<compile_context>
chip_gen: v6e
topology: v6e:2x2x1
jax: 0.10.0
libtpu: 0.0.40
codegen_flags: <defaults>
</compile_context>

<pallas_src>
import functools

import jax
import jax.numpy as jnp
from jax import lax
from jax.experimental import pallas as pl
from jax.experimental.pallas import tpu as pltpu

K = 5     # conv kernel size
PAD = 2   # padding used by every conv layer

CH = (2, 32, 64, 128, 256)   # channels: input, conv1..conv4


# ----------------------------------------------------------------------------
# Fused whole-network kernel (one batch element per grid step)
# ----------------------------------------------------------------------------
def _starnet_kernel(x1p_ref,
                    w1_ref, b1_ref, w2_ref, b2_ref, w3_ref, b3_ref,
                    w4_ref, b4_ref, wf1_ref, bf1_ref, wf2_ref, bf2_ref,
                    o_ref,
                    x2p_ref, x3p_ref, x4p_ref, s2_ref, s3_ref, s4_ref,
                    *, out_hw):
    (H1, W1), (H2, W2), (H3, W3), (H4, W4) = out_hw
    C1, C2, C3 = CH[1], CH[2], CH[3]

    def scatter_phase_split(xp_ref, y, hout, wout, c):
        # y: (hout*wout, c) f32 post-ReLU activations of the producing layer.
        # Store (as bf16) into the consumer's zero-padded, (H,W)-phase-split input
        # scratch of shape (2, 2, (hout+4)//2, (wout+4)//2, c) so every one of the
        # consumer's 25 patch taps becomes a contiguous static slice.
        xp_ref[...] = jnp.zeros_like(xp_ref)          # refresh zero borders each step
        yb = y.astype(xp_ref.dtype).reshape(hout // 2, 2, wout // 2, 2, c)
        for ph in range(2):
            for pw in range(2):
                xp_ref[ph, pw, pl.ds(1, hout // 2), pl.ds(1, wout // 2), :] = \
                    yb[:, ph, :, pw, :]

    def conv_s2(xp_ref, slab_ref, w_ref, b_ref, hout, wout, cin):
        # 5x5 / stride-2 conv + bias + ReLU as ONE MXU contraction: build the
        # (hout*wout, 25*cin) im2col slab in VMEM (25 contiguous copies), then a
        # single dot against the (25*cin, cout) weight slab, f32 accumulation.
        m = hout * wout
        for ky in range(K):
            for kx in range(K):
                v = xp_ref[ky % 2, kx % 2,
                           pl.ds(ky // 2, hout), pl.ds(kx // 2, wout), :]
                slab_ref[:, pl.ds((ky * K + kx) * cin, cin)] = v.reshape(m, cin)
        acc = jnp.dot(slab_ref[...], w_ref[...],
                      preferred_element_type=jnp.float32)
        return jnp.maximum(acc + b_ref[...], 0.0)               # (m, cout) f32

    # conv1 (stride 1): the wrapper already delivered im2col patches -> one dot.
    a1 = jnp.dot(x1p_ref[...], w1_ref[...], preferred_element_type=jnp.float32)
    a1 = jnp.maximum(a1 + b1_ref[...], 0.0)                     # (H1*W1, 32)
    scatter_phase_split(x2p_ref, a1, H1, W1, C1)

    a2 = conv_s2(x2p_ref, s2_ref, w2_ref, b2_ref, H2, W2, C1)   # (H2*W2, 64)
    scatter_phase_split(x3p_ref, a2, H2, W2, C2)

    a3 = conv_s2(x3p_ref, s3_ref, w3_ref, b3_ref, H3, W3, C2)   # (H3*W3, 128)
    scatter_phase_split(x4p_ref, a3, H3, W3, C3)

    a4 = conv_s2(x4p_ref, s4_ref, w4_ref, b4_ref, H4, W4, C3)   # (H4*W4, 256)

    # Global average pool + fc1 + ReLU + fc2 (in-register; one tiny HBM store).
    pooled = jnp.mean(a4, axis=0, keepdims=True)                # (1, 256) f32
    h = jnp.dot(pooled.astype(jnp.bfloat16), wf1_ref[...],
                preferred_element_type=jnp.float32)
    h = jnp.maximum(h + bf1_ref[...], 0.0)                      # (1, 128) f32
    y = jnp.dot(h.astype(jnp.bfloat16), wf2_ref[...],
                preferred_element_type=jnp.float32)
    o_ref[...] = y + bf2_ref[...]                               # (1, 1) f32


# ----------------------------------------------------------------------------
# Wrapper: weight/patch layout prep + single pallas_call
# ----------------------------------------------------------------------------
def starnet_forward(x_nchw, params):
    B, cin, H, W = x_nchw.shape
    assert cin == CH[0] and H % 8 == 0 and W % 8 == 0, (cin, H, W)
    H1, W1 = H, W                      # conv1 out (stride 1, 'same')
    H2, W2 = H1 // 2, W1 // 2          # conv2 out
    H3, W3 = H2 // 2, W2 // 2          # conv3 out
    H4, W4 = H3 // 2, W3 // 2          # conv4 out
    C1, C2, C3 = CH[1], CH[2], CH[3]

    # conv1 patch extraction of the raw network input (tiny) done by XLA; all
    # other layers build their patches inside the fused kernel.
    x = jnp.transpose(x_nchw, (0, 2, 3, 1))
    xp = jnp.pad(x, ((0, 0), (PAD, PAD), (PAD, PAD), (0, 0)))
    x1p = jnp.concatenate(
        [xp[:, ky:ky + H1, kx:kx + W1, :] for ky in range(K) for kx in range(K)],
        axis=-1).reshape(B, H1 * W1, K * K * CH[0]).astype(jnp.bfloat16)

    def wslab(w):   # (Cout, Cin, 5, 5) -> (25*Cin, Cout) bf16, row order (ky, kx, cin)
        cout, ci = w.shape[0], w.shape[1]
        return jnp.transpose(w, (2, 3, 1, 0)).reshape(K * K * ci, cout).astype(jnp.bfloat16)

    def brow(b):
        return b.reshape(1, -1).astype(jnp.float32)

    args = (
        x1p,
        wslab(params["conv1_w"]), brow(params["conv1_b"]),
        wslab(params["conv2_w"]), brow(params["conv2_b"]),
        wslab(params["conv3_w"]), brow(params["conv3_b"]),
        wslab(params["conv4_w"]), brow(params["conv4_b"]),
        params["fc1_w"].T.astype(jnp.bfloat16), brow(params["fc1_b"]),
        params["fc2_w"].T.astype(jnp.bfloat16), brow(params["fc2_b"]),
    )

    def full2d(a):
        return pl.BlockSpec(a.shape, lambda b: (0, 0))

    in_specs = [pl.BlockSpec((None, H1 * W1, K * K * CH[0]), lambda b: (b, 0, 0))]
    in_specs += [full2d(a) for a in args[1:]]

    scratch_shapes = [
        pltpu.VMEM((2, 2, (H1 + 4) // 2, (W1 + 4) // 2, C1), jnp.bfloat16),  # conv2 in
        pltpu.VMEM((2, 2, (H2 + 4) // 2, (W2 + 4) // 2, C2), jnp.bfloat16),  # conv3 in
        pltpu.VMEM((2, 2, (H3 + 4) // 2, (W3 + 4) // 2, C3), jnp.bfloat16),  # conv4 in
        pltpu.VMEM((H2 * W2, K * K * C1), jnp.bfloat16),                     # conv2 slab
        pltpu.VMEM((H3 * W3, K * K * C2), jnp.bfloat16),                     # conv3 slab
        pltpu.VMEM((H4 * W4, K * K * C3), jnp.bfloat16),                     # conv4 slab
    ]

    kernel = functools.partial(
        _starnet_kernel,
        out_hw=((H1, W1), (H2, W2), (H3, W3), (H4, W4)))

    out = pl.pallas_call(
        kernel,
        out_shape=jax.ShapeDtypeStruct((B, 1, 1), jnp.float32),
        grid=(B,),
        in_specs=in_specs,
        out_specs=pl.BlockSpec((None, 1, 1), lambda b: (b, 0, 0)),
        scratch_shapes=scratch_shapes,
        compiler_params=pltpu.CompilerParams(dimension_semantics=("parallel",)),
    )(*args)
    return out.reshape(B, 1)


# ----------------------------------------------------------------------------
# Pure-JAX f32 reference (for a tolerance check against the bf16 kernel)
# ----------------------------------------------------------------------------
def starnet_reference(x_nchw, params):
    x = jnp.transpose(x_nchw, (0, 2, 3, 1)).astype(jnp.float32)

    def conv(x, w, b, stride):
        y = lax.conv_general_dilated(
            x, jnp.transpose(w, (2, 3, 1, 0)), (stride, stride),
            ((PAD, PAD), (PAD, PAD)),
            dimension_numbers=("NHWC", "HWIO", "NHWC"))
        return jax.nn.relu(y + b.reshape(1, 1, 1, -1))

    x = conv(x, params["conv1_w"], params["conv1_b"], 1)
    x = conv(x, params["conv2_w"], params["conv2_b"], 2)
    x = conv(x, params["conv3_w"], params["conv3_b"], 2)
    x = conv(x, params["conv4_w"], params["conv4_b"], 2)
    p = jnp.mean(x, axis=(1, 2))
    h = jax.nn.relu(p @ params["fc1_w"].T + params["fc1_b"])
    return h @ params["fc2_w"].T + params["fc2_b"]


# ----------------------------------------------------------------------------
# Parameters (deterministic, PyTorch-like fan_in-uniform init, f32 master copy)
# ----------------------------------------------------------------------------
def init_params(key):
    params = {}

    def uniform(k, shape, bound):
        return jax.random.uniform(k, shape, jnp.float32, -bound, bound)

    conv_defs = [("conv1", 2, 32), ("conv2", 32, 64),
                 ("conv3", 64, 128), ("conv4", 128, 256)]
    for name, ci, co in conv_defs:
        key, kw, kb = jax.random.split(key, 3)
        bound = 1.0 / jnp.sqrt(ci * K * K)
        params[name + "_w"] = uniform(kw, (co, ci, K, K), bound)   # PyTorch layout
        params[name + "_b"] = uniform(kb, (co,), bound)

    fc_defs = [("fc1", 256, 128), ("fc2", 128, 1)]
    for name, fin, fout in fc_defs:
        key, kw, kb = jax.random.split(key, 3)
        bound = 1.0 / jnp.sqrt(fin)
        params[name + "_w"] = uniform(kw, (fout, fin), bound)      # PyTorch layout
        params[name + "_b"] = uniform(kb, (fout,), bound)
    return params


if __name__ == "__main__":
    key = jax.random.PRNGKey(0)
    key_params, key_x = jax.random.split(key)
    params = init_params(key_params)

    # Input matches the PyTorch module: NCHW with 2 input channels.
    B, C, H, W = 2, 2, 16, 16
    x = jax.random.normal(key_x, (B, C, H, W), dtype=jnp.float32)

    fwd = jax.jit(lambda inp: starnet_forward(inp, params))
    out = jax.block_until_ready(fwd(x))

    assert out.shape == (B, 1), out.shape
    assert bool(jnp.all(jnp.isfinite(out)))

    # Tolerance check vs. a pure-JAX f32 reference (kernel uses bf16 MXU operands
    # with f32 accumulation, so ~1%-level deviations are expected).
    ref = starnet_reference(x, params)
    err = float(jnp.max(jnp.abs(out - ref)))
    scale = float(jnp.max(jnp.abs(ref)))
    assert err <= 0.1 * scale + 2e-2, (err, scale)

    print("KERNEL_OK")
</pallas_src>

<mosaic_0001>
module attributes {stable_mosaic.version = 11 : i64} {
  func.func @_starnet_kernel(%arg0: i32, %arg1: memref<1x256x50xbf16, #tpu.memory_space<vmem>>, %arg2: memref<50x32xbf16, #tpu.memory_space<vmem>>, %arg3: memref<1x32xf32, #tpu.memory_space<vmem>>, %arg4: memref<800x64xbf16, #tpu.memory_space<vmem>>, %arg5: memref<1x64xf32, #tpu.memory_space<vmem>>, %arg6: memref<1600x128xbf16, #tpu.memory_space<vmem>>, %arg7: memref<1x128xf32, #tpu.memory_space<vmem>>, %arg8: memref<3200x256xbf16, #tpu.memory_space<vmem>>, %arg9: memref<1x256xf32, #tpu.memory_space<vmem>>, %arg10: memref<256x128xbf16, #tpu.memory_space<vmem>>, %arg11: memref<1x128xf32, #tpu.memory_space<vmem>>, %arg12: memref<128x1xbf16, #tpu.memory_space<vmem>>, %arg13: memref<1x1xf32, #tpu.memory_space<vmem>>, %arg14: memref<1x1x1xf32, #tpu.memory_space<vmem>>, %arg15: memref<2x2x10x10x32xbf16, #tpu.memory_space<vmem>>, %arg16: memref<2x2x6x6x64xbf16, #tpu.memory_space<vmem>>, %arg17: memref<2x2x4x4x128xbf16, #tpu.memory_space<vmem>>, %arg18: memref<64x800xbf16, #tpu.memory_space<vmem>>, %arg19: memref<16x1600xbf16, #tpu.memory_space<vmem>>, %arg20: memref<4x3200xbf16, #tpu.memory_space<vmem>>) attributes {dimension_semantics = [#tpu.dimension_semantics<parallel>], iteration_bounds = array<i64: 2>, scalar_prefetch = 0 : i64, scratch_operands = 6 : i64, tpu.core_type = #tpu.core_type<tc>, window_params = [{transform_indices = @transform_0, window_bounds = array<i64: 1, 256, 50>}, {pipeline_mode = #tpu.pipeline_mode<synchronous>, transform_indices = @transform_1, window_bounds = array<i64: 50, 32>}, {pipeline_mode = #tpu.pipeline_mode<synchronous>, transform_indices = @transform_2, window_bounds = array<i64: 1, 32>}, {pipeline_mode = #tpu.pipeline_mode<synchronous>, transform_indices = @transform_3, window_bounds = array<i64: 800, 64>}, {pipeline_mode = #tpu.pipeline_mode<synchronous>, transform_indices = @transform_4, window_bounds = array<i64: 1, 64>}, {pipeline_mode = #tpu.pipeline_mode<synchronous>, transform_indices = @transform_5, window_bounds = array<i64: 1600, 128>}, {pipeline_mode = #tpu.pipeline_mode<synchronous>, transform_indices = @transform_6, window_bounds = array<i64: 1, 128>}, {pipeline_mode = #tpu.pipeline_mode<synchronous>, transform_indices = @transform_7, window_bounds = array<i64: 3200, 256>}, {pipeline_mode = #tpu.pipeline_mode<synchronous>, transform_indices = @transform_8, window_bounds = array<i64: 1, 256>}, {pipeline_mode = #tpu.pipeline_mode<synchronous>, transform_indices = @transform_9, window_bounds = array<i64: 256, 128>}, {pipeline_mode = #tpu.pipeline_mode<synchronous>, transform_indices = @transform_10, window_bounds = array<i64: 1, 128>}, {pipeline_mode = #tpu.pipeline_mode<synchronous>, transform_indices = @transform_11, window_bounds = array<i64: 128, 1>}, {pipeline_mode = #tpu.pipeline_mode<synchronous>, transform_indices = @transform_12, window_bounds = array<i64: 1, 1>}, {transform_indices = @transform_13, window_bounds = array<i64: 1, 1, 1>}]} {
    %c0 = arith.constant 0 : index
    %c0_0 = arith.constant 0 : index
    %c0_1 = arith.constant 0 : index
    %0 = vector.load %arg1[%c0, %c0_0, %c0_1] : memref<1x256x50xbf16, #tpu.memory_space<vmem>>, vector<1x256x50xbf16>
    %1 = vector.shape_cast %0 : vector<1x256x50xbf16> to vector<256x50xbf16>
    %c0_2 = arith.constant 0 : index
    %c0_3 = arith.constant 0 : index
    %2 = vector.load %arg2[%c0_2, %c0_3] : memref<50x32xbf16, #tpu.memory_space<vmem>>, vector<50x32xbf16>
    %cst = arith.constant dense<0.000000e+00> : vector<256x32xf32>
    %3 = tpu.matmul %1, %2, %cst {dimension_numbers = #tpu.dot_dimension_numbers<[1], [0], [0], [1], [0, 0, 1, 1], [], []>} : vector<256x50xbf16>, vector<50x32xbf16>, vector<256x32xf32> -> vector<256x32xf32>
    %c0_4 = arith.constant 0 : index
    %c0_5 = arith.constant 0 : index
    %4 = vector.load %arg3[%c0_4, %c0_5] : memref<1x32xf32, #tpu.memory_space<vmem>>, vector<1x32xf32>
    %5 = vector.broadcast %4 : vector<1x32xf32> to vector<256x32xf32>
    %6 = arith.addf %3, %5 : vector<256x32xf32>
    %cst_6 = arith.constant 0.000000e+00 : f32
    %7 = vector.broadcast %cst_6 : f32 to vector<256x32xf32>
    %8 = arith.maximumf %6, %7 : vector<256x32xf32>
    %cst_7 = arith.constant 0.000000e+00 : bf16
    %9 = vector.broadcast %cst_7 : bf16 to vector<2x2x10x10x32xbf16>
    %c0_8 = arith.constant 0 : index
    %c0_9 = arith.constant 0 : index
    %c0_10 = arith.constant 0 : index
    %c0_11 = arith.constant 0 : index
    %c0_12 = arith.constant 0 : index
    %10 = vector.load %arg15[%c0_8, %c0_9, %c0_10, %c0_11, %c0_12] : memref<2x2x10x10x32xbf16, #tpu.memory_space<vmem>>, vector<2x2x10x10x32xbf16>
    tpu.vector_store %arg15[%c0_8, %c0_9, %c0_10, %c0_11, %c0_12], %9 {strides = array<i32>} : memref<2x2x10x10x32xbf16, #tpu.memory_space<vmem>>, vector<2x2x10x10x32xbf16>,
    %11 = arith.truncf %8 : vector<256x32xf32> to vector<256x32xbf16>
    %12 = vector.shape_cast %11 : vector<256x32xbf16> to vector<8x2x8x2x32xbf16>
    %13 = vector.extract_strided_slice %12 {offsets = [0, 0, 0, 0, 0], sizes = [8, 1, 8, 1, 32], strides = [1, 1, 1, 1, 1]} : vector<8x2x8x2x32xbf16> to vector<8x1x8x1x32xbf16>
    %14 = vector.shape_cast %13 : vector<8x1x8x1x32xbf16> to vector<8x8x32xbf16>
    %c0_13 = arith.constant 0 : index
    %c0_14 = arith.constant 0 : index
    %c1 = arith.constant 1 : index
    %c1_15 = arith.constant 1 : index
    %c0_16 = arith.constant 0 : index
    %15 = vector.load %arg15[%c0_13, %c0_14, %c1, %c1_15, %c0_16] : memref<2x2x10x10x32xbf16, #tpu.memory_space<vmem>>, vector<1x1x8x8x32xbf16>
    %16 = vector.shape_cast %15 : vector<1x1x8x8x32xbf16> to vector<8x8x32xbf16>
    %17 = vector.shape_cast %14 : vector<8x8x32xbf16> to vector<1x1x8x8x32xbf16>
    tpu.vector_store %arg15[%c0_13, %c0_14, %c1, %c1_15, %c0_16], %17 {strides = array<i32>} : memref<2x2x10x10x32xbf16, #tpu.memory_space<vmem>>, vector<1x1x8x8x32xbf16>,
    %18 = vector.extract_strided_slice %12 {offsets = [0, 0, 0, 1, 0], sizes = [8, 1, 8, 1, 32], strides = [1, 1, 1, 1, 1]} : vector<8x2x8x2x32xbf16> to vector<8x1x8x1x32xbf16>
    %19 = vector.shape_cast %18 : vector<8x1x8x1x32xbf16> to vector<8x8x32xbf16>
    %c0_17 = arith.constant 0 : index
    %c1_18 = arith.constant 1 : index
    %c1_19 = arith.constant 1 : index
    %c1_20 = arith.constant 1 : index
    %c0_21 = arith.constant 0 : index
    %20 = vector.load %arg15[%c0_17, %c1_18, %c1_19, %c1_20, %c0_21] : memref<2x2x10x10x32xbf16, #tpu.memory_space<vmem>>, vector<1x1x8x8x32xbf16>
    %21 = vector.shape_cast %20 : vector<1x1x8x8x32xbf16> to vector<8x8x32xbf16>
    %22 = vector.shape_cast %19 : vector<8x8x32xbf16> to vector<1x1x8x8x32xbf16>
    tpu.vector_store %arg15[%c0_17, %c1_18, %c1_19, %c1_20, %c0_21], %22 {strides = array<i32>} : memref<2x2x10x10x32xbf16, #tpu.memory_space<vmem>>, vector<1x1x8x8x32xbf16>,
    %23 = vector.extract_strided_slice %12 {offsets = [0, 1, 0, 0, 0], sizes = [8, 1, 8, 1, 32], strides = [1, 1, 1, 1, 1]} : vector<8x2x8x2x32xbf16> to vector<8x1x8x1x32xbf16>
    %24 = vector.shape_cast %23 : vector<8x1x8x1x32xbf16> to vector<8x8x32xbf16>
    %c1_22 = arith.constant 1 : index
    %c0_23 = arith.constant 0 : index
    %c1_24 = arith.constant 1 : index
    %c1_25 = arith.constant 1 : index
    %c0_26 = arith.constant 0 : index
    %25 = vector.load %arg15[%c1_22, %c0_23, %c1_24, %c1_25, %c0_26] : memref<2x2x10x10x32xbf16, #tpu.memory_space<vmem>>, vector<1x1x8x8x32xbf16>
    %26 = vector.shape_cast %25 : vector<1x1x8x8x32xbf16> to vector<8x8x32xbf16>
    %27 = vector.shape_cast %24 : vector<8x8x32xbf16> to vector<1x1x8x8x32xbf16>
    tpu.vector_store %arg15[%c1_22, %c0_23, %c1_24, %c1_25, %c0_26], %27 {strides = array<i32>} : memref<2x2x10x10x32xbf16, #tpu.memory_space<vmem>>, vector<1x1x8x8x32xbf16>,
    %28 = vector.extract_strided_slice %12 {offsets = [0, 1, 0, 1, 0], sizes = [8, 1, 8, 1, 32], strides = [1, 1, 1, 1, 1]} : vector<8x2x8x2x32xbf16> to vector<8x1x8x1x32xbf16>
    %29 = vector.shape_cast %28 : vector<8x1x8x1x32xbf16> to vector<8x8x32xbf16>
    %c1_27 = arith.constant 1 : index
    %c1_28 = arith.constant 1 : index
    %c1_29 = arith.constant 1 : index
    %c1_30 = arith.constant 1 : index
    %c0_31 = arith.constant 0 : index
    %30 = vector.load %arg15[%c1_27, %c1_28, %c1_29, %c1_30, %c0_31] : memref<2x2x10x10x32xbf16, #tpu.memory_space<vmem>>, vector<1x1x8x8x32xbf16>
    %31 = vector.shape_cast %30 : vector<1x1x8x8x32xbf16> to vector<8x8x32xbf16>
    %32 = vector.shape_cast %29 : vector<8x8x32xbf16> to vector<1x1x8x8x32xbf16>
    tpu.vector_store %arg15[%c1_27, %c1_28, %c1_29, %c1_30, %c0_31], %32 {strides = array<i32>} : memref<2x2x10x10x32xbf16, #tpu.memory_space<vmem>>, vector<1x1x8x8x32xbf16>,
    %c0_32 = arith.constant 0 : index
    %c0_33 = arith.constant 0 : index
    %c0_34 = arith.constant 0 : index
    %c0_35 = arith.constant 0 : index
    %c0_36 = arith.constant 0 : index
    %33 = vector.load %arg15[%c0_32, %c0_33, %c0_34, %c0_35, %c0_36] : memref<2x2x10x10x32xbf16, #tpu.memory_space<vmem>>, vector<1x1x8x8x32xbf16>
    %34 = vector.shape_cast %33 : vector<1x1x8x8x32xbf16> to vector<8x8x32xbf16>
    %35 = vector.shape_cast %34 : vector<8x8x32xbf16> to vector<64x32xbf16>
    %c0_37 = arith.constant 0 : index
    %c0_38 = arith.constant 0 : index
    %36 = vector.load %arg18[%c0_37, %c0_38] : memref<64x800xbf16, #tpu.memory_space<vmem>>, vector<64x32xbf16>
    tpu.vector_store %arg18[%c0_37, %c0_38], %35 {strides = array<i32>} : memref<64x800xbf16, #tpu.memory_space<vmem>>, vector<64x32xbf16>,
    %c0_39 = arith.constant 0 : index
    %c1_40 = arith.constant 1 : index
    %c0_41 = arith.constant 0 : index
    %c0_42 = arith.constant 0 : index
    %c0_43 = arith.constant 0 : index
    %37 = vector.load %arg15[%c0_39, %c1_40, %c0_41, %c0_42, %c0_43] : memref<2x2x10x10x32xbf16, #tpu.memory_space<vmem>>, vector<1x1x8x8x32xbf16>
    %38 = vector.shape_cast %37 : vector<1x1x8x8x32xbf16> to vector<8x8x32xbf16>
    %39 = vector.shape_cast %38 : vector<8x8x32xbf16> to vector<64x32xbf16>
    %c0_44 = arith.constant 0 : index
    %c32 = arith.constant 32 : index
    %40 = vector.load %arg18[%c0_44, %c32] : memref<64x800xbf16, #tpu.memory_space<vmem>>, vector<64x32xbf16>
    tpu.vector_store %arg18[%c0_44, %c32], %39 {strides = array<i32>} : memref<64x800xbf16, #tpu.memory_space<vmem>>, vector<64x32xbf16>,
    %c0_45 = arith.constant 0 : index
    %c0_46 = arith.constant 0 : index
    %c0_47 = arith.constant 0 : index
    %c1_48 = arith.constant 1 : index
    %c0_49 = arith.constant 0 : index
    %41 = vector.load %arg15[%c0_45, %c0_46, %c0_47, %c1_48, %c0_49] : memref<2x2x10x10x32xbf16, #tpu.memory_space<vmem>>, vector<1x1x8x8x32xbf16>
    %42 = vector.shape_cast %41 : vector<1x1x8x8x32xbf16> to vector<8x8x32xbf16>
    %43 = vector.shape_cast %42 : vector<8x8x32xbf16> to vector<64x32xbf16>
    %c0_50 = arith.constant 0 : index
    %c64 = arith.constant 64 : index
    %44 = vector.load %arg18[%c0_50, %c64] : memref<64x800xbf16, #tpu.memory_space<vmem>>, vector<64x32xbf16>
    tpu.vector_store %arg18[%c0_50, %c64], %43 {strides = array<i32>} : memref<64x800xbf16, #tpu.memory_space<vmem>>, vector<64x32xbf16>,
    %c0_51 = arith.constant 0 : index
    %c1_52 = arith.constant 1 : index
    %c0_53 = arith.constant 0 : index
    %c1_54 = arith.constant 1 : index
    %c0_55 = arith.constant 0 : index
    %45 = vector.load %arg15[%c0_51, %c1_52, %c0_53, %c1_54, %c0_55] : memref<2x2x10x10x32xbf16, #tpu.memory_space<vmem>>, vector<1x1x8x8x32xbf16>
    %46 = vector.shape_cast %45 : vector<1x1x8x8x32xbf16> to vector<8x8x32xbf16>
    %47 = vector.shape_cast %46 : vector<8x8x32xbf16> to vector<64x32xbf16>
    %c0_56 = arith.constant 0 : index
    %c96 = arith.constant 96 : index
    %48 = vector.load %arg18[%c0_56, %c96] : memref<64x800xbf16, #tpu.memory_space<vmem>>, vector<64x32xbf16>
    tpu.vector_store %arg18[%c0_56, %c96], %47 {strides = array<i32>} : memref<64x800xbf16, #tpu.memory_space<vmem>>, vector<64x32xbf16>,
    %c0_57 = arith.constant 0 : index
    %c0_58 = arith.constant 0 : index
    %c0_59 = arith.constant 0 : index
    %c2 = arith.constant 2 : index
    %c0_60 = arith.constant 0 : index
    %49 = vector.load %arg15[%c0_57, %c0_58, %c0_59, %c2, %c0_60] : memref<2x2x10x10x32xbf16, #tpu.memory_space<vmem>>, vector<1x1x8x8x32xbf16>
    %50 = vector.shape_cast %49 : vector<1x1x8x8x32xbf16> to vector<8x8x32xbf16>
    %51 = vector.shape_cast %50 : vector<8x8x32xbf16> to vector<64x32xbf16>
    %c0_61 = arith.constant 0 : index
    %c128 = arith.constant 128 : index
    %52 = vector.load %arg18[%c0_61, %c128] : memref<64x800xbf16, #tpu.memory_space<vmem>>, vector<64x32xbf16>
    tpu.vector_store %arg18[%c0_61, %c128], %51 {strides = array<i32>} : memref<64x800xbf16, #tpu.memory_space<vmem>>, vector<64x32xbf16>,
    %c1_62 = arith.constant 1 : index
    %c0_63 = arith.constant 0 : index
    %c0_64 = arith.constant 0 : index
    %c0_65 = arith.constant 0 : index
    %c0_66 = arith.constant 0 : index
    %53 = vector.load %arg15[%c1_62, %c0_63, %c0_64, %c0_65, %c0_66] : memref<2x2x10x10x32xbf16, #tpu.memory_space<vmem>>, vector<1x1x8x8x32xbf16>
    %54 = vector.shape_cast %53 : vector<1x1x8x8x32xbf16> to vector<8x8x32xbf16>
    %55 = vector.shape_cast %54 : vector<8x8x32xbf16> to vector<64x32xbf16>
    %c0_67 = arith.constant 0 : index
    %c160 = arith.constant 160 : index
    %56 = vector.load %arg18[%c0_67, %c160] : memref<64x800xbf16, #tpu.memory_space<vmem>>, vector<64x32xbf16>
    tpu.vector_store %arg18[%c0_67, %c160], %55 {strides = array<i32>} : memref<64x800xbf16, #tpu.memory_space<vmem>>, vector<64x32xbf16>,
    %c1_68 = arith.constant 1 : index
    %c1_69 = arith.constant 1 : index
    %c0_70 = arith.constant 0 : index
    %c0_71 = arith.constant 0 : index
    %c0_72 = arith.constant 0 : index
    %57 = vector.load %arg15[%c1_68, %c1_69, %c0_70, %c0_71, %c0_72] : memref<2x2x10x10x32xbf16, #tpu.memory_space<vmem>>, vector<1x1x8x8x32xbf16>
    %58 = vector.shape_cast %57 : vector<1x1x8x8x32xbf16> to vector<8x8x32xbf16>
    %59 = vector.shape_cast %58 : vector<8x8x32xbf16> to vector<64x32xbf16>
    %c0_73 = arith.constant 0 : index
    %c192 = arith.constant 192 : index
    %60 = vector.load %arg18[%c0_73, %c192] : memref<64x800xbf16, #tpu.memory_space<vmem>>, vector<64x32xbf16>
    tpu.vector_store %arg18[%c0_73, %c192], %59 {strides = array<i32>} : memref<64x800xbf16, #tpu.memory_space<vmem>>, vector<64x32xbf16>,
    %c1_74 = arith.constant 1 : index
    %c0_75 = arith.constant 0 : index
    %c0_76 = arith.constant 0 : index
    %c1_77 = arith.constant 1 : index
    %c0_78 = arith.constant 0 : index
    %61 = vector.load %arg15[%c1_74, %c0_75, %c0_76, %c1_77, %c0_78] : memref<2x2x10x10x32xbf16, #tpu.memory_space<vmem>>, vector<1x1x8x8x32xbf16>
    %62 = vector.shape_cast %61 : vector<1x1x8x8x32xbf16> to vector<8x8x32xbf16>
    %63 = vector.shape_cast %62 : vector<8x8x32xbf16> to vector<64x32xbf16>
    %c0_79 = arith.constant 0 : index
    %c224 = arith.constant 224 : index
    %64 = vector.load %arg18[%c0_79, %c224] : memref<64x800xbf16, #tpu.memory_space<vmem>>, vector<64x32xbf16>
    tpu.vector_store %arg18[%c0_79, %c224], %63 {strides = array<i32>} : memref<64x800xbf16, #tpu.memory_space<vmem>>, vector<64x32xbf16>,
    %c1_80 = arith.constant 1 : index
    %c1_81 = arith.constant 1 : index
    %c0_82 = arith.constant 0 : index
    %c1_83 = arith.constant 1 : index
    %c0_84 = arith.constant 0 : index
    %65 = vector.load %arg15[%c1_80, %c1_81, %c0_82, %c1_83, %c0_84] : memref<2x2x10x10x32xbf16, #tpu.memory_space<vmem>>, vector<1x1x8x8x32xbf16>
    %66 = vector.shape_cast %65 : vector<1x1x8x8x32xbf16> to vector<8x8x32xbf16>
    %67 = vector.shape_cast %66 : vector<8x8x32xbf16> to vector<64x32xbf16>
    %c0_85 = arith.constant 0 : index
    %c256 = arith.constant 256 : index
    %68 = vector.load %arg18[%c0_85, %c256] : memref<64x800xbf16, #tpu.memory_space<vmem>>, vector<64x32xbf16>
    tpu.vector_store %arg18[%c0_85, %c256], %67 {strides = array<i32>} : memref<64x800xbf16, #tpu.memory_space<vmem>>, vector<64x32xbf16>,
    %c1_86 = arith.constant 1 : index
    %c0_87 = arith.constant 0 : index
    %c0_88 = arith.constant 0 : index
    %c2_89 = arith.constant 2 : index
    %c0_90 = arith.constant 0 : index
    %69 = vector.load %arg15[%c1_86, %c0_87, %c0_88, %c2_89, %c0_90] : memref<2x2x10x10x32xbf16, #tpu.memory_space<vmem>>, vector<1x1x8x8x32xbf16>
    %70 = vector.shape_cast %69 : vector<1x1x8x8x32xbf16> to vector<8x8x32xbf16>
    %71 = vector.shape_cast %70 : vector<8x8x32xbf16> to vector<64x32xbf16>
    %c0_91 = arith.constant 0 : index
    %c288 = arith.constant 288 : index
    %72 = vector.load %arg18[%c0_91, %c288] : memref<64x800xbf16, #tpu.memory_space<vmem>>, vector<64x32xbf16>
    tpu.vector_store %arg18[%c0_91, %c288], %71 {strides = array<i32>} : memref<64x800xbf16, #tpu.memory_space<vmem>>, vector<64x32xbf16>,
    %c0_92 = arith.constant 0 : index
    %c0_93 = arith.constant 0 : index
    %c1_94 = arith.constant 1 : index
    %c0_95 = arith.constant 0 : index
    %c0_96 = arith.constant 0 : index
    %73 = vector.load %arg15[%c0_92, %c0_93, %c1_94, %c0_95, %c0_96] : memref<2x2x10x10x32xbf16, #tpu.memory_space<vmem>>, vector<1x1x8x8x32xbf16>
    %74 = vector.shape_cast %73 : vector<1x1x8x8x32xbf16> to vector<8x8x32xbf16>
    %75 = vector.shape_cast %74 : vector<8x8x32xbf16> to vector<64x32xbf16>
    %c0_97 = arith.constant 0 : index
    %c320 = arith.constant 320 : index
    %76 = vector.load %arg18[%c0_97, %c320] : memref<64x800xbf16, #tpu.memory_space<vmem>>, vector<64x32xbf16>
    tpu.vector_store %arg18[%c0_97, %c320], %75 {strides = array<i32>} : memref<64x800xbf16, #tpu.memory_space<vmem>>, vector<64x32xbf16>,
    %c0_98 = arith.constant 0 : index
    %c1_99 = arith.constant 1 : index
    %c1_100 = arith.constant 1 : index
    %c0_101 = arith.constant 0 : index
    %c0_102 = arith.constant 0 : index
    %77 = vector.load %arg15[%c0_98, %c1_99, %c1_100, %c0_101, %c0_102] : memref<2x2x10x10x32xbf16, #tpu.memory_space<vmem>>, vector<1x1x8x8x32xbf16>
    %78 = vector.shape_cast %77 : vector<1x1x8x8x32xbf16> to vector<8x8x32xbf16>
    %79 = vector.shape_cast %78 : vector<8x8x32xbf16> to vector<64x32xbf16>
    %c0_103 = arith.constant 0 : index
    %c352 = arith.constant 352 : index
    %80 = vector.load %arg18[%c0_103, %c352] : memref<64x800xbf16, #tpu.memory_space<vmem>>, vector<64x32xbf16>
    tpu.vector_store %arg18[%c0_103, %c352], %79 {strides = array<i32>} : memref<64x800xbf16, #tpu.memory_space<vmem>>, vector<64x32xbf16>,
    %c0_104 = arith.constant 0 : index
    %c0_105 = arith.constant 0 : index
    %c1_106 = arith.constant 1 : index
    %c1_107 = arith.constant 1 : index
    %c0_108 = arith.constant 0 : index
    %81 = vector.load %arg15[%c0_104, %c0_105, %c1_106, %c1_107, %c0_108] : memref<2x2x10x10x32xbf16, #tpu.memory_space<vmem>>, vector<1x1x8x8x32xbf16>
    %82 = vector.shape_cast %81 : vector<1x1x8x8x32xbf16> to vector<8x8x32xbf16>
    %83 = vector.shape_cast %82 : vector<8x8x32xbf16> to vector<64x32xbf16>
    %c0_109 = arith.constant 0 : index
    %c384 = arith.constant 384 : index
    %84 = vector.load %arg18[%c0_109, %c384] : memref<64x800xbf16, #tpu.memory_space<vmem>>, vector<64x32xbf16>
    tpu.vector_store %arg18[%c0_109, %c384], %83 {strides = array<i32>} : memref<64x800xbf16, #tpu.memory_space<vmem>>, vector<64x32xbf16>,
    %c0_110 = arith.constant 0 : index
    %c1_111 = arith.constant 1 : index
    %c1_112 = arith.constant 1 : index
    %c1_113 = arith.constant 1 : index
    %c0_114 = arith.constant 0 : index
    %85 = vector.load %arg15[%c0_110, %c1_111, %c1_112, %c1_113, %c0_114] : memref<2x2x10x10x32xbf16, #tpu.memory_space<vmem>>, vector<1x1x8x8x32xbf16>
    %86 = vector.shape_cast %85 : vector<1x1x8x8x32xbf16> to vector<8x8x32xbf16>
    %87 = vector.shape_cast %86 : vector<8x8x32xbf16> to vector<64x32xbf16>
    %c0_115 = arith.constant 0 : index
    %c416 = arith.constant 416 : index
    %88 = vector.load %arg18[%c0_115, %c416] : memref<64x800xbf16, #tpu.memory_space<vmem>>, vector<64x32xbf16>
    tpu.vector_store %arg18[%c0_115, %c416], %87 {strides = array<i32>} : memref<64x800xbf16, #tpu.memory_space<vmem>>, vector<64x32xbf16>,
    %c0_116 = arith.constant 0 : index
    %c0_117 = arith.constant 0 : index
    %c1_118 = arith.constant 1 : index
    %c2_119 = arith.constant 2 : index
    %c0_120 = arith.constant 0 : index
    %89 = vector.load %arg15[%c0_116, %c0_117, %c1_118, %c2_119, %c0_120] : memref<2x2x10x10x32xbf16, #tpu.memory_space<vmem>>, vector<1x1x8x8x32xbf16>
    %90 = vector.shape_cast %89 : vector<1x1x8x8x32xbf16> to vector<8x8x32xbf16>
    %91 = vector.shape_cast %90 : vector<8x8x32xbf16> to vector<64x32xbf16>
    %c0_121 = arith.constant 0 : index
    %c448 = arith.constant 448 : index
    %92 = vector.load %arg18[%c0_121, %c448] : memref<64x800xbf16, #tpu.memory_space<vmem>>, vector<64x32xbf16>
    tpu.vector_store %arg18[%c0_121, %c448], %91 {strides = array<i32>} : memref<64x800xbf16, #tpu.memory_space<vmem>>, vector<64x32xbf16>,
    %c1_122 = arith.constant 1 : index
    %c0_123 = arith.constant 0 : index
    %c1_124 = arith.constant 1 : index
    %c0_125 = arith.constant 0 : index
    %c0_126 = arith.constant 0 : index
    %93 = vector.load %arg15[%c1_122, %c0_123, %c1_124, %c0_125, %c0_126] : memref<2x2x10x10x32xbf16, #tpu.memory_space<vmem>>, vector<1x1x8x8x32xbf16>
    %94 = vector.shape_cast %93 : vector<1x1x8x8x32xbf16> to vector<8x8x32xbf16>
    %95 = vector.shape_cast %94 : vector<8x8x32xbf16> to vector<64x32xbf16>
    %c0_127 = arith.constant 0 : index
    %c480 = arith.constant 480 : index
    %96 = vector.load %arg18[%c0_127, %c480] : memref<64x800xbf16, #tpu.memory_space<vmem>>, vector<64x32xbf16>
    tpu.vector_store %arg18[%c0_127, %c480], %95 {strides = array<i32>} : memref<64x800xbf16, #tpu.memory_space<vmem>>, vector<64x32xbf16>,
    %c1_128 = arith.constant 1 : index
    %c1_129 = arith.constant 1 : index
    %c1_130 = arith.constant 1 : index
    %c0_131 = arith.constant 0 : index
    %c0_132 = arith.constant 0 : index
    %97 = vector.load %arg15[%c1_128, %c1_129, %c1_130, %c0_131, %c0_132] : memref<2x2x10x10x32xbf16, #tpu.memory_space<vmem>>, vector<1x1x8x8x32xbf16>
    %98 = vector.shape_cast %97 : vector<1x1x8x8x32xbf16> to vector<8x8x32xbf16>
    %99 = vector.shape_cast %98 : vector<8x8x32xbf16> to vector<64x32xbf16>
    %c0_133 = arith.constant 0 : index
    %c512 = arith.constant 512 : index
    %100 = vector.load %arg18[%c0_133, %c512] : memref<64x800xbf16, #tpu.memory_space<vmem>>, vector<64x32xbf16>
    tpu.vector_store %arg18[%c0_133, %c512], %99 {strides = array<i32>} : memref<64x800xbf16, #tpu.memory_space<vmem>>, vector<64x32xbf16>,
    %c1_134 = arith.constant 1 : index
    %c0_135 = arith.constant 0 : index
    %c1_136 = arith.constant 1 : index
    %c1_137 = arith.constant 1 : index
    %c0_138 = arith.constant 0 : index
    %101 = vector.load %arg15[%c1_134, %c0_135, %c1_136, %c1_137, %c0_138] : memref<2x2x10x10x32xbf16, #tpu.memory_space<vmem>>, vector<1x1x8x8x32xbf16>
    %102 = vector.shape_cast %101 : vector<1x1x8x8x32xbf16> to vector<8x8x32xbf16>
    %103 = vector.shape_cast %102 : vector<8x8x32xbf16> to vector<64x32xbf16>
    %c0_139 = arith.constant 0 : index
    %c544 = arith.constant 544 : index
    %104 = vector.load %arg18[%c0_139, %c544] : memref<64x800xbf16, #tpu.memory_space<vmem>>, vector<64x32xbf16>
    tpu.vector_store %arg18[%c0_139, %c544], %103 {strides = array<i32>} : memref<64x800xbf16, #tpu.memory_space<vmem>>, vector<64x32xbf16>,
    %c1_140 = arith.constant 1 : index
    %c1_141 = arith.constant 1 : index
    %c1_142 = arith.constant 1 : index
    %c1_143 = arith.constant 1 : index
    %c0_144 = arith.constant 0 : index
    %105 = vector.load %arg15[%c1_140, %c1_141, %c1_142, %c1_143, %c0_144] : memref<2x2x10x10x32xbf16, #tpu.memory_space<vmem>>, vector<1x1x8x8x32xbf16>
    %106 = vector.shape_cast %105 : vector<1x1x8x8x32xbf16> to vector<8x8x32xbf16>
    %107 = vector.shape_cast %106 : vector<8x8x32xbf16> to vector<64x32xbf16>
    %c0_145 = arith.constant 0 : index
    %c576 = arith.constant 576 : index
    %108 = vector.load %arg18[%c0_145, %c576] : memref<64x800xbf16, #tpu.memory_space<vmem>>, vector<64x32xbf16>
    tpu.vector_store %arg18[%c0_145, %c576], %107 {strides = array<i32>} : memref<64x800xbf16, #tpu.memory_space<vmem>>, vector<64x32xbf16>,
    %c1_146 = arith.constant 1 : index
    %c0_147 = arith.constant 0 : index
    %c1_148 = arith.constant 1 : index
    %c2_149 = arith.constant 2 : index
    %c0_150 = arith.constant 0 : index
    %109 = vector.load %arg15[%c1_146, %c0_147, %c1_148, %c2_149, %c0_150] : memref<2x2x10x10x32xbf16, #tpu.memory_space<vmem>>, vector<1x1x8x8x32xbf16>
    %110 = vector.shape_cast %109 : vector<1x1x8x8x32xbf16> to vector<8x8x32xbf16>
    %111 = vector.shape_cast %110 : vector<8x8x32xbf16> to vector<64x32xbf16>
    %c0_151 = arith.constant 0 : index
    %c608 = arith.constant 608 : index
    %112 = vector.load %arg18[%c0_151, %c608] : memref<64x800xbf16, #tpu.memory_space<vmem>>, vector<64x32xbf16>
    tpu.vector_store %arg18[%c0_151, %c608], %111 {strides = array<i32>} : memref<64x800xbf16, #tpu.memory_space<vmem>>, vector<64x32xbf16>,
    %c0_152 = arith.constant 0 : index
    %c0_153 = arith.constant 0 : index
    %c2_154 = arith.constant 2 : index
    %c0_155 = arith.constant 0 : index
    %c0_156 = arith.constant 0 : index
    %113 = vector.load %arg15[%c0_152, %c0_153, %c2_154, %c0_155, %c0_156] : memref<2x2x10x10x32xbf16, #tpu.memory_space<vmem>>, vector<1x1x8x8x32xbf16>
    %114 = vector.shape_cast %113 : vector<1x1x8x8x32xbf16> to vector<8x8x32xbf16>
    %115 = vector.shape_cast %114 : vector<8x8x32xbf16> to vector<64x32xbf16>
    %c0_157 = arith.constant 0 : index
    %c640 = arith.constant 640 : index
    %116 = vector.load %arg18[%c0_157, %c640] : memref<64x800xbf16, #tpu.memory_space<vmem>>, vector<64x32xbf16>
    tpu.vector_store %arg18[%c0_157, %c640], %115 {strides = array<i32>} : memref<64x800xbf16, #tpu.memory_space<vmem>>, vector<64x32xbf16>,
    %c0_158 = arith.constant 0 : index
    %c1_159 = arith.constant 1 : index
    %c2_160 = arith.constant 2 : index
    %c0_161 = arith.constant 0 : index
    %c0_162 = arith.constant 0 : index
    %117 = vector.load %arg15[%c0_158, %c1_159, %c2_160, %c0_161, %c0_162] : memref<2x2x10x10x32xbf16, #tpu.memory_space<vmem>>, vector<1x1x8x8x32xbf16>
    %118 = vector.shape_cast %117 : vector<1x1x8x8x32xbf16> to vector<8x8x32xbf16>
    %119 = vector.shape_cast %118 : vector<8x8x32xbf16> to vector<64x32xbf16>
    %c0_163 = arith.constant 0 : index
    %c672 = arith.constant 672 : index
    %120 = vector.load %arg18[%c0_163, %c672] : memref<64x800xbf16, #tpu.memory_space<vmem>>, vector<64x32xbf16>
    tpu.vector_store %arg18[%c0_163, %c672], %119 {strides = array<i32>} : memref<64x800xbf16, #tpu.memory_space<vmem>>, vector<64x32xbf16>,
    %c0_164 = arith.constant 0 : index
    %c0_165 = arith.constant 0 : index
    %c2_166 = arith.constant 2 : index
    %c1_167 = arith.constant 1 : index
    %c0_168 = arith.constant 0 : index
    %121 = vector.load %arg15[%c0_164, %c0_165, %c2_166, %c1_167, %c0_168] : memref<2x2x10x10x32xbf16, #tpu.memory_space<vmem>>, vector<1x1x8x8x32xbf16>
    %122 = vector.shape_cast %121 : vector<1x1x8x8x32xbf16> to vector<8x8x32xbf16>
    %123 = vector.shape_cast %122 : vector<8x8x32xbf16> to vector<64x32xbf16>
    %c0_169 = arith.constant 0 : index
    %c704 = arith.constant 704 : index
    %124 = vector.load %arg18[%c0_169, %c704] : memref<64x800xbf16, #tpu.memory_space<vmem>>, vector<64x32xbf16>
    tpu.vector_store %arg18[%c0_169, %c704], %123 {strides = array<i32>} : memref<64x800xbf16, #tpu.memory_space<vmem>>, vector<64x32xbf16>,
    %c0_170 = arith.constant 0 : index
    %c1_171 = arith.constant 1 : index
    %c2_172 = arith.constant 2 : index
    %c1_173 = arith.constant 1 : index
    %c0_174 = arith.constant 0 : index
    %125 = vector.load %arg15[%c0_170, %c1_171, %c2_172, %c1_173, %c0_174] : memref<2x2x10x10x32xbf16, #tpu.memory_space<vmem>>, vector<1x1x8x8x32xbf16>
    %126 = vector.shape_cast %125 : vector<1x1x8x8x32xbf16> to vector<8x8x32xbf16>
    %127 = vector.shape_cast %126 : vector<8x8x32xbf16> to vector<64x32xbf16>
    %c0_175 = arith.constant 0 : index
    %c736 = arith.constant 736 : index
    %128 = vector.load %arg18[%c0_175, %c736] : memref<64x800xbf16, #tpu.memory_space<vmem>>, vector<64x32xbf16>
    tpu.vector_store %arg18[%c0_175, %c736], %127 {strides = array<i32>} : memref<64x800xbf16, #tpu.memory_space<vmem>>, vector<64x32xbf16>,
    %c0_176 = arith.constant 0 : index
    %c0_177 = arith.constant 0 : index
    %c2_178 = arith.constant 2 : index
    %c2_179 = arith.constant 2 : index
    %c0_180 = arith.constant 0 : index
    %129 = vector.load %arg15[%c0_176, %c0_177, %c2_178, %c2_179, %c0_180] : memref<2x2x10x10x32xbf16, #tpu.memory_space<vmem>>, vector<1x1x8x8x32xbf16>
    %130 = vector.shape_cast %129 : vector<1x1x8x8x32xbf16> to vector<8x8x32xbf16>
    %131 = vector.shape_cast %130 : vector<8x8x32xbf16> to vector<64x32xbf16>
    %c0_181 = arith.constant 0 : index
    %c768 = arith.constant 768 : index
    %132 = vector.load %arg18[%c0_181, %c768] : memref<64x800xbf16, #tpu.memory_space<vmem>>, vector<64x32xbf16>
    tpu.vector_store %arg18[%c0_181, %c768], %131 {strides = array<i32>} : memref<64x800xbf16, #tpu.memory_space<vmem>>, vector<64x32xbf16>,
    %c0_182 = arith.constant 0 : index
    %c0_183 = arith.constant 0 : index
    %133 = vector.load %arg18[%c0_182, %c0_183] : memref<64x800xbf16, #tpu.memory_space<vmem>>, vector<64x800xbf16>
    %c0_184 = arith.constant 0 : index
    %c0_185 = arith.constant 0 : index
    %134 = vector.load %arg4[%c0_184, %c0_185] : memref<800x64xbf16, #tpu.memory_space<vmem>>, vector<800x64xbf16>
    %cst_186 = arith.constant dense<0.000000e+00> : vector<64x64xf32>
    %135 = tpu.matmul %133, %134, %cst_186 {dimension_numbers = #tpu.dot_dimension_numbers<[1], [0], [0], [1], [0, 0, 1, 1], [], []>} : vector<64x800xbf16>, vector<800x64xbf16>, vector<64x64xf32> -> vector<64x64xf32>
    %c0_187 = arith.constant 0 : index
    %c0_188 = arith.constant 0 : index
    %136 = vector.load %arg5[%c0_187, %c0_188] : memref<1x64xf32, #tpu.memory_space<vmem>>, vector<1x64xf32>
    %137 = vector.broadcast %136 : vector<1x64xf32> to vector<64x64xf32>
    %138 = arith.addf %135, %137 : vector<64x64xf32>
    %cst_189 = arith.constant 0.000000e+00 : f32
    %139 = vector.broadcast %cst_189 : f32 to vector<64x64xf32>
    %140 = arith.maximumf %138, %139 : vector<64x64xf32>
    %cst_190 = arith.constant 0.000000e+00 : bf16
    %141 = vector.broadcast %cst_190 : bf16 to vector<2x2x6x6x64xbf16>
    %c0_191 = arith.constant 0 : index
    %c0_192 = arith.constant 0 : index
    %c0_193 = arith.constant 0 : index
    %c0_194 = arith.constant 0 : index
    %c0_195 = arith.constant 0 : index
    %142 = vector.load %arg16[%c0_191, %c0_192, %c0_193, %c0_194, %c0_195] : memref<2x2x6x6x64xbf16, #tpu.memory_space<vmem>>, vector<2x2x6x6x64xbf16>
    tpu.vector_store %arg16[%c0_191, %c0_192, %c0_193, %c0_194, %c0_195], %141 {strides = array<i32>} : memref<2x2x6x6x64xbf16, #tpu.memory_space<vmem>>, vector<2x2x6x6x64xbf16>,
    %143 = arith.truncf %140 : vector<64x64xf32> to vector<64x64xbf16>
    %144 = vector.shape_cast %143 : vector<64x64xbf16> to vector<4x2x4x2x64xbf16>
    %145 = vector.extract_strided_slice %144 {offsets = [0, 0, 0, 0, 0], sizes = [4, 1, 4, 1, 64], strides = [1, 1, 1, 1, 1]} : vector<4x2x4x2x64xbf16> to vector<4x1x4x1x64xbf16>
    %146 = vector.shape_cast %145 : vector<4x1x4x1x64xbf16> to vector<4x4x64xbf16>
    %c0_196 = arith.constant 0 : index
    %c0_197 = arith.constant 0 : index
    %c1_198 = arith.constant 1 : index
    %c1_199 = arith.constant 1 : index
    %c0_200 = arith.constant 0 : index
    %147 = vector.load %arg16[%c0_196, %c0_197, %c1_198, %c1_199, %c0_200] : memref<2x2x6x6x64xbf16, #tpu.memory_space<vmem>>, vector<1x1x4x4x64xbf16>
    %148 = vector.shape_cast %147 : vector<1x1x4x4x64xbf16> to vector<4x4x64xbf16>
    %149 = vector.shape_cast %146 : vector<4x4x64xbf16> to vector<1x1x4x4x64xbf16>
    tpu.vector_store %arg16[%c0_196, %c0_197, %c1_198, %c1_199, %c0_200], %149 {strides = array<i32>} : memref<2x2x6x6x64xbf16, #tpu.memory_space<vmem>>, vector<1x1x4x4x64xbf16>,
    %150 = vector.extract_strided_slice %144 {offsets = [0, 0, 0, 1, 0], sizes = [4, 1, 4, 1, 64], strides = [1, 1, 1, 1, 1]} : vector<4x2x4x2x64xbf16> to vector<4x1x4x1x64xbf16>
    %151 = vector.shape_cast %150 : vector<4x1x4x1x64xbf16> to vector<4x4x64xbf16>
    %c0_201 = arith.constant 0 : index
    %c1_202 = arith.constant 1 : index
    %c1_203 = arith.constant 1 : index
    %c1_204 = arith.constant 1 : index
    %c0_205 = arith.constant 0 : index
    %152 = vector.load %arg16[%c0_201, %c1_202, %c1_203, %c1_204, %c0_205] : memref<2x2x6x6x64xbf16, #tpu.memory_space<vmem>>, vector<1x1x4x4x64xbf16>
    %153 = vector.shape_cast %152 : vector<1x1x4x4x64xbf16> to vector<4x4x64xbf16>
    %154 = vector.shape_cast %151 : vector<4x4x64xbf16> to vector<1x1x4x4x64xbf16>
    tpu.vector_store %arg16[%c0_201, %c1_202, %c1_203, %c1_204, %c0_205], %154 {strides = array<i32>} : memref<2x2x6x6x64xbf16, #tpu.memory_space<vmem>>, vector<1x1x4x4x64xbf16>,
    %155 = vector.extract_strided_slice %144 {offsets = [0, 1, 0, 0, 0], sizes = [4, 1, 4, 1, 64], strides = [1, 1, 1, 1, 1]} : vector<4x2x4x2x64xbf16> to vector<4x1x4x1x64xbf16>
    %156 = vector.shape_cast %155 : vector<4x1x4x1x64xbf16> to vector<4x4x64xbf16>
    %c1_206 = arith.constant 1 : index
    %c0_207 = arith.constant 0 : index
    %c1_208 = arith.constant 1 : index
    %c1_209 = arith.constant 1 : index
    %c0_210 = arith.constant 0 : index
    %157 = vector.load %arg16[%c1_206, %c0_207, %c1_208, %c1_209, %c0_210] : memref<2x2x6x6x64xbf16, #tpu.memory_space<vmem>>, vector<1x1x4x4x64xbf16>
    %158 = vector.shape_cast %157 : vector<1x1x4x4x64xbf16> to vector<4x4x64xbf16>
    %159 = vector.shape_cast %156 : vector<4x4x64xbf16> to vector<1x1x4x4x64xbf16>
    tpu.vector_store %arg16[%c1_206, %c0_207, %c1_208, %c1_209, %c0_210], %159 {strides = array<i32>} : memref<2x2x6x6x64xbf16, #tpu.memory_space<vmem>>, vector<1x1x4x4x64xbf16>,
    %160 = vector.extract_strided_slice %144 {offsets = [0, 1, 0, 1, 0], sizes = [4, 1, 4, 1, 64], strides = [1, 1, 1, 1, 1]} : vector<4x2x4x2x64xbf16> to vector<4x1x4x1x64xbf16>
    %161 = vector.shape_cast %160 : vector<4x1x4x1x64xbf16> to vector<4x4x64xbf16>
    %c1_211 = arith.constant 1 : index
    %c1_212 = arith.constant 1 : index
    %c1_213 = arith.constant 1 : index
    %c1_214 = arith.constant 1 : index
    %c0_215 = arith.constant 0 : index
    %162 = vector.load %arg16[%c1_211, %c1_212, %c1_213, %c1_214, %c0_215] : memref<2x2x6x6x64xbf16, #tpu.memory_space<vmem>>, vector<1x1x4x4x64xbf16>
    %163 = vector.shape_cast %162 : vector<1x1x4x4x64xbf16> to vector<4x4x64xbf16>
    %164 = vector.shape_cast %161 : vector<4x4x64xbf16> to vector<1x1x4x4x64xbf16>
    tpu.vector_store %arg16[%c1_211, %c1_212, %c1_213, %c1_214, %c0_215], %164 {strides = array<i32>} : memref<2x2x6x6x64xbf16, #tpu.memory_space<vmem>>, vector<1x1x4x4x64xbf16>,
    %c0_216 = arith.constant 0 : index
    %c0_217 = arith.constant 0 : index
    %c0_218 = arith.constant 0 : index
    %c0_219 = arith.constant 0 : index
    %c0_220 = arith.constant 0 : index
    %165 = vector.load %arg16[%c0_216, %c0_217, %c0_218, %c0_219, %c0_220] : memref<2x2x6x6x64xbf16, #tpu.memory_space<vmem>>, vector<1x1x4x4x64xbf16>
    %166 = vector.shape_cast %165 : vector<1x1x4x4x64xbf16> to vector<4x4x64xbf16>
    %167 = vector.shape_cast %166 : vector<4x4x64xbf16> to vector<16x64xbf16>
    %c0_221 = arith.constant 0 : index
    %c0_222 = arith.constant 0 : index
    %168 = vector.load %arg19[%c0_221, %c0_222] : memref<16x1600xbf16, #tpu.memory_space<vmem>>, vector<16x64xbf16>
    tpu.vector_store %arg19[%c0_221, %c0_222], %167 {strides = array<i32>} : memref<16x1600xbf16, #tpu.memory_space<vmem>>, vector<16x64xbf16>,
    %c0_223 = arith.constant 0 : index
    %c1_224 = arith.constant 1 : index
    %c0_225 = arith.constant 0 : index
    %c0_226 = arith.constant 0 : index
    %c0_227 = arith.constant 0 : index
    %169 = vector.load %arg16[%c0_223, %c1_224, %c0_225, %c0_226, %c0_227] : memref<2x2x6x6x64xbf16, #tpu.memory_space<vmem>>, vector<1x1x4x4x64xbf16>
    %170 = vector.shape_cast %169 : vector<1x1x4x4x64xbf16> to vector<4x4x64xbf16>
    %171 = vector.shape_cast %170 : vector<4x4x64xbf16> to vector<16x64xbf16>
    %c0_228 = arith.constant 0 : index
    %c64_229 = arith.constant 64 : index
    %172 = vector.load %arg19[%c0_228, %c64_229] : memref<16x1600xbf16, #tpu.memory_space<vmem>>, vector<16x64xbf16>
    tpu.vector_store %arg19[%c0_228, %c64_229], %171 {strides = array<i32>} : memref<16x1600xbf16, #tpu.memory_space<vmem>>, vector<16x64xbf16>,
    %c0_230 = arith.constant 0 : index
    %c0_231 = arith.constant 0 : index
    %c0_232 = arith.constant 0 : index
    %c1_233 = arith.constant 1 : index
    %c0_234 = arith.constant 0 : index
    %173 = vector.load %arg16[%c0_230, %c0_231, %c0_232, %c1_233, %c0_234] : memref<2x2x6x6x64xbf16, #tpu.memory_space<vmem>>, vector<1x1x4x4x64xbf16>
    %174 = vector.shape_cast %173 : vector<1x1x4x4x64xbf16> to vector<4x4x64xbf16>
    %175 = vector.shape_cast %174 : vector<4x4x64xbf16> to vector<16x64xbf16>
    %c0_235 = arith.constant 0 : index
    %c128_236 = arith.constant 128 : index
    %176 = vector.load %arg19[%c0_235, %c128_236] : memref<16x1600xbf16, #tpu.memory_space<vmem>>, vector<16x64xbf16>
    tpu.vector_store %arg19[%c0_235, %c128_236], %175 {strides = array<i32>} : memref<16x1600xbf16, #tpu.memory_space<vmem>>, vector<16x64xbf16>,
    %c0_237 = arith.constant 0 : index
    %c1_238 = arith.constant 1 : index
    %c0_239 = arith.constant 0 : index
    %c1_240 = arith.constant 1 : index
    %c0_241 = arith.constant 0 : index
    %177 = vector.load %arg16[%c0_237, %c1_238, %c0_239, %c1_240, %c0_241] : memref<2x2x6x6x64xbf16, #tpu.memory_space<vmem>>, vector<1x1x4x4x64xbf16>
    %178 = vector.shape_cast %177 : vector<1x1x4x4x64xbf16> to vector<4x4x64xbf16>
    %179 = vector.shape_cast %178 : vector<4x4x64xbf16> to vector<16x64xbf16>
    %c0_242 = arith.constant 0 : index
    %c192_243 = arith.constant 192 : index
    %180 = vector.load %arg19[%c0_242, %c192_243] : memref<16x1600xbf16, #tpu.memory_space<vmem>>, vector<16x64xbf16>
    tpu.vector_store %arg19[%c0_242, %c192_243], %179 {strides = array<i32>} : memref<16x1600xbf16, #tpu.memory_space<vmem>>, vector<16x64xbf16>,
    %c0_244 = arith.constant 0 : index
    %c0_245 = arith.constant 0 : index
    %c0_246 = arith.constant 0 : index
    %c2_247 = arith.constant 2 : index
    %c0_248 = arith.constant 0 : index
    %181 = vector.load %arg16[%c0_244, %c0_245, %c0_246, %c2_247, %c0_248] : memref<2x2x6x6x64xbf16, #tpu.memory_space<vmem>>, vector<1x1x4x4x64xbf16>
    %182 = vector.shape_cast %181 : vector<1x1x4x4x64xbf16> to vector<4x4x64xbf16>
    %183 = vector.shape_cast %182 : vector<4x4x64xbf16> to vector<16x64xbf16>
    %c0_249 = arith.constant 0 : index
    %c256_250 = arith.constant 256 : index
    %184 = vector.load %arg19[%c0_249, %c256_250] : memref<16x1600xbf16, #tpu.memory_space<vmem>>, vector<16x64xbf16>
    tpu.vector_store %arg19[%c0_249, %c256_250], %183 {strides = array<i32>} : memref<16x1600xbf16, #tpu.memory_space<vmem>>, vector<16x64xbf16>,
    %c1_251 = arith.constant 1 : index
    %c0_252 = arith.constant 0 : index
    %c0_253 = arith.constant 0 : index
    %c0_254 = arith.constant 0 : index
    %c0_255 = arith.constant 0 : index
    %185 = vector.load %arg16[%c1_251, %c0_252, %c0_253, %c0_254, %c0_255] : memref<2x2x6x6x64xbf16, #tpu.memory_space<vmem>>, vector<1x1x4x4x64xbf16>
    %186 = vector.shape_cast %185 : vector<1x1x4x4x64xbf16> to vector<4x4x64xbf16>
    %187 = vector.shape_cast %186 : vector<4x4x64xbf16> to vector<16x64xbf16>
    %c0_256 = arith.constant 0 : index
    %c320_257 = arith.constant 320 : index
    %188 = vector.load %arg19[%c0_256, %c320_257] : memref<16x1600xbf16, #tpu.memory_space<vmem>>, vector<16x64xbf16>
    tpu.vector_store %arg19[%c0_256, %c320_257], %187 {strides = array<i32>} : memref<16x1600xbf16, #tpu.memory_space<vmem>>, vector<16x64xbf16>,
    %c1_258 = arith.constant 1 : index
    %c1_259 = arith.constant 1 : index
    %c0_260 = arith.constant 0 : index
    %c0_261 = arith.constant 0 : index
    %c0_262 = arith.constant 0 : index
    %189 = vector.load %arg16[%c1_258, %c1_259, %c0_260, %c0_261, %c0_262] : memref<2x2x6x6x64xbf16, #tpu.memory_space<vmem>>, vector<1x1x4x4x64xbf16>
    %190 = vector.shape_cast %189 : vector<1x1x4x4x64xbf16> to vector<4x4x64xbf16>
    %191 = vector.shape_cast %190 : vector<4x4x64xbf16> to vector<16x64xbf16>
    %c0_263 = arith.constant 0 : index
    %c384_264 = arith.constant 384 : index
    %192 = vector.load %arg19[%c0_263, %c384_264] : memref<16x1600xbf16, #tpu.memory_space<vmem>>, vector<16x64xbf16>
    tpu.vector_store %arg19[%c0_263, %c384_264], %191 {strides = array<i32>} : memref<16x1600xbf16, #tpu.memory_space<vmem>>, vector<16x64xbf16>,
    %c1_265 = arith.constant 1 : index
    %c0_266 = arith.constant 0 : index
    %c0_267 = arith.constant 0 : index
    %c1_268 = arith.constant 1 : index
    %c0_269 = arith.constant 0 : index
    %193 = vector.load %arg16[%c1_265, %c0_266, %c0_267, %c1_268, %c0_269] : memref<2x2x6x6x64xbf16, #tpu.memory_space<vmem>>, vector<1x1x4x4x64xbf16>
    %194 = vector.shape_cast %193 : vector<1x1x4x4x64xbf16> to vector<4x4x64xbf16>
    %195 = vector.shape_cast %194 : vector<4x4x64xbf16> to vector<16x64xbf16>
    %c0_270 = arith.constant 0 : index
    %c448_271 = arith.constant 448 : index
    %196 = vector.load %arg19[%c0_270, %c448_271] : memref<16x1600xbf16, #tpu.memory_space<vmem>>, vector<16x64xbf16>
    tpu.vector_store %arg19[%c0_270, %c448_271], %195 {strides = array<i32>} : memref<16x1600xbf16, #tpu.memory_space<vmem>>, vector<16x64xbf16>,
    %c1_272 = arith.constant 1 : index
    %c1_273 = arith.constant 1 : index
    %c0_274 = arith.constant 0 : index
    %c1_275 = arith.constant 1 : index
    %c0_276 = arith.constant 0 : index
    %197 = vector.load %arg16[%c1_272, %c1_273, %c0_274, %c1_275, %c0_276] : memref<2x2x6x6x64xbf16, #tpu.memory_space<vmem>>, vector<1x1x4x4x64xbf16>
    %198 = vector.shape_cast %197 : vector<1x1x4x4x64xbf16> to vector<4x4x64xbf16>
    %199 = vector.shape_cast %198 : vector<4x4x64xbf16> to vector<16x64xbf16>
    %c0_277 = arith.constant 0 : index
    %c512_278 = arith.constant 512 : index
    %200 = vector.load %arg19[%c0_277, %c512_278] : memref<16x1600xbf16, #tpu.memory_space<vmem>>, vector<16x64xbf16>
    tpu.vector_store %arg19[%c0_277, %c512_278], %199 {strides = array<i32>} : memref<16x1600xbf16, #tpu.memory_space<vmem>>, vector<16x64xbf16>,
    %c1_279 = arith.constant 1 : index
    %c0_280 = arith.constant 0 : index
    %c0_281 = arith.constant 0 : index
    %c2_282 = arith.constant 2 : index
    %c0_283 = arith.constant 0 : index
    %201 = vector.load %arg16[%c1_279, %c0_280, %c0_281, %c2_282, %c0_283] : memref<2x2x6x6x64xbf16, #tpu.memory_space<vmem>>, vector<1x1x4x4x64xbf16>
    %202 = vector.shape_cast %201 : vector<1x1x4x4x64xbf16> to vector<4x4x64xbf16>
    %203 = vector.shape_cast %202 : vector<4x4x64xbf16> to vector<16x64xbf16>
    %c0_284 = arith.constant 0 : index
    %c576_285 = arith.constant 576 : index
    %204 = vector.load %arg19[%c0_284, %c576_285] : memref<16x1600xbf16, #tpu.memory_space<vmem>>, vector<16x64xbf16>
    tpu.vector_store %arg19[%c0_284, %c576_285], %203 {strides = array<i32>} : memref<16x1600xbf16, #tpu.memory_space<vmem>>, vector<16x64xbf16>,
    %c0_286 = arith.constant 0 : index
    %c0_287 = arith.constant 0 : index
    %c1_288 = arith.constant 1 : index
    %c0_289 = arith.constant 0 : index
    %c0_290 = arith.constant 0 : index
    %205 = vector.load %arg16[%c0_286, %c0_287, %c1_288, %c0_289, %c0_290] : memref<2x2x6x6x64xbf16, #tpu.memory_space<vmem>>, vector<1x1x4x4x64xbf16>
    %206 = vector.shape_cast %205 : vector<1x1x4x4x64xbf16> to vector<4x4x64xbf16>
    %207 = vector.shape_cast %206 : vector<4x4x64xbf16> to vector<16x64xbf16>
    %c0_291 = arith.constant 0 : index
    %c640_292 = arith.constant 640 : index
    %208 = vector.load %arg19[%c0_291, %c640_292] : memref<16x1600xbf16, #tpu.memory_space<vmem>>, vector<16x64xbf16>
    tpu.vector_store %arg19[%c0_291, %c640_292], %207 {strides = array<i32>} : memref<16x1600xbf16, #tpu.memory_space<vmem>>, vector<16x64xbf16>,
    %c0_293 = arith.constant 0 : index
    %c1_294 = arith.constant 1 : index
    %c1_295 = arith.constant 1 : index
    %c0_296 = arith.constant 0 : index
    %c0_297 = arith.constant 0 : index
    %209 = vector.load %arg16[%c0_293, %c1_294, %c1_295, %c0_296, %c0_297] : memref<2x2x6x6x64xbf16, #tpu.memory_space<vmem>>, vector<1x1x4x4x64xbf16>
    %210 = vector.shape_cast %209 : vector<1x1x4x4x64xbf16> to vector<4x4x64xbf16>
    %211 = vector.shape_cast %210 : vector<4x4x64xbf16> to vector<16x64xbf16>
    %c0_298 = arith.constant 0 : index
    %c704_299 = arith.constant 704 : index
    %212 = vector.load %arg19[%c0_298, %c704_299] : memref<16x1600xbf16, #tpu.memory_space<vmem>>, vector<16x64xbf16>
    tpu.vector_store %arg19[%c0_298, %c704_299], %211 {strides = array<i32>} : memref<16x1600xbf16, #tpu.memory_space<vmem>>, vector<16x64xbf16>,
    %c0_300 = arith.constant 0 : index
    %c0_301 = arith.constant 0 : index
    %c1_302 = arith.constant 1 : index
    %c1_303 = arith.constant 1 : index
    %c0_304 = arith.constant 0 : index
    %213 = vector.load %arg16[%c0_300, %c0_301, %c1_302, %c1_303, %c0_304] : memref<2x2x6x6x64xbf16, #tpu.memory_space<vmem>>, vector<1x1x4x4x64xbf16>
    %214 = vector.shape_cast %213 : vector<1x1x4x4x64xbf16> to vector<4x4x64xbf16>
    %215 = vector.shape_cast %214 : vector<4x4x64xbf16> to vector<16x64xbf16>
    %c0_305 = arith.constant 0 : index
    %c768_306 = arith.constant 768 : index
    %216 = vector.load %arg19[%c0_305, %c768_306] : memref<16x1600xbf16, #tpu.memory_space<vmem>>, vector<16x64xbf16>
    tpu.vector_store %arg19[%c0_305, %c768_306], %215 {strides = array<i32>} : memref<16x1600xbf16, #tpu.memory_space<vmem>>, vector<16x64xbf16>,
    %c0_307 = arith.constant 0 : index
    %c1_308 = arith.constant 1 : index
    %c1_309 = arith.constant 1 : index
    %c1_310 = arith.constant 1 : index
    %c0_311 = arith.constant 0 : index
    %217 = vector.load %arg16[%c0_307, %c1_308, %c1_309, %c1_310, %c0_311] : memref<2x2x6x6x64xbf16, #tpu.memory_space<vmem>>, vector<1x1x4x4x64xbf16>
    %218 = vector.shape_cast %217 : vector<1x1x4x4x64xbf16> to vector<4x4x64xbf16>
    %219 = vector.shape_cast %218 : vector<4x4x64xbf16> to vector<16x64xbf16>
    %c0_312 = arith.constant 0 : index
    %c832 = arith.constant 832 : index
    %220 = vector.load %arg19[%c0_312, %c832] : memref<16x1600xbf16, #tpu.memory_space<vmem>>, vector<16x64xbf16>
    tpu.vector_store %arg19[%c0_312, %c832], %219 {strides = array<i32>} : memref<16x1600xbf16, #tpu.memory_space<vmem>>, vector<16x64xbf16>,
    %c0_313 = arith.constant 0 : index
    %c0_314 = arith.constant 0 : index
    %c1_315 = arith.constant 1 : index
    %c2_316 = arith.constant 2 : index
    %c0_317 = arith.constant 0 : index
    %221 = vector.load %arg16[%c0_313, %c0_314, %c1_315, %c2_316, %c0_317] : memref<2x2x6x6x64xbf16, #tpu.memory_space<vmem>>, vector<1x1x4x4x64xbf16>
    %222 = vector.shape_cast %221 : vector<1x1x4x4x64xbf16> to vector<4x4x64xbf16>
    %223 = vector.shape_cast %222 : vector<4x4x64xbf16> to vector<16x64xbf16>
    %c0_318 = arith.constant 0 : index
    %c896 = arith.constant 896 : index
    %224 = vector.load %arg19[%c0_318, %c896] : memref<16x1600xbf16, #tpu.memory_space<vmem>>, vector<16x64xbf16>
    tpu.vector_store %arg19[%c0_318, %c896], %223 {strides = array<i32>} : memref<16x1600xbf16, #tpu.memory_space<vmem>>, vector<16x64xbf16>,
    %c1_319 = arith.constant 1 : index
    %c0_320 = arith.constant 0 : index
    %c1_321 = arith.constant 1 : index
    %c0_322 = arith.constant 0 : index
    %c0_323 = arith.constant 0 : index
    %225 = vector.load %arg16[%c1_319, %c0_320, %c1_321, %c0_322, %c0_323] : memref<2x2x6x6x64xbf16, #tpu.memory_space<vmem>>, vector<1x1x4x4x64xbf16>
    %226 = vector.shape_cast %225 : vector<1x1x4x4x64xbf16> to vector<4x4x64xbf16>
    %227 = vector.shape_cast %226 : vector<4x4x64xbf16> to vector<16x64xbf16>
    %c0_324 = arith.constant 0 : index
    %c960 = arith.constant 960 : index
    %228 = vector.load %arg19[%c0_324, %c960] : memref<16x1600xbf16, #tpu.memory_space<vmem>>, vector<16x64xbf16>
    tpu.vector_store %arg19[%c0_324, %c960], %227 {strides = array<i32>} : memref<16x1600xbf16, #tpu.memory_space<vmem>>, vector<16x64xbf16>,
    %c1_325 = arith.constant 1 : index
    %c1_326 = arith.constant 1 : index
    %c1_327 = arith.constant 1 : index
    %c0_328 = arith.constant 0 : index
    %c0_329 = arith.constant 0 : index
    %229 = vector.load %arg16[%c1_325, %c1_326, %c1_327, %c0_328, %c0_329] : memref<2x2x6x6x64xbf16, #tpu.memory_space<vmem>>, vector<1x1x4x4x64xbf16>
    %230 = vector.shape_cast %229 : vector<1x1x4x4x64xbf16> to vector<4x4x64xbf16>
    %231 = vector.shape_cast %230 : vector<4x4x64xbf16> to vector<16x64xbf16>
    %c0_330 = arith.constant 0 : index
    %c1024 = arith.constant 1024 : index
    %232 = vector.load %arg19[%c0_330, %c1024] : memref<16x1600xbf16, #tpu.memory_space<vmem>>, vector<16x64xbf16>
    tpu.vector_store %arg19[%c0_330, %c1024], %231 {strides = array<i32>} : memref<16x1600xbf16, #tpu.memory_space<vmem>>, vector<16x64xbf16>,
    %c1_331 = arith.constant 1 : index
    %c0_332 = arith.constant 0 : index
    %c1_333 = arith.constant 1 : index
    %c1_334 = arith.constant 1 : index
    %c0_335 = arith.constant 0 : index
    %233 = vector.load %arg16[%c1_331, %c0_332, %c1_333, %c1_334, %c0_335] : memref<2x2x6x6x64xbf16, #tpu.memory_space<vmem>>, vector<1x1x4x4x64xbf16>
    %234 = vector.shape_cast %233 : vector<1x1x4x4x64xbf16> to vector<4x4x64xbf16>
    %235 = vector.shape_cast %234 : vector<4x4x64xbf16> to vector<16x64xbf16>
    %c0_336 = arith.constant 0 : index
    %c1088 = arith.constant 1088 : index
    %236 = vector.load %arg19[%c0_336, %c1088] : memref<16x1600xbf16, #tpu.memory_space<vmem>>, vector<16x64xbf16>
    tpu.vector_store %arg19[%c0_336, %c1088], %235 {strides = array<i32>} : memref<16x1600xbf16, #tpu.memory_space<vmem>>, vector<16x64xbf16>,
    %c1_337 = arith.constant 1 : index
    %c1_338 = arith.constant 1 : index
    %c1_339 = arith.constant 1 : index
    %c1_340 = arith.constant 1 : index
    %c0_341 = arith.constant 0 : index
    %237 = vector.load %arg16[%c1_337, %c1_338, %c1_339, %c1_340, %c0_341] : memref<2x2x6x6x64xbf16, #tpu.memory_space<vmem>>, vector<1x1x4x4x64xbf16>
    %238 = vector.shape_cast %237 : vector<1x1x4x4x64xbf16> to vector<4x4x64xbf16>
    %239 = vector.shape_cast %238 : vector<4x4x64xbf16> to vector<16x64xbf16>
    %c0_342 = arith.constant 0 : index
    %c1152 = arith.constant 1152 : index
    %240 = vector.load %arg19[%c0_342, %c1152] : memref<16x1600xbf16, #tpu.memory_space<vmem>>, vector<16x64xbf16>
    tpu.vector_store %arg19[%c0_342, %c1152], %239 {strides = array<i32>} : memref<16x1600xbf16, #tpu.memory_space<vmem>>, vector<16x64xbf16>,
    %c1_343 = arith.constant 1 : index
    %c0_344 = arith.constant 0 : index
    %c1_345 = arith.constant 1 : index
    %c2_346 = arith.constant 2 : index
    %c0_347 = arith.constant 0 : index
    %241 = vector.load %arg16[%c1_343, %c0_344, %c1_345, %c2_346, %c0_347] : memref<2x2x6x6x64xbf16, #tpu.memory_space<vmem>>, vector<1x1x4x4x64xbf16>
    %242 = vector.shape_cast %241 : vector<1x1x4x4x64xbf16> to vector<4x4x64xbf16>
    %243 = vector.shape_cast %242 : vector<4x4x64xbf16> to vector<16x64xbf16>
    %c0_348 = arith.constant 0 : index
    %c1216 = arith.constant 1216 : index
    %244 = vector.load %arg19[%c0_348, %c1216] : memref<16x1600xbf16, #tpu.memory_space<vmem>>, vector<16x64xbf16>
    tpu.vector_store %arg19[%c0_348, %c1216], %243 {strides = array<i32>} : memref<16x1600xbf16, #tpu.memory_space<vmem>>, vector<16x64xbf16>,
    %c0_349 = arith.constant 0 : index
    %c0_350 = arith.constant 0 : index
    %c2_351 = arith.constant 2 : index
    %c0_352 = arith.constant 0 : index
    %c0_353 = arith.constant 0 : index
    %245 = vector.load %arg16[%c0_349, %c0_350, %c2_351, %c0_352, %c0_353] : memref<2x2x6x6x64xbf16, #tpu.memory_space<vmem>>, vector<1x1x4x4x64xbf16>
    %246 = vector.shape_cast %245 : vector<1x1x4x4x64xbf16> to vector<4x4x64xbf16>
    %247 = vector.shape_cast %246 : vector<4x4x64xbf16> to vector<16x64xbf16>
    %c0_354 = arith.constant 0 : index
    %c1280 = arith.constant 1280 : index
    %248 = vector.load %arg19[%c0_354, %c1280] : memref<16x1600xbf16, #tpu.memory_space<vmem>>, vector<16x64xbf16>
    tpu.vector_store %arg19[%c0_354, %c1280], %247 {strides = array<i32>} : memref<16x1600xbf16, #tpu.memory_space<vmem>>, vector<16x64xbf16>,
    %c0_355 = arith.constant 0 : index
    %c1_356 = arith.constant 1 : index
    %c2_357 = arith.constant 2 : index
    %c0_358 = arith.constant 0 : index
    %c0_359 = arith.constant 0 : index
    %249 = vector.load %arg16[%c0_355, %c1_356, %c2_357, %c0_358, %c0_359] : memref<2x2x6x6x64xbf16, #tpu.memory_space<vmem>>, vector<1x1x4x4x64xbf16>
    %250 = vector.shape_cast %249 : vector<1x1x4x4x64xbf16> to vector<4x4x64xbf16>
    %251 = vector.shape_cast %250 : vector<4x4x64xbf16> to vector<16x64xbf16>
    %c0_360 = arith.constant 0 : index
    %c1344 = arith.constant 1344 : index
    %252 = vector.load %arg19[%c0_360, %c1344] : memref<16x1600xbf16, #tpu.memory_space<vmem>>, vector<16x64xbf16>
    tpu.vector_store %arg19[%c0_360, %c1344], %251 {strides = array<i32>} : memref<16x1600xbf16, #tpu.memory_space<vmem>>, vector<16x64xbf16>,
    %c0_361 = arith.constant 0 : index
    %c0_362 = arith.constant 0 : index
    %c2_363 = arith.constant 2 : index
    %c1_364 = arith.constant 1 : index
    %c0_365 = arith.constant 0 : index
    %253 = vector.load %arg16[%c0_361, %c0_362, %c2_363, %c1_364, %c0_365] : memref<2x2x6x6x64xbf16, #tpu.memory_space<vmem>>, vector<1x1x4x4x64xbf16>
    %254 = vector.shape_cast %253 : vector<1x1x4x4x64xbf16> to vector<4x4x64xbf16>
    %255 = vector.shape_cast %254 : vector<4x4x64xbf16> to vector<16x64xbf16>
    %c0_366 = arith.constant 0 : index
    %c1408 = arith.constant 1408 : index
    %256 = vector.load %arg19[%c0_366, %c1408] : memref<16x1600xbf16, #tpu.memory_space<vmem>>, vector<16x64xbf16>
    tpu.vector_store %arg19[%c0_366, %c1408], %255 {strides = array<i32>} : memref<16x1600xbf16, #tpu.memory_space<vmem>>, vector<16x64xbf16>,
    %c0_367 = arith.constant 0 : index
    %c1_368 = arith.constant 1 : index
    %c2_369 = arith.constant 2 : index
    %c1_370 = arith.constant 1 : index
    %c0_371 = arith.constant 0 : index
    %257 = vector.load %arg16[%c0_367, %c1_368, %c2_369, %c1_370, %c0_371] : memref<2x2x6x6x64xbf16, #tpu.memory_space<vmem>>, vector<1x1x4x4x64xbf16>
    %258 = vector.shape_cast %257 : vector<1x1x4x4x64xbf16> to vector<4x4x64xbf16>
    %259 = vector.shape_cast %258 : vector<4x4x64xbf16> to vector<16x64xbf16>
    %c0_372 = arith.constant 0 : index
    %c1472 = arith.constant 1472 : index
    %260 = vector.load %arg19[%c0_372, %c1472] : memref<16x1600xbf16, #tpu.memory_space<vmem>>, vector<16x64xbf16>
    tpu.vector_store %arg19[%c0_372, %c1472], %259 {strides = array<i32>} : memref<16x1600xbf16, #tpu.memory_space<vmem>>, vector<16x64xbf16>,
    %c0_373 = arith.constant 0 : index
    %c0_374 = arith.constant 0 : index
    %c2_375 = arith.constant 2 : index
    %c2_376 = arith.constant 2 : index
    %c0_377 = arith.constant 0 : index
    %261 = vector.load %arg16[%c0_373, %c0_374, %c2_375, %c2_376, %c0_377] : memref<2x2x6x6x64xbf16, #tpu.memory_space<vmem>>, vector<1x1x4x4x64xbf16>
    %262 = vector.shape_cast %261 : vector<1x1x4x4x64xbf16> to vector<4x4x64xbf16>
    %263 = vector.shape_cast %262 : vector<4x4x64xbf16> to vector<16x64xbf16>
    %c0_378 = arith.constant 0 : index
    %c1536 = arith.constant 1536 : index
    %264 = vector.load %arg19[%c0_378, %c1536] : memref<16x1600xbf16, #tpu.memory_space<vmem>>, vector<16x64xbf16>
    tpu.vector_store %arg19[%c0_378, %c1536], %263 {strides = array<i32>} : memref<16x1600xbf16, #tpu.memory_space<vmem>>, vector<16x64xbf16>,
    %c0_379 = arith.constant 0 : index
    %c0_380 = arith.constant 0 : index
    %265 = vector.load %arg19[%c0_379, %c0_380] : memref<16x1600xbf16, #tpu.memory_space<vmem>>, vector<16x1600xbf16>
    %c0_381 = arith.constant 0 : index
    %c0_382 = arith.constant 0 : index
    %266 = vector.load %arg6[%c0_381, %c0_382] : memref<1600x128xbf16, #tpu.memory_space<vmem>>, vector<1600x128xbf16>
    %cst_383 = arith.constant dense<0.000000e+00> : vector<16x128xf32>
    %267 = tpu.matmul %265, %266, %cst_383 {dimension_numbers = #tpu.dot_dimension_numbers<[1], [0], [0], [1], [0, 0, 1, 1], [], []>} : vector<16x1600xbf16>, vector<1600x128xbf16>, vector<16x128xf32> -> vector<16x128xf32>
    %c0_384 = arith.constant 0 : index
    %c0_385 = arith.constant 0 : index
    %268 = vector.load %arg7[%c0_384, %c0_385] : memref<1x128xf32, #tpu.memory_space<vmem>>, vector<1x128xf32>
    %269 = vector.broadcast %268 : vector<1x128xf32> to vector<16x128xf32>
    %270 = arith.addf %267, %269 : vector<16x128xf32>
    %cst_386 = arith.constant 0.000000e+00 : f32
    %271 = vector.broadcast %cst_386 : f32 to vector<16x128xf32>
    %272 = arith.maximumf %270, %271 : vector<16x128xf32>
    %cst_387 = arith.constant 0.000000e+00 : bf16
    %273 = vector.broadcast %cst_387 : bf16 to vector<2x2x4x4x128xbf16>
    %c0_388 = arith.constant 0 : index
    %c0_389 = arith.constant 0 : index
    %c0_390 = arith.constant 0 : index
    %c0_391 = arith.constant 0 : index
    %c0_392 = arith.constant 0 : index
    %274 = vector.load %arg17[%c0_388, %c0_389, %c0_390, %c0_391, %c0_392] : memref<2x2x4x4x128xbf16, #tpu.memory_space<vmem>>, vector<2x2x4x4x128xbf16>
    tpu.vector_store %arg17[%c0_388, %c0_389, %c0_390, %c0_391, %c0_392], %273 {strides = array<i32>} : memref<2x2x4x4x128xbf16, #tpu.memory_space<vmem>>, vector<2x2x4x4x128xbf16>,
    %275 = arith.truncf %272 : vector<16x128xf32> to vector<16x128xbf16>
    %276 = vector.shape_cast %275 : vector<16x128xbf16> to vector<2x2x2x2x128xbf16>
    %277 = vector.extract_strided_slice %276 {offsets = [0, 0, 0, 0, 0], sizes = [2, 1, 2, 1, 128], strides = [1, 1, 1, 1, 1]} : vector<2x2x2x2x128xbf16> to vector<2x1x2x1x128xbf16>
    %278 = vector.shape_cast %277 : vector<2x1x2x1x128xbf16> to vector<2x2x128xbf16>
    %c0_393 = arith.constant 0 : index
    %c0_394 = arith.constant 0 : index
    %c1_395 = arith.constant 1 : index
    %c1_396 = arith.constant 1 : index
    %c0_397 = arith.constant 0 : index
    %279 = vector.load %arg17[%c0_393, %c0_394, %c1_395, %c1_396, %c0_397] : memref<2x2x4x4x128xbf16, #tpu.memory_space<vmem>>, vector<1x1x2x2x128xbf16>
    %280 = vector.shape_cast %279 : vector<1x1x2x2x128xbf16> to vector<2x2x128xbf16>
    %281 = vector.shape_cast %278 : vector<2x2x128xbf16> to vector<1x1x2x2x128xbf16>
    tpu.vector_store %arg17[%c0_393, %c0_394, %c1_395, %c1_396, %c0_397], %281 {strides = array<i32>} : memref<2x2x4x4x128xbf16, #tpu.memory_space<vmem>>, vector<1x1x2x2x128xbf16>,
    %282 = vector.extract_strided_slice %276 {offsets = [0, 0, 0, 1, 0], sizes = [2, 1, 2, 1, 128], strides = [1, 1, 1, 1, 1]} : vector<2x2x2x2x128xbf16> to vector<2x1x2x1x128xbf16>
    %283 = vector.shape_cast %282 : vector<2x1x2x1x128xbf16> to vector<2x2x128xbf16>
    %c0_398 = arith.constant 0 : index
    %c1_399 = arith.constant 1 : index
    %c1_400 = arith.constant 1 : index
    %c1_401 = arith.constant 1 : index
    %c0_402 = arith.constant 0 : index
    %284 = vector.load %arg17[%c0_398, %c1_399, %c1_400, %c1_401, %c0_402] : memref<2x2x4x4x128xbf16, #tpu.memory_space<vmem>>, vector<1x1x2x2x128xbf16>
    %285 = vector.shape_cast %284 : vector<1x1x2x2x128xbf16> to vector<2x2x128xbf16>
    %286 = vector.shape_cast %283 : vector<2x2x128xbf16> to vector<1x1x2x2x128xbf16>
    tpu.vector_store %arg17[%c0_398, %c1_399, %c1_400, %c1_401, %c0_402], %286 {strides = array<i32>} : memref<2x2x4x4x128xbf16, #tpu.memory_space<vmem>>, vector<1x1x2x2x128xbf16>,
    %287 = vector.extract_strided_slice %276 {offsets = [0, 1, 0, 0, 0], sizes = [2, 1, 2, 1, 128], strides = [1, 1, 1, 1, 1]} : vector<2x2x2x2x128xbf16> to vector<2x1x2x1x128xbf16>
    %288 = vector.shape_cast %287 : vector<2x1x2x1x128xbf16> to vector<2x2x128xbf16>
    %c1_403 = arith.constant 1 : index
    %c0_404 = arith.constant 0 : index
    %c1_405 = arith.constant 1 : index
    %c1_406 = arith.constant 1 : index
    %c0_407 = arith.constant 0 : index
    %289 = vector.load %arg17[%c1_403, %c0_404, %c1_405, %c1_406, %c0_407] : memref<2x2x4x4x128xbf16, #tpu.memory_space<vmem>>, vector<1x1x2x2x128xbf16>
    %290 = vector.shape_cast %289 : vector<1x1x2x2x128xbf16> to vector<2x2x128xbf16>
    %291 = vector.shape_cast %288 : vector<2x2x128xbf16> to vector<1x1x2x2x128xbf16>
    tpu.vector_store %arg17[%c1_403, %c0_404, %c1_405, %c1_406, %c0_407], %291 {strides = array<i32>} : memref<2x2x4x4x128xbf16, #tpu.memory_space<vmem>>, vector<1x1x2x2x128xbf16>,
    %292 = vector.extract_strided_slice %276 {offsets = [0, 1, 0, 1, 0], sizes = [2, 1, 2, 1, 128], strides = [1, 1, 1, 1, 1]} : vector<2x2x2x2x128xbf16> to vector<2x1x2x1x128xbf16>
    %293 = vector.shape_cast %292 : vector<2x1x2x1x128xbf16> to vector<2x2x128xbf16>
    %c1_408 = arith.constant 1 : index
    %c1_409 = arith.constant 1 : index
    %c1_410 = arith.constant 1 : index
    %c1_411 = arith.constant 1 : index
    %c0_412 = arith.constant 0 : index
    %294 = vector.load %arg17[%c1_408, %c1_409, %c1_410, %c1_411, %c0_412] : memref<2x2x4x4x128xbf16, #tpu.memory_space<vmem>>, vector<1x1x2x2x128xbf16>
    %295 = vector.shape_cast %294 : vector<1x1x2x2x128xbf16> to vector<2x2x128xbf16>
    %296 = vector.shape_cast %293 : vector<2x2x128xbf16> to vector<1x1x2x2x128xbf16>
    tpu.vector_store %arg17[%c1_408, %c1_409, %c1_410, %c1_411, %c0_412], %296 {strides = array<i32>} : memref<2x2x4x4x128xbf16, #tpu.memory_space<vmem>>, vector<1x1x2x2x128xbf16>,
    %c0_413 = arith.constant 0 : index
    %c0_414 = arith.constant 0 : index
    %c0_415 = arith.constant 0 : index
    %c0_416 = arith.constant 0 : index
    %c0_417 = arith.constant 0 : index
    %297 = vector.load %arg17[%c0_413, %c0_414, %c0_415, %c0_416, %c0_417] : memref<2x2x4x4x128xbf16, #tpu.memory_space<vmem>>, vector<1x1x2x2x128xbf16>
    %298 = vector.shape_cast %297 : vector<1x1x2x2x128xbf16> to vector<2x2x128xbf16>
    %299 = vector.shape_cast %298 : vector<2x2x128xbf16> to vector<4x128xbf16>
    %c0_418 = arith.constant 0 : index
    %c0_419 = arith.constant 0 : index
    %300 = vector.load %arg20[%c0_418, %c0_419] : memref<4x3200xbf16, #tpu.memory_space<vmem>>, vector<4x128xbf16>
    tpu.vector_store %arg20[%c0_418, %c0_419], %299 {strides = array<i32>} : memref<4x3200xbf16, #tpu.memory_space<vmem>>, vector<4x128xbf16>,
    %c0_420 = arith.constant 0 : index
    %c1_421 = arith.constant 1 : index
    %c0_422 = arith.constant 0 : index
    %c0_423 = arith.constant 0 : index
    %c0_424 = arith.constant 0 : index
    %301 = vector.load %arg17[%c0_420, %c1_421, %c0_422, %c0_423, %c0_424] : memref<2x2x4x4x128xbf16, #tpu.memory_space<vmem>>, vector<1x1x2x2x128xbf16>
    %302 = vector.shape_cast %301 : vector<1x1x2x2x128xbf16> to vector<2x2x128xbf16>
    %303 = vector.shape_cast %302 : vector<2x2x128xbf16> to vector<4x128xbf16>
    %c0_425 = arith.constant 0 : index
    %c128_426 = arith.constant 128 : index
    %304 = vector.load %arg20[%c0_425, %c128_426] : memref<4x3200xbf16, #tpu.memory_space<vmem>>, vector<4x128xbf16>
    tpu.vector_store %arg20[%c0_425, %c128_426], %303 {strides = array<i32>} : memref<4x3200xbf16, #tpu.memory_space<vmem>>, vector<4x128xbf16>,
    %c0_427 = arith.constant 0 : index
    %c0_428 = arith.constant 0 : index
    %c0_429 = arith.constant 0 : index
    %c1_430 = arith.constant 1 : index
    %c0_431 = arith.constant 0 : index
    %305 = vector.load %arg17[%c0_427, %c0_428, %c0_429, %c1_430, %c0_431] : memref<2x2x4x4x128xbf16, #tpu.memory_space<vmem>>, vector<1x1x2x2x128xbf16>
    %306 = vector.shape_cast %305 : vector<1x1x2x2x128xbf16> to vector<2x2x128xbf16>
    %307 = vector.shape_cast %306 : vector<2x2x128xbf16> to vector<4x128xbf16>
    %c0_432 = arith.constant 0 : index
    %c256_433 = arith.constant 256 : index
    %308 = vector.load %arg20[%c0_432, %c256_433] : memref<4x3200xbf16, #tpu.memory_space<vmem>>, vector<4x128xbf16>
    tpu.vector_store %arg20[%c0_432, %c256_433], %307 {strides = array<i32>} : memref<4x3200xbf16, #tpu.memory_space<vmem>>, vector<4x128xbf16>,
    %c0_434 = arith.constant 0 : index
    %c1_435 = arith.constant 1 : index
    %c0_436 = arith.constant 0 : index
    %c1_437 = arith.constant 1 : index
    %c0_438 = arith.constant 0 : index
    %309 = vector.load %arg17[%c0_434, %c1_435, %c0_436, %c1_437, %c0_438] : memref<2x2x4x4x128xbf16, #tpu.memory_space<vmem>>, vector<1x1x2x2x128xbf16>
    %310 = vector.shape_cast %309 : vector<1x1x2x2x128xbf16> to vector<2x2x128xbf16>
    %311 = vector.shape_cast %310 : vector<2x2x128xbf16> to vector<4x128xbf16>
    %c0_439 = arith.constant 0 : index
    %c384_440 = arith.constant 384 : index
    %312 = vector.load %arg20[%c0_439, %c384_440] : memref<4x3200xbf16, #tpu.memory_space<vmem>>, vector<4x128xbf16>
    tpu.vector_store %arg20[%c0_439, %c384_440], %311 {strides = array<i32>} : memref<4x3200xbf16, #tpu.memory_space<vmem>>, vector<4x128xbf16>,
    %c0_441 = arith.constant 0 : index
    %c0_442 = arith.constant 0 : index
    %c0_443 = arith.constant 0 : index
    %c2_444 = arith.constant 2 : index
    %c0_445 = arith.constant 0 : index
    %313 = vector.load %arg17[%c0_441, %c0_442, %c0_443, %c2_444, %c0_445] : memref<2x2x4x4x128xbf16, #tpu.memory_space<vmem>>, vector<1x1x2x2x128xbf16>
    %314 = vector.shape_cast %313 : vector<1x1x2x2x128xbf16> to vector<2x2x128xbf16>
    %315 = vector.shape_cast %314 : vector<2x2x128xbf16> to vector<4x128xbf16>
    %c0_446 = arith.constant 0 : index
    %c512_447 = arith.constant 512 : index
    %316 = vector.load %arg20[%c0_446, %c512_447] : memref<4x3200xbf16, #tpu.memory_space<vmem>>, vector<4x128xbf16>
    tpu.vector_store %arg20[%c0_446, %c512_447], %315 {strides = array<i32>} : memref<4x3200xbf16, #tpu.memory_space<vmem>>, vector<4x128xbf16>,
    %c1_448 = arith.constant 1 : index
    %c0_449 = arith.constant 0 : index
    %c0_450 = arith.constant 0 : index
    %c0_451 = arith.constant 0 : index
    %c0_452 = arith.constant 0 : index
    %317 = vector.load %arg17[%c1_448, %c0_449, %c0_450, %c0_451, %c0_452] : memref<2x2x4x4x128xbf16, #tpu.memory_space<vmem>>, vector<1x1x2x2x128xbf16>
    %318 = vector.shape_cast %317 : vector<1x1x2x2x128xbf16> to vector<2x2x128xbf16>
    %319 = vector.shape_cast %318 : vector<2x2x128xbf16> to vector<4x128xbf16>
    %c0_453 = arith.constant 0 : index
    %c640_454 = arith.constant 640 : index
    %320 = vector.load %arg20[%c0_453, %c640_454] : memref<4x3200xbf16, #tpu.memory_space<vmem>>, vector<4x128xbf16>
    tpu.vector_store %arg20[%c0_453, %c640_454], %319 {strides = array<i32>} : memref<4x3200xbf16, #tpu.memory_space<vmem>>, vector<4x128xbf16>,
    %c1_455 = arith.constant 1 : index
    %c1_456 = arith.constant 1 : index
    %c0_457 = arith.constant 0 : index
    %c0_458 = arith.constant 0 : index
    %c0_459 = arith.constant 0 : index
    %321 = vector.load %arg17[%c1_455, %c1_456, %c0_457, %c0_458, %c0_459] : memref<2x2x4x4x128xbf16, #tpu.memory_space<vmem>>, vector<1x1x2x2x128xbf16>
    %322 = vector.shape_cast %321 : vector<1x1x2x2x128xbf16> to vector<2x2x128xbf16>
    %323 = vector.shape_cast %322 : vector<2x2x128xbf16> to vector<4x128xbf16>
    %c0_460 = arith.constant 0 : index
    %c768_461 = arith.constant 768 : index
    %324 = vector.load %arg20[%c0_460, %c768_461] : memref<4x3200xbf16, #tpu.memory_space<vmem>>, vector<4x128xbf16>
    tpu.vector_store %arg20[%c0_460, %c768_461], %323 {strides = array<i32>} : memref<4x3200xbf16, #tpu.memory_space<vmem>>, vector<4x128xbf16>,
    %c1_462 = arith.constant 1 : index
    %c0_463 = arith.constant 0 : index
    %c0_464 = arith.constant 0 : index
    %c1_465 = arith.constant 1 : index
    %c0_466 = arith.constant 0 : index
    %325 = vector.load %arg17[%c1_462, %c0_463, %c0_464, %c1_465, %c0_466] : memref<2x2x4x4x128xbf16, #tpu.memory_space<vmem>>, vector<1x1x2x2x128xbf16>
    %326 = vector.shape_cast %325 : vector<1x1x2x2x128xbf16> to vector<2x2x128xbf16>
    %327 = vector.shape_cast %326 : vector<2x2x128xbf16> to vector<4x128xbf16>
    %c0_467 = arith.constant 0 : index
    %c896_468 = arith.constant 896 : index
    %328 = vector.load %arg20[%c0_467, %c896_468] : memref<4x3200xbf16, #tpu.memory_space<vmem>>, vector<4x128xbf16>
    tpu.vector_store %arg20[%c0_467, %c896_468], %327 {strides = array<i32>} : memref<4x3200xbf16, #tpu.memory_space<vmem>>, vector<4x128xbf16>,
    %c1_469 = arith.constant 1 : index
    %c1_470 = arith.constant 1 : index
    %c0_471 = arith.constant 0 : index
    %c1_472 = arith.constant 1 : index
    %c0_473 = arith.constant 0 : index
    %329 = vector.load %arg17[%c1_469, %c1_470, %c0_471, %c1_472, %c0_473] : memref<2x2x4x4x128xbf16, #tpu.memory_space<vmem>>, vector<1x1x2x2x128xbf16>
    %330 = vector.shape_cast %329 : vector<1x1x2x2x128xbf16> to vector<2x2x128xbf16>
    %331 = vector.shape_cast %330 : vector<2x2x128xbf16> to vector<4x128xbf16>
    %c0_474 = arith.constant 0 : index
    %c1024_475 = arith.constant 1024 : index
    %332 = vector.load %arg20[%c0_474, %c1024_475] : memref<4x3200xbf16, #tpu.memory_space<vmem>>, vector<4x128xbf16>
    tpu.vector_store %arg20[%c0_474, %c1024_475], %331 {strides = array<i32>} : memref<4x3200xbf16, #tpu.memory_space<vmem>>, vector<4x128xbf16>,
    %c1_476 = arith.constant 1 : index
    %c0_477 = arith.constant 0 : index
    %c0_478 = arith.constant 0 : index
    %c2_479 = arith.constant 2 : index
    %c0_480 = arith.constant 0 : index
    %333 = vector.load %arg17[%c1_476, %c0_477, %c0_478, %c2_479, %c0_480] : memref<2x2x4x4x128xbf16, #tpu.memory_space<vmem>>, vector<1x1x2x2x128xbf16>
    %334 = vector.shape_cast %333 : vector<1x1x2x2x128xbf16> to vector<2x2x128xbf16>
    %335 = vector.shape_cast %334 : vector<2x2x128xbf16> to vector<4x128xbf16>
    %c0_481 = arith.constant 0 : index
    %c1152_482 = arith.constant 1152 : index
    %336 = vector.load %arg20[%c0_481, %c1152_482] : memref<4x3200xbf16, #tpu.memory_space<vmem>>, vector<4x128xbf16>
    tpu.vector_store %arg20[%c0_481, %c1152_482], %335 {strides = array<i32>} : memref<4x3200xbf16, #tpu.memory_space<vmem>>, vector<4x128xbf16>,
    %c0_483 = arith.constant 0 : index
    %c0_484 = arith.constant 0 : index
    %c1_485 = arith.constant 1 : index
    %c0_486 = arith.constant 0 : index
    %c0_487 = arith.constant 0 : index
    %337 = vector.load %arg17[%c0_483, %c0_484, %c1_485, %c0_486, %c0_487] : memref<2x2x4x4x128xbf16, #tpu.memory_space<vmem>>, vector<1x1x2x2x128xbf16>
    %338 = vector.shape_cast %337 : vector<1x1x2x2x128xbf16> to vector<2x2x128xbf16>
    %339 = vector.shape_cast %338 : vector<2x2x128xbf16> to vector<4x128xbf16>
    %c0_488 = arith.constant 0 : index
    %c1280_489 = arith.constant 1280 : index
    %340 = vector.load %arg20[%c0_488, %c1280_489] : memref<4x3200xbf16, #tpu.memory_space<vmem>>, vector<4x128xbf16>
    tpu.vector_store %arg20[%c0_488, %c1280_489], %339 {strides = array<i32>} : memref<4x3200xbf16, #tpu.memory_space<vmem>>, vector<4x128xbf16>,
    %c0_490 = arith.constant 0 : index
    %c1_491 = arith.constant 1 : index
    %c1_492 = arith.constant 1 : index
    %c0_493 = arith.constant 0 : index
    %c0_494 = arith.constant 0 : index
    %341 = vector.load %arg17[%c0_490, %c1_491, %c1_492, %c0_493, %c0_494] : memref<2x2x4x4x128xbf16, #tpu.memory_space<vmem>>, vector<1x1x2x2x128xbf16>
    %342 = vector.shape_cast %341 : vector<1x1x2x2x128xbf16> to vector<2x2x128xbf16>
    %343 = vector.shape_cast %342 : vector<2x2x128xbf16> to vector<4x128xbf16>
    %c0_495 = arith.constant 0 : index
    %c1408_496 = arith.constant 1408 : index
    %344 = vector.load %arg20[%c0_495, %c1408_496] : memref<4x3200xbf16, #tpu.memory_space<vmem>>, vector<4x128xbf16>
    tpu.vector_store %arg20[%c0_495, %c1408_496], %343 {strides = array<i32>} : memref<4x3200xbf16, #tpu.memory_space<vmem>>, vector<4x128xbf16>,
    %c0_497 = arith.constant 0 : index
    %c0_498 = arith.constant 0 : index
    %c1_499 = arith.constant 1 : index
    %c1_500 = arith.constant 1 : index
    %c0_501 = arith.constant 0 : index
    %345 = vector.load %arg17[%c0_497, %c0_498, %c1_499, %c1_500, %c0_501] : memref<2x2x4x4x128xbf16, #tpu.memory_space<vmem>>, vector<1x1x2x2x128xbf16>
    %346 = vector.shape_cast %345 : vector<1x1x2x2x128xbf16> to vector<2x2x128xbf16>
    %347 = vector.shape_cast %346 : vector<2x2x128xbf16> to vector<4x128xbf16>
    %c0_502 = arith.constant 0 : index
    %c1536_503 = arith.constant 1536 : index
    %348 = vector.load %arg20[%c0_502, %c1536_503] : memref<4x3200xbf16, #tpu.memory_space<vmem>>, vector<4x128xbf16>
    tpu.vector_store %arg20[%c0_502, %c1536_503], %347 {strides = array<i32>} : memref<4x3200xbf16, #tpu.memory_space<vmem>>, vector<4x128xbf16>,
    %c0_504 = arith.constant 0 : index
    %c1_505 = arith.constant 1 : index
    %c1_506 = arith.constant 1 : index
    %c1_507 = arith.constant 1 : index
    %c0_508 = arith.constant 0 : index
    %349 = vector.load %arg17[%c0_504, %c1_505, %c1_506, %c1_507, %c0_508] : memref<2x2x4x4x128xbf16, #tpu.memory_space<vmem>>, vector<1x1x2x2x128xbf16>
    %350 = vector.shape_cast %349 : vector<1x1x2x2x128xbf16> to vector<2x2x128xbf16>
    %351 = vector.shape_cast %350 : vector<2x2x128xbf16> to vector<4x128xbf16>
    %c0_509 = arith.constant 0 : index
    %c1664 = arith.constant 1664 : index
    %352 = vector.load %arg20[%c0_509, %c1664] : memref<4x3200xbf16, #tpu.memory_space<vmem>>, vector<4x128xbf16>
    tpu.vector_store %arg20[%c0_509, %c1664], %351 {strides = array<i32>} : memref<4x3200xbf16, #tpu.memory_space<vmem>>, vector<4x128xbf16>,
    %c0_510 = arith.constant 0 : index
    %c0_511 = arith.constant 0 : index
    %c1_512 = arith.constant 1 : index
    %c2_513 = arith.constant 2 : index
    %c0_514 = arith.constant 0 : index
    %353 = vector.load %arg17[%c0_510, %c0_511, %c1_512, %c2_513, %c0_514] : memref<2x2x4x4x128xbf16, #tpu.memory_space<vmem>>, vector<1x1x2x2x128xbf16>
    %354 = vector.shape_cast %353 : vector<1x1x2x2x128xbf16> to vector<2x2x128xbf16>
    %355 = vector.shape_cast %354 : vector<2x2x128xbf16> to vector<4x128xbf16>
    %c0_515 = arith.constant 0 : index
    %c1792 = arith.constant 1792 : index
    %356 = vector.load %arg20[%c0_515, %c1792] : memref<4x3200xbf16, #tpu.memory_space<vmem>>, vector<4x128xbf16>
    tpu.vector_store %arg20[%c0_515, %c1792], %355 {strides = array<i32>} : memref<4x3200xbf16, #tpu.memory_space<vmem>>, vector<4x128xbf16>,
    %c1_516 = arith.constant 1 : index
    %c0_517 = arith.constant 0 : index
    %c1_518 = arith.constant 1 : index
    %c0_519 = arith.constant 0 : index
    %c0_520 = arith.constant 0 : index
    %357 = vector.load %arg17[%c1_516, %c0_517, %c1_518, %c0_519, %c0_520] : memref<2x2x4x4x128xbf16, #tpu.memory_space<vmem>>, vector<1x1x2x2x128xbf16>
    %358 = vector.shape_cast %357 : vector<1x1x2x2x128xbf16> to vector<2x2x128xbf16>
    %359 = vector.shape_cast %358 : vector<2x2x128xbf16> to vector<4x128xbf16>
    %c0_521 = arith.constant 0 : index
    %c1920 = arith.constant 1920 : index
    %360 = vector.load %arg20[%c0_521, %c1920] : memref<4x3200xbf16, #tpu.memory_space<vmem>>, vector<4x128xbf16>
    tpu.vector_store %arg20[%c0_521, %c1920], %359 {strides = array<i32>} : memref<4x3200xbf16, #tpu.memory_space<vmem>>, vector<4x128xbf16>,
    %c1_522 = arith.constant 1 : index
    %c1_523 = arith.constant 1 : index
    %c1_524 = arith.constant 1 : index
    %c0_525 = arith.constant 0 : index
    %c0_526 = arith.constant 0 : index
    %361 = vector.load %arg17[%c1_522, %c1_523, %c1_524, %c0_525, %c0_526] : memref<2x2x4x4x128xbf16, #tpu.memory_space<vmem>>, vector<1x1x2x2x128xbf16>
    %362 = vector.shape_cast %361 : vector<1x1x2x2x128xbf16> to vector<2x2x128xbf16>
    %363 = vector.shape_cast %362 : vector<2x2x128xbf16> to vector<4x128xbf16>
    %c0_527 = arith.constant 0 : index
    %c2048 = arith.constant 2048 : index
    %364 = vector.load %arg20[%c0_527, %c2048] : memref<4x3200xbf16, #tpu.memory_space<vmem>>, vector<4x128xbf16>
    tpu.vector_store %arg20[%c0_527, %c2048], %363 {strides = array<i32>} : memref<4x3200xbf16, #tpu.memory_space<vmem>>, vector<4x128xbf16>,
    %c1_528 = arith.constant 1 : index
    %c0_529 = arith.constant 0 : index
    %c1_530 = arith.constant 1 : index
    %c1_531 = arith.constant 1 : index
    %c0_532 = arith.constant 0 : index
    %365 = vector.load %arg17[%c1_528, %c0_529, %c1_530, %c1_531, %c0_532] : memref<2x2x4x4x128xbf16, #tpu.memory_space<vmem>>, vector<1x1x2x2x128xbf16>
    %366 = vector.shape_cast %365 : vector<1x1x2x2x128xbf16> to vector<2x2x128xbf16>
    %367 = vector.shape_cast %366 : vector<2x2x128xbf16> to vector<4x128xbf16>
    %c0_533 = arith.constant 0 : index
    %c2176 = arith.constant 2176 : index
    %368 = vector.load %arg20[%c0_533, %c2176] : memref<4x3200xbf16, #tpu.memory_space<vmem>>, vector<4x128xbf16>
    tpu.vector_store %arg20[%c0_533, %c2176], %367 {strides = array<i32>} : memref<4x3200xbf16, #tpu.memory_space<vmem>>, vector<4x128xbf16>,
    %c1_534 = arith.constant 1 : index
    %c1_535 = arith.constant 1 : index
    %c1_536 = arith.constant 1 : index
    %c1_537 = arith.constant 1 : index
    %c0_538 = arith.constant 0 : index
    %369 = vector.load %arg17[%c1_534, %c1_535, %c1_536, %c1_537, %c0_538] : memref<2x2x4x4x128xbf16, #tpu.memory_space<vmem>>, vector<1x1x2x2x128xbf16>
    %370 = vector.shape_cast %369 : vector<1x1x2x2x128xbf16> to vector<2x2x128xbf16>
    %371 = vector.shape_cast %370 : vector<2x2x128xbf16> to vector<4x128xbf16>
    %c0_539 = arith.constant 0 : index
    %c2304 = arith.constant 2304 : index
    %372 = vector.load %arg20[%c0_539, %c2304] : memref<4x3200xbf16, #tpu.memory_space<vmem>>, vector<4x128xbf16>
    tpu.vector_store %arg20[%c0_539, %c2304], %371 {strides = array<i32>} : memref<4x3200xbf16, #tpu.memory_space<vmem>>, vector<4x128xbf16>,
    %c1_540 = arith.constant 1 : index
    %c0_541 = arith.constant 0 : index
    %c1_542 = arith.constant 1 : index
    %c2_543 = arith.constant 2 : index
    %c0_544 = arith.constant 0 : index
    %373 = vector.load %arg17[%c1_540, %c0_541, %c1_542, %c2_543, %c0_544] : memref<2x2x4x4x128xbf16, #tpu.memory_space<vmem>>, vector<1x1x2x2x128xbf16>
    %374 = vector.shape_cast %373 : vector<1x1x2x2x128xbf16> to vector<2x2x128xbf16>
    %375 = vector.shape_cast %374 : vector<2x2x128xbf16> to vector<4x128xbf16>
    %c0_545 = arith.constant 0 : index
    %c2432 = arith.constant 2432 : index
    %376 = vector.load %arg20[%c0_545, %c2432] : memref<4x3200xbf16, #tpu.memory_space<vmem>>, vector<4x128xbf16>
    tpu.vector_store %arg20[%c0_545, %c2432], %375 {strides = array<i32>} : memref<4x3200xbf16, #tpu.memory_space<vmem>>, vector<4x128xbf16>,
    %c0_546 = arith.constant 0 : index
    %c0_547 = arith.constant 0 : index
    %c2_548 = arith.constant 2 : index
    %c0_549 = arith.constant 0 : index
    %c0_550 = arith.constant 0 : index
    %377 = vector.load %arg17[%c0_546, %c0_547, %c2_548, %c0_549, %c0_550] : memref<2x2x4x4x128xbf16, #tpu.memory_space<vmem>>, vector<1x1x2x2x128xbf16>
    %378 = vector.shape_cast %377 : vector<1x1x2x2x128xbf16> to vector<2x2x128xbf16>
    %379 = vector.shape_cast %378 : vector<2x2x128xbf16> to vector<4x128xbf16>
    %c0_551 = arith.constant 0 : index
    %c2560 = arith.constant 2560 : index
    %380 = vector.load %arg20[%c0_551, %c2560] : memref<4x3200xbf16, #tpu.memory_space<vmem>>, vector<4x128xbf16>
    tpu.vector_store %arg20[%c0_551, %c2560], %379 {strides = array<i32>} : memref<4x3200xbf16, #tpu.memory_space<vmem>>, vector<4x128xbf16>,
    %c0_552 = arith.constant 0 : index
    %c1_553 = arith.constant 1 : index
    %c2_554 = arith.constant 2 : index
    %c0_555 = arith.constant 0 : index
    %c0_556 = arith.constant 0 : index
    %381 = vector.load %arg17[%c0_552, %c1_553, %c2_554, %c0_555, %c0_556] : memref<2x2x4x4x128xbf16, #tpu.memory_space<vmem>>, vector<1x1x2x2x128xbf16>
    %382 = vector.shape_cast %381 : vector<1x1x2x2x128xbf16> to vector<2x2x128xbf16>
    %383 = vector.shape_cast %382 : vector<2x2x128xbf16> to vector<4x128xbf16>
    %c0_557 = arith.constant 0 : index
    %c2688 = arith.constant 2688 : index
    %384 = vector.load %arg20[%c0_557, %c2688] : memref<4x3200xbf16, #tpu.memory_space<vmem>>, vector<4x128xbf16>
    tpu.vector_store %arg20[%c0_557, %c2688], %383 {strides = array<i32>} : memref<4x3200xbf16, #tpu.memory_space<vmem>>, vector<4x128xbf16>,
    %c0_558 = arith.constant 0 : index
    %c0_559 = arith.constant 0 : index
    %c2_560 = arith.constant 2 : index
    %c1_561 = arith.constant 1 : index
    %c0_562 = arith.constant 0 : index
    %385 = vector.load %arg17[%c0_558, %c0_559, %c2_560, %c1_561, %c0_562] : memref<2x2x4x4x128xbf16, #tpu.memory_space<vmem>>, vector<1x1x2x2x128xbf16>
    %386 = vector.shape_cast %385 : vector<1x1x2x2x128xbf16> to vector<2x2x128xbf16>
    %387 = vector.shape_cast %386 : vector<2x2x128xbf16> to vector<4x128xbf16>
    %c0_563 = arith.constant 0 : index
    %c2816 = arith.constant 2816 : index
    %388 = vector.load %arg20[%c0_563, %c2816] : memref<4x3200xbf16, #tpu.memory_space<vmem>>, vector<4x128xbf16>
    tpu.vector_store %arg20[%c0_563, %c2816], %387 {strides = array<i32>} : memref<4x3200xbf16, #tpu.memory_space<vmem>>, vector<4x128xbf16>,
    %c0_564 = arith.constant 0 : index
    %c1_565 = arith.constant 1 : index
    %c2_566 = arith.constant 2 : index
    %c1_567 = arith.constant 1 : index
    %c0_568 = arith.constant 0 : index
    %389 = vector.load %arg17[%c0_564, %c1_565, %c2_566, %c1_567, %c0_568] : memref<2x2x4x4x128xbf16, #tpu.memory_space<vmem>>, vector<1x1x2x2x128xbf16>
    %390 = vector.shape_cast %389 : vector<1x1x2x2x128xbf16> to vector<2x2x128xbf16>
    %391 = vector.shape_cast %390 : vector<2x2x128xbf16> to vector<4x128xbf16>
    %c0_569 = arith.constant 0 : index
    %c2944 = arith.constant 2944 : index
    %392 = vector.load %arg20[%c0_569, %c2944] : memref<4x3200xbf16, #tpu.memory_space<vmem>>, vector<4x128xbf16>
    tpu.vector_store %arg20[%c0_569, %c2944], %391 {strides = array<i32>} : memref<4x3200xbf16, #tpu.memory_space<vmem>>, vector<4x128xbf16>,
    %c0_570 = arith.constant 0 : index
    %c0_571 = arith.constant 0 : index
    %c2_572 = arith.constant 2 : index
    %c2_573 = arith.constant 2 : index
    %c0_574 = arith.constant 0 : index
    %393 = vector.load %arg17[%c0_570, %c0_571, %c2_572, %c2_573, %c0_574] : memref<2x2x4x4x128xbf16, #tpu.memory_space<vmem>>, vector<1x1x2x2x128xbf16>
    %394 = vector.shape_cast %393 : vector<1x1x2x2x128xbf16> to vector<2x2x128xbf16>
    %395 = vector.shape_cast %394 : vector<2x2x128xbf16> to vector<4x128xbf16>
    %c0_575 = arith.constant 0 : index
    %c3072 = arith.constant 3072 : index
    %396 = vector.load %arg20[%c0_575, %c3072] : memref<4x3200xbf16, #tpu.memory_space<vmem>>, vector<4x128xbf16>
    tpu.vector_store %arg20[%c0_575, %c3072], %395 {strides = array<i32>} : memref<4x3200xbf16, #tpu.memory_space<vmem>>, vector<4x128xbf16>,
    %c0_576 = arith.constant 0 : index
    %c0_577 = arith.constant 0 : index
    %397 = vector.load %arg20[%c0_576, %c0_577] : memref<4x3200xbf16, #tpu.memory_space<vmem>>, vector<4x3200xbf16>
    %c0_578 = arith.constant 0 : index
    %c0_579 = arith.constant 0 : index
    %398 = vector.load %arg8[%c0_578, %c0_579] : memref<3200x256xbf16, #tpu.memory_space<vmem>>, vector<3200x256xbf16>
    %cst_580 = arith.constant dense<0.000000e+00> : vector<4x256xf32>
    %399 = tpu.matmul %397, %398, %cst_580 {dimension_numbers = #tpu.dot_dimension_numbers<[1], [0], [0], [1], [0, 0, 1, 1], [], []>} : vector<4x3200xbf16>, vector<3200x256xbf16>, vector<4x256xf32> -> vector<4x256xf32>
    %c0_581 = arith.constant 0 : index
    %c0_582 = arith.constant 0 : index
    %400 = vector.load %arg9[%c0_581, %c0_582] : memref<1x256xf32, #tpu.memory_space<vmem>>, vector<1x256xf32>
    %401 = vector.broadcast %400 : vector<1x256xf32> to vector<4x256xf32>
    %402 = arith.addf %399, %401 : vector<4x256xf32>
    %cst_583 = arith.constant 0.000000e+00 : f32
    %403 = vector.broadcast %cst_583 : f32 to vector<4x256xf32>
    %404 = arith.maximumf %402, %403 : vector<4x256xf32>
    %cst_584 = arith.constant dense<0.000000e+00> : vector<256xf32>
    %405 = vector.multi_reduction <add>, %404, %cst_584 [0] : vector<4x256xf32> to vector<256xf32>
    %406 = vector.shape_cast %405 : vector<256xf32> to vector<1x256xf32>
    %cst_585 = arith.constant 4.000000e+00 : f32
    %407 = vector.broadcast %cst_585 : f32 to vector<1x256xf32>
    %408 = arith.divf %406, %407 : vector<1x256xf32>
    %409 = arith.truncf %408 : vector<1x256xf32> to vector<1x256xbf16>
    %c0_586 = arith.constant 0 : index
    %c0_587 = arith.constant 0 : index
    %410 = vector.load %arg10[%c0_586, %c0_587] : memref<256x128xbf16, #tpu.memory_space<vmem>>, vector<256x128xbf16>
    %cst_588 = arith.constant dense<0.000000e+00> : vector<1x128xf32>
    %411 = tpu.matmul %409, %410, %cst_588 {dimension_numbers = #tpu.dot_dimension_numbers<[1], [0], [0], [1], [0, 0, 1, 1], [], []>} : vector<1x256xbf16>, vector<256x128xbf16>, vector<1x128xf32> -> vector<1x128xf32>
    %c0_589 = arith.constant 0 : index
    %c0_590 = arith.constant 0 : index
    %412 = vector.load %arg11[%c0_589, %c0_590] : memref<1x128xf32, #tpu.memory_space<vmem>>, vector<1x128xf32>
    %413 = arith.addf %411, %412 : vector<1x128xf32>
    %cst_591 = arith.constant 0.000000e+00 : f32
    %414 = vector.broadcast %cst_591 : f32 to vector<1x128xf32>
    %415 = arith.maximumf %413, %414 : vector<1x128xf32>
    %416 = arith.truncf %415 : vector<1x128xf32> to vector<1x128xbf16>
    %c0_592 = arith.constant 0 : index
    %c0_593 = arith.constant 0 : index
    %417 = vector.load %arg12[%c0_592, %c0_593] : memref<128x1xbf16, #tpu.memory_space<vmem>>, vector<128x1xbf16>
    %cst_594 = arith.constant dense<0.000000e+00> : vector<1x1xf32>
    %418 = tpu.matmul %416, %417, %cst_594 {dimension_numbers = #tpu.dot_dimension_numbers<[1], [0], [0], [1], [0, 0, 1, 1], [], []>} : vector<1x128xbf16>, vector<128x1xbf16>, vector<1x1xf32> -> vector<1x1xf32>
    %c0_595 = arith.constant 0 : index
    %c0_596 = arith.constant 0 : index
    %419 = vector.load %arg13[%c0_595, %c0_596] : memref<1x1xf32, #tpu.memory_space<vmem>>, vector<1x1xf32>
    %420 = arith.addf %418, %419 : vector<1x1xf32>
    %c0_597 = arith.constant 0 : index
    %c0_598 = arith.constant 0 : index
    %c0_599 = arith.constant 0 : index
    %421 = vector.load %arg14[%c0_597, %c0_598, %c0_599] : memref<1x1x1xf32, #tpu.memory_space<vmem>>, vector<1x1x1xf32>
    %422 = vector.shape_cast %421 : vector<1x1x1xf32> to vector<1x1xf32>
    %423 = vector.shape_cast %420 : vector<1x1xf32> to vector<1x1x1xf32>
    tpu.vector_store %arg14[%c0_597, %c0_598, %c0_599], %423 {strides = array<i32>} : memref<1x1x1xf32, #tpu.memory_space<vmem>>, vector<1x1x1xf32>,
    return
  }
  func.func @transform_0(%arg0: i32) -> (i32, i32, i32) {
    %c0_i32 = arith.constant 0 : i32
    %c0_i32_0 = arith.constant 0 : i32
    %c0_i32_1 = arith.constant 0 : i32
    return %arg0, %c0_i32, %c0_i32_0 : i32, i32, i32
  }
  func.func @transform_1(%arg0: i32) -> (i32, i32) {
    %c0_i32 = arith.constant 0 : i32
    %c0_i32_0 = arith.constant 0 : i32
    %c0_i32_1 = arith.constant 0 : i32
    return %c0_i32, %c0_i32_0 : i32, i32
  }
  func.func @transform_2(%arg0: i32) -> (i32, i32) {
    %c0_i32 = arith.constant 0 : i32
    %c0_i32_0 = arith.constant 0 : i32
    %c0_i32_1 = arith.constant 0 : i32
    return %c0_i32, %c0_i32_0 : i32, i32
  }
  func.func @transform_3(%arg0: i32) -> (i32, i32) {
    %c0_i32 = arith.constant 0 : i32
    %c0_i32_0 = arith.constant 0 : i32
    %c0_i32_1 = arith.constant 0 : i32
    return %c0_i32, %c0_i32_0 : i32, i32
  }
  func.func @transform_4(%arg0: i32) -> (i32, i32) {
    %c0_i32 = arith.constant 0 : i32
    %c0_i32_0 = arith.constant 0 : i32
    %c0_i32_1 = arith.constant 0 : i32
    return %c0_i32, %c0_i32_0 : i32, i32
  }
  func.func @transform_5(%arg0: i32) -> (i32, i32) {
    %c0_i32 = arith.constant 0 : i32
    %c0_i32_0 = arith.constant 0 : i32
    %c0_i32_1 = arith.constant 0 : i32
    return %c0_i32, %c0_i32_0 : i32, i32
  }
  func.func @transform_6(%arg0: i32) -> (i32, i32) {
    %c0_i32 = arith.constant 0 : i32
    %c0_i32_0 = arith.constant 0 : i32
    %c0_i32_1 = arith.constant 0 : i32
    return %c0_i32, %c0_i32_0 : i32, i32
  }
  func.func @transform_7(%arg0: i32) -> (i32, i32) {
    %c0_i32 = arith.constant 0 : i32
    %c0_i32_0 = arith.constant 0 : i32
    %c0_i32_1 = arith.constant 0 : i32
    return %c0_i32, %c0_i32_0 : i32, i32
  }
  func.func @transform_8(%arg0: i32) -> (i32, i32) {
    %c0_i32 = arith.constant 0 : i32
    %c0_i32_0 = arith.constant 0 : i32
    %c0_i32_1 = arith.constant 0 : i32
    return %c0_i32, %c0_i32_0 : i32, i32
  }
  func.func @transform_9(%arg0: i32) -> (i32, i32) {
    %c0_i32 = arith.constant 0 : i32
    %c0_i32_0 = arith.constant 0 : i32
    %c0_i32_1 = arith.constant 0 : i32
    return %c0_i32, %c0_i32_0 : i32, i32
  }
  func.func @transform_10(%arg0: i32) -> (i32, i32) {
    %c0_i32 = arith.constant 0 : i32
    %c0_i32_0 = arith.constant 0 : i32
    %c0_i32_1 = arith.constant 0 : i32
    return %c0_i32, %c0_i32_0 : i32, i32
  }
  func.func @transform_11(%arg0: i32) -> (i32, i32) {
    %c0_i32 = arith.constant 0 : i32
    %c0_i32_0 = arith.constant 0 : i32
    %c0_i32_1 = arith.constant 0 : i32
    return %c0_i32, %c0_i32_0 : i32, i32
  }
  func.func @transform_12(%arg0: i32) -> (i32, i32) {
    %c0_i32 = arith.constant 0 : i32
    %c0_i32_0 = arith.constant 0 : i32
    %c0_i32_1 = arith.constant 0 : i32
    return %c0_i32, %c0_i32_0 : i32, i32
  }
  func.func @transform_13(%arg0: i32) -> (i32, i32, i32) {
    %c0_i32 = arith.constant 0 : i32
    %c0_i32_0 = arith.constant 0 : i32
    %c0_i32_1 = arith.constant 0 : i32
    return %arg0, %c0_i32, %c0_i32_0 : i32, i32, i32
  }
}

</mosaic_0001>

<bundles_post_ra>
// kernel: _lambda_.1
= control target key start
LH: loop header
LB: loop body
LE: loop exit
PB: predicated region body
PF: predicated region fallthrough
CT: control target
= control target key end

     0   :  { %s18503_s27 = smov 0   ;;  %s23887_s0 = inlined_call_operand.vmem [shape: bf16[2,256,50], index: 0, kind: input, shape index: {}]   ;;  %s23888_s1 = inlined_call_operand.vmem [shape: bf16[50,32], index: 1, kind: input, shape index: {}]   ;;  %s23889_s2 = inlined_call_operand.vmem [shape: f32[1,32], index: 2, kind: input, shape index: {}]   ;;  %s23890_s3 = inlined_call_operand.vmem [shape: bf16[800,64], index: 3, kind: input, shape index: {}]   ;;  %s23891_s4 = inlined_call_operand.vmem [shape: f32[1,64], index: 4, kind: input, shape index: {}]   ;;  %s23892_s5 = inlined_call_operand.vmem [shape: bf16[1600,128], index: 5, kind: input, shape index: {}]   ;;  %s23893_s6 = inlined_call_operand.vmem [shape: f32[1,128], index: 6, kind: input, shape index: {}]   ;;  %s23894_s7 = inlined_call_operand.vmem [shape: bf16[3200,256], index: 7, kind: input, shape index: {}]   ;;  %s23895_s8 = inlined_call_operand.vmem [shape: f32[1,256], index: 8, kind: input, shape index: {}]   ;;  %s23896_s9 = inlined_call_operand.vmem [shape: bf16[256,128], index: 9, kind: input, shape index: {}]   ;;  %s23897_s10 = inlined_call_operand.vmem [shape: f32[1,128], index: 10, kind: input, shape index: {}]   ;;  %s23898_s11 = inlined_call_operand.vmem [shape: bf16[128,1], index: 11, kind: input, shape index: {}]   ;;  %s23899_s12 = inlined_call_operand.<no memory space> [shape: f32[1,1], index: 12, kind: input, shape index: {}]   ;;  %s23900_s13 = inlined_call_operand.vmem [shape: f32[2,1,1], index: 13, kind: output, shape index: {}]  }
   0x1   :  { %v18_v0 = vstv %s23899_s12 }
   0x2   :  { %19 = vst [vmem:[#allocation8] sm:$0x1] %v18_v0 }
   0x3 LB: > { %s16184_s28 = sadd.s32 4294967295, %s18419_s27   ;;  %p16188_p0 = scmp.ge.s32.totalorder %s18419_s27, 1  ;;  %s18419_s27 = sphi %s18503_s27, %s25_s27  }
   0x4   : > { %p389_p1 = scmp.lt.s32.totalorder %s18419_s27, 3 }
   0x6   : > { %p390_p2 = pnand %p16188_p0, %p389_p1 }
   0x7   : > { %p431_p3 = scmp.lt.s32.totalorder (!%p390_p2), %s16184_s28, 1  ;;  %s18424_s25 = smov (!%p390_p2), 32  }
   0x8   : > { %393 = sbr.rel (%p390_p2) target bundleno = 2613 (0xa35), region = 72  ;;  %s18425_s26 = smov (!%p390_p2), 64  }
   0x9   : > { %s18426_s15 = smov (!%p390_p2), 96  }
   0xd   : > { %v17516_v1 = vld [vmem:[%s23888_s1 + $0x18] ss:$0 sps:$4 sm:$0x11]   ;;  %vm636_vm0 = vcmask 1040384   ;;  %v17517_v2 = vld [vmem:[%s23888_s1 + $0x10] sm:$0xff]   ;;  %v17518_v4 = vld [vmem:[%s23888_s1 + $0x8] sm:$0xff]   ;;  %v951_v25 = vlaneseq }
   0xe   : > { %17497 = vmatprep.subr.msk.bf16.mxu0 %vm636_vm0, %v17516_v1  ;;  %17498 = vmatprep.subr.msk.bf16.mxu1 %vm636_vm0, %v17516_v1  ;;  %v638_v3 = vsel %vm636_vm0, %v17516_v1, 0  ;;  %s23956_s28 = smov (!%p431_p3, %s16184_s28), 1  ;;  %vm587_vm1 = vcmask 408576   ;;  %v17519_v5 = vld [vmem:[%s23888_s1] sm:$0xff]   ;;  %vm833_vm2 = vcmask 257024   ;;  %vm835_vm3 = vcmask 253952  }
   0xf   : > { %17406 = vmatpush3.bf16.msra.mxu0 %v638_v3  ;;  %17493 = vmatpush3.bf16.msra.mxu1 %v638_v3  ;;  %s17090_s19 = sshll.u32 %s23956_s28, 7  ;;  %v23901_v22 = vmov 0   ;;  %v18422_v23 = vmov 1966171168   ;;  %v16191_v26 = vld [vmem:[%s23889_s2] ss:$0 sm:$0xff]  ;;  %s438_s18 = scalar_lea.vmem %s23900_s13, %s23956_s28 }
  0x10   : > { %17407 = vmatprep.subr.bf16.mxu0 %v17517_v2  ;;  %17490 = vmatprep.subr.bf16.mxu1 %v17517_v2  ;;  %s18532_s22 = scalar_lea.vmem %s23887_s0, %s17090_s19  ;;  %877 = vst.msk [vmem:[#allocation2 + $0xa8] sm:$0xf] %vm833_vm2, %v23901_v22  ;;  %897 = vst.msk [vmem:[#allocation2 + $0xf8] sm:$0xf] %vm833_vm2, %v23901_v22  ;;  %v949_v24 = vunpack.c.l.s4 %v18422_v23  ;;  %v18423_v30 = vmov 1935823168  }
  0x11   : > { %v17520_v6 = vld [vmem:[%s18532_s22] sm:$0xff]   ;;  %v17522_v8 = vld [vmem:[%s18532_s22 + $0x8] sm:$0xff]   ;;  %v17524_v10 = vld [vmem:[%s18532_s22 + $0x10] sm:$0xff]   ;;  %878 = vst.msk [vmem:[#allocation2 + $0xac] sm:$0x1] %vm835_vm3, %v23901_v22  ;;  %v1732_v31 = vunpack.c.l.s4 %v18423_v30  ;;  %v18736_v37 = vshrl.u32 %v951_v25, 7 }
  0x12   : > { %v17521_v7 = vld [vmem:[%s18532_s22 + $0x40] sm:$0xff]   ;;  %17413 = vmatprep.mubr.msk.bf16.mxu0 %vm587_vm1, %v17520_v6  ;;  %v17523_v9 = vld [vmem:[%s18532_s22 + $0x48] sm:$0xff]   ;;  %v17526_v11 = vld [vmem:[%s18532_s22 + $0x50] sm:$0xff]   ;;  %898 = vst.msk [vmem:[#allocation2 + $0xfc] sm:$0x1] %vm835_vm3, %v23901_v22  ;;  %v950_v36 = vunpack.c.0.s8 %v949_v24  ;;  %vm2693_vm6 = vcmask 1042434  }
  0x13   : > { %17408 = vmatpush3.bf16.msra.mxu0 %v17517_v2  ;;  %17494 = vmatpush3.bf16.msra.mxu1 %v17517_v2  ;;  %v17525_v12 = vld [vmem:[%s18532_s22 + $0x18] sm:$0xff]   ;;  %v17528_v14 = vld [vmem:[%s18532_s22 + $0x20] sm:$0xff]   ;;  %v17529_v16 = vld [vmem:[%s18532_s22 + $0x28] sm:$0xff]   ;;  %834 = vst.msk [vmem:[#allocation2] sm:$0xf] %vm833_vm2, %v23901_v22  ;;  %v1733_v41 = vunpack.c.0.s8 %v1732_v31  ;;  %vm2696_vm7 = vcmask 1043459  }
  0x14   : > { %17409 = vmatprep.subr.bf16.mxu0 %v17518_v4  ;;  %17491 = vmatprep.subr.bf16.mxu1 %v17518_v4  ;;  %v17527_v13 = vld [vmem:[%s18532_s22 + $0x58] sm:$0xff]   ;;  %v17530_v15 = vld [vmem:[%s18532_s22 + $0x60] sm:$0xff]   ;;  %v17531_v17 = vld [vmem:[%s18532_s22 + $0x68] sm:$0xff]   ;;  %836 = vst.msk [vmem:[#allocation2 + $0x4] sm:$0x1] %vm835_vm3, %v23901_v22  ;;  %v18739_v47 = vsub.s32 %v950_v36, %v18736_v37  ;;  %vm2699_vm8 = vcmask 1044484  }
  0x15   : > { %17429 = vmatprep.mubr.msk.bf16.mxu1 %vm587_vm1, %v17521_v7  ;;  %v17532_v18 = vld [vmem:[%s18532_s22 + $0x30] sm:$0xff]   ;;  %v17533_v20 = vld [vmem:[%s18532_s22 + $0x38] sm:$0xff]   ;;  %837 = vst.msk [vmem:[#allocation2 + $0x8] sm:$0xf] %vm833_vm2, %v23901_v22  ;;  %839 = vst.msk [vmem:[#allocation2 + $0x10] sm:$0xf] %vm833_vm2, %v23901_v22  ;;  %v18742_v56 = vsub.s32 %v1733_v41, %v18736_v37 }
  0x16   : > { %v17534_v19 = vld [vmem:[%s18532_s22 + $0x70] sm:$0xff]   ;;  %v17535_v21 = vld [vmem:[%s18532_s22 + $0x78] sm:$0xff]   ;;  %838 = vst.msk [vmem:[#allocation2 + $0xc] sm:$0x1] %vm835_vm3, %v23901_v22  ;;  %840 = vst.msk [vmem:[#allocation2 + $0x14] sm:$0x1] %vm835_vm3, %v23901_v22 }
  0x17   : > { %17410 = vmatpush3.bf16.msra.mxu0 %v17518_v4  ;;  %17495 = vmatpush3.bf16.msra.mxu1 %v17518_v4  ;;  %841 = vst.msk [vmem:[#allocation2 + $0x18] sm:$0xf] %vm833_vm2, %v23901_v22  ;;  %843 = vst.msk [vmem:[#allocation2 + $0x20] sm:$0xf] %vm833_vm2, %v23901_v22  ;;  %vm2841_vm4 = vsmask.f32 256 }
  0x18   : > { %17411 = vmatprep.subr.bf16.mxu0 %v17519_v5  ;;  %17492 = vmatprep.subr.bf16.mxu1 %v17519_v5  ;;  %842 = vst.msk [vmem:[#allocation2 + $0x1c] sm:$0x1] %vm835_vm3, %v23901_v22  ;;  %844 = vst.msk [vmem:[#allocation2 + $0x24] sm:$0x1] %vm835_vm3, %v23901_v22  ;;  %vm2835_vm5 = vsmask.f32 7938 }
  0x19   : > { %845 = vst.msk [vmem:[#allocation2 + $0x28] sm:$0xf] %vm833_vm2, %v23901_v22  ;;  %847 = vst.msk [vmem:[#allocation2 + $0x30] sm:$0xf] %vm833_vm2, %v23901_v22  ;;  %vm2702_vm10 = vcmask 1045509   ;;  %vm2705_vm11 = vcmask 1046534  }
  0x1a   : > { %846 = vst.msk [vmem:[#allocation2 + $0x2c] sm:$0x1] %vm835_vm3, %v23901_v22  ;;  %848 = vst.msk [vmem:[#allocation2 + $0x34] sm:$0x1] %vm835_vm3, %v23901_v22  ;;  %vm2708_vm12 = vcmask 1047559  }
  0x1b   : > { %17412 = vmatpush3.bf16.msra.mxu0 %v17519_v5  ;;  %17496 = vmatpush3.bf16.msra.mxu1 %v17519_v5  ;;  %849 = vst.msk [vmem:[#allocation2 + $0x38] sm:$0xf] %vm833_vm2, %v23901_v22  ;;  %851 = vst.msk [vmem:[#allocation2 + $0x40] sm:$0xf] %vm833_vm2, %v23901_v22  ;;  %vm4485_vm14 = vsmask.f32 3328 }
  0x1c   : > { %850 = vst.msk [vmem:[#allocation2 + $0x3c] sm:$0x1] %vm835_vm3, %v23901_v22  ;;  %852 = vst.msk [vmem:[#allocation2 + $0x44] sm:$0x1] %vm835_vm3, %v23901_v22  ;;  %vm4486_vm15 = vsmask.f32 7440 }
  0x1d   : > { %853 = vst.msk [vmem:[#allocation2 + $0x48] sm:$0xf] %vm833_vm2, %v23901_v22  ;;  %855 = vst.msk [vmem:[#allocation2 + $0x50] sm:$0xf] %vm833_vm2, %v23901_v22 }
  0x1e   : > { %17414 = vmatmul.mubr.msk.bf16.vlgmr.msra.gmra.mxu0 %vm587_vm1, %v17522_v8  ;;  %17430 = vmatmul.mubr.msk.bf16.vlgmr.msra.gmra.mxu1 %vm587_vm1, %v17523_v9  ;;  %854 = vst.msk [vmem:[#allocation2 + $0x4c] sm:$0x1] %vm835_vm3, %v23901_v22  ;;  %856 = vst.msk [vmem:[#allocation2 + $0x54] sm:$0x1] %vm835_vm3, %v23901_v22 }
  0x1f   : > { %17417 = vmatprep.mubr.msk.bf16.mxu0 %vm587_vm1, %v17524_v10  ;;  %17433 = vmatprep.mubr.msk.bf16.mxu1 %vm587_vm1, %v17526_v11  ;;  %857 = vst.msk [vmem:[#allocation2 + $0x58] sm:$0xf] %vm833_vm2, %v23901_v22  ;;  %859 = vst.msk [vmem:[#allocation2 + $0x60] sm:$0xf] %vm833_vm2, %v23901_v22 }
  0x20   : > { %858 = vst.msk [vmem:[#allocation2 + $0x5c] sm:$0x1] %vm835_vm3, %v23901_v22  ;;  %860 = vst.msk [vmem:[#allocation2 + $0x64] sm:$0x1] %vm835_vm3, %v23901_v22 }
  0x21   : > { %861 = vst.msk [vmem:[#allocation2 + $0x68] sm:$0xf] %vm833_vm2, %v23901_v22  ;;  %863 = vst.msk [vmem:[#allocation2 + $0x70] sm:$0xf] %vm833_vm2, %v23901_v22 }
  0x22   : > { %862 = vst.msk [vmem:[#allocation2 + $0x6c] sm:$0x1] %vm835_vm3, %v23901_v22  ;;  %864 = vst.msk [vmem:[#allocation2 + $0x74] sm:$0x1] %vm835_vm3, %v23901_v22 }
  0x23   : > { %865 = vst.msk [vmem:[#allocation2 + $0x78] sm:$0xf] %vm833_vm2, %v23901_v22  ;;  %867 = vst.msk [vmem:[#allocation2 + $0x80] sm:$0xf] %vm833_vm2, %v23901_v22 }
  0x24   : > { %866 = vst.msk [vmem:[#allocation2 + $0x7c] sm:$0x1] %vm835_vm3, %v23901_v22  ;;  %868 = vst.msk [vmem:[#allocation2 + $0x84] sm:$0x1] %vm835_vm3, %v23901_v22  ;;  %v4420_v27 = vld [vmem:[#allocation2 + $0x50] sm:$0xf] }
  0x25   : > { %869 = vst.msk [vmem:[#allocation2 + $0x88] sm:$0xf] %vm833_vm2, %v23901_v22  ;;  %871 = vst.msk [vmem:[#allocation2 + $0x90] sm:$0xf] %vm833_vm2, %v23901_v22  ;;  %4436 = vrot.lane.b32.xlu0 %v4420_v27, %s18424_s25 }
  0x26   : > { %17418 = vmatmul.mubr.msk.bf16.gmra.mxu0 %vm587_vm1, %v17525_v12  ;;  %17434 = vmatmul.mubr.msk.bf16.gmra.mxu1 %vm587_vm1, %v17527_v13  ;;  %870 = vst.msk [vmem:[#allocation2 + $0x8c] sm:$0x1] %vm835_vm3, %v23901_v22  ;;  %872 = vst.msk [vmem:[#allocation2 + $0x94] sm:$0x1] %vm835_vm3, %v23901_v22 }
  0x27   : > { %17421 = vmatprep.mubr.msk.bf16.mxu0 %vm587_vm1, %v17528_v14  ;;  %17437 = vmatprep.mubr.msk.bf16.mxu1 %vm587_vm1, %v17530_v15  ;;  %873 = vst.msk [vmem:[#allocation2 + $0x98] sm:$0xf] %vm833_vm2, %v23901_v22  ;;  %875 = vst.msk [vmem:[#allocation2 + $0xa0] sm:$0xf] %vm833_vm2, %v23901_v22 }
  0x28   : > { %874 = vst.msk [vmem:[#allocation2 + $0x9c] sm:$0x1] %vm835_vm3, %v23901_v22  ;;  %876 = vst.msk [vmem:[#allocation2 + $0xa4] sm:$0x1] %vm835_vm3, %v23901_v22 }
  0x29   : > { %879 = vst.msk [vmem:[#allocation2 + $0xb0] sm:$0xf] %vm833_vm2, %v23901_v22  ;;  %881 = vst.msk [vmem:[#allocation2 + $0xb8] sm:$0xf] %vm833_vm2, %v23901_v22 }
  0x2a   : > { %880 = vst.msk [vmem:[#allocation2 + $0xb4] sm:$0x1] %vm835_vm3, %v23901_v22  ;;  %882 = vst.msk [vmem:[#allocation2 + $0xbc] sm:$0x1] %vm835_vm3, %v23901_v22 }
  0x2b   : > { %883 = vst.msk [vmem:[#allocation2 + $0xc0] sm:$0xf] %vm833_vm2, %v23901_v22  ;;  %885 = vst.msk [vmem:[#allocation2 + $0xc8] sm:$0xf] %vm833_vm2, %v23901_v22 }
  0x2c   : > { %884 = vst.msk [vmem:[#allocation2 + $0xc4] sm:$0x1] %vm835_vm3, %v23901_v22  ;;  %886 = vst.msk [vmem:[#allocation2 + $0xcc] sm:$0x1] %vm835_vm3, %v23901_v22 }
  0x2d   : > { %887 = vst.msk [vmem:[#allocation2 + $0xd0] sm:$0xf] %vm833_vm2, %v23901_v22  ;;  %889 = vst.msk [vmem:[#allocation2 + $0xd8] sm:$0xf] %vm833_vm2, %v23901_v22 }
  0x2e   : > { %17422 = vmatmul.mubr.msk.bf16.gmra.mxu0 %vm587_vm1, %v17529_v16  ;;  %17438 = vmatmul.mubr.msk.bf16.gmra.mxu1 %vm587_vm1, %v17531_v17  ;;  %888 = vst.msk [vmem:[#allocation2 + $0xd4] sm:$0x1] %vm835_vm3, %v23901_v22  ;;  %890 = vst.msk [vmem:[#allocation2 + $0xdc] sm:$0x1] %vm835_vm3, %v23901_v22 }
  0x2f   : > { %17425 = vmatprep.mubr.msk.bf16.mxu0 %vm587_vm1, %v17532_v18  ;;  %17441 = vmatprep.mubr.msk.bf16.mxu1 %vm587_vm1, %v17534_v19  ;;  %891 = vst.msk [vmem:[#allocation2 + $0xe0] sm:$0xf] %vm833_vm2, %v23901_v22  ;;  %895 = vst.msk [vmem:[#allocation2 + $0xf0] sm:$0xf] %vm833_vm2, %v23901_v22 }
  0x30   : > { %892 = vst.msk [vmem:[#allocation2 + $0xe4] sm:$0x1] %vm835_vm3, %v23901_v22  ;;  %896 = vst.msk [vmem:[#allocation2 + $0xf4] sm:$0x1] %vm835_vm3, %v23901_v22 }
  0x31   : > { %899 = vst.msk [vmem:[#allocation2 + $0x100] sm:$0xf] %vm833_vm2, %v23901_v22  ;;  %901 = vst.msk [vmem:[#allocation2 + $0x108] sm:$0xf] %vm833_vm2, %v23901_v22 }
  0x32   : > { %900 = vst.msk [vmem:[#allocation2 + $0x104] sm:$0x1] %vm835_vm3, %v23901_v22  ;;  %902 = vst.msk [vmem:[#allocation2 + $0x10c] sm:$0x1] %vm835_vm3, %v23901_v22 }
  0x33   : > { %903 = vst.msk [vmem:[#allocation2 + $0x110] sm:$0xf] %vm833_vm2, %v23901_v22  ;;  %905 = vst.msk [vmem:[#allocation2 + $0x118] sm:$0xf] %vm833_vm2, %v23901_v22 }
  0x34   : > { %904 = vst.msk [vmem:[#allocation2 + $0x114] sm:$0x1] %vm835_vm3, %v23901_v22  ;;  %906 = vst.msk [vmem:[#allocation2 + $0x11c] sm:$0x1] %vm835_vm3, %v23901_v22 }
  0x35   : > { %907 = vst.msk [vmem:[#allocation2 + $0x120] sm:$0xf] %vm833_vm2, %v23901_v22  ;;  %909 = vst.msk [vmem:[#allocation2 + $0x128] sm:$0xf] %vm833_vm2, %v23901_v22 }
  0x36   : > { %17426 = vmatmul.mubr.msk.bf16.gmra.mxu0 %vm587_vm1, %v17533_v20  ;;  %17442 = vmatmul.mubr.msk.bf16.gmra.mxu1 %vm587_vm1, %v17535_v21  ;;  %908 = vst.msk [vmem:[#allocation2 + $0x124] sm:$0x1] %vm835_vm3, %v23901_v22  ;;  %910 = vst.msk [vmem:[#allocation2 + $0x12c] sm:$0x1] %vm835_vm3, %v23901_v22 }
  0x37   : > { %911 = vst.msk [vmem:[#allocation2 + $0x130] sm:$0xf] %vm833_vm2, %v23901_v22  ;;  %11645 = vst [vmem:[#allocation4] sm:$0x3] %v23901_v22 }
  0x38   : > { %912 = vst.msk [vmem:[#allocation2 + $0x134] sm:$0x1] %vm835_vm3, %v23901_v22  ;;  %11646 = vst [vmem:[#allocation4 + $0x2] sm:$0x3] %v23901_v22 }
  0x39   : > { %11647 = vst [vmem:[#allocation4 + $0x4] sm:$0x3] %v23901_v22  ;;  %11648 = vst [vmem:[#allocation4 + $0x6] sm:$0x3] %v23901_v22 }
  0x3a   : > { %11649 = vst [vmem:[#allocation4 + $0x8] sm:$0x3] %v23901_v22  ;;  %11650 = vst [vmem:[#allocation4 + $0xa] sm:$0x3] %v23901_v22 }
  0x3b   : > { %11651 = vst [vmem:[#allocation4 + $0xc] sm:$0x3] %v23901_v22  ;;  %11652 = vst [vmem:[#allocation4 + $0xe] sm:$0x3] %v23901_v22 }
  0x3c   : > { %11653 = vst [vmem:[#allocation4 + $0x10] sm:$0x3] %v23901_v22  ;;  %11654 = vst [vmem:[#allocation4 + $0x12] sm:$0x3] %v23901_v22 }
  0x3d   : > { %11655 = vst [vmem:[#allocation4 + $0x14] sm:$0x3] %v23901_v22  ;;  %11657 = vst [vmem:[#allocation4 + $0x18] sm:$0x3] %v23901_v22 }
  0x3e   : > { %11658 = vst [vmem:[#allocation4 + $0x1a] sm:$0x3] %v23901_v22  ;;  %11659 = vst [vmem:[#allocation4 + $0x1c] sm:$0x3] %v23901_v22 }
  0x3f   : > { %vm18778_vm9 = vmand %vm835_vm3, %vm2841_vm4  ;;  %vm4826_vm3 = vcmask 1042432  }
  0x40   : > { %vm18806_vm13 = vmand %vm833_vm2, %vm2835_vm5  ;;  %vm4827_vm5 = vcmask 1046532  }
  0x41   : > { %vm19422_vm1 = vmor %vm4485_vm14, %vm4486_vm15  ;;  %vm4460_vm15 = vcmask 519424  }
  0x42   : > { %vm19514_vm14 = vmor %vm4826_vm3, %vm4827_vm5  ;;  %vm4624_vm3 = vcmask 781824   ;;  %vm8683_vm5 = vsmask.f32 5392 }
  0xde   : > { %v17415_v28 = vpop.f32.mrf.mxu0  ;;  %v17431_v29 = vpop.f32.mrf.mxu1 }
  0xdf   : > { %v747_v32 = vadd.f32 %v17431_v29, %v16191_v26  ;;  %v683_v33 = vadd.f32 %v17415_v28, %v16191_v26 }
  0xe0   : > { %v674_v34 = vpop.f32.mrf.mxu0  ;;  %v738_v35 = vpop.f32.mrf.mxu1 }
  0xe1   : > { %v675_v38 = vadd.f32 %v16191_v26, %v674_v34  ;;  %v739_v39 = vadd.f32 %v16191_v26, %v738_v35  ;;  %v819_v43 = vmax.f32 %v747_v32, 0.0  ;;  %v803_v46 = vmax.f32 %v683_v33, 0.0 }
  0xe2   : > { %v17416_v40 = vpop.f32.mrf.mxu0  ;;  %v17432_v42 = vpop.f32.mrf.mxu1 }
  0xe3   : > { %v686_v44 = vadd.f32 %v17416_v40, %v16191_v26  ;;  %v750_v45 = vadd.f32 %v17432_v42, %v16191_v26  ;;  %v801_v54 = vmax.f32 %v675_v38, 0.0  ;;  %v817_v55 = vmax.f32 %v739_v39, 0.0 }
  0xe4   : > { %v677_v48 = vpop.f32.mrf.mxu0  ;;  %v741_v49 = vpop.f32.mrf.mxu1 }
  0xe5   : > { %v804_v50 = vmax.f32 %v686_v44, 0.0  ;;  %v820_v51 = vmax.f32 %v750_v45, 0.0  ;;  %v678_v52 = vadd.f32 %v16191_v26, %v677_v48  ;;  %v742_v53 = vadd.f32 %v16191_v26, %v741_v49 }
  0xe6   : > { %v17419_v61 = vpop.f32.mrf.mxu0  ;;  %v17435_v62 = vpop.f32.mrf.mxu1 }
  0xe7   : > { %v916_v57 = vpack.c.bf16 %v804_v50, %v803_v46  ;;  %v16229_v58 = vpack.c.bf16 %v804_v50, %v804_v50  ;;  %v924_v59 = vpack.c.bf16 %v820_v51, %v819_v43  ;;  %v16237_v60 = vpack.c.bf16 %v820_v51, %v820_v51  ;;  %v4173_v51 = vld [vmem:[#allocation2 + $0xac] sm:$0x1] }
  0xe8   : > { %v18744_v63 = vmax.f32 %v678_v52, 0.0  ;;  %v18746_v0 = vmax.f32 %v742_v53, 0.0  ;;  %v18748_v1 = vadd.f32 %v17419_v61, %v16191_v26  ;;  %v18750_v2 = vadd.f32 %v17435_v62, %v16191_v26 }
  0xe9   : > { %v1003_v3 = vrot.slane %v916_v57, %v18739_v47  ;;  %v1010_v4 = vrot.slane %v16229_v58, %v18739_v47  ;;  %v1395_v5 = vrot.slane %v924_v59, %v18739_v47  ;;  %v1402_v6 = vrot.slane %v16237_v60, %v18739_v47 }
  0xea   : > { %v18757_v7 = vpack.c.bf16 %v18744_v63, %v801_v54  ;;  %v16228_v8 = vpack.c.bf16 %v18744_v63, %v18744_v63  ;;  %v18762_v9 = vpack.c.bf16 %v18746_v0, %v817_v55  ;;  %v16236_v10 = vpack.c.bf16 %v18746_v0, %v18746_v0 }
  0xeb   : > { %v1011_v11 = vcombine.high %v1003_v3, %v1003_v3  ;;  %v1012_v12 = vcombine.high %v1010_v4, %v1010_v4  ;;  %v1019_v13 = vrot.slane %v1003_v3, %v18739_v47  ;;  %v1026_v14 = vrot.slane %v1010_v4, %v18739_v47 }
  0xec   : > { %v1403_v15 = vcombine.high %v1395_v5, %v1395_v5  ;;  %v1404_v16 = vcombine.high %v1402_v6, %v1402_v6  ;;  %v18769_v17 = vrot.slane %v1395_v5, %v18739_v47  ;;  %v18772_v18 = vrot.slane %v1402_v6, %v18739_v47 }
  0xed   : > { %v1033_v19 = vrot.slane %v1011_v11, %v18739_v47  ;;  %v1040_v20 = vrot.slane %v1012_v12, %v18739_v47  ;;  %v1041_v21 = vcombine.high %v1019_v13, %v1019_v13  ;;  %v1042_v23 = vcombine.high %v1026_v14, %v1026_v14 }
  0xee   : > { %v3079_v25 = vrot.slane %v1019_v13, %v18742_v56  ;;  %v3135_v26 = vrot.slane %v1026_v14, %v18742_v56  ;;  %v18785_v27 = vrot.slane %v1403_v15, %v18739_v47  ;;  %v18788_v28 = vrot.slane %v1404_v16, %v18739_v47 }
  0xef   : > { %v1043_v29 = vcombine.high %v1033_v19, %v1033_v19  ;;  %v1044_v30 = vcombine.high %v1040_v20, %v1040_v20  ;;  %v3093_v31 = vrot.slane %v1033_v19, %v18742_v56  ;;  %v3107_v32 = vrot.slane %v1041_v21, %v18742_v56 }
  0xf0   : > { %v3086_v33 = vrot.slane %v3079_v25, %v18742_v56  ;;  %v3142_v34 = vrot.slane %v3135_v26, %v18742_v56  ;;  %v3149_v35 = vrot.slane %v1040_v20, %v18742_v56  ;;  %v3163_v36 = vrot.slane %v1042_v23, %v18742_v56  ;;  %v4927_v20 = vld [vmem:[#allocation2 + $0xf0] sm:$0xf] }
  0xf1   : > { %v3100_v38 = vrot.slane %v3093_v31, %v18742_v56  ;;  %v3114_v39 = vrot.slane %v3107_v32, %v18742_v56  ;;  %v3121_v40 = vrot.slane %v1043_v29, %v18742_v56  ;;  %v3177_v41 = vrot.slane %v1044_v30, %v18742_v56  ;;  %v4358_v29 = vld [vmem:[#allocation2 + $0xfc] sm:$0x1]  ;;  %4943 = vrot.lane.b32.xlu0 %v4927_v20, %s18425_s26  ;;  %v4170_v31 = vld [vmem:[#allocation2 + $0xa8] sm:$0xf] }
  0xf2   : > { %v3156_v42 = vrot.slane %v3149_v35, %v18742_v56  ;;  %v3170_v43 = vrot.slane %v3163_v36, %v18742_v56  ;;  %v3969_v44 = vunpack.c.l.b16 %v3086_v33  ;;  %v3973_v45 = vunpack.c.l.b16 %v3142_v34 }
  0xf3   : > { %v3128_v46 = vrot.slane %v3121_v40, %v18742_v56  ;;  %v3184_v48 = vrot.slane %v3177_v41, %v18742_v56  ;;  %v3970_v49 = vunpack.c.l.b16 %v3100_v38  ;;  %v3971_v50 = vunpack.c.l.b16 %v3114_v39  ;;  %v4355_v38 = vld [vmem:[#allocation2 + $0xf8] sm:$0xf] }
  0xf4   : > { %v3974_v53 = vunpack.c.l.b16 %v3156_v42  ;;  %v3975_v54 = vunpack.c.l.b16 %v3170_v43  ;;  %v4033_v55 = vrot.slane %v3969_v44, 7  ;;  %v4040_v57 = vrot.slane %v3973_v45, 3 }
  0xf5   : > { %v3972_v58 = vunpack.c.l.b16 %v3128_v46  ;;  %v3976_v59 = vunpack.c.l.b16 %v3184_v48  ;;  %v4034_v60 = vrot.slane %v3970_v49, 6  ;;  %v4036_v61 = vrot.slane %v3971_v50, 5 }
  0xf6   : > { %v4042_v62 = vrot.slane %v3974_v53, 2  ;;  %v4044_v3 = vrot.slane %v3975_v54, 1  ;;  %v16252_v4 = vcombine.low %v3184_v48, %v3184_v48  ;;  %v4218_v5 = vrot.slane %v3970_v49, 7 }
  0xf7   : > { %v4035_v6 = vsel %vm2693_vm6, %v4034_v60, %v4033_v55  ;;  %v4038_v11 = vrot.slane %v3972_v58, 4  ;;  %v4220_v12 = vrot.slane %v3971_v50, 6  ;;  %v4222_v13 = vrot.slane %v3972_v58, 5 }
  0xf8   : > { %v4037_v14 = vsel %vm2696_vm7, %v4036_v61, %v4035_v6  ;;  %v4174_v15 = vsel %vm18778_vm9, %v16252_v4, %v4173_v51  ;;  %v4219_v16 = vsel %vm2693_vm6, %v4218_v5, %v3969_v44  ;;  %v4224_v19 = vrot.slane %v3973_v45, 4 }
  0xf9   : > { %v4039_v21 = vsel %vm2699_vm8, %v4038_v11, %v4037_v14  ;;  %4175 = vst [vmem:[#allocation2 + $0xac] sm:$0x1] %v4174_v15  ;;  %v4221_v23 = vsel %vm2696_vm7, %v4220_v12, %v4219_v16  ;;  %v4226_v25 = vrot.slane %v3974_v53, 3  ;;  %v4228_v26 = vrot.slane %v3975_v54, 2 }
  0xfa   : > { %v4041_v30 = vsel %vm2702_vm10, %v4040_v57, %v4039_v21  ;;  %v4223_v32 = vsel %vm2699_vm8, %v4222_v13, %v4221_v23  ;;  %v4230_v33 = vrot.slane %v3976_v59, 1  ;;  %v1433_v34 = vcombine.high %v18769_v17, %v18769_v17  ;;  %v4197_v13 = vld [vmem:[#allocation2 + $0xcc] sm:$0x1] }
  0xfb   : > { %v4043_v35 = vsel %vm2705_vm11, %v4042_v62, %v4041_v30  ;;  %v4225_v36 = vsel %vm2702_vm10, %v4224_v19, %v4223_v32  ;;  %v1434_v39 = vcombine.high %v18772_v18, %v18772_v18  ;;  %v1435_v40 = vcombine.high %v18785_v27, %v18785_v27 }
  0xfc   : > { %v4045_v41 = vsel %vm2708_vm12, %v4044_v3, %v4043_v35  ;;  %v4227_v42 = vsel %vm2705_vm11, %v4226_v25, %v4225_v36  ;;  %v4323_v43 = vpack.c.b16 %v4230_v33, %v4230_v33  ;;  %v1436_v44 = vcombine.high %v18788_v28, %v18788_v28 }
  0xfd   : > { %v4137_v45 = vpack.c.b16 %v4045_v41, %v4045_v41  ;;  %v4229_v46 = vsel %vm2708_vm12, %v4228_v26, %v4227_v42  ;;  %v3527_v48 = vrot.slane %v18769_v17, %v18742_v56  ;;  %v3541_v49 = vrot.slane %v18785_v27, %v18742_v56 }
  0xfe   : > { %v4322_v50 = vpack.c.b16 %v4229_v46, %v4229_v46  ;;  %v4359_v51 = vsel %vm18778_vm9, %v4323_v43, %v4358_v29  ;;  %v3555_v53 = vrot.slane %v1433_v34, %v18742_v56  ;;  %v3569_v54 = vrot.slane %v1435_v40, %v18742_v56  ;;  %v4194_v46 = vld [vmem:[#allocation2 + $0xc8] sm:$0xf] }
  0xff   : > { %v4171_v55 = vsel %vm18806_vm13, %v4137_v45, %v4170_v31  ;;  %4360 = vst [vmem:[#allocation2 + $0xfc] sm:$0x1] %v4359_v51  ;;  %v3534_v57 = vrot.slane %v3527_v48, %v18742_v56  ;;  %v3548_v58 = vrot.slane %v3541_v49, %v18742_v56  ;;  %v3583_v17 = vrot.slane %v18772_v18, %v18742_v56 }
 0x100   : > { %4172 = vst [vmem:[#allocation2 + $0xa8] sm:$0xf] %v4171_v55  ;;  %v4356_v27 = vsel %vm18806_vm13, %v4322_v50, %v4355_v38  ;;  %v3562_v59 = vrot.slane %v3555_v53, %v18742_v56  ;;  %v3576_v60 = vrot.slane %v3569_v54, %v18742_v56  ;;  %v3597_v61 = vrot.slane %v18788_v28, %v18742_v56 }
 0x101   : > { %4357 = vst [vmem:[#allocation2 + $0xf8] sm:$0xf] %v4356_v27  ;;  %v3590_v62 = vrot.slane %v3583_v17, %v18742_v56  ;;  %v3611_v3 = vrot.slane %v1434_v39, %v18742_v56  ;;  %v3625_v4 = vrot.slane %v1436_v44, %v18742_v56  ;;  %v4001_v5 = vunpack.c.l.b16 %v3534_v57  ;;  %v4382_v44 = vld [vmem:[#allocation2 + $0x11c] sm:$0x1]  ;;  %v4379_v27 = vld [vmem:[#allocation2 + $0x118] sm:$0xf] }
 0x102   : > { %v3604_v18 = vrot.slane %v3597_v61, %v18742_v56  ;;  %v4002_v6 = vunpack.c.l.b16 %v3548_v58  ;;  %v4003_v11 = vunpack.c.l.b16 %v3562_v59  ;;  %v4004_v12 = vunpack.c.l.b16 %v3576_v60 }
 0x103   : > { %v3618_v14 = vrot.slane %v3611_v3, %v18742_v56  ;;  %v3632_v15 = vrot.slane %v3625_v4, %v18742_v56  ;;  %v4005_v16 = vunpack.c.l.b16 %v3590_v62  ;;  %v4085_v28 = vrot.slane %v4001_v5, 7 }
 0x104   : > { %v4006_v19 = vunpack.c.l.b16 %v3604_v18  ;;  %v4086_v20 = vrot.slane %v4002_v6, 6  ;;  %v4088_v21 = vrot.slane %v4003_v11, 5  ;;  %v4090_v23 = vrot.slane %v4004_v12, 4 }
 0x105   : > { %v4007_v25 = vunpack.c.l.b16 %v3618_v14  ;;  %v4008_v26 = vunpack.c.l.b16 %v3632_v15  ;;  %v4092_v29 = vrot.slane %v4005_v16, 3  ;;  %v16256_v30 = vcombine.low %v3632_v15, %v3632_v15 }
 0x106   : > { %v4087_v31 = vsel %vm2693_vm6, %v4086_v20, %v4085_v28  ;;  %v4094_v32 = vrot.slane %v4006_v19, 2  ;;  %v4270_v33 = vrot.slane %v4002_v6, 7  ;;  %v4272_v34 = vrot.slane %v4003_v11, 6 }
 0x107   : > { %v4089_v35 = vsel %vm2696_vm7, %v4088_v21, %v4087_v31  ;;  %v4096_v36 = vrot.slane %v4007_v25, 1  ;;  %v4198_v38 = vsel %vm18778_vm9, %v16256_v30, %v4197_v13  ;;  %v4274_v39 = vrot.slane %v4004_v12, 5 }
 0x108   : > { %v4091_v40 = vsel %vm2699_vm8, %v4090_v23, %v4089_v35  ;;  %4199 = vst [vmem:[#allocation2 + $0xcc] sm:$0x1] %v4198_v38  ;;  %v4271_v41 = vsel %vm2693_vm6, %v4270_v33, %v4001_v5  ;;  %v4276_v42 = vrot.slane %v4005_v16, 4  ;;  %v4278_v43 = vrot.slane %v4006_v19, 3 }
 0x109   : > { %v4093_v45 = vsel %vm2702_vm10, %v4092_v29, %v4091_v40  ;;  %v4273_v48 = vsel %vm2696_vm7, %v4272_v34, %v4271_v41  ;;  %v4280_v49 = vrot.slane %v4007_v25, 2  ;;  %v4282_v50 = vrot.slane %v4008_v26, 1  ;;  %v2843_v41 = vld [vmem:[#allocation2 + $0xc] sm:$0x1] }
 0x10a   : > { %v4095_v51 = vsel %vm2705_vm11, %v4094_v32, %v4093_v45  ;;  %v4275_v53 = vsel %vm2699_vm8, %v4274_v39, %v4273_v48  ;;  %v954_v54 = vrot.slane %v18757_v7, %v18739_v47  ;;  %v961_v55 = vrot.slane %v16228_v8, %v18739_v47 }
 0x10b   : > { %v4097_v57 = vsel %vm2708_vm12, %v4096_v36, %v4095_v51  ;;  %v4277_v58 = vsel %vm2702_vm10, %v4276_v42, %v4275_v53  ;;  %v4331_v17 = vpack.c.b16 %v4282_v50, %v4282_v50  ;;  %v18879_v59 = vrot.slane %v18762_v9, %v18739_v47 }
 0x10c   : > { %v4145_v60 = vpack.c.b16 %v4097_v57, %v4097_v57  ;;  %v4279_v61 = vsel %vm2705_vm11, %v4278_v43, %v4277_v58  ;;  %v962_v62 = vcombine.high %v954_v54, %v954_v54  ;;  %v963_v7 = vcombine.high %v961_v55, %v961_v55 }
 0x10d   : > { %v4281_v3 = vsel %vm2708_vm12, %v4280_v49, %v4279_v61  ;;  %v4383_v63 = vsel %vm18778_vm9, %v4331_v17, %v4382_v44  ;;  %v970_v8 = vrot.slane %v954_v54, %v18739_v47  ;;  %v977_v4 = vrot.slane %v961_v55, %v18739_v47 }
 0x10e   : > { %v4195_v5 = vsel %vm18806_vm13, %v4145_v60, %v4194_v46  ;;  %v4330_v18 = vpack.c.b16 %v4281_v3, %v4281_v3  ;;  %4384 = vst [vmem:[#allocation2 + $0x11c] sm:$0x1] %v4383_v63  ;;  %v984_v9 = vrot.slane %v962_v62, %v18739_v47  ;;  %v991_v6 = vrot.slane %v963_v7, %v18739_v47 }
 0x10f   : > { %4196 = vst [vmem:[#allocation2 + $0xc8] sm:$0xf] %v4195_v5  ;;  %v992_v11 = vcombine.high %v970_v8, %v970_v8  ;;  %v993_v12 = vcombine.high %v977_v4, %v977_v4  ;;  %v1737_v13 = vrot.slane %v970_v8, %v18742_v56  ;;  %v1793_v14 = vrot.slane %v977_v4, %v18742_v56  ;;  %v3028_v5 = vld [vmem:[#allocation2 + $0x5c] sm:$0x1] }
 0x110   : > { %v4380_v15 = vsel %vm18806_vm13, %v4330_v18, %v4379_v27  ;;  %v994_v16 = vcombine.high %v984_v9, %v984_v9  ;;  %v995_v28 = vcombine.high %v991_v6, %v991_v6  ;;  %v1751_v19 = vrot.slane %v984_v9, %v18742_v56  ;;  %v2837_v9 = vld [vmem:[#allocation2 + $0x8] sm:$0xf] }
 0x111   : > { %4381 = vst [vmem:[#allocation2 + $0x118] sm:$0xf] %v4380_v15  ;;  %v1744_v20 = vrot.slane %v1737_v13, %v18742_v56  ;;  %v1765_v21 = vrot.slane %v992_v11, %v18742_v56  ;;  %v1800_v23 = vrot.slane %v1793_v14, %v18742_v56  ;;  %v1807_v25 = vrot.slane %v991_v6, %v18742_v56  ;;  %v3025_v15 = vld [vmem:[#allocation2 + $0x58] sm:$0xf] }
 0x112   : > { %v1758_v26 = vrot.slane %v1751_v19, %v18742_v56  ;;  %v1779_v29 = vrot.slane %v994_v16, %v18742_v56  ;;  %v1821_v30 = vrot.slane %v993_v12, %v18742_v56  ;;  %v1835_v31 = vrot.slane %v995_v28, %v18742_v56 }
 0x113   : > { %v1772_v32 = vrot.slane %v1765_v21, %v18742_v56  ;;  %v1814_v33 = vrot.slane %v1807_v25, %v18742_v56  ;;  %v2627_v34 = vunpack.c.l.b16 %v1744_v20  ;;  %v2631_v35 = vunpack.c.l.b16 %v1800_v23 }
 0x114   : > { %v1786_v36 = vrot.slane %v1779_v29, %v18742_v56  ;;  %v1828_v38 = vrot.slane %v1821_v30, %v18742_v56  ;;  %v1842_v39 = vrot.slane %v1835_v31, %v18742_v56  ;;  %v2628_v40 = vunpack.c.l.b16 %v1758_v26 }
 0x115   : > { %v2629_v42 = vunpack.c.l.b16 %v1772_v32  ;;  %v2632_v43 = vunpack.c.l.b16 %v1814_v33  ;;  %v2691_v44 = vrot.slane %v2627_v34, 7  ;;  %v2701_v45 = vrot.slane %v2631_v35, 3 }
 0x116   : > { %v2630_v46 = vunpack.c.l.b16 %v1786_v36  ;;  %v2633_v48 = vunpack.c.l.b16 %v1828_v38  ;;  %v2634_v49 = vunpack.c.l.b16 %v1842_v39  ;;  %v2692_v50 = vrot.slane %v2628_v40, 6 }
 0x117   : > { %v2695_v51 = vrot.slane %v2629_v42, 5  ;;  %v2704_v53 = vrot.slane %v2632_v43, 2  ;;  %v16244_v54 = vcombine.low %v1842_v39, %v1842_v39  ;;  %v2888_v55 = vrot.slane %v2628_v40, 7 }
 0x118   : > { %v2694_v57 = vsel %vm2693_vm6, %v2692_v50, %v2691_v44  ;;  %v2698_v58 = vrot.slane %v2630_v46, 4  ;;  %v2707_v17 = vrot.slane %v2633_v48, 1  ;;  %v2890_v27 = vrot.slane %v2629_v42, 6 }
 0x119   : > { %v2697_v60 = vsel %vm2696_vm7, %v2695_v51, %v2694_v57  ;;  %v2844_v61 = vsel %vm18778_vm9, %v16244_v54, %v2843_v41  ;;  %v2889_v62 = vsel %vm2693_vm6, %v2888_v55, %v2627_v34  ;;  %v2892_v7 = vrot.slane %v2630_v46, 5 }
 0x11a   : > { %v2700_v3 = vsel %vm2699_vm8, %v2698_v58, %v2697_v60  ;;  %2845 = vst [vmem:[#allocation2 + $0xc] sm:$0x1] %v2844_v61  ;;  %v2891_v63 = vsel %vm2696_vm7, %v2890_v27, %v2889_v62  ;;  %v2894_v8 = vrot.slane %v2631_v35, 4  ;;  %v2896_v4 = vrot.slane %v2632_v43, 3  ;;  %v690_v27 = vpop.f32.mrf.mxu0 }
 0x11b   : > { %v2703_v18 = vsel %vm2702_vm10, %v2701_v45, %v2700_v3  ;;  %v2893_v6 = vsel %vm2699_vm8, %v2892_v7, %v2891_v63  ;;  %v2898_v11 = vrot.slane %v2633_v48, 2  ;;  %v2900_v12 = vrot.slane %v2634_v49, 1 }
 0x11c   : > { %v2706_v13 = vsel %vm2705_vm11, %v2704_v53, %v2703_v18  ;;  %v2895_v14 = vsel %vm2702_vm10, %v2894_v8, %v2893_v6  ;;  %v1353_v16 = vrot.slane %v16236_v10, %v18739_v47  ;;  %v1354_v28 = vcombine.high %v18879_v59, %v18879_v59 }
 0x11d   : > { %v2709_v19 = vsel %vm2708_vm12, %v2707_v17, %v2706_v13  ;;  %v2897_v20 = vsel %vm2705_vm11, %v2896_v4, %v2895_v14  ;;  %v2993_v21 = vpack.c.b16 %v2900_v12, %v2900_v12  ;;  %v1362_v23 = vrot.slane %v18879_v59, %v18739_v47 }
 0x11e   : > { %v2801_v25 = vpack.c.b16 %v2709_v19, %v2709_v19  ;;  %v2899_v26 = vsel %vm2708_vm12, %v2898_v11, %v2897_v20  ;;  %v1355_v29 = vcombine.high %v1353_v16, %v1353_v16  ;;  %v1369_v30 = vrot.slane %v1353_v16, %v18739_v47  ;;  %v17420_v16 = vpop.f32.mrf.mxu0 }
 0x11f   : > { %v2992_v31 = vpack.c.b16 %v2899_v26, %v2899_v26  ;;  %v3029_v0 = vsel %vm18778_vm9, %v2993_v21, %v3028_v5  ;;  %v1376_v10 = vrot.slane %v1354_v28, %v18739_v47  ;;  %v1384_v32 = vcombine.high %v1362_v23, %v1362_v23  ;;  %v2867_v5 = vld [vmem:[#allocation2 + $0x2c] sm:$0x1]  ;;  %v754_v28 = vpop.f32.mrf.mxu1 }
 0x120   : > { %v2838_v33 = vsel %vm18806_vm13, %v2801_v25, %v2837_v9  ;;  %3030 = vst [vmem:[#allocation2 + $0x5c] sm:$0x1] %v3029_v0  ;;  %v1383_v34 = vrot.slane %v1355_v29, %v18739_v47  ;;  %v1385_v59 = vcombine.high %v1369_v30, %v1369_v30  ;;  %v2185_v35 = vrot.slane %v1362_v23, %v18742_v56  ;;  %v2864_v0 = vld [vmem:[#allocation2 + $0x28] sm:$0xf] }
 0x121   : > { %2839 = vst [vmem:[#allocation2 + $0x8] sm:$0xf] %v2838_v33  ;;  %v3026_v36 = vsel %vm18806_vm13, %v2992_v31, %v3025_v15  ;;  %v1386_v38 = vcombine.high %v1376_v10, %v1376_v10  ;;  %v2199_v39 = vrot.slane %v1376_v10, %v18742_v56  ;;  %v2213_v40 = vrot.slane %v1384_v32, %v18742_v56 }
 0x122   : > { %3027 = vst [vmem:[#allocation2 + $0x58] sm:$0xf] %v3026_v36  ;;  %v1387_v41 = vcombine.high %v1383_v34, %v1383_v34  ;;  %v2192_v42 = vrot.slane %v2185_v35, %v18742_v56  ;;  %v2241_v43 = vrot.slane %v1369_v30, %v18742_v56  ;;  %v2255_v44 = vrot.slane %v1383_v34, %v18742_v56  ;;  %v3052_v34 = vld [vmem:[#allocation2 + $0x7c] sm:$0x1] }
 0x123   : > { %v2206_v45 = vrot.slane %v2199_v39, %v18742_v56  ;;  %v2220_v46 = vrot.slane %v2213_v40, %v18742_v56  ;;  %v2227_v48 = vrot.slane %v1386_v38, %v18742_v56  ;;  %v2269_v49 = vrot.slane %v1385_v59, %v18742_v56  ;;  %v18970_v38 = vld [vmem:[%s23889_s2] ss:$0 sm:$0xff]  ;;  %v693_v40 = vpop.f32.mrf.mxu0 }
 0x124   : > { %v2248_v50 = vrot.slane %v2241_v43, %v18742_v56  ;;  %v2262_v51 = vrot.slane %v2255_v44, %v18742_v56  ;;  %v2283_v53 = vrot.slane %v1387_v41, %v18742_v56  ;;  %v2659_v54 = vunpack.c.l.b16 %v2192_v42  ;;  %v17436_v41 = vpop.f32.mrf.mxu1 }
 0x125   : > { %v2234_v55 = vrot.slane %v2227_v48, %v18742_v56  ;;  %v2276_v57 = vrot.slane %v2269_v49, %v18742_v56  ;;  %v2660_v58 = vunpack.c.l.b16 %v2206_v45  ;;  %v2661_v17 = vunpack.c.l.b16 %v2220_v46 }
 0x126   : > { %v2290_v60 = vrot.slane %v2283_v53, %v18742_v56  ;;  %v2663_v61 = vunpack.c.l.b16 %v2248_v50  ;;  %v2664_v62 = vunpack.c.l.b16 %v2262_v51  ;;  %v2749_v7 = vrot.slane %v2659_v54, 7  ;;  %v3049_v51 = vld [vmem:[#allocation2 + $0x78] sm:$0xf] }
 0x127   : > { %v2662_v3 = vunpack.c.l.b16 %v2234_v55  ;;  %v2665_v63 = vunpack.c.l.b16 %v2276_v57  ;;  %v2750_v8 = vrot.slane %v2660_v58, 6  ;;  %v2752_v4 = vrot.slane %v2661_v17, 5 }
 0x128   : > { %v2666_v18 = vunpack.c.l.b16 %v2290_v60  ;;  %v2756_v9 = vrot.slane %v2663_v61, 3  ;;  %v2758_v6 = vrot.slane %v2664_v62, 2  ;;  %v16248_v11 = vcombine.low %v2290_v60, %v2290_v60  ;;  %v757_v60 = vpop.f32.mrf.mxu1 }
 0x129   : > { %v2751_v12 = vsel %vm2693_vm6, %v2750_v8, %v2749_v7  ;;  %v2754_v13 = vrot.slane %v2662_v3, 4  ;;  %v2760_v14 = vrot.slane %v2665_v63, 1  ;;  %v2940_v15 = vrot.slane %v2660_v58, 7 }
 0x12a   : > { %v2753_v19 = vsel %vm2696_vm7, %v2752_v4, %v2751_v12  ;;  %v2868_v20 = vsel %vm18778_vm9, %v16248_v11, %v2867_v5  ;;  %v2942_v21 = vrot.slane %v2661_v17, 6  ;;  %v2944_v23 = vrot.slane %v2662_v3, 5 }
 0x12b   : > { %v2755_v25 = vsel %vm2699_vm8, %v2754_v13, %v2753_v19  ;;  %2869 = vst [vmem:[#allocation2 + $0x2c] sm:$0x1] %v2868_v20  ;;  %v2941_v26 = vsel %vm2693_vm6, %v2940_v15, %v2659_v54  ;;  %v2946_v29 = vrot.slane %v2663_v61, 4  ;;  %v2948_v30 = vrot.slane %v2664_v62, 3 }
 0x12c   : > { %v2757_v31 = vsel %vm2702_vm10, %v2756_v9, %v2755_v25  ;;  %v2943_v10 = vsel %vm2696_vm7, %v2942_v21, %v2941_v26  ;;  %v2950_v32 = vrot.slane %v2665_v63, 2  ;;  %v2952_v33 = vrot.slane %v2666_v18, 1 }
 0x12d   : > { %v2759_v59 = vsel %vm2705_vm11, %v2758_v6, %v2757_v31  ;;  %v2945_v35 = vsel %vm2699_vm8, %v2944_v23, %v2943_v10  ;;  %v807_v36 = vmax.f32 %v18748_v1, 0.0  ;;  %v691_v39 = vadd.f32 %v18970_v38, %v690_v27  ;;  %v17423_v27 = vpop.f32.mrf.mxu0 }
 0x12e   : > { %v2761_v42 = vsel %vm2708_vm12, %v2760_v14, %v2759_v59  ;;  %v2947_v43 = vsel %vm2702_vm10, %v2946_v29, %v2945_v35  ;;  %v3001_v44 = vpack.c.b16 %v2952_v33, %v2952_v33  ;;  %v823_v45 = vmax.f32 %v18750_v2, 0.0 }
 0x12f   : > { %v2809_v46 = vpack.c.b16 %v2761_v42, %v2761_v42  ;;  %v2949_v48 = vsel %vm2705_vm11, %v2948_v30, %v2947_v43  ;;  %v805_v1 = vmax.f32 %v691_v39, 0.0  ;;  %v702_v49 = vadd.f32 %v18970_v38, %v17420_v16 }
 0x130   : > { %v2951_v50 = vsel %vm2708_vm12, %v2950_v32, %v2949_v48  ;;  %v3053_v53 = vsel %vm18778_vm9, %v3001_v44, %v3052_v34  ;;  %v755_v54 = vadd.f32 %v18970_v38, %v754_v28  ;;  %v694_v55 = vadd.f32 %v18970_v38, %v693_v40 }
 0x131   : > { %v2865_v57 = vsel %vm18806_vm13, %v2809_v46, %v2864_v0  ;;  %v3000_v2 = vpack.c.b16 %v2951_v50, %v2951_v50  ;;  %3054 = vst [vmem:[#allocation2 + $0x7c] sm:$0x1] %v3053_v53  ;;  %v808_v58 = vmax.f32 %v702_v49, 0.0  ;;  %v766_v17 = vadd.f32 %v18970_v38, %v17436_v41 }
 0x132   : > { %2866 = vst [vmem:[#allocation2 + $0x28] sm:$0xf] %v2865_v57  ;;  %v821_v61 = vmax.f32 %v755_v54, 0.0  ;;  %v806_v62 = vmax.f32 %v694_v55, 0.0  ;;  %v18987_v7 = vadd.f32 %v18970_v38, %v17423_v27  ;;  %v758_v3 = vadd.f32 %v18970_v38, %v757_v60 }
 0x133   : > { %v3050_v63 = vsel %vm18806_vm13, %v3000_v2, %v3049_v51  ;;  %v918_v8 = vpack.c.bf16 %v808_v58, %v807_v36  ;;  %v16231_v4 = vpack.c.bf16 %v808_v58, %v808_v58  ;;  %v18992_v5 = vmax.f32 %v766_v17, 0.0 }
 0x134   : > { %3051 = vst [vmem:[#allocation2 + $0x78] sm:$0xf] %v3050_v63  ;;  %v917_v18 = vpack.c.bf16 %v806_v62, %v805_v1  ;;  %v16230_v9 = vpack.c.bf16 %v806_v62, %v806_v62  ;;  %v811_v6 = vmax.f32 %v18987_v7, 0.0  ;;  %v18995_v11 = vmax.f32 %v758_v3, 0.0 }
 0x135   : > { %v1101_v12 = vrot.slane %v918_v8, %v18739_v47  ;;  %v1108_v13 = vrot.slane %v16231_v4, %v18739_v47  ;;  %v19000_v14 = vpack.c.bf16 %v18992_v5, %v823_v45  ;;  %v16239_v15 = vpack.c.bf16 %v18992_v5, %v18992_v5 }
 0x136   : > { %v1052_v16 = vrot.slane %v917_v18, %v18739_v47  ;;  %v1059_v28 = vrot.slane %v16230_v9, %v18739_v47  ;;  %v19007_v19 = vpack.c.bf16 %v18995_v11, %v821_v61  ;;  %v16238_v20 = vpack.c.bf16 %v18995_v11, %v18995_v11  ;;  %v4179_v9 = vld [vmem:[#allocation2 + $0xb4] sm:$0x1] }
 0x137   : > { %v1109_v21 = vcombine.high %v1101_v12, %v1101_v12  ;;  %v1110_v23 = vcombine.high %v1108_v13, %v1108_v13  ;;  %v1117_v25 = vrot.slane %v1101_v12, %v18739_v47  ;;  %v1124_v26 = vrot.slane %v1108_v13, %v18739_v47 }
 0x138   : > { %v1060_v29 = vcombine.high %v1052_v16, %v1052_v16  ;;  %v1061_v30 = vcombine.high %v1059_v28, %v1059_v28  ;;  %v19014_v31 = vrot.slane %v1052_v16, %v18739_v47  ;;  %v19017_v0 = vrot.slane %v1059_v28, %v18739_v47 }
 0x139   : > { %v1131_v10 = vrot.slane %v1109_v21, %v18739_v47  ;;  %v1138_v32 = vrot.slane %v1110_v23, %v18739_v47  ;;  %v1139_v33 = vcombine.high %v1117_v25, %v1117_v25  ;;  %v1140_v34 = vcombine.high %v1124_v26, %v1124_v26 }
 0x13a   : > { %v3191_v59 = vrot.slane %v1117_v25, %v18742_v56  ;;  %v3247_v35 = vrot.slane %v1124_v26, %v18742_v56  ;;  %v19024_v36 = vrot.slane %v1060_v29, %v18739_v47  ;;  %v19027_v39 = vrot.slane %v1061_v30, %v18739_v47 }
 0x13b   : > { %v1141_v40 = vcombine.high %v1131_v10, %v1131_v10  ;;  %v1142_v41 = vcombine.high %v1138_v32, %v1138_v32  ;;  %v3205_v42 = vrot.slane %v1131_v10, %v18742_v56  ;;  %v3219_v43 = vrot.slane %v1139_v33, %v18742_v56 }
 0x13c   : > { %v3198_v44 = vrot.slane %v3191_v59, %v18742_v56  ;;  %v3254_v45 = vrot.slane %v3247_v35, %v18742_v56  ;;  %v3261_v46 = vrot.slane %v1138_v32, %v18742_v56  ;;  %v3275_v48 = vrot.slane %v1140_v34, %v18742_v56 }
 0x13d   : > { %v3212_v1 = vrot.slane %v3205_v42, %v18742_v56  ;;  %v3226_v49 = vrot.slane %v3219_v43, %v18742_v56  ;;  %v3233_v50 = vrot.slane %v1141_v40, %v18742_v56  ;;  %v3289_v51 = vrot.slane %v1142_v41, %v18742_v56 }
 0x13e   : > { %v3268_v53 = vrot.slane %v3261_v46, %v18742_v56  ;;  %v3282_v54 = vrot.slane %v3275_v48, %v18742_v56  ;;  %v3977_v55 = vunpack.c.l.b16 %v3198_v44  ;;  %v3981_v57 = vunpack.c.l.b16 %v3254_v45  ;;  %v4364_v46 = vld [vmem:[#allocation2 + $0x104] sm:$0x1] }
 0x13f   : > { %v3240_v2 = vrot.slane %v3233_v50, %v18742_v56  ;;  %v3296_v58 = vrot.slane %v3289_v51, %v18742_v56  ;;  %v3978_v17 = vunpack.c.l.b16 %v3212_v1  ;;  %v3979_v27 = vunpack.c.l.b16 %v3226_v49  ;;  %v4176_v50 = vld [vmem:[#allocation2 + $0xb0] sm:$0xf] }
 0x140   : > { %v3982_v60 = vunpack.c.l.b16 %v3268_v53  ;;  %v3983_v61 = vunpack.c.l.b16 %v3282_v54  ;;  %v4046_v62 = vrot.slane %v3977_v55, 7  ;;  %v4053_v3 = vrot.slane %v3981_v57, 3 }
 0x141   : > { %v3980_v63 = vunpack.c.l.b16 %v3240_v2  ;;  %v3984_v8 = vunpack.c.l.b16 %v3296_v58  ;;  %v4047_v4 = vrot.slane %v3978_v17, 6  ;;  %v4049_v18 = vrot.slane %v3979_v27, 5  ;;  %v4361_v2 = vld [vmem:[#allocation2 + $0x100] sm:$0xf] }
 0x142   : > { %v4055_v12 = vrot.slane %v3982_v60, 2  ;;  %v4057_v13 = vrot.slane %v3983_v61, 1  ;;  %v16253_v16 = vcombine.low %v3296_v58, %v3296_v58  ;;  %v4231_v28 = vrot.slane %v3978_v17, 7 }
 0x143   : > { %v4048_v21 = vsel %vm2693_vm6, %v4047_v4, %v4046_v62  ;;  %v4051_v23 = vrot.slane %v3980_v63, 4  ;;  %v4233_v25 = vrot.slane %v3979_v27, 6  ;;  %v4235_v26 = vrot.slane %v3980_v63, 5 }
 0x144   : > { %v4050_v29 = vsel %vm2696_vm7, %v4049_v18, %v4048_v21  ;;  %v4180_v30 = vsel %vm18778_vm9, %v16253_v16, %v4179_v9  ;;  %v4232_v10 = vsel %vm2693_vm6, %v4231_v28, %v3977_v55  ;;  %v4237_v32 = vrot.slane %v3981_v57, 4 }
 0x145   : > { %v4052_v33 = vsel %vm2699_vm8, %v4051_v23, %v4050_v29  ;;  %4181 = vst [vmem:[#allocation2 + $0xb4] sm:$0x1] %v4180_v30  ;;  %v4234_v34 = vsel %vm2696_vm7, %v4233_v25, %v4232_v10  ;;  %v4239_v59 = vrot.slane %v3982_v60, 3  ;;  %v4241_v35 = vrot.slane %v3983_v61, 2 }
 0x146   : > { %v4054_v40 = vsel %vm2702_vm10, %v4053_v3, %v4052_v33  ;;  %v4236_v41 = vsel %vm2699_vm8, %v4235_v26, %v4234_v34  ;;  %v4243_v42 = vrot.slane %v3984_v8, 1  ;;  %v1090_v43 = vcombine.high %v19014_v31, %v19014_v31 }
 0x147   : > { %v4056_v44 = vsel %vm2705_vm11, %v4055_v12, %v4054_v40  ;;  %v4238_v45 = vsel %vm2702_vm10, %v4237_v32, %v4236_v41  ;;  %v1091_v48 = vcombine.high %v19017_v0, %v19017_v0  ;;  %v1092_v1 = vcombine.high %v19024_v36, %v19024_v36 }
 0x148   : > { %v4058_v49 = vsel %vm2708_vm12, %v4057_v13, %v4056_v44  ;;  %v4240_v51 = vsel %vm2705_vm11, %v4239_v59, %v4238_v45  ;;  %v4325_v53 = vpack.c.b16 %v4243_v42, %v4243_v42  ;;  %v1093_v54 = vcombine.high %v19027_v39, %v19027_v39  ;;  %v2849_v59 = vld [vmem:[#allocation2 + $0x14] sm:$0x1] }
 0x149   : > { %v4139_v55 = vpack.c.b16 %v4058_v49, %v4058_v49  ;;  %v4242_v57 = vsel %vm2708_vm12, %v4241_v35, %v4240_v51  ;;  %v1849_v58 = vrot.slane %v19014_v31, %v18742_v56  ;;  %v1863_v17 = vrot.slane %v19024_v36, %v18742_v56 }
 0x14a   : > { %v4324_v27 = vpack.c.b16 %v4242_v57, %v4242_v57  ;;  %v4365_v60 = vsel %vm18778_vm9, %v4325_v53, %v4364_v46  ;;  %v1877_v61 = vrot.slane %v1090_v43, %v18742_v56  ;;  %v1891_v62 = vrot.slane %v1092_v1, %v18742_v56 }
 0x14b   : > { %v4177_v3 = vsel %vm18806_vm13, %v4139_v55, %v4176_v50  ;;  %4366 = vst [vmem:[#allocation2 + $0x104] sm:$0x1] %v4365_v60  ;;  %v1856_v63 = vrot.slane %v1849_v58, %v18742_v56  ;;  %v1870_v8 = vrot.slane %v1863_v17, %v18742_v56  ;;  %v1905_v31 = vrot.slane %v19017_v0, %v18742_v56 }
 0x14c   : > { %4178 = vst [vmem:[#allocation2 + $0xb0] sm:$0xf] %v4177_v3  ;;  %v4362_v36 = vsel %vm18806_vm13, %v4324_v27, %v4361_v2  ;;  %v1884_v4 = vrot.slane %v1877_v61, %v18742_v56  ;;  %v1898_v18 = vrot.slane %v1891_v62, %v18742_v56  ;;  %v1919_v9 = vrot.slane %v19027_v39, %v18742_v56  ;;  %v3034_v61 = vld [vmem:[#allocation2 + $0x64] sm:$0x1] }
 0x14d   : > { %4363 = vst [vmem:[#allocation2 + $0x100] sm:$0xf] %v4362_v36  ;;  %v1912_v12 = vrot.slane %v1905_v31, %v18742_v56  ;;  %v1933_v13 = vrot.slane %v1091_v48, %v18742_v56  ;;  %v1947_v16 = vrot.slane %v1093_v54, %v18742_v56  ;;  %v2635_v28 = vunpack.c.l.b16 %v1856_v63 }
 0x14e   : > { %v1926_v0 = vrot.slane %v1919_v9, %v18742_v56  ;;  %v2636_v21 = vunpack.c.l.b16 %v1870_v8  ;;  %v2637_v23 = vunpack.c.l.b16 %v1884_v4  ;;  %v2638_v25 = vunpack.c.l.b16 %v1898_v18  ;;  %v2846_v8 = vld [vmem:[#allocation2 + $0x10] sm:$0xf] }
 0x14f   : > { %v1940_v26 = vrot.slane %v1933_v13, %v18742_v56  ;;  %v1954_v29 = vrot.slane %v1947_v16, %v18742_v56  ;;  %v2639_v30 = vunpack.c.l.b16 %v1912_v12  ;;  %v2710_v10 = vrot.slane %v2635_v28, 7  ;;  %v3031_v16 = vld [vmem:[#allocation2 + $0x60] sm:$0xf] }
 0x150   : > { %v2640_v39 = vunpack.c.l.b16 %v1926_v0  ;;  %v2711_v32 = vrot.slane %v2636_v21, 6  ;;  %v2713_v33 = vrot.slane %v2637_v23, 5  ;;  %v2715_v34 = vrot.slane %v2638_v25, 4 }
 0x151   : > { %v2641_v35 = vunpack.c.l.b16 %v1940_v26  ;;  %v2642_v40 = vunpack.c.l.b16 %v1954_v29  ;;  %v2717_v41 = vrot.slane %v2639_v30, 3  ;;  %v16245_v42 = vcombine.low %v1954_v29, %v1954_v29 }
 0x152   : > { %v2712_v43 = vsel %vm2693_vm6, %v2711_v32, %v2710_v10  ;;  %v2719_v44 = vrot.slane %v2640_v39, 2  ;;  %v2901_v45 = vrot.slane %v2636_v21, 7  ;;  %v2903_v46 = vrot.slane %v2637_v23, 6 }
 0x153   : > { %v2714_v48 = vsel %vm2696_vm7, %v2713_v33, %v2712_v43  ;;  %v2721_v1 = vrot.slane %v2641_v35, 1  ;;  %v2850_v49 = vsel %vm18778_vm9, %v16245_v42, %v2849_v59  ;;  %v2905_v50 = vrot.slane %v2638_v25, 5 }
 0x154   : > { %v2716_v51 = vsel %vm2699_vm8, %v2715_v34, %v2714_v48  ;;  %2851 = vst [vmem:[#allocation2 + $0x14] sm:$0x1] %v2850_v49  ;;  %v2902_v53 = vsel %vm2693_vm6, %v2901_v45, %v2635_v28  ;;  %v2907_v54 = vrot.slane %v2639_v30, 4  ;;  %v2909_v55 = vrot.slane %v2640_v39, 3 }
 0x155   : > { %v2718_v57 = vsel %vm2702_vm10, %v2717_v41, %v2716_v51  ;;  %v2904_v2 = vsel %vm2696_vm7, %v2903_v46, %v2902_v53  ;;  %v2911_v58 = vrot.slane %v2641_v35, 2  ;;  %v2913_v17 = vrot.slane %v2642_v40, 1 }
 0x156   : > { %v2720_v27 = vsel %vm2705_vm11, %v2719_v44, %v2718_v57  ;;  %v2906_v60 = vsel %vm2699_vm8, %v2905_v50, %v2904_v2  ;;  %v1493_v62 = vrot.slane %v19000_v14, %v18739_v47  ;;  %v1500_v3 = vrot.slane %v16239_v15, %v18739_v47 }
 0x157   : > { %v2722_v63 = vsel %vm2708_vm12, %v2721_v1, %v2720_v27  ;;  %v2908_v31 = vsel %vm2702_vm10, %v2907_v54, %v2906_v60  ;;  %v2995_v36 = vpack.c.b16 %v2913_v17, %v2913_v17  ;;  %v19111_v4 = vrot.slane %v19007_v19, %v18739_v47 }
 0x158   : > { %v2803_v18 = vpack.c.b16 %v2722_v63, %v2722_v63  ;;  %v2910_v9 = vsel %vm2705_vm11, %v2909_v55, %v2908_v31  ;;  %v1501_v12 = vcombine.high %v1493_v62, %v1493_v62  ;;  %v1502_v14 = vcombine.high %v1500_v3, %v1500_v3 }
 0x159   : > { %v2912_v13 = vsel %vm2708_vm12, %v2911_v58, %v2910_v9  ;;  %v3035_v5 = vsel %vm18778_vm9, %v2995_v36, %v3034_v61  ;;  %v1509_v15 = vrot.slane %v1493_v62, %v18739_v47  ;;  %v1516_v28 = vrot.slane %v1500_v3, %v18739_v47  ;;  %v4203_v61 = vld [vmem:[#allocation2 + $0xd4] sm:$0x1] }
 0x15a   : > { %v2847_v0 = vsel %vm18806_vm13, %v2803_v18, %v2846_v8  ;;  %v2994_v19 = vpack.c.b16 %v2912_v13, %v2912_v13  ;;  %3036 = vst [vmem:[#allocation2 + $0x64] sm:$0x1] %v3035_v5  ;;  %v1523_v21 = vrot.slane %v1501_v12, %v18739_v47  ;;  %v1530_v23 = vrot.slane %v1502_v14, %v18739_v47 }
 0x15b   : > { %2848 = vst [vmem:[#allocation2 + $0x10] sm:$0xf] %v2847_v0  ;;  %v1531_v25 = vcombine.high %v1509_v15, %v1509_v15  ;;  %v1532_v26 = vcombine.high %v1516_v28, %v1516_v28  ;;  %v3639_v29 = vrot.slane %v1509_v15, %v18742_v56  ;;  %v3695_v30 = vrot.slane %v1516_v28, %v18742_v56 }
 0x15c   : > { %v3032_v10 = vsel %vm18806_vm13, %v2994_v19, %v3031_v16  ;;  %v1533_v39 = vcombine.high %v1523_v21, %v1523_v21  ;;  %v1534_v32 = vcombine.high %v1530_v23, %v1530_v23  ;;  %v3653_v33 = vrot.slane %v1523_v21, %v18742_v56 }
 0x15d   : > { %3033 = vst [vmem:[#allocation2 + $0x60] sm:$0xf] %v3032_v10  ;;  %v3646_v34 = vrot.slane %v3639_v29, %v18742_v56  ;;  %v3667_v59 = vrot.slane %v1531_v25, %v18742_v56  ;;  %v3702_v35 = vrot.slane %v3695_v30, %v18742_v56  ;;  %v3709_v40 = vrot.slane %v1530_v23, %v18742_v56  ;;  %v4388_v30 = vld [vmem:[#allocation2 + $0x124] sm:$0x1] }
 0x15e   : > { %v3660_v41 = vrot.slane %v3653_v33, %v18742_v56  ;;  %v3681_v42 = vrot.slane %v1533_v39, %v18742_v56  ;;  %v3723_v43 = vrot.slane %v1532_v26, %v18742_v56  ;;  %v3737_v44 = vrot.slane %v1534_v32, %v18742_v56  ;;  %v4200_v33 = vld [vmem:[#allocation2 + $0xd0] sm:$0xf] }
 0x15f   : > { %v3674_v45 = vrot.slane %v3667_v59, %v18742_v56  ;;  %v3716_v46 = vrot.slane %v3709_v40, %v18742_v56  ;;  %v4009_v48 = vunpack.c.l.b16 %v3646_v34  ;;  %v4013_v1 = vunpack.c.l.b16 %v3702_v35 }
 0x160   : > { %v3688_v49 = vrot.slane %v3681_v42, %v18742_v56  ;;  %v3730_v50 = vrot.slane %v3723_v43, %v18742_v56  ;;  %v3744_v51 = vrot.slane %v3737_v44, %v18742_v56  ;;  %v4010_v53 = vunpack.c.l.b16 %v3660_v41  ;;  %v4385_v42 = vld [vmem:[#allocation2 + $0x120] sm:$0xf] }
 0x161   : > { %v4011_v54 = vunpack.c.l.b16 %v3674_v45  ;;  %v4014_v55 = vunpack.c.l.b16 %v3716_v46  ;;  %v4098_v57 = vrot.slane %v4009_v48, 7  ;;  %v4105_v2 = vrot.slane %v4013_v1, 3 }
 0x162   : > { %v4012_v58 = vunpack.c.l.b16 %v3688_v49  ;;  %v4015_v17 = vunpack.c.l.b16 %v3730_v50  ;;  %v4016_v27 = vunpack.c.l.b16 %v3744_v51  ;;  %v4099_v60 = vrot.slane %v4010_v53, 6  ;;  %v4878_v50 = vld [vmem:[#allocation2 + $0xa0] sm:$0xf] }
 0x163   : > { %v4101_v62 = vrot.slane %v4011_v54, 5  ;;  %v4107_v3 = vrot.slane %v4014_v55, 2  ;;  %v16257_v63 = vcombine.low %v3744_v51, %v3744_v51  ;;  %v4283_v8 = vrot.slane %v4010_v53, 7  ;;  %4894 = vrot.lane.b32.xlu1 %v4878_v50, %s18424_s25 }
 0x164   : > { %v4100_v31 = vsel %vm2693_vm6, %v4099_v60, %v4098_v57  ;;  %v4103_v36 = vrot.slane %v4012_v58, 4  ;;  %v4109_v18 = vrot.slane %v4015_v17, 1  ;;  %v4285_v9 = vrot.slane %v4011_v54, 6 }
 0x165   : > { %v4102_v12 = vsel %vm2696_vm7, %v4101_v62, %v4100_v31  ;;  %v4204_v14 = vsel %vm18778_vm9, %v16257_v63, %v4203_v61  ;;  %v4284_v13 = vsel %vm2693_vm6, %v4283_v8, %v4009_v48  ;;  %v4287_v16 = vrot.slane %v4012_v58, 5 }
 0x166   : > { %v4104_v5 = vsel %vm2699_vm8, %v4103_v36, %v4102_v12  ;;  %4205 = vst [vmem:[#allocation2 + $0xd4] sm:$0x1] %v4204_v14  ;;  %v4286_v15 = vsel %vm2696_vm7, %v4285_v9, %v4284_v13  ;;  %v4289_v28 = vrot.slane %v4013_v1, 4  ;;  %v4291_v0 = vrot.slane %v4014_v55, 3  ;;  %v4879_v36 = vld [vmem:[#allocation2 + $0xa8] sm:$0xf]  ;;  %v17439_v13 = vpop.f32.mrf.mxu1 }
 0x167   : > { %v4106_v19 = vsel %vm2702_vm10, %v4105_v2, %v4104_v5  ;;  %v4288_v21 = vsel %vm2699_vm8, %v4287_v16, %v4286_v15  ;;  %v4293_v23 = vrot.slane %v4015_v17, 2  ;;  %v4295_v25 = vrot.slane %v4016_v27, 1  ;;  %4896 = vrot.lane.b32.xlu1 %v4879_v36, %s18424_s25 }
 0x168   : > { %v4108_v26 = vsel %vm2705_vm11, %v4107_v3, %v4106_v19  ;;  %v4290_v29 = vsel %vm2702_vm10, %v4289_v28, %v4288_v21  ;;  %v1451_v10 = vrot.slane %v16238_v20, %v18739_v47  ;;  %v1452_v39 = vcombine.high %v19111_v4, %v19111_v4 }
 0x169   : > { %v4110_v32 = vsel %vm2708_vm12, %v4109_v18, %v4108_v26  ;;  %v4292_v34 = vsel %vm2705_vm11, %v4291_v0, %v4290_v29  ;;  %v4333_v59 = vpack.c.b16 %v4295_v25, %v4295_v25  ;;  %v1460_v35 = vrot.slane %v19111_v4, %v18739_v47  ;;  %v706_v0 = vpop.f32.mrf.mxu0  ;;  %v2873_v26 = vld [vmem:[#allocation2 + $0x34] sm:$0x1] }
 0x16a   : > { %v4147_v40 = vpack.c.b16 %v4110_v32, %v4110_v32  ;;  %v4294_v41 = vsel %vm2708_vm12, %v4293_v23, %v4292_v34  ;;  %v1453_v43 = vcombine.high %v1451_v10, %v1451_v10  ;;  %v1467_v11 = vrot.slane %v1451_v10, %v18739_v47  ;;  %v4928_v32 = vld [vmem:[#allocation2 + $0xf8] sm:$0xf] }
 0x16b   : > { %v4332_v20 = vpack.c.b16 %v4294_v41, %v4294_v41  ;;  %v4389_v44 = vsel %vm18778_vm9, %v4333_v59, %v4388_v30  ;;  %v1474_v45 = vrot.slane %v1452_v39, %v18739_v47  ;;  %v1482_v46 = vcombine.high %v1460_v35, %v1460_v35  ;;  %4945 = vrot.lane.b32.xlu1 %v4928_v32, %s18425_s26 }
 0x16c   : > { %v4201_v48 = vsel %vm18806_vm13, %v4147_v40, %v4200_v33  ;;  %4390 = vst [vmem:[#allocation2 + $0x124] sm:$0x1] %v4389_v44  ;;  %v1481_v4 = vrot.slane %v1453_v43, %v18739_v47  ;;  %v1483_v1 = vcombine.high %v1467_v11, %v1467_v11  ;;  %v2297_v49 = vrot.slane %v1460_v35, %v18742_v56  ;;  %v770_v40 = vpop.f32.mrf.mxu1 }
 0x16d   : > { %4202 = vst [vmem:[#allocation2 + $0xd0] sm:$0xf] %v4201_v48  ;;  %v4386_v51 = vsel %vm18806_vm13, %v4332_v20, %v4385_v42  ;;  %v1484_v53 = vcombine.high %v1474_v45, %v1474_v45  ;;  %v2311_v54 = vrot.slane %v1474_v45, %v18742_v56  ;;  %v2325_v55 = vrot.slane %v1482_v46, %v18742_v56  ;;  %v17424_v20 = vpop.f32.mrf.mxu0 }
 0x16e   : > { %4387 = vst [vmem:[#allocation2 + $0x120] sm:$0xf] %v4386_v51  ;;  %v1485_v57 = vcombine.high %v1481_v4, %v1481_v4  ;;  %v2304_v2 = vrot.slane %v2297_v49, %v18742_v56  ;;  %v2353_v58 = vrot.slane %v1467_v11, %v18742_v56  ;;  %v2367_v17 = vrot.slane %v1481_v4, %v18742_v56  ;;  %v4883_v51 = vld [vmem:[#allocation2 + $0xc8] sm:$0xf] }
 0x16f   : > { %v2318_v27 = vrot.slane %v2311_v54, %v18742_v56  ;;  %v2332_v60 = vrot.slane %v2325_v55, %v18742_v56  ;;  %v2339_v61 = vrot.slane %v1484_v53, %v18742_v56  ;;  %v2381_v62 = vrot.slane %v1483_v1, %v18742_v56  ;;  %v3058_v55 = vld [vmem:[#allocation2 + $0x84] sm:$0x1]  ;;  %4904 = vrot.lane.b32.xlu1 %v4883_v51, %s18424_s25 }
 0x170   : > { %v2360_v3 = vrot.slane %v2353_v58, %v18742_v56  ;;  %v2374_v63 = vrot.slane %v2367_v17, %v18742_v56  ;;  %v2395_v8 = vrot.slane %v1485_v57, %v18742_v56  ;;  %v2667_v31 = vunpack.c.l.b16 %v2304_v2  ;;  %v17440_v58 = vpop.f32.mrf.mxu1 }
 0x171   : > { %v2346_v18 = vrot.slane %v2339_v61, %v18742_v56  ;;  %v2388_v9 = vrot.slane %v2381_v62, %v18742_v56  ;;  %v2668_v12 = vunpack.c.l.b16 %v2318_v27  ;;  %v2669_v14 = vunpack.c.l.b16 %v2332_v60  ;;  %v2870_v27 = vld [vmem:[#allocation2 + $0x30] sm:$0xf] }
 0x172   : > { %v2402_v16 = vrot.slane %v2395_v8, %v18742_v56  ;;  %v2671_v5 = vunpack.c.l.b16 %v2360_v3  ;;  %v2672_v15 = vunpack.c.l.b16 %v2374_v63  ;;  %v2762_v28 = vrot.slane %v2667_v31, 7  ;;  %v709_v3 = vpop.f32.mrf.mxu0 }
 0x173   : > { %v2670_v19 = vunpack.c.l.b16 %v2346_v18  ;;  %v2673_v21 = vunpack.c.l.b16 %v2388_v9  ;;  %v2763_v23 = vrot.slane %v2668_v12, 6  ;;  %v2765_v25 = vrot.slane %v2669_v14, 5  ;;  %v3055_v9 = vld [vmem:[#allocation2 + $0x80] sm:$0xf] }
 0x174   : > { %v2674_v29 = vunpack.c.l.b16 %v2402_v16  ;;  %v2769_v30 = vrot.slane %v2671_v5, 3  ;;  %v2771_v10 = vrot.slane %v2672_v15, 2  ;;  %v16249_v39 = vcombine.low %v2402_v16, %v2402_v16  ;;  %v4932_v16 = vld [vmem:[#allocation2 + $0x118] sm:$0xf] }
 0x175   : > { %v2764_v33 = vsel %vm2693_vm6, %v2763_v23, %v2762_v28  ;;  %v2767_v34 = vrot.slane %v2670_v19, 4  ;;  %v2773_v59 = vrot.slane %v2673_v21, 1  ;;  %v2953_v35 = vrot.slane %v2668_v12, 7  ;;  %4953 = vrot.lane.b32.xlu1 %v4932_v16, %s18425_s26 }
 0x176   : > { %v2766_v41 = vsel %vm2696_vm7, %v2765_v25, %v2764_v33  ;;  %v2874_v42 = vsel %vm18778_vm9, %v16249_v39, %v2873_v26  ;;  %v2955_v43 = vrot.slane %v2669_v14, 6  ;;  %v2957_v11 = vrot.slane %v2670_v19, 5  ;;  %v773_v19 = vpop.f32.mrf.mxu1 }
 0x177   : > { %v2768_v44 = vsel %vm2699_vm8, %v2767_v34, %v2766_v41  ;;  %2875 = vst [vmem:[#allocation2 + $0x34] sm:$0x1] %v2874_v42  ;;  %v2954_v45 = vsel %vm2693_vm6, %v2953_v35, %v2667_v31  ;;  %v2959_v46 = vrot.slane %v2671_v5, 4  ;;  %v2961_v48 = vrot.slane %v2672_v15, 3 }
 0x178   : > { %v2770_v4 = vsel %vm2702_vm10, %v2769_v30, %v2768_v44  ;;  %v2956_v1 = vsel %vm2696_vm7, %v2955_v43, %v2954_v45  ;;  %v2963_v49 = vrot.slane %v2673_v21, 2  ;;  %v2965_v50 = vrot.slane %v2674_v29, 1 }
 0x179   : > { %v2772_v53 = vsel %vm2705_vm11, %v2771_v10, %v2770_v4  ;;  %v2958_v54 = vsel %vm2699_vm8, %v2957_v11, %v2956_v1  ;;  %v707_v57 = vadd.f32 %v18970_v38, %v706_v0  ;;  %v779_v2 = vadd.f32 %v18970_v38, %v17439_v13  ;;  %v17427_v10 = vpop.f32.mrf.mxu0 }
 0x17a   : > { %v2774_v17 = vsel %vm2708_vm12, %v2773_v59, %v2772_v53  ;;  %v2960_v60 = vsel %vm2702_vm10, %v2959_v46, %v2958_v54  ;;  %v3003_v61 = vpack.c.b16 %v2965_v50, %v2965_v50  ;;  %v718_v62 = vadd.f32 %v18970_v38, %v17424_v20 }
 0x17b   : > { %v2811_v63 = vpack.c.b16 %v2774_v17, %v2774_v17  ;;  %v2962_v8 = vsel %vm2705_vm11, %v2961_v48, %v2960_v60  ;;  %v809_v31 = vmax.f32 %v707_v57, 0.0  ;;  %v827_v36 = vmax.f32 %v779_v2, 0.0 }
 0x17c   : > { %v2964_v18 = vsel %vm2708_vm12, %v2963_v49, %v2962_v8  ;;  %v3059_v12 = vsel %vm18778_vm9, %v3003_v61, %v3058_v55  ;;  %v812_v14 = vmax.f32 %v718_v62, 0.0  ;;  %v19212_v13 = vadd.f32 %v18970_v38, %v770_v40 }
 0x17d   : > { %v2871_v5 = vsel %vm18806_vm13, %v2811_v63, %v2870_v27  ;;  %v3002_v15 = vpack.c.b16 %v2964_v18, %v2964_v18  ;;  %3060 = vst [vmem:[#allocation2 + $0x84] sm:$0x1] %v3059_v12  ;;  %v710_v28 = vadd.f32 %v18970_v38, %v709_v3  ;;  %v782_v0 = vadd.f32 %v18970_v38, %v17440_v58 }
 0x17e   : > { %2872 = vst [vmem:[#allocation2 + $0x30] sm:$0xf] %v2871_v5  ;;  %v920_v21 = vpack.c.bf16 %v812_v14, %v811_v6  ;;  %v16233_v23 = vpack.c.bf16 %v812_v14, %v812_v14  ;;  %v825_v26 = vmax.f32 %v19212_v13, 0.0  ;;  %v19227_v33 = vadd.f32 %v18970_v38, %v17427_v10  ;;  %v4425_v6 = vld [vmem:[#allocation2 + $0x78] sm:$0xf] }
 0x17f   : > { %v3056_v25 = vsel %vm18806_vm13, %v3002_v15, %v3055_v9  ;;  %v810_v29 = vmax.f32 %v710_v28, 0.0  ;;  %v828_v30 = vmax.f32 %v782_v0, 0.0  ;;  %v19230_v7 = vadd.f32 %v18970_v38, %v773_v19  ;;  %4446 = vrot.lane.b32.xlu1 %v4425_v6, %s18424_s25 }
 0x180   : > { %3057 = vst [vmem:[#allocation2 + $0x80] sm:$0xf] %v3056_v25  ;;  %v1199_v39 = vrot.slane %v920_v21, %v18739_v47  ;;  %v1206_v32 = vrot.slane %v16233_v23, %v18739_v47 }
 0x181   : > { %v919_v34 = vpack.c.bf16 %v810_v29, %v809_v31  ;;  %v16232_v59 = vpack.c.bf16 %v810_v29, %v810_v29  ;;  %v928_v35 = vpack.c.bf16 %v828_v30, %v827_v36  ;;  %v16241_v40 = vpack.c.bf16 %v828_v30, %v828_v30  ;;  %v4185_v29 = vld [vmem:[#allocation2 + $0xbc] sm:$0x1] }
 0x182   : > { %v1207_v41 = vcombine.high %v1199_v39, %v1199_v39  ;;  %v1208_v42 = vcombine.high %v1206_v32, %v1206_v32  ;;  %v1215_v43 = vrot.slane %v1199_v39, %v18739_v47  ;;  %v1222_v11 = vrot.slane %v1206_v32, %v18739_v47 }
 0x183   : > { %v19236_v20 = vrot.slane %v919_v34, %v18739_v47  ;;  %v19239_v44 = vrot.slane %v16232_v59, %v18739_v47  ;;  %v19242_v38 = vrot.slane %v928_v35, %v18739_v47  ;;  %v19245_v45 = vrot.slane %v16241_v40, %v18739_v47 }
 0x184   : > { %v1229_v46 = vrot.slane %v1207_v41, %v18739_v47  ;;  %v1236_v48 = vrot.slane %v1208_v42, %v18739_v47  ;;  %v1237_v4 = vcombine.high %v1215_v43, %v1215_v43  ;;  %v1238_v1 = vcombine.high %v1222_v11, %v1222_v11 }
 0x185   : > { %v3303_v49 = vrot.slane %v1215_v43, %v18742_v56  ;;  %v3359_v50 = vrot.slane %v1222_v11, %v18742_v56  ;;  %v1158_v51 = vcombine.high %v19236_v20, %v19236_v20  ;;  %v1159_v53 = vcombine.high %v19239_v44, %v19239_v44 }
 0x186   : > { %v1239_v54 = vcombine.high %v1229_v46, %v1229_v46  ;;  %v1240_v55 = vcombine.high %v1236_v48, %v1236_v48  ;;  %v3317_v57 = vrot.slane %v1229_v46, %v18742_v56  ;;  %v3331_v2 = vrot.slane %v1237_v4, %v18742_v56 }
 0x187   : > { %v3310_v58 = vrot.slane %v3303_v49, %v18742_v56  ;;  %v3366_v17 = vrot.slane %v3359_v50, %v18742_v56  ;;  %v3373_v27 = vrot.slane %v1236_v48, %v18742_v56  ;;  %v3387_v60 = vrot.slane %v1238_v1, %v18742_v56 }
 0x188   : > { %v3324_v61 = vrot.slane %v3317_v57, %v18742_v56  ;;  %v3338_v62 = vrot.slane %v3331_v2, %v18742_v56  ;;  %v3345_v3 = vrot.slane %v1239_v54, %v18742_v56  ;;  %v3401_v63 = vrot.slane %v1240_v55, %v18742_v56  ;;  %v4370_v2 = vld [vmem:[#allocation2 + $0x10c] sm:$0x1] }
 0x189   : > { %v3380_v8 = vrot.slane %v3373_v27, %v18742_v56  ;;  %v3394_v31 = vrot.slane %v3387_v60, %v18742_v56  ;;  %v3985_v36 = vunpack.c.l.b16 %v3310_v58  ;;  %v3989_v18 = vunpack.c.l.b16 %v3366_v17  ;;  %v4182_v60 = vld [vmem:[#allocation2 + $0xb8] sm:$0xf] }
 0x18a   : > { %v3352_v9 = vrot.slane %v3345_v3, %v18742_v56  ;;  %v3408_v12 = vrot.slane %v3401_v63, %v18742_v56  ;;  %v3986_v14 = vunpack.c.l.b16 %v3324_v61  ;;  %v3987_v16 = vunpack.c.l.b16 %v3338_v62 }
 0x18b   : > { %v3990_v5 = vunpack.c.l.b16 %v3380_v8  ;;  %v3991_v15 = vunpack.c.l.b16 %v3394_v31  ;;  %v4059_v28 = vrot.slane %v3985_v36, 7  ;;  %v4066_v0 = vrot.slane %v3989_v18, 3  ;;  %v4367_v8 = vld [vmem:[#allocation2 + $0x108] sm:$0xf] }
 0x18c   : > { %v3988_v19 = vunpack.c.l.b16 %v3352_v9  ;;  %v3992_v21 = vunpack.c.l.b16 %v3408_v12  ;;  %v4060_v23 = vrot.slane %v3986_v14, 6  ;;  %v4062_v25 = vrot.slane %v3987_v16, 5 }
 0x18d   : > { %v4068_v30 = vrot.slane %v3990_v5, 2  ;;  %v4070_v10 = vrot.slane %v3991_v15, 1  ;;  %v16254_v39 = vcombine.low %v3408_v12, %v3408_v12  ;;  %v4244_v32 = vrot.slane %v3986_v14, 7 }
 0x18e   : > { %v4061_v6 = vsel %vm2693_vm6, %v4060_v23, %v4059_v28  ;;  %v4064_v34 = vrot.slane %v3988_v19, 4  ;;  %v4246_v59 = vrot.slane %v3987_v16, 6  ;;  %v4248_v35 = vrot.slane %v3988_v19, 5 }
 0x18f   : > { %v4063_v40 = vsel %vm2696_vm7, %v4062_v25, %v4061_v6  ;;  %v4186_v41 = vsel %vm18778_vm9, %v16254_v39, %v4185_v29  ;;  %v4245_v42 = vsel %vm2693_vm6, %v4244_v32, %v3985_v36  ;;  %v4250_v43 = vrot.slane %v3989_v18, 4 }
 0x190   : > { %v4065_v11 = vsel %vm2699_vm8, %v4064_v34, %v4063_v40  ;;  %4187 = vst [vmem:[#allocation2 + $0xbc] sm:$0x1] %v4186_v41  ;;  %v4247_v46 = vsel %vm2696_vm7, %v4246_v59, %v4245_v42  ;;  %v4252_v48 = vrot.slane %v3990_v5, 3  ;;  %v4254_v4 = vrot.slane %v3991_v15, 2 }
 0x191   : > { %v4067_v1 = vsel %vm2702_vm10, %v4066_v0, %v4065_v11  ;;  %v4249_v49 = vsel %vm2699_vm8, %v4248_v35, %v4247_v46  ;;  %v4256_v50 = vrot.slane %v3992_v21, 1  ;;  %v1166_v54 = vrot.slane %v19236_v20, %v18739_v47 }
 0x192   : > { %v4069_v55 = vsel %vm2705_vm11, %v4068_v30, %v4067_v1  ;;  %v4251_v57 = vsel %vm2702_vm10, %v4250_v43, %v4249_v49  ;;  %v1173_v58 = vrot.slane %v19239_v44, %v18739_v47  ;;  %v1180_v17 = vrot.slane %v1158_v51, %v18739_v47 }
 0x193   : > { %v4071_v27 = vsel %vm2708_vm12, %v4070_v10, %v4069_v55  ;;  %v4253_v61 = vsel %vm2705_vm11, %v4252_v48, %v4251_v57  ;;  %v4327_v62 = vpack.c.b16 %v4256_v50, %v4256_v50  ;;  %v1187_v3 = vrot.slane %v1159_v53, %v18739_v47 }
 0x194   : > { %v4141_v63 = vpack.c.b16 %v4071_v27, %v4071_v27  ;;  %v4255_v20 = vsel %vm2708_vm12, %v4254_v4, %v4253_v61  ;;  %v1188_v31 = vcombine.high %v1166_v54, %v1166_v54  ;;  %v1189_v36 = vcombine.high %v1173_v58, %v1173_v58 }
 0x195   : > { %v4326_v18 = vpack.c.b16 %v4255_v20, %v4255_v20  ;;  %v4371_v44 = vsel %vm18778_vm9, %v4327_v62, %v4370_v2  ;;  %v1190_v9 = vcombine.high %v1180_v17, %v1180_v17  ;;  %v1191_v51 = vcombine.high %v1187_v3, %v1187_v3 }
 0x196   : > { %v4183_v12 = vsel %vm18806_vm13, %v4141_v63, %v4182_v60  ;;  %4372 = vst [vmem:[#allocation2 + $0x10c] sm:$0x1] %v4371_v44  ;;  %v1961_v14 = vrot.slane %v1166_v54, %v18742_v56  ;;  %v1975_v53 = vrot.slane %v1180_v17, %v18742_v56  ;;  %v1989_v16 = vrot.slane %v1188_v31, %v18742_v56  ;;  %v2855_v54 = vld [vmem:[#allocation2 + $0x1c] sm:$0x1] }
 0x197   : > { %4184 = vst [vmem:[#allocation2 + $0xb8] sm:$0xf] %v4183_v12  ;;  %v4368_v5 = vsel %vm18806_vm13, %v4326_v18, %v4367_v8  ;;  %v2003_v15 = vrot.slane %v1190_v9, %v18742_v56  ;;  %v2017_v28 = vrot.slane %v1173_v58, %v18742_v56  ;;  %v2031_v0 = vrot.slane %v1187_v3, %v18742_v56 }
 0x198   : > { %4369 = vst [vmem:[#allocation2 + $0x108] sm:$0xf] %v4368_v5  ;;  %v1968_v19 = vrot.slane %v1961_v14, %v18742_v56  ;;  %v1982_v21 = vrot.slane %v1975_v53, %v18742_v56  ;;  %v1996_v23 = vrot.slane %v1989_v16, %v18742_v56  ;;  %v2045_v25 = vrot.slane %v1189_v36, %v18742_v56  ;;  %v2852_v16 = vld [vmem:[#allocation2 + $0x18] sm:$0xf] }
 0x199   : > { %v2010_v29 = vrot.slane %v2003_v15, %v18742_v56  ;;  %v2024_v30 = vrot.slane %v2017_v28, %v18742_v56  ;;  %v2038_v10 = vrot.slane %v2031_v0, %v18742_v56  ;;  %v2059_v39 = vrot.slane %v1191_v51, %v18742_v56  ;;  %v3040_v51 = vld [vmem:[#allocation2 + $0x6c] sm:$0x1] }
 0x19a   : > { %v2052_v32 = vrot.slane %v2045_v25, %v18742_v56  ;;  %v2643_v6 = vunpack.c.l.b16 %v1968_v19  ;;  %v2644_v34 = vunpack.c.l.b16 %v1982_v21  ;;  %v2645_v59 = vunpack.c.l.b16 %v1996_v23 }
 0x19b   : > { %v2066_v35 = vrot.slane %v2059_v39, %v18742_v56  ;;  %v2646_v40 = vunpack.c.l.b16 %v2010_v29  ;;  %v2647_v41 = vunpack.c.l.b16 %v2024_v30  ;;  %v2648_v42 = vunpack.c.l.b16 %v2038_v10  ;;  %v3037_v29 = vld [vmem:[#allocation2 + $0x68] sm:$0xf] }
 0x19c   : > { %v2649_v43 = vunpack.c.l.b16 %v2052_v32  ;;  %v2723_v11 = vrot.slane %v2643_v6, 7  ;;  %v2724_v46 = vrot.slane %v2644_v34, 6  ;;  %v2726_v48 = vrot.slane %v2645_v59, 5 }
 0x19d   : > { %v2650_v4 = vunpack.c.l.b16 %v2066_v35  ;;  %v2728_v1 = vrot.slane %v2646_v40, 4  ;;  %v2730_v49 = vrot.slane %v2647_v41, 3  ;;  %v2732_v50 = vrot.slane %v2648_v42, 2 }
 0x19e   : > { %v2725_v55 = vsel %vm2693_vm6, %v2724_v46, %v2723_v11  ;;  %v2734_v57 = vrot.slane %v2649_v43, 1  ;;  %v16246_v2 = vcombine.low %v2066_v35, %v2066_v35  ;;  %v2914_v58 = vrot.slane %v2644_v34, 7 }
 0x19f   : > { %v2727_v17 = vsel %vm2696_vm7, %v2726_v48, %v2725_v55  ;;  %v2916_v27 = vrot.slane %v2645_v59, 6  ;;  %v2918_v60 = vrot.slane %v2646_v40, 5  ;;  %v2920_v61 = vrot.slane %v2647_v41, 4 }
 0x1a0   : > { %v2729_v62 = vsel %vm2699_vm8, %v2728_v1, %v2727_v17  ;;  %v2856_v3 = vsel %vm18778_vm9, %v16246_v2, %v2855_v54  ;;  %v2915_v63 = vsel %vm2693_vm6, %v2914_v58, %v2643_v6  ;;  %v2922_v20 = vrot.slane %v2648_v42, 3 }
 0x1a1   : > { %v2731_v8 = vsel %vm2702_vm10, %v2730_v49, %v2729_v62  ;;  %2857 = vst [vmem:[#allocation2 + $0x1c] sm:$0x1] %v2856_v3  ;;  %v2917_v31 = vsel %vm2696_vm7, %v2916_v27, %v2915_v63  ;;  %v2924_v36 = vrot.slane %v2649_v43, 2  ;;  %v2926_v18 = vrot.slane %v2650_v4, 1 }
 0x1a2   : > { %v2733_v44 = vsel %vm2705_vm11, %v2732_v50, %v2731_v8  ;;  %v2919_v9 = vsel %vm2699_vm8, %v2918_v60, %v2917_v31  ;;  %v1599_v12 = vcombine.high %v19242_v38, %v19242_v38  ;;  %v1600_v14 = vcombine.high %v19245_v45, %v19245_v45 }
 0x1a3   : > { %v2735_v53 = vsel %vm2708_vm12, %v2734_v57, %v2733_v44  ;;  %v2921_v5 = vsel %vm2702_vm10, %v2920_v61, %v2919_v9  ;;  %v2997_v15 = vpack.c.b16 %v2926_v18, %v2926_v18  ;;  %v1607_v28 = vrot.slane %v19242_v38, %v18739_v47  ;;  %v4209_v9 = vld [vmem:[#allocation2 + $0xdc] sm:$0x1] }
 0x1a4   : > { %v2805_v0 = vpack.c.b16 %v2735_v53, %v2735_v53  ;;  %v2923_v19 = vsel %vm2705_vm11, %v2922_v20, %v2921_v5  ;;  %v1614_v21 = vrot.slane %v19245_v45, %v18739_v47  ;;  %v1621_v23 = vrot.slane %v1599_v12, %v18739_v47 }
 0x1a5   : > { %v2925_v25 = vsel %vm2708_vm12, %v2924_v36, %v2923_v19  ;;  %v3041_v30 = vsel %vm18778_vm9, %v2997_v15, %v3040_v51  ;;  %v1628_v10 = vrot.slane %v1600_v14, %v18739_v47  ;;  %v1629_v39 = vcombine.high %v1607_v28, %v1607_v28 }
 0x1a6   : > { %v2853_v38 = vsel %vm18806_vm13, %v2805_v0, %v2852_v16  ;;  %v2996_v32 = vpack.c.b16 %v2925_v25, %v2925_v25  ;;  %3042 = vst [vmem:[#allocation2 + $0x6c] sm:$0x1] %v3041_v30  ;;  %v1630_v6 = vcombine.high %v1614_v21, %v1614_v21  ;;  %v1631_v34 = vcombine.high %v1621_v23, %v1621_v23  ;;  %v4469_v25 = vld [vmem:[#allocation2] sm:$0xf] }
 0x1a7   : > { %2854 = vst [vmem:[#allocation2 + $0x18] sm:$0xf] %v2853_v38  ;;  %v1632_v45 = vcombine.high %v1628_v10, %v1628_v10  ;;  %v3751_v59 = vrot.slane %v1607_v28, %v18742_v56  ;;  %v3765_v35 = vrot.slane %v1621_v23, %v18742_v56  ;;  %v3779_v40 = vrot.slane %v1629_v39, %v18742_v56 }
 0x1a8   : > { %v3038_v41 = vsel %vm18806_vm13, %v2996_v32, %v3037_v29  ;;  %v3793_v42 = vrot.slane %v1631_v34, %v18742_v56  ;;  %v3807_v43 = vrot.slane %v1614_v21, %v18742_v56  ;;  %v3821_v11 = vrot.slane %v1628_v10, %v18742_v56 }
 0x1a9   : > { %3039 = vst [vmem:[#allocation2 + $0x68] sm:$0xf] %v3038_v41  ;;  %v3758_v46 = vrot.slane %v3751_v59, %v18742_v56  ;;  %v3772_v48 = vrot.slane %v3765_v35, %v18742_v56  ;;  %v3786_v4 = vrot.slane %v3779_v40, %v18742_v56  ;;  %v3835_v1 = vrot.slane %v1630_v6, %v18742_v56  ;;  %v4394_v6 = vld [vmem:[#allocation2 + $0x12c] sm:$0x1]  ;;  %v722_v59 = vpop.f32.mrf.mxu0  ;;  %v4206_v40 = vld [vmem:[#allocation2 + $0xd8] sm:$0xf] }
 0x1aa   : > { %v3800_v49 = vrot.slane %v3793_v42, %v18742_v56  ;;  %v3814_v50 = vrot.slane %v3807_v43, %v18742_v56  ;;  %v3828_v54 = vrot.slane %v3821_v11, %v18742_v56  ;;  %v3849_v55 = vrot.slane %v1632_v45, %v18742_v56 }
 0x1ab   : > { %v3842_v57 = vrot.slane %v3835_v1, %v18742_v56  ;;  %v4017_v2 = vunpack.c.l.b16 %v3758_v46  ;;  %v4018_v58 = vunpack.c.l.b16 %v3772_v48  ;;  %v4019_v17 = vunpack.c.l.b16 %v3786_v4  ;;  %v4470_v1 = vld [vmem:[#allocation2 + $0x4] sm:$0x1] }
 0x1ac   : > { %v3856_v27 = vrot.slane %v3849_v55, %v18742_v56  ;;  %v4020_v60 = vunpack.c.l.b16 %v3800_v49  ;;  %v4021_v61 = vunpack.c.l.b16 %v3814_v50  ;;  %v4022_v62 = vunpack.c.l.b16 %v3828_v54  ;;  %v4391_v50 = vld [vmem:[#allocation2 + $0x128] sm:$0xf] }
 0x1ad   : > { %v4023_v3 = vunpack.c.l.b16 %v3842_v57  ;;  %v4111_v63 = vrot.slane %v4017_v2, 7  ;;  %v4112_v20 = vrot.slane %v4018_v58, 6  ;;  %v4114_v8 = vrot.slane %v4019_v17, 5 }
 0x1ae   : > { %v4024_v31 = vunpack.c.l.b16 %v3856_v27  ;;  %v4116_v36 = vrot.slane %v4020_v60, 4  ;;  %v4118_v18 = vrot.slane %v4021_v61, 3  ;;  %v4120_v44 = vrot.slane %v4022_v62, 2 }
 0x1af   : > { %v4113_v51 = vsel %vm2693_vm6, %v4112_v20, %v4111_v63  ;;  %v4122_v12 = vrot.slane %v4023_v3, 1  ;;  %v16258_v14 = vcombine.low %v3856_v27, %v3856_v27  ;;  %v4296_v53 = vrot.slane %v4018_v58, 7 }
 0x1b0   : > { %v4115_v16 = vsel %vm2696_vm7, %v4114_v8, %v4113_v51  ;;  %v4298_v5 = vrot.slane %v4019_v17, 6  ;;  %v4300_v15 = vrot.slane %v4020_v60, 5  ;;  %v4302_v28 = vrot.slane %v4021_v61, 4  ;;  %v19384_v60 = vld [vmem:[%s23889_s2] ss:$0 sm:$0xff] }
 0x1b1   : > { %v4117_v0 = vsel %vm2699_vm8, %v4116_v36, %v4115_v16  ;;  %v4210_v19 = vsel %vm18778_vm9, %v16258_v14, %v4209_v9  ;;  %v4297_v21 = vsel %vm2693_vm6, %v4296_v53, %v4017_v2  ;;  %v4304_v23 = vrot.slane %v4022_v62, 3 }
 0x1b2   : > { %v4119_v29 = vsel %vm2702_vm10, %v4118_v18, %v4117_v0  ;;  %4211 = vst [vmem:[#allocation2 + $0xdc] sm:$0x1] %v4210_v19  ;;  %v4299_v30 = vsel %vm2696_vm7, %v4298_v5, %v4297_v21  ;;  %v4306_v10 = vrot.slane %v4023_v3, 2  ;;  %v4308_v39 = vrot.slane %v4024_v31, 1 }
 0x1b3   : > { %v4121_v38 = vsel %vm2705_vm11, %v4120_v44, %v4119_v29  ;;  %v4301_v32 = vsel %vm2699_vm8, %v4300_v15, %v4299_v30  ;;  %v815_v34 = vmax.f32 %v19227_v33, 0.0  ;;  %v826_v45 = vmax.f32 %v19230_v7, 0.0 }
 0x1b4   : > { %v4123_v35 = vsel %vm2708_vm12, %v4122_v12, %v4121_v38  ;;  %v4303_v41 = vsel %vm2702_vm10, %v4302_v28, %v4301_v32  ;;  %v4335_v42 = vpack.c.b16 %v4308_v39, %v4308_v39  ;;  %v4489_v43 = vshrl.u32 %v4469_v25, 16 }
 0x1b5   : > { %v4149_v11 = vpack.c.b16 %v4123_v35, %v4123_v35  ;;  %v4305_v46 = vsel %vm2705_vm11, %v4304_v23, %v4303_v41  ;;  %v927_v48 = vpack.c.bf16 %v826_v45, %v825_v26  ;;  %v16240_v4 = vpack.c.bf16 %v826_v45, %v826_v45  ;;  %v17428_v26 = vpop.f32.mrf.mxu0 }
 0x1b6   : > { %v4307_v49 = vsel %vm2708_vm12, %v4306_v10, %v4305_v46  ;;  %v4395_v7 = vsel %vm18778_vm9, %v4335_v42, %v4394_v6  ;;  %v4491_v54 = vrot.slane %v4489_v43, 4  ;;  %v4492_v55 = vshll.u32 %v4469_v25, 16 }
 0x1b7   : > { %v4207_v57 = vsel %vm18806_vm13, %v4149_v11, %v4206_v40  ;;  %v4334_v2 = vpack.c.b16 %v4307_v49, %v4307_v49  ;;  %4396 = vst [vmem:[#allocation2 + $0x12c] sm:$0x1] %v4395_v7  ;;  %v1542_v58 = vrot.slane %v927_v48, %v18739_v47  ;;  %v1549_v13 = vrot.slane %v16240_v4, %v18739_v47 }
 0x1b8   : > { %4208 = vst [vmem:[#allocation2 + $0xd8] sm:$0xf] %v4207_v57  ;;  %v4494_v17 = vrot.slane %v4492_v55, 5  ;;  %v4498_v27 = vshll.u32 %v4470_v1, 16  ;;  %v19387_v61 = vadd.f32 %v19384_v60, %v722_v59  ;;  %v734_v62 = vadd.f32 %v19384_v60, %v17428_v26  ;;  %v2879_v1 = vld [vmem:[#allocation2 + $0x3c] sm:$0x1] }
 0x1b9   : > { %v4392_v3 = vsel %vm18806_vm13, %v4334_v2, %v4391_v50  ;;  %v1550_v63 = vcombine.high %v1542_v58, %v1542_v58  ;;  %v1551_v20 = vcombine.high %v1549_v13, %v1549_v13  ;;  %v1558_v8 = vrot.slane %v1542_v58, %v18739_v47 }
 0x1ba   : > { %4393 = vst [vmem:[#allocation2 + $0x128] sm:$0xf] %v4392_v3  ;;  %v1565_v31 = vrot.slane %v1549_v13, %v18739_v47  ;;  %v4495_v36 = vor.u32 %v4494_v17, %v4491_v54  ;;  %v19394_v18 = vrot.slane %v4498_v27, 5  ;;  %v813_v44 = vmax.f32 %v19387_v61, 0.0 }
 0x1bb   : > { %v1572_v9 = vrot.slane %v1550_v63, %v18739_v47  ;;  %v1579_v51 = vrot.slane %v1551_v20, %v18739_v47  ;;  %v1580_v12 = vcombine.high %v1558_v8, %v1558_v8  ;;  %v2409_v14 = vrot.slane %v1558_v8, %v18742_v56 }
 0x1bc   : > { %v1581_v53 = vcombine.high %v1565_v31, %v1565_v31  ;;  %v2465_v16 = vrot.slane %v1565_v31, %v18742_v56  ;;  %v4496_v5 = vrot.slane %v4495_v36, 4  ;;  %v19401_v15 = vmax.f32 %v734_v62, 0.0 }
 0x1bd   : > { %v1582_v28 = vcombine.high %v1572_v9, %v1572_v9  ;;  %v1583_v0 = vcombine.high %v1579_v51, %v1579_v51  ;;  %v2416_v19 = vrot.slane %v2409_v14, %v18742_v56  ;;  %v2423_v21 = vrot.slane %v1572_v9, %v18742_v56 }
 0x1be   : > { %v2437_v23 = vrot.slane %v1580_v12, %v18742_v56  ;;  %v2472_v25 = vrot.slane %v2465_v16, %v18742_v56  ;;  %v2479_v29 = vrot.slane %v1579_v51, %v18742_v56  ;;  %v2493_v30 = vrot.slane %v1581_v53, %v18742_v56  ;;  %v4633_v12 = vld [vmem:[#allocation2 + $0x50] sm:$0xf] }
 0x1bf   : > { %v2430_v10 = vrot.slane %v2423_v21, %v18742_v56  ;;  %v2451_v39 = vrot.slane %v1582_v28, %v18742_v56  ;;  %v2507_v38 = vrot.slane %v1583_v0, %v18742_v56  ;;  %v2675_v32 = vunpack.c.l.b16 %v2416_v19  ;;  %v3064_v21 = vld [vmem:[#allocation2 + $0x8c] sm:$0x1] }
 0x1c0   : > { %v2444_v6 = vrot.slane %v2437_v23, %v18742_v56  ;;  %v2486_v45 = vrot.slane %v2479_v29, %v18742_v56  ;;  %v2500_v59 = vrot.slane %v2493_v30, %v18742_v56  ;;  %v2679_v35 = vunpack.c.l.b16 %v2472_v25  ;;  %v4403_v29 = vld [vmem:[#allocation2] sm:$0xf] }
 0x1c1   : > { %v2458_v40 = vrot.slane %v2451_v39, %v18742_v56  ;;  %v2514_v41 = vrot.slane %v2507_v38, %v18742_v56  ;;  %v2676_v42 = vunpack.c.l.b16 %v2430_v10  ;;  %v2775_v43 = vrot.slane %v2675_v32, 7  ;;  %v2876_v10 = vld [vmem:[#allocation2 + $0x38] sm:$0xf]  ;;  %4411 = vst.msk [vmem:[#allocation5] sm:$0xf] %vm833_vm2, %v4403_v29 }
 0x1c2   : > { %v2677_v11 = vunpack.c.l.b16 %v2444_v6  ;;  %v2680_v46 = vunpack.c.l.b16 %v2486_v45  ;;  %v2681_v48 = vunpack.c.l.b16 %v2500_v59  ;;  %v2782_v4 = vrot.slane %v2679_v35, 3  ;;  %v3061_v6 = vld [vmem:[#allocation2 + $0x88] sm:$0xf]  ;;  %v4634_v45 = vld [vmem:[#allocation2 + $0x54] sm:$0x1] }
 0x1c3   : > { %v2678_v49 = vunpack.c.l.b16 %v2458_v40  ;;  %v2682_v50 = vunpack.c.l.b16 %v2514_v41  ;;  %v2776_v7 = vrot.slane %v2676_v42, 6  ;;  %v16250_v54 = vcombine.low %v2514_v41, %v2514_v41 }
 0x1c4   : > { %v2778_v55 = vrot.slane %v2677_v11, 5  ;;  %v2784_v57 = vrot.slane %v2680_v46, 2  ;;  %v2786_v2 = vrot.slane %v2681_v48, 1  ;;  %v2966_v58 = vrot.slane %v2676_v42, 7 }
 0x1c5   : > { %v2777_v13 = vsel %vm2693_vm6, %v2776_v7, %v2775_v43  ;;  %v2780_v26 = vrot.slane %v2678_v49, 4  ;;  %v2880_v17 = vsel %vm18778_vm9, %v16250_v54, %v2879_v1  ;;  %v2968_v27 = vrot.slane %v2677_v11, 6 }
 0x1c6   : > { %v2779_v3 = vsel %vm2696_vm7, %v2778_v55, %v2777_v13  ;;  %2881 = vst [vmem:[#allocation2 + $0x3c] sm:$0x1] %v2880_v17  ;;  %v2967_v63 = vsel %vm2693_vm6, %v2966_v58, %v2675_v32  ;;  %v2970_v20 = vrot.slane %v2678_v49, 5  ;;  %v2972_v8 = vrot.slane %v2679_v35, 4 }
 0x1c7   : > { %v2781_v31 = vsel %vm2699_vm8, %v2780_v26, %v2779_v3  ;;  %v2969_v36 = vsel %vm2696_vm7, %v2968_v27, %v2967_v63  ;;  %v2974_v9 = vrot.slane %v2680_v46, 3  ;;  %v2976_v51 = vrot.slane %v2681_v48, 2  ;;  %v4404_v46 = vld [vmem:[#allocation2 + $0x8] sm:$0xf] }
 0x1c8   : > { %v2783_v14 = vsel %vm2702_vm10, %v2782_v4, %v2781_v31  ;;  %v2971_v53 = vsel %vm2699_vm8, %v2970_v20, %v2969_v36  ;;  %v2978_v16 = vrot.slane %v2682_v50, 1  ;;  %v4501_v28 = vsel %vm19422_vm1, %v4496_v5, %v19394_v18  ;;  %v4408_v48 = vld [vmem:[#allocation2 + $0x28] sm:$0xf]  ;;  %4412 = vst.msk [vmem:[#allocation5 + $0x1c] sm:$0xf] %vm833_vm2, %v4404_v46 }
 0x1c9   : > { %v2785_v0 = vsel %vm2705_vm11, %v2784_v57, %v2783_v14  ;;  %v2973_v19 = vsel %vm2702_vm10, %v2972_v8, %v2971_v53  ;;  %4600 = vrot.lane.b32.xlu0 %v4501_v28, %s18425_s26  ;;  %v922_v23 = vpack.c.bf16 %v19401_v15, %v815_v34  ;;  %v16235_v25 = vpack.c.bf16 %v19401_v15, %v19401_v15 }
 0x1ca   : > { %v2787_v30 = vsel %vm2708_vm12, %v2786_v2, %v2785_v0  ;;  %v2975_v18 = vsel %vm2705_vm11, %v2974_v9, %v2973_v19  ;;  %v3005_v5 = vpack.c.b16 %v2978_v16, %v2978_v16  ;;  %v4650_v39 = vshrl.u32 %v4633_v12, 16  ;;  %4416 = vst.msk [vmem:[#allocation5 + $0x8c] sm:$0xf] %vm833_vm2, %v4408_v48  ;;  %v725_v48 = vpop.f32.mrf.mxu0 }
 0x1cb   : > { %v2813_v38 = vpack.c.b16 %v2787_v30, %v2787_v30  ;;  %v2977_v32 = vsel %vm2708_vm12, %v2976_v51, %v2975_v18  ;;  %v1297_v33 = vrot.slane %v922_v23, %v18739_v47  ;;  %v1304_v34 = vrot.slane %v16235_v25, %v18739_v47 }
 0x1cc   : > { %v3004_v15 = vpack.c.b16 %v2977_v32, %v2977_v32  ;;  %v3065_v59 = vsel %vm18778_vm9, %v3005_v5, %v3064_v21  ;;  %v19451_v35 = vrot.slane %v4650_v39, 4  ;;  %v4653_v40 = vshll.u32 %v4633_v12, 16  ;;  %v4191_v5 = vld [vmem:[#allocation2 + $0xc4] sm:$0x1] }
 0x1cd   : > { %v2877_v41 = vsel %vm18806_vm13, %v2813_v38, %v2876_v10  ;;  %3066 = vst [vmem:[#allocation2 + $0x8c] sm:$0x1] %v3065_v59  ;;  %v1305_v42 = vcombine.high %v1297_v33, %v1297_v33  ;;  %v1306_v43 = vcombine.high %v1304_v34, %v1304_v34  ;;  %v1313_v11 = vrot.slane %v1297_v33, %v18739_v47 }
 0x1ce   : > { %2878 = vst [vmem:[#allocation2 + $0x38] sm:$0xf] %v2877_v41  ;;  %v3062_v4 = vsel %vm18806_vm13, %v3004_v15, %v3061_v6  ;;  %v1320_v1 = vrot.slane %v1304_v34, %v18739_v47  ;;  %v19459_v49 = vrot.slane %v4653_v40, 5  ;;  %v4659_v50 = vshll.u32 %v4634_v45, 16 }
 0x1cf   : > { %3063 = vst [vmem:[#allocation2 + $0x88] sm:$0xf] %v3062_v4  ;;  %v1327_v7 = vrot.slane %v1305_v42, %v18739_v47  ;;  %v1334_v54 = vrot.slane %v1306_v43, %v18739_v47  ;;  %v1335_v55 = vcombine.high %v1313_v11, %v1313_v11  ;;  %v3415_v57 = vrot.slane %v1313_v11, %v18742_v56  ;;  %v4975_v4 = vld [vmem:[#allocation2 + $0xa0] sm:$0xf] }
 0x1d0   : > { %v1336_v2 = vcombine.high %v1320_v1, %v1320_v1  ;;  %v3471_v58 = vrot.slane %v1320_v1, %v18742_v56  ;;  %v4656_v13 = vor.u32 %v19459_v49, %v19451_v35  ;;  %v19469_v26 = vrot.slane %v4659_v50, 5 }
 0x1d1   : > { %v1337_v17 = vcombine.high %v1327_v7, %v1327_v7  ;;  %v1338_v27 = vcombine.high %v1334_v54, %v1334_v54  ;;  %v3422_v3 = vrot.slane %v3415_v57, %v18742_v56  ;;  %v3429_v63 = vrot.slane %v1327_v7, %v18742_v56 }
 0x1d2   : > { %v3443_v20 = vrot.slane %v1335_v55, %v18742_v56  ;;  %v3478_v8 = vrot.slane %v3471_v58, %v18742_v56  ;;  %v3485_v31 = vrot.slane %v1334_v54, %v18742_v56  ;;  %v3499_v36 = vrot.slane %v1336_v2, %v18742_v56 }
 0x1d3   : > { %v3436_v9 = vrot.slane %v3429_v63, %v18742_v56  ;;  %v3457_v51 = vrot.slane %v1337_v17, %v18742_v56  ;;  %v3513_v12 = vrot.slane %v1338_v27, %v18742_v56  ;;  %v3993_v14 = vunpack.c.l.b16 %v3422_v3  ;;  %v4376_v27 = vld [vmem:[#allocation2 + $0x114] sm:$0x1]  ;;  %v4976_v63 = vld [vmem:[#allocation2 + $0xa4] sm:$0x1] }
 0x1d4   : > { %v3450_v53 = vrot.slane %v3443_v20, %v18742_v56  ;;  %v3492_v16 = vrot.slane %v3485_v31, %v18742_v56  ;;  %v3506_v28 = vrot.slane %v3499_v36, %v18742_v56  ;;  %v3997_v0 = vunpack.c.l.b16 %v3478_v8  ;;  %v4188_v31 = vld [vmem:[#allocation2 + $0xc0] sm:$0xf] }
 0x1d5   : > { %v3464_v19 = vrot.slane %v3457_v51, %v18742_v56  ;;  %v3520_v21 = vrot.slane %v3513_v12, %v18742_v56  ;;  %v3994_v23 = vunpack.c.l.b16 %v3436_v9  ;;  %v4072_v25 = vrot.slane %v3993_v14, 7 }
 0x1d6   : > { %v3995_v29 = vunpack.c.l.b16 %v3450_v53  ;;  %v3998_v30 = vunpack.c.l.b16 %v3492_v16  ;;  %v3999_v10 = vunpack.c.l.b16 %v3506_v28  ;;  %v4079_v18 = vrot.slane %v3997_v0, 3  ;;  %v5282_v28 = vld [vmem:[#allocation2 + $0xac] sm:$0x1] }
 0x1d7   : > { %v3996_v39 = vunpack.c.l.b16 %v3464_v19  ;;  %v4000_v38 = vunpack.c.l.b16 %v3520_v21  ;;  %v4073_v32 = vrot.slane %v3994_v23, 6  ;;  %v16255_v6 = vcombine.low %v3520_v21, %v3520_v21 }
 0x1d8   : > { %v4075_v33 = vrot.slane %v3995_v29, 5  ;;  %v4081_v34 = vrot.slane %v3998_v30, 2  ;;  %v4083_v45 = vrot.slane %v3999_v10, 1  ;;  %v4257_v15 = vrot.slane %v3994_v23, 7 }
 0x1d9   : > { %v4074_v59 = vsel %vm2693_vm6, %v4073_v32, %v4072_v25  ;;  %v4077_v35 = vrot.slane %v3996_v39, 4  ;;  %v4192_v40 = vsel %vm18778_vm9, %v16255_v6, %v4191_v5  ;;  %v4259_v41 = vrot.slane %v3995_v29, 6  ;;  %v5279_v25 = vld [vmem:[#allocation2 + $0xa0] sm:$0xe]  ;;  %v5280_v29 = vld [vmem:[#allocation2 + $0xa4] sm:$0x1] }
 0x1da   : > { %v4076_v42 = vsel %vm2696_vm7, %v4075_v33, %v4074_v59  ;;  %4193 = vst [vmem:[#allocation2 + $0xc4] sm:$0x1] %v4192_v40  ;;  %v4258_v43 = vsel %vm2693_vm6, %v4257_v15, %v3993_v14  ;;  %v4261_v11 = vrot.slane %v3996_v39, 5  ;;  %v4263_v46 = vrot.slane %v3997_v0, 4  ;;  %v4373_v14 = vld [vmem:[#allocation2 + $0x110] sm:$0xf] }
 0x1db   : > { %v4078_v1 = vsel %vm2699_vm8, %v4077_v35, %v4076_v42  ;;  %v4260_v49 = vsel %vm2696_vm7, %v4259_v41, %v4258_v43  ;;  %v4265_v50 = vrot.slane %v3998_v30, 3  ;;  %v4267_v7 = vrot.slane %v3999_v10, 2  ;;  %v5289_v5 = vld [vmem:[#allocation2 + $0xc8] sm:$0xe] }
 0x1dc   : > { %v4080_v54 = vsel %vm2702_vm10, %v4079_v18, %v4078_v1  ;;  %v4262_v55 = vsel %vm2699_vm8, %v4261_v11, %v4260_v49  ;;  %v4269_v57 = vrot.slane %v4000_v38, 1  ;;  %v4657_v2 = vrot.slane %v4656_v13, 4  ;;  %v5281_v18 = vld [vmem:[#allocation2 + $0xa8] sm:$0xe]  ;;  %v5919_v49 = vld [vmem:[#allocation2 + $0xf8] sm:$0xf] }
 0x1dd   : > { %v4082_v58 = vsel %vm2705_vm11, %v4081_v34, %v4080_v54  ;;  %v4264_v17 = vsel %vm2702_vm10, %v4263_v46, %v4262_v55  ;;  %v726_v3 = vadd.f32 %v19384_v60, %v725_v48  ;;  %v4992_v20 = vshrl.u32 %v4975_v4, 16  ;;  %5927 = vst.msk [vmem:[#allocation5 + $0x10] sm:$0xf] %vm833_vm2, %v5919_v49  ;;  %v5876_v49 = vld [vmem:[#allocation2 + $0xd0] sm:$0xf] }
 0x1de   : > { %v4084_v8 = vsel %vm2708_vm12, %v4083_v45, %v4082_v58  ;;  %v4266_v36 = vsel %vm2705_vm11, %v4265_v50, %v4264_v17  ;;  %v4329_v9 = vpack.c.b16 %v4269_v57, %v4269_v57  ;;  %v4662_v51 = vsel %vm19422_vm1, %v4657_v2, %v19469_v26  ;;  %v5290_v45 = vld [vmem:[#allocation2 + $0xcc] sm:$0x1] }
 0x1df   : > { %v4143_v13 = vpack.c.b16 %v4084_v8, %v4084_v8  ;;  %v4268_v12 = vsel %vm2708_vm12, %v4267_v7, %v4266_v36  ;;  %4761 = vrot.lane.b32.xlu0 %v4662_v51, %s18426_s15  ;;  %v814_v53 = vmax.f32 %v726_v3, 0.0  ;;  %v4994_v16 = vrot.slane %v4992_v20, 4 }
 0x1e0   : > { %v4328_v0 = vpack.c.b16 %v4268_v12, %v4268_v12  ;;  %v4377_v19 = vsel %vm18778_vm9, %v4329_v9, %v4376_v27  ;;  %v4995_v21 = vshll.u32 %v4975_v4, 16  ;;  %v5001_v23 = vshll.u32 %v4976_v63, 16 }
 0x1e1   : > { %v4189_v26 = vsel %vm18806_vm13, %v4143_v13, %v4188_v31  ;;  %4378 = vst [vmem:[#allocation2 + $0x114] sm:$0x1] %v4377_v19  ;;  %v921_v30 = vpack.c.bf16 %v814_v53, %v813_v44  ;;  %v16234_v10 = vpack.c.bf16 %v814_v53, %v814_v53  ;;  %v16268_v61 = vrot.slane %v5279_v25, 9  ;;  %v4405_v19 = vld [vmem:[#allocation2 + $0x10] sm:$0xf] }
 0x1e2   : > { %4190 = vst [vmem:[#allocation2 + $0xc0] sm:$0xf] %v4189_v26  ;;  %v4374_v39 = vsel %vm18806_vm13, %v4328_v0, %v4373_v14  ;;  %v4997_v38 = vrot.slane %v4995_v21, 5  ;;  %v5003_v32 = vrot.slane %v5001_v23, 5  ;;  %v5313_v44 = vrot.slane %v5280_v29, 5 }
 0x1e3   : > { %4375 = vst [vmem:[#allocation2 + $0x110] sm:$0xf] %v4374_v39  ;;  %v1248_v6 = vrot.slane %v921_v30, %v18739_v47  ;;  %v1255_v33 = vrot.slane %v16234_v10, %v18739_v47  ;;  %v16269_v59 = vrot.slane %v5281_v18, 9  ;;  %v5317_v35 = vrot.slane %v5282_v28, 5  ;;  %v6352_v21 = vld [vmem:[#allocation2 + $0x10] sm:$0xf] }
 0x1e4   : > { %v4998_v15 = vor.u32 %v4997_v38, %v4994_v16  ;;  %v16273_v40 = vrot.slane %v5289_v5, 9  ;;  %v5314_v48 = vsel %vm19514_vm14, %v16268_v61, %v5313_v44  ;;  %v5333_v1 = vrot.slane %v5290_v45, 5  ;;  %4413 = vst.msk [vmem:[#allocation5 + $0x38] sm:$0xf] %vm833_vm2, %v4405_v19  ;;  %6360 = vst.msk [vmem:[#allocation5 + $0x14] sm:$0xf] %vm833_vm2, %v6352_v21 }
 0x1e5   : > { %v1256_v41 = vcombine.high %v1248_v6, %v1248_v6  ;;  %v1257_v42 = vcombine.high %v1255_v33, %v1255_v33  ;;  %v1264_v43 = vrot.slane %v1248_v6, %v18739_v47  ;;  %v1271_v11 = vrot.slane %v1255_v33, %v18739_v47  ;;  %v5871_v39 = vld [vmem:[#allocation2 + $0xa8] sm:$0xf]  ;;  %v5872_v38 = vld [vmem:[#allocation2 + $0xb0] sm:$0xf]  ;;  %v2861_v44 = vld [vmem:[#allocation2 + $0x24] sm:$0x1] }
 0x1e6   : > { %v4999_v46 = vrot.slane %v4998_v15, 4  ;;  %v5318_v4 = vsel %vm19514_vm14, %v16269_v59, %v5317_v35  ;;  %v5334_v17 = vsel %vm19514_vm14, %v16273_v40, %v5333_v1  ;;  %v4409_v40 = vld [vmem:[#allocation2 + $0x30] sm:$0xf]  ;;  %v4421_v21 = vld [vmem:[#allocation2 + $0x58] sm:$0xf] }
 0x1e7   : > { %v1278_v50 = vrot.slane %v1256_v41, %v18739_v47  ;;  %v1285_v7 = vrot.slane %v1257_v42, %v18739_v47  ;;  %v1286_v54 = vcombine.high %v1264_v43, %v1264_v43  ;;  %v1287_v55 = vcombine.high %v1271_v11, %v1271_v11  ;;  %5345 = vrot.lane.b32.xlu1 %v5318_v4, %s18424_s25 }
 0x1e8   : > { %v2073_v57 = vrot.slane %v1264_v43, %v18742_v56  ;;  %v2129_v2 = vrot.slane %v1271_v11, %v18742_v56  ;;  %v5004_v58 = vsel %vm19422_vm1, %v4999_v46, %v5003_v32  ;;  %4417 = vst.msk [vmem:[#allocation5 + $0xa8] sm:$0xf] %vm833_vm2, %v4409_v40  ;;  %v6256_v40 = vld [vmem:[#allocation2 + $0xac] sm:$0x1] }
 0x1e9   : > { %v1288_v27 = vcombine.high %v1278_v50, %v1278_v50  ;;  %v1289_v3 = vcombine.high %v1285_v7, %v1285_v7  ;;  %v2087_v63 = vrot.slane %v1278_v50, %v18742_v56  ;;  %v2101_v20 = vrot.slane %v1286_v54, %v18742_v56  ;;  %5103 = vrot.lane.b32.xlu0 %v5004_v58, %s18426_s15  ;;  %v19561_v50 = vpop.permute.xlu1 %4894 }
 0x1ea   : > { %v2080_v8 = vrot.slane %v2073_v57, %v18742_v56  ;;  %v2136_v31 = vrot.slane %v2129_v2, %v18742_v56  ;;  %v2143_v36 = vrot.slane %v1285_v7, %v18742_v56  ;;  %v2157_v9 = vrot.slane %v1287_v55, %v18742_v56 }
 0x1eb   : > { %v2094_v51 = vrot.slane %v2087_v63, %v18742_v56  ;;  %v2108_v13 = vrot.slane %v2101_v20, %v18742_v56  ;;  %v2115_v12 = vrot.slane %v1288_v27, %v18742_v56  ;;  %v2171_v14 = vrot.slane %v1289_v3, %v18742_v56  ;;  %5353 = vrot.lane.b32.xlu1 %v5334_v17, %s18424_s25  ;;  %v5875_v27 = vld [vmem:[#allocation2 + $0xc8] sm:$0xf] }
 0x1ec   : > { %v2150_v53 = vrot.slane %v2143_v36, %v18742_v56  ;;  %v2164_v16 = vrot.slane %v2157_v9, %v18742_v56  ;;  %v2651_v28 = vunpack.c.l.b16 %v2080_v8  ;;  %v2655_v0 = vunpack.c.l.b16 %v2136_v31  ;;  %v4977_v3 = vld [vmem:[#allocation2 + $0xa8] sm:$0xf]  ;;  %v3046_v8 = vld [vmem:[#allocation2 + $0x74] sm:$0x1]  ;;  %v2858_v36 = vld [vmem:[#allocation2 + $0x20] sm:$0xf] }
 0x1ed   : > { %v2122_v23 = vrot.slane %v2115_v12, %v18742_v56  ;;  %v2178_v25 = vrot.slane %v2171_v14, %v18742_v56  ;;  %v2652_v29 = vunpack.c.l.b16 %v2094_v51  ;;  %v2653_v26 = vunpack.c.l.b16 %v2108_v13  ;;  %5343 = vrot.lane.b32.xlu0 %v5314_v48, %s18424_s25  ;;  %v4978_v13 = vld [vmem:[#allocation2 + $0xac] sm:$0x1] }
 0x1ee   : > { %v2656_v30 = vunpack.c.l.b16 %v2150_v53  ;;  %v2657_v10 = vunpack.c.l.b16 %v2164_v16  ;;  %v2736_v18 = vrot.slane %v2651_v28, 7  ;;  %v2743_v5 = vrot.slane %v2655_v0, 3  ;;  %v3043_v53 = vld [vmem:[#allocation2 + $0x70] sm:$0xf] }
 0x1ef   : > { %v2654_v32 = vunpack.c.l.b16 %v2122_v23  ;;  %v2658_v6 = vunpack.c.l.b16 %v2178_v25  ;;  %v2737_v33 = vrot.slane %v2652_v29, 6  ;;  %v2739_v61 = vrot.slane %v2653_v26, 5  ;;  %5889 = vrot.lane.b32.xlu1 %v5872_v38, %s18426_s15 }
 0x1f0   : > { %v2745_v45 = vrot.slane %v2656_v30, 2  ;;  %v2747_v15 = vrot.slane %v2657_v10, 1  ;;  %v16247_v59 = vcombine.low %v2178_v25, %v2178_v25  ;;  %v2927_v35 = vrot.slane %v2652_v29, 7  ;;  %v19576_v25 = vpop.permute.xlu1 %4896 }
 0x1f1   : > { %v2738_v41 = vsel %vm2693_vm6, %v2737_v33, %v2736_v18  ;;  %v2741_v42 = vrot.slane %v2654_v32, 4  ;;  %v2929_v43 = vrot.slane %v2653_v26, 6  ;;  %v2931_v11 = vrot.slane %v2654_v32, 5  ;;  %5887 = vrot.lane.b32.xlu0 %v5871_v39, %s18426_s15  ;;  %v4986_v32 = vld [vmem:[#allocation2 + $0xcc] sm:$0x1] }
 0x1f2   : > { %v2740_v46 = vsel %vm2696_vm7, %v2739_v61, %v2738_v41  ;;  %v2862_v48 = vsel %vm18778_vm9, %v16247_v59, %v2861_v44  ;;  %v2928_v4 = vsel %vm2693_vm6, %v2927_v35, %v2651_v28  ;;  %v2933_v1 = vrot.slane %v2655_v0, 4  ;;  %v4985_v28 = vld [vmem:[#allocation2 + $0xc8] sm:$0xf]  ;;  %v6095_v33 = vld [vmem:[#allocation2 + $0xf8] sm:$0xf] }
 0x1f3   : > { %v2742_v7 = vsel %vm2699_vm8, %v2741_v42, %v2740_v46  ;;  %2863 = vst [vmem:[#allocation2 + $0x24] sm:$0x1] %v2862_v48  ;;  %v2930_v54 = vsel %vm2696_vm7, %v2929_v43, %v2928_v4  ;;  %v2935_v55 = vrot.slane %v2656_v30, 3  ;;  %v2937_v57 = vrot.slane %v2657_v10, 2  ;;  %5897 = vrot.lane.b32.xlu1 %v5876_v49, %s18426_s15  ;;  %v5935_v10 = vld [vmem:[#allocation2 + $0xa8] sm:$0xf] }
 0x1f4   : > { %v2744_v2 = vsel %vm2702_vm10, %v2743_v5, %v2742_v7  ;;  %v2932_v58 = vsel %vm2699_vm8, %v2931_v11, %v2930_v54  ;;  %v2939_v17 = vrot.slane %v2658_v6, 1  ;;  %v5006_v16 = vshrl.u32 %v4977_v3, 16  ;;  %v5375_v5 = vld [vmem:[#allocation2 + $0x8] sm:$0xf]  ;;  %v5423_v49 = vld [vmem:[#allocation2 + $0x58] sm:$0xf] }
 0x1f5   : > { %v2746_v63 = vsel %vm2705_vm11, %v2745_v45, %v2744_v2  ;;  %v2934_v20 = vsel %vm2702_vm10, %v2933_v1, %v2932_v58  ;;  %5895 = vrot.lane.b32.xlu0 %v5875_v27, %s18426_s15  ;;  %v5009_v23 = vshll.u32 %v4977_v3, 16  ;;  %v5015_v30 = vshll.u32 %v4978_v13, 16  ;;  %v4471_v59 = vld [vmem:[#allocation2 + $0x8] sm:$0xf]  ;;  %v19584_v1 = vpop.permute.xlu1 %4945  ;;  %v5776_v7 = vld [vmem:[#allocation2 + $0xc] sm:$0x1] }
 0x1f6   : > { %v2748_v31 = vsel %vm2708_vm12, %v2747_v15, %v2746_v63  ;;  %v2936_v9 = vsel %vm2705_vm11, %v2935_v55, %v2934_v20  ;;  %v2999_v51 = vpack.c.b16 %v2939_v17, %v2939_v17  ;;  %v5008_v26 = vrot.slane %v5006_v16, 4  ;;  %v6255_v35 = vld [vmem:[#allocation2 + $0xa8] sm:$0xe]  ;;  %v19588_v58 = vld [vmem:[#allocation2 + $0xac] sm:$0x1] }
 0x1f7   : > { %v2807_v12 = vpack.c.b16 %v2748_v31, %v2748_v31  ;;  %v2938_v14 = vsel %vm2708_vm12, %v2937_v57, %v2936_v9  ;;  %v5011_v39 = vrot.slane %v5009_v23, 5  ;;  %v5062_v38 = vshrl.u32 %v4985_v28, 16  ;;  %v5775_v43 = vld [vmem:[#allocation2 + $0x8] sm:$0xe]  ;;  %v4635_v3 = vld [vmem:[#allocation2 + $0x58] sm:$0xf] }
 0x1f8   : > { %v2998_v0 = vpack.c.b16 %v2938_v14, %v2938_v14  ;;  %v3047_v19 = vsel %vm18778_vm9, %v2999_v51, %v3046_v8  ;;  %v5065_v6 = vshll.u32 %v4985_v28, 16  ;;  %v5952_v45 = vshrl.u32 %v5935_v10, 16  ;;  %v19592_v8 = vld [vmem:[#allocation2 + $0x28] sm:$0xe] }
 0x1f9   : > { %v2859_v29 = vsel %vm18806_vm13, %v2807_v12, %v2858_v36  ;;  %3048 = vst [vmem:[#allocation2 + $0x74] sm:$0x1] %v3047_v19  ;;  %4438 = vrot.lane.b32.xlu0 %v4421_v21, %s18424_s25  ;;  %v5012_v61 = vor.u32 %v5011_v39, %v5008_v26  ;;  %v5064_v44 = vrot.slane %v5062_v38, 4  ;;  %v5955_v15 = vshll.u32 %v5935_v10, 16  ;;  %v4479_v14 = vld [vmem:[#allocation2 + $0x28] sm:$0xf]  ;;  %v19598_v10 = vpop.permute.xlu1 %4904 }
 0x1fa   : > { %2860 = vst [vmem:[#allocation2 + $0x20] sm:$0xf] %v2859_v29  ;;  %v3044_v18 = vsel %vm18806_vm13, %v2998_v0, %v3043_v53  ;;  %v5017_v41 = vrot.slane %v5015_v30, 5  ;;  %v5067_v42 = vrot.slane %v5065_v6, 5  ;;  %v5071_v46 = vshll.u32 %v4986_v32, 16 }
 0x1fb   : > { %3045 = vst [vmem:[#allocation2 + $0x70] sm:$0xf] %v3044_v18  ;;  %v5013_v11 = vrot.slane %v5012_v61, 4  ;;  %v6112_v48 = vshrl.u32 %v6095_v33, 16  ;;  %v6115_v4 = vshll.u32 %v6095_v33, 16  ;;  %v4503_v55 = vshrl.u32 %v4471_v59, 16 }
 0x1fc   : > { %v5068_v54 = vor.u32 %v5067_v42, %v5064_v44  ;;  %v16284_v57 = vrot.slane %v6255_v35, 9  ;;  %v5954_v17 = vrot.slane %v5952_v45, 4  ;;  %v5957_v27 = vrot.slane %v5955_v15, 5  ;;  %v4643_v19 = vld [vmem:[#allocation2 + $0x78] sm:$0xf] }
 0x1fd   : > { %5391 = vrot.lane.b32.xlu0 %v5375_v5, %s18425_s26  ;;  %v5018_v2 = vsel %vm19422_vm1, %v5013_v11, %v5017_v41  ;;  %v6289_v63 = vrot.slane %v6256_v40, 5  ;;  %v16276_v20 = vrot.slane %v5775_v43, 9  ;;  %v4506_v36 = vshll.u32 %v4471_v59, 16  ;;  %v5379_v21 = vld [vmem:[#allocation2 + $0x28] sm:$0xf] }
 0x1fe   : > { %5105 = vrot.lane.b32.xlu1 %v5018_v2, %s18426_s15  ;;  %v5069_v31 = vrot.slane %v5068_v54, 4  ;;  %v5073_v9 = vrot.slane %v5071_v46, 5  ;;  %v6114_v51 = vrot.slane %v6112_v48, 4  ;;  %v6117_v13 = vrot.slane %v6115_v4, 5  ;;  %v6096_v30 = vld [vmem:[#allocation2 + $0xfc] sm:$0x1] }
 0x1ff   : > { %v4505_v12 = vrot.slane %v4503_v55, 4  ;;  %v5809_v53 = vrot.slane %v5776_v7, 5  ;;  %v4508_v16 = vrot.slane %v4506_v36, 5  ;;  %v4664_v28 = vshrl.u32 %v4635_v3, 16  ;;  %v4472_v38 = vld [vmem:[#allocation2 + $0xc] sm:$0x1]  ;;  %v19620_v36 = vpop.permute.xlu1 %4953 }
 0x200   : > { %v4667_v0 = vshll.u32 %v4635_v3, 16  ;;  %v6290_v23 = vsel %vm19514_vm14, %v16284_v57, %v6289_v63  ;;  %v5074_v29 = vsel %vm19422_vm1, %v5069_v31, %v5073_v9  ;;  %v5958_v26 = vor.u32 %v5957_v27, %v5954_v17  ;;  %v5427_v6 = vld [vmem:[#allocation2 + $0x78] sm:$0xf]  ;;  %v5784_v33 = vld [vmem:[#allocation2 + $0x2c] sm:$0x1]  ;;  %v19618_v31 = vpop.f32.mrf.mxu1 }
 0x201   : > { %5439 = vrot.lane.b32.xlu0 %v5423_v49, %s18426_s15  ;;  %v19603_v18 = vsel %vm19514_vm14, %v16276_v20, %v5809_v53  ;;  %v16280_v5 = vrot.slane %v19592_v8, 9  ;;  %v5961_v39 = vshll.u32 %v19588_v58, 16  ;;  %v4559_v32 = vshrl.u32 %v4479_v14, 16  ;;  %v4636_v45 = vld [vmem:[#allocation2 + $0x5c] sm:$0x1] }
 0x202   : > { %5113 = vrot.lane.b32.xlu1 %v5074_v29, %s18426_s15  ;;  %v6118_v61 = vor.u32 %v6117_v13, %v6114_v51  ;;  %v4509_v44 = vor.u32 %v4508_v16, %v4505_v12  ;;  %v4562_v15 = vshll.u32 %v4479_v14, 16  ;;  %v4720_v59 = vshrl.u32 %v4643_v19, 16  ;;  %v5615_v35 = vld [vmem:[#allocation2 + $0x58] sm:$0xf]  ;;  %v4480_v43 = vld [vmem:[#allocation2 + $0x2c] sm:$0x1] }
 0x203   : > { %v6121_v40 = vshll.u32 %v6096_v30, 16  ;;  %v4666_v41 = vrot.slane %v4664_v28, 4  ;;  %v4669_v42 = vrot.slane %v4667_v0, 5  ;;  %v4723_v11 = vshll.u32 %v4643_v19, 16  ;;  %v5376_v46 = vld [vmem:[#allocation2 + $0x10] sm:$0xf] }
 0x204   : > { %v19608_v48 = vrot.slane %v5958_v26, 4  ;;  %v4512_v4 = vshll.u32 %v4472_v38, 16  ;;  %v4561_v49 = vrot.slane %v4559_v32, 4  ;;  %v4564_v7 = vrot.slane %v4562_v15, 5  ;;  %v19612_v55 = vld [vmem:[#allocation2 + $0x7c] sm:$0x1] }
 0x205   : > { %5399 = vrot.lane.b32.xlu0 %v5379_v21, %s18425_s26  ;;  %v4673_v54 = vshll.u32 %v4636_v45, 16  ;;  %v4722_v57 = vrot.slane %v4720_v59, 4  ;;  %v4725_v2 = vrot.slane %v4723_v11, 5  ;;  %v5632_v58 = vshrl.u32 %v5615_v35, 16  ;;  %v5424_v17 = vld [vmem:[#allocation2 + $0x60] sm:$0xf]  ;;  %v786_v59 = vpop.f32.mrf.mxu1 }
 0x206   : > { %5393 = vrot.lane.b32.xlu1 %v5376_v46, %s18425_s26  ;;  %v19614_v27 = vrot.slane %v6118_v61, 4  ;;  %v19616_v3 = vrot.slane %v4509_v44, 4  ;;  %v4568_v63 = vshll.u32 %v4480_v43, 16  ;;  %v5635_v20 = vshll.u32 %v5615_v35, 16  ;;  %v5623_v8 = vld [vmem:[#allocation2 + $0x78] sm:$0xf] }
 0x207   : > { %v5825_v9 = vrot.slane %v5784_v33, 5  ;;  %v19622_v51 = vrot.slane %v5961_v39, 5  ;;  %v4670_v13 = vor.u32 %v4669_v42, %v4666_v41  ;;  %v19624_v12 = vld [vmem:[#allocation2 + $0x5c] sm:$0x1]  ;;  %v5634_v14 = vrot.slane %v5632_v58, 4 }
 0x208   : > { %v19626_v53 = vld [vmem:[#allocation2 + $0xb0] sm:$0xe]  ;;  %v19628_v16 = vld [vmem:[#allocation2 + $0xb4] sm:$0x1]  ;;  %v19630_v28 = vrot.slane %v6121_v40, 5  ;;  %v19632_v0 = vrot.slane %v4512_v4, 5  ;;  %v4565_v19 = vor.u32 %v4564_v7, %v4561_v49  ;;  %v4726_v38 = vor.u32 %v4725_v2, %v4722_v57 }
 0x209   : > { %5447 = vrot.lane.b32.xlu0 %v5427_v6, %s18426_s15  ;;  %v5637_v21 = vrot.slane %v5635_v20, 5  ;;  %v19634_v29 = vld [vmem:[#allocation2 + $0xb0] sm:$0xe]  ;;  %v5826_v26 = vsel %vm19514_vm14, %v16280_v5, %v5825_v9  ;;  %v5964_v30 = vsel %vm19422_vm1, %v19608_v48, %v19622_v51  ;;  %v19644_v39 = vrot.slane %v4673_v54, 5  ;;  %v19646_v32 = vld [vmem:[#allocation2 + $0xb4] sm:$0x1] }
 0x20a   : > { %5441 = vrot.lane.b32.xlu1 %v5424_v17, %s18426_s15  ;;  %v19648_v6 = vld [vmem:[#allocation2 + $0x10] sm:$0xe]  ;;  %v4515_v5 = vsel %vm19422_vm1, %v19616_v3, %v19632_v0  ;;  %v19658_v61 = vrot.slane %v4568_v63, 5  ;;  %v4729_v44 = vshll.u32 %v19612_v55, 16  ;;  %v5778_v45 = vld [vmem:[#allocation2 + $0x14] sm:$0x1]  ;;  %v4447_v55 = vpop.permute.xlu1 %4446 }
 0x20b   : > { %v5380_v33 = vld [vmem:[#allocation2 + $0x30] sm:$0xf]  ;;  %v19661_v15 = vld [vmem:[#allocation2 + $0x7c] sm:$0x1]  ;;  %v19666_v40 = vrot.slane %v4670_v13, 4  ;;  %v5638_v41 = vor.u32 %v5637_v21, %v5634_v14  ;;  %v5688_v42 = vshrl.u32 %v5623_v8, 16  ;;  %v17444_v14 = vpop.f32.mrf.mxu1 }
 0x20c   : > { %v17536_v35 = vld [vmem:[%s23890_s3 + $0x78] sm:$0xff]   ;;  %v5691_v43 = vshll.u32 %v5623_v8, 16  ;;  %v5785_v11 = vld [vmem:[#allocation2 + $0x30] sm:$0xe]  ;;  %v5786_v46 = vld [vmem:[#allocation2 + $0x34] sm:$0x1] }
 0x20d   : > { %6319 = vrot.lane.b32.xlu0 %v6290_v23, %s18426_s15  ;;  %v6124_v23 = vsel %vm19422_vm1, %v19614_v27, %v19630_v28  ;;  %v19668_v4 = vrot.slane %v4565_v19, 4  ;;  %v5641_v49 = vshll.u32 %v19624_v12, 16  ;;  %v16285_v7 = vrot.slane %v19626_v53, 9  ;;  %17111 = vmatprep.subr.bf16.mxu1 %v17536_v35  ;;  %v17537_v57 = vld [vmem:[%s23890_s3 + $0x38] sm:$0xff]   ;;  %v17538_v20 = vld [vmem:[%s23890_s3 + $0x70] sm:$0xff]  }
 0x20e   : > { %v6293_v54 = vrot.slane %v19628_v16, 5  ;;  %5401 = vrot.lane.b32.xlu1 %v5380_v33, %s18425_s26  ;;  %v19679_v2 = vrot.slane %v4726_v38, 4  ;;  %v16270_v58 = vrot.slane %v19634_v29, 9  ;;  %v5690_v17 = vrot.slane %v5688_v42, 4  ;;  %v5428_v8 = vld [vmem:[#allocation2 + $0x80] sm:$0xf]  ;;  %17112 = vmatpush3.bf16.msra.mxu1 %v17537_v57 }
 0x20f   : > { %v5693_v63 = vrot.slane %v5691_v43, 5  ;;  %v5321_v9 = vrot.slane %v19646_v32, 5  ;;  %v16277_v13 = vrot.slane %v19648_v6, 9  ;;  %v5813_v12 = vrot.slane %v5778_v45, 5  ;;  %v4979_v29 = vld [vmem:[#allocation2 + $0xb0] sm:$0xf]  ;;  %17113 = vmatprep.subr.bf16.mxu1 %v17538_v20 }
 0x210   : > { %v4676_v53 = vsel %vm19422_vm1, %v19666_v40, %v19644_v39  ;;  %v19691_v16 = vrot.slane %v4729_v44, 5  ;;  %v19693_v19 = vrot.slane %v5638_v41, 4  ;;  %v5697_v21 = vshll.u32 %v19661_v15, 16  ;;  %4466 = vst.msk [vmem:[#allocation5 + $0x8c] sm:$0xf] %vm4460_vm15, %v4447_v55  ;;  %v17539_v45 = vld [vmem:[%s23890_s3 + $0x30] sm:$0xff]  }
 0x211   : > { %5839 = vrot.lane.b32.xlu0 %v19603_v18, %s18425_s26  ;;  %v4437_v18 = vpop.permute.xlu0 %4436  ;;  %v4571_v38 = vsel %vm19422_vm1, %v19668_v4, %v19658_v61  ;;  %v16281_v32 = vrot.slane %v5785_v11, 9  ;;  %v5829_v6 = vrot.slane %v5786_v46, 5  ;;  %v19702_v33 = vld [vmem:[#allocation2 + $0xd0] sm:$0xe]  ;;  %v795_v44 = vadd.f32 %v19384_v60, %v19618_v31  ;;  %v19717_v42 = vld [vmem:[#allocation2 + $0xd4] sm:$0x1] }
 0x212   : > { %4461 = vst.msk [vmem:[#allocation5] sm:$0xf] %vm4460_vm15, %v4437_v18  ;;  %5449 = vrot.lane.b32.xlu1 %v5428_v8, %s18426_s15  ;;  %v19711_v15 = vrot.slane %v5641_v49, 5  ;;  %v19715_v35 = vsel %vm19514_vm14, %v16285_v7, %v6293_v54  ;;  %v5694_v41 = vor.u32 %v5693_v63, %v5690_v17  ;;  %v787_v43 = vadd.f32 %v19384_v60, %v786_v59  ;;  %v17540_v31 = vld [vmem:[%s23890_s3 + $0x68] sm:$0xff]   ;;  %v4880_v11 = vld [vmem:[#allocation2 + $0xb0] sm:$0xf]  ;;  %v789_v60 = vpop.f32.mrf.mxu1 }
 0x213   : > { %v19729_v46 = vsel %vm19514_vm14, %v16270_v58, %v5321_v9  ;;  %v19733_v49 = vsel %vm19514_vm14, %v16277_v13, %v5813_v12  ;;  %v5020_v7 = vshrl.u32 %v4979_v29, 16  ;;  %v5937_v59 = vld [vmem:[#allocation2 + $0xb0] sm:$0xf]  ;;  %17114 = vmatpush3.bf16.msra.mxu1 %v17539_v45  ;;  %v19739_v55 = vrot.slane %v5697_v21, 5  ;;  %v5938_v58 = vld [vmem:[#allocation2 + $0xb4] sm:$0x1] }
 0x214   : > { %v5023_v17 = vshll.u32 %v4979_v29, 16  ;;  %17115 = vmatprep.subr.bf16.mxu1 %v17540_v31  ;;  %v19744_v63 = vsel %vm19514_vm14, %v16281_v32, %v5829_v6  ;;  %v831_v8 = vmax.f32 %v795_v44, 0.0  ;;  %v18392_v9 = vld [vmem:[%s23889_s2] ss:$0 sm:$0xff]  ;;  %v17541_v18 = vld [vmem:[%s23890_s3 + $0x28] sm:$0xff]   ;;  %v19762_v21 = vrot.slane %v5694_v41, 4 }
 0x215   : > { %5847 = vrot.lane.b32.xlu0 %v5826_v26, %s18425_s26  ;;  %v4732_v26 = vsel %vm19422_vm1, %v19679_v2, %v19691_v16  ;;  %v798_v13 = vadd.f32 %v18392_v9, %v17444_v14  ;;  %v19750_v12 = vld [vmem:[#allocation2 + $0x100] sm:$0xf]  ;;  %v829_v29 = vmax.f32 %v787_v43, 0.0  ;;  %v19764_v32 = vld [vmem:[#allocation2 + $0xd0] sm:$0xf]  ;;  %v790_v14 = vadd.f32 %v18392_v9, %v789_v60  ;;  %v17544_v39 = vld [vmem:[%s23890_s3 + $0x58] sm:$0xff]  }
 0x216   : > { %4602 = vrot.lane.b32.xlu1 %v4515_v5, %s18425_s26  ;;  %v5966_v6 = vshrl.u32 %v5937_v59, 16  ;;  %v17542_v44 = vld [vmem:[%s23890_s3 + $0x60] sm:$0xff]   ;;  %v19769_v45 = vrot.slane %v5020_v7, 4  ;;  %v5975_v22 = vshll.u32 %v5938_v58, 16  ;;  %v19771_v57 = vrot.slane %v5023_v17, 5  ;;  %v17546_v4 = vld [vmem:[%s23890_s3 + $0x50] sm:$0xff]  }
 0x217   : > { %v832_v31 = vmax.f32 %v798_v13, 0.0  ;;  %17116 = vmatpush3.bf16.msra.mxu1 %v17541_v18  ;;  %v830_v3 = vmax.f32 %v790_v14, 0.0  ;;  %v6126_v5 = vshrl.u32 %v19750_v12, 16  ;;  %v4929_v41 = vld [vmem:[#allocation2 + $0x100] sm:$0xf]  ;;  %v23913_v24 = vsel %vm19422_vm1, %v19762_v21, %v19739_v55 }
 0x218   : > { %v5968_v0 = vrot.slane %v5966_v6, 4  ;;  %17117 = vmatprep.subr.bf16.mxu1 %v17542_v44  ;;  %v17543_v7 = vld [vmem:[%s23890_s3 + $0x20] sm:$0xff]   ;;  %v19792_v14 = vrot.slane %v5975_v22, 5  ;;  %v5923_v27 = vld [vmem:[#allocation2 + $0x118] sm:$0xf]  ;;  %v23916_v21 = vshrl.u32 %v19764_v32, 16 }
 0x219   : > { %4898 = vrot.lane.b32.xlu0 %v4880_v11, %s18424_s25  ;;  %v5969_v11 = vshll.u32 %v5937_v59, 16  ;;  %v930_v60 = vpack.c.bf16 %v832_v31, %v831_v8  ;;  %v16243_v9 = vpack.c.bf16 %v832_v31, %v832_v31  ;;  %v929_v58 = vpack.c.bf16 %v830_v3, %v829_v29  ;;  %v19794_v6 = vld [vmem:[#allocation2 + $0x104] sm:$0x1]  ;;  %v4422_v28 = vld [vmem:[#allocation2 + $0x60] sm:$0xf] }
 0x21a   : > { %4763 = vrot.lane.b32.xlu1 %v4676_v53, %s18426_s15  ;;  %v16242_v8 = vpack.c.bf16 %v830_v3, %v830_v3  ;;  %v19796_v44 = vrot.slane %v6126_v5, 4  ;;  %v6129_v31 = vshll.u32 %v19750_v12, 16  ;;  %5931 = vst.msk [vmem:[#allocation5 + $0x80] sm:$0xf] %vm833_vm2, %v5923_v27  ;;  %v4988_v55 = vld [vmem:[#allocation2 + $0xd4] sm:$0x1] }
 0x21b   : > { %v5971_v20 = vrot.slane %v5969_v11, 5  ;;  %v1689_v13 = vrot.slane %v930_v60, %v18739_v47  ;;  %v1696_v18 = vrot.slane %v16243_v9, %v18739_v47  ;;  %17118 = vmatpush3.bf16.msra.mxu1 %v17543_v7  ;;  %v1640_v40 = vrot.slane %v929_v58, %v18739_v47  ;;  %v4884_v11 = vld [vmem:[#allocation2 + $0xd0] sm:$0xf]  ;;  %v17545_v7 = vld [vmem:[%s23890_s3 + $0x18] sm:$0xff]  }
 0x21c   : > { %v19803_v53 = vrot.slane %v16242_v8, %v18739_v47  ;;  %17119 = vmatprep.subr.bf16.mxu1 %v17544_v39 }
 0x21d   : > { %4947 = vrot.lane.b32.xlu0 %v4929_v41, %s18425_s26  ;;  %v5972_v29 = vor.u32 %v5971_v20, %v5968_v0  ;;  %v1697_v22 = vcombine.high %v1689_v13, %v1689_v13  ;;  %v1698_v3 = vcombine.high %v1696_v18, %v1696_v18  ;;  %v1705_v41 = vrot.slane %v1689_v13, %v18739_v47 }
 0x21e   : > { %v1712_v5 = vrot.slane %v1696_v18, %v18739_v47  ;;  %4610 = vrot.lane.b32.xlu1 %v4571_v38, %s18425_s26  ;;  %v1648_v20 = vcombine.high %v1640_v40, %v1640_v40  ;;  %v1649_v0 = vcombine.high %v19803_v53, %v19803_v53  ;;  %v19818_v60 = vrot.slane %v1640_v40, %v18739_v47 }
 0x21f   : > { %v1719_v58 = vrot.slane %v1697_v22, %v18739_v47  ;;  %v1726_v8 = vrot.slane %v1698_v3, %v18739_v47  ;;  %v1727_v13 = vcombine.high %v1705_v41, %v1705_v41  ;;  %v3863_v38 = vrot.slane %v1705_v41, %v18742_v56  ;;  %17120 = vmatpush3.bf16.msra.mxu1 %v17545_v7  ;;  %v17547_v41 = vld [vmem:[%s23890_s3 + $0x10] sm:$0xff]  }
 0x220   : > { %v1728_v61 = vcombine.high %v1712_v5, %v1712_v5  ;;  %v3919_v18 = vrot.slane %v1712_v5, %v18742_v56  ;;  %v19833_v39 = vrot.slane %v19803_v53, %v18739_v47  ;;  %v19836_v40 = vrot.slane %v1648_v20, %v18739_v47  ;;  %17121 = vmatprep.subr.bf16.mxu1 %v17546_v4 }
 0x221   : > { %4906 = vrot.lane.b32.xlu0 %v4884_v11, %s18424_s25  ;;  %v4933_v11 = vld [vmem:[#allocation2 + $0x120] sm:$0xf]  ;;  %v1729_v22 = vcombine.high %v1719_v58, %v1719_v58  ;;  %v1730_v3 = vcombine.high %v1726_v8, %v1726_v8  ;;  %v3877_v17 = vrot.slane %v1719_v58, %v18742_v56  ;;  %v3891_v43 = vrot.slane %v1727_v13, %v18742_v56  ;;  %v17548_v13 = vld [vmem:[%s23890_s3 + $0x48] sm:$0xff]  }
 0x222   : > { %4771 = vrot.lane.b32.xlu1 %v4732_v26, %s18426_s15  ;;  %v3870_v5 = vrot.slane %v3863_v38, %v18742_v56  ;;  %v3926_v20 = vrot.slane %v3919_v18, %v18742_v56  ;;  %v3933_v7 = vrot.slane %v1726_v8, %v18742_v56  ;;  %v19853_v58 = vrot.slane %v5972_v29, 4 }
 0x223   : > { %v3884_v4 = vrot.slane %v3877_v17, %v18742_v56  ;;  %v3905_v59 = vrot.slane %v1729_v22, %v18742_v56  ;;  %v3947_v2 = vrot.slane %v1728_v61, %v18742_v56  ;;  %v3961_v26 = vrot.slane %v1730_v3, %v18742_v56  ;;  %17122 = vmatpush3.bf16.msra.mxu1 %v17547_v41  ;;  %v17550_v3 = vld [vmem:[%s23890_s3 + $0x40] sm:$0xff]  }
 0x224   : > { %v3940_v16 = vrot.slane %v3933_v7, %v18742_v56  ;;  %v4025_v38 = vunpack.c.l.b16 %v3870_v5  ;;  %v4029_v8 = vunpack.c.l.b16 %v3926_v20  ;;  %17123 = vmatprep.subr.bf16.mxu1 %v17548_v13  ;;  %v4215_v13 = vld [vmem:[#allocation2 + $0xe4] sm:$0x1]  ;;  %v19917_v53 = vrot.slane %v6129_v31, 5 }
 0x225   : > { %4955 = vrot.lane.b32.xlu0 %v4933_v11, %s18425_s26  ;;  %v3898_v11 = vrot.slane %v3891_v43, %v18742_v56  ;;  %v3912_v29 = vrot.slane %v3905_v59, %v18742_v56  ;;  %v3954_v18 = vrot.slane %v3947_v2, %v18742_v56  ;;  %v4026_v9 = vunpack.c.l.b16 %v3884_v4  ;;  %v17549_v43 = vld [vmem:[%s23890_s3 + $0x8] sm:$0xff]  }
 0x226   : > { %6321 = vrot.lane.b32.xlu1 %v19715_v35, %s18426_s15  ;;  %v3968_v59 = vrot.slane %v3961_v26, %v18742_v56  ;;  %v4030_v17 = vunpack.c.l.b16 %v3940_v16  ;;  %v4124_v61 = vrot.slane %v4025_v38, 7  ;;  %v4131_v22 = vrot.slane %v4029_v8, 3  ;;  %v17551_v26 = vld [vmem:[%s23890_s3] sm:$0xff]  }
 0x227   : > { %v4027_v54 = vunpack.c.l.b16 %v3898_v11  ;;  %v4028_v41 = vunpack.c.l.b16 %v3912_v29  ;;  %v4031_v5 = vunpack.c.l.b16 %v3954_v18  ;;  %v4125_v20 = vrot.slane %v4026_v9, 6  ;;  %17124 = vmatpush3.bf16.msra.mxu1 %v17549_v43 }
 0x228   : > { %v4032_v4 = vunpack.c.l.b16 %v3968_v59  ;;  %v4133_v48 = vrot.slane %v4030_v17, 2  ;;  %v16259_v51 = vcombine.low %v3968_v59, %v3968_v59  ;;  %17125 = vmatprep.subr.bf16.mxu1 %v17550_v3  ;;  %v4317_v3 = vrot.slane %v4030_v17, 3 }
 0x229   : > { %6063 = vrot.lane.b32.xlu0 %v5964_v30, %s18424_s25  ;;  %v4127_v7 = vrot.slane %v4027_v54, 5  ;;  %v4309_v30 = vrot.slane %v4026_v9, 7  ;;  %v4126_v35 = vsel %vm2693_vm6, %v4125_v20, %v4124_v61  ;;  %v4129_v11 = vrot.slane %v4028_v41, 4 }
 0x22a   : > { %v4135_v2 = vrot.slane %v4031_v5, 1  ;;  %v4311_v16 = vrot.slane %v4027_v54, 6  ;;  %5841 = vrot.lane.b32.xlu1 %v19733_v49, %s18425_s26  ;;  %v4216_v54 = vsel %vm18778_vm9, %v16259_v51, %v4215_v13  ;;  %v4313_v18 = vrot.slane %v4028_v41, 5  ;;  %v4400_v13 = vld [vmem:[#allocation2 + $0x134] sm:$0x1] }
 0x22b   : > { %v4128_v9 = vsel %vm2696_vm7, %v4127_v7, %v4126_v35  ;;  %v4310_v29 = vsel %vm2693_vm6, %v4309_v30, %v4025_v38  ;;  %4217 = vst [vmem:[#allocation2 + $0xe4] sm:$0x1] %v4216_v54  ;;  %v4315_v61 = vrot.slane %v4029_v8, 4  ;;  %v4319_v20 = vrot.slane %v4031_v5, 2  ;;  %17126 = vmatpush3.bf16.msra.mxu1 %v17551_v26  ;;  %v6355_v51 = vld [vmem:[#allocation2 + $0x28] sm:$0xf] }
 0x22c   : > { %v4130_v43 = vsel %vm2699_vm8, %v4129_v11, %v4128_v9  ;;  %v4312_v59 = vsel %vm2696_vm7, %v4311_v16, %v4310_v29  ;;  %v4321_v7 = vrot.slane %v4032_v4, 1  ;;  %v1677_v8 = vrot.slane %v1649_v0, %v18739_v47  ;;  %v4212_v4 = vld [vmem:[#allocation2 + $0xe0] sm:$0xf]  ;;  %6363 = vst.msk [vmem:[#allocation5 + $0x68] sm:$0xf] %vm833_vm2, %v6355_v51 }
 0x22d   : > { %6223 = vrot.lane.b32.xlu0 %v6124_v23, %s18425_s26  ;;  %v4132_v23 = vsel %vm2702_vm10, %v4131_v22, %v4130_v43  ;;  %v4314_v49 = vsel %vm2699_vm8, %v4313_v18, %v4312_v59  ;;  %v1678_v17 = vcombine.high %v19818_v60, %v19818_v60  ;;  %v5920_v22 = vld [vmem:[#allocation2 + $0x100] sm:$0xf]  ;;  %v4397_v11 = vld [vmem:[#allocation2 + $0x130] sm:$0xf]  ;;  %v19926_v16 = vld [vmem:[#allocation2 + $0x4] sm:$0x1]  ;;  %v2521_v9 = vrot.slane %v19818_v60, %v18742_v56 }
 0x22e   : > { %v4134_v38 = vsel %vm2705_vm11, %v4133_v48, %v4132_v23  ;;  %v4316_v41 = vsel %vm2702_vm10, %v4315_v61, %v4314_v49  ;;  %5849 = vrot.lane.b32.xlu1 %v19744_v63, %s18425_s26  ;;  %v4337_v30 = vpack.c.b16 %v4321_v7, %v4321_v7  ;;  %5928 = vst.msk [vmem:[#allocation5 + $0x2c] sm:$0xf] %vm833_vm2, %v5920_v22  ;;  %v4426_v54 = vld [vmem:[#allocation2 + $0x80] sm:$0xf]  ;;  %v4881_v29 = vld [vmem:[#allocation2 + $0xb8] sm:$0xf] }
 0x22f   : > { %v4136_v5 = vsel %vm2708_vm12, %v4135_v2, %v4134_v38  ;;  %v4318_v48 = vsel %vm2705_vm11, %v4317_v3, %v4316_v41  ;;  %v1679_v63 = vcombine.high %v19833_v39, %v19833_v39  ;;  %v1680_v2 = vcombine.high %v19836_v40, %v19836_v40  ;;  %v19940_v3 = vpop.permute.xlu0 %4943  ;;  %v6369_v22 = vld [vmem:[#allocation2 + $0x60] sm:$0xf] }
 0x230   : > { %v4151_v0 = vpack.c.b16 %v4136_v5, %v4136_v5  ;;  %v4320_v35 = vsel %vm2708_vm12, %v4319_v20, %v4318_v48  ;;  %v4401_v31 = vsel %vm18778_vm9, %v4337_v30, %v4400_v13  ;;  %v1681_v26 = vcombine.high %v1677_v8, %v1677_v8 }
 0x231   : > { %4440 = vrot.lane.b32.xlu0 %v4422_v28, %s18424_s25  ;;  %v4336_v12 = vpack.c.b16 %v4320_v35, %v4320_v35  ;;  %4402 = vst [vmem:[#allocation2 + $0x134] sm:$0x1] %v4401_v31  ;;  %v2535_v43 = vrot.slane %v19836_v40, %v18742_v56  ;;  %v2549_v59 = vrot.slane %v1678_v17, %v18742_v56  ;;  %v4831_v40 = vrot.slane %v19926_v16, 5  ;;  %v2885_v31 = vld [vmem:[#allocation2 + $0x44] sm:$0x1] }
 0x232   : > { %v4213_v18 = vsel %vm18806_vm13, %v4151_v0, %v4212_v4  ;;  %v2563_v61 = vrot.slane %v1680_v2, %v18742_v56  ;;  %4900 = vrot.lane.b32.xlu1 %v4881_v29, %s18424_s25  ;;  %v2528_v27 = vrot.slane %v2521_v9, %v18742_v56  ;;  %v2577_v28 = vrot.slane %v19833_v39, %v18742_v56  ;;  %v4930_v39 = vld [vmem:[#allocation2 + $0x108] sm:$0xf] }
 0x233   : > { %4214 = vst [vmem:[#allocation2 + $0xe0] sm:$0xf] %v4213_v18  ;;  %v4398_v60 = vsel %vm18806_vm13, %v4336_v12, %v4397_v11  ;;  %v2542_v23 = vrot.slane %v2535_v43, %v18742_v56  ;;  %v2556_v49 = vrot.slane %v2549_v59, %v18742_v56  ;;  %v2591_v7 = vrot.slane %v1677_v8, %v18742_v56  ;;  %v4885_v43 = vld [vmem:[#allocation2 + $0xd8] sm:$0xf] }
 0x234   : > { %4399 = vst [vmem:[#allocation2 + $0x130] sm:$0xf] %v4398_v60  ;;  %v2570_v20 = vrot.slane %v2563_v61, %v18742_v56  ;;  %v2584_v38 = vrot.slane %v2577_v28, %v18742_v56  ;;  %v2605_v41 = vrot.slane %v1679_v63, %v18742_v56  ;;  %v2619_v13 = vrot.slane %v1681_v26, %v18742_v56 }
 0x235   : > { %4448 = vrot.lane.b32.xlu0 %v4426_v54, %s18424_s25  ;;  %v2683_v17 = vunpack.c.l.b16 %v2528_v27  ;;  %v2598_v51 = vrot.slane %v2591_v7, %v18742_v56  ;;  %v2684_v5 = vunpack.c.l.b16 %v2542_v23  ;;  %v2685_v4 = vunpack.c.l.b16 %v2556_v49 }
 0x236   : > { %v2686_v48 = vunpack.c.l.b16 %v2570_v20  ;;  %4949 = vrot.lane.b32.xlu1 %v4930_v39, %s18425_s26  ;;  %v2612_v8 = vrot.slane %v2605_v41, %v18742_v56  ;;  %v2626_v30 = vrot.slane %v2619_v13, %v18742_v56  ;;  %v2687_v0 = vunpack.c.l.b16 %v2584_v38  ;;  %v4794_v39 = vld [vmem:[#allocation2] sm:$0xe] }
 0x237   : > { %v2788_v35 = vrot.slane %v2683_v17, 7  ;;  %v2688_v11 = vunpack.c.l.b16 %v2598_v51  ;;  %v2789_v63 = vrot.slane %v2684_v5, 6  ;;  %v2791_v2 = vrot.slane %v2685_v4, 5 }
 0x238   : > { %v2793_v12 = vrot.slane %v2686_v48, 4  ;;  %v2689_v9 = vunpack.c.l.b16 %v2612_v8  ;;  %v2690_v54 = vunpack.c.l.b16 %v2626_v30  ;;  %v2795_v29 = vrot.slane %v2687_v0, 3  ;;  %v4934_v8 = vld [vmem:[#allocation2 + $0x128] sm:$0xf] }
 0x239   : > { %6385 = vrot.lane.b32.xlu0 %v6369_v22, %s18424_s25  ;;  %v16251_v18 = vcombine.low %v2626_v30, %v2626_v30  ;;  %v2790_v59 = vsel %vm2693_vm6, %v2789_v63, %v2788_v35  ;;  %v2797_v61 = vrot.slane %v2688_v11, 2  ;;  %v2979_v60 = vrot.slane %v2684_v5, 7  ;;  %v3070_v35 = vld [vmem:[#allocation2 + $0x94] sm:$0x1] }
 0x23a   : > { %v2981_v27 = vrot.slane %v2685_v4, 6  ;;  %v23911_v28 = vsel %vm19422_vm1, %v19693_v19, %v19711_v15  ;;  %4908 = vrot.lane.b32.xlu1 %v4885_v43, %s18424_s25  ;;  %v2792_v23 = vsel %vm2696_vm7, %v2791_v2, %v2790_v59  ;;  %v2799_v49 = vrot.slane %v2689_v9, 1  ;;  %v5135_v4 = vld [vmem:[#allocation2 + $0xf0] sm:$0xf]  ;;  %v2882_v2 = vld [vmem:[#allocation2 + $0x40] sm:$0xf] }
 0x23b   : > { %v4601_v26 = vpop.permute.xlu0 %4600  ;;  %v2886_v20 = vsel %vm18778_vm9, %v16251_v18, %v2885_v31  ;;  %v2983_v7 = vrot.slane %v2686_v48, 5  ;;  %v2794_v38 = vsel %vm2699_vm8, %v2793_v12, %v2792_v23  ;;  %v2980_v41 = vsel %vm2693_vm6, %v2979_v60, %v2683_v17  ;;  %v3067_v43 = vld [vmem:[#allocation2 + $0x90] sm:$0xf] }
 0x23c   : > { %4625 = vst.msk [vmem:[#allocation5] sm:$0xf] %vm4624_vm3, %v4601_v26  ;;  %2887 = vst [vmem:[#allocation2 + $0x44] sm:$0x1] %v2886_v20  ;;  %v2985_v13 = vrot.slane %v2687_v0, 4  ;;  %v2987_v22 = vrot.slane %v2688_v11, 3  ;;  %v2796_v19 = vsel %vm2702_vm10, %v2795_v29, %v2794_v38  ;;  %v2982_v15 = vsel %vm2696_vm7, %v2981_v27, %v2980_v41 }
 0x23d   : > { %5743 = vrot.lane.b32.xlu0 %v23911_v28, %s18424_s25  ;;  %v2989_v51 = vrot.slane %v2689_v9, 2  ;;  %v2991_v5 = vrot.slane %v2690_v54, 1  ;;  %v2798_v30 = vsel %vm2705_vm11, %v2797_v61, %v2796_v19  ;;  %v2984_v48 = vsel %vm2699_vm8, %v2983_v7, %v2982_v15  ;;  %v4797_v9 = vld [vmem:[#allocation2 + $0xc] sm:$0x1]  ;;  %v4980_v27 = vld [vmem:[#allocation2 + $0xb4] sm:$0x1] }
 0x23e   : > { %v6132_v63 = vor.u32 %v19917_v53, %v19796_v44  ;;  %v23912_v17 = vshll.u32 %v19794_v6, 16  ;;  %4957 = vrot.lane.b32.xlu1 %v4934_v8, %s18425_s26  ;;  %v2800_v11 = vsel %vm2708_vm12, %v2799_v49, %v2798_v30  ;;  %v2986_v12 = vsel %vm2702_vm10, %v2985_v13, %v2984_v48  ;;  %v5136_v44 = vld [vmem:[#allocation2 + $0xf4] sm:$0x1]  ;;  %v4796_v53 = vld [vmem:[#allocation2 + $0x8] sm:$0xe] }
 0x23f   : > { %v3007_v31 = vpack.c.b16 %v2991_v5, %v2991_v5  ;;  %v16260_v26 = vrot.slane %v4794_v39, 9  ;;  %v2815_v54 = vpack.c.b16 %v2800_v11, %v2800_v11  ;;  %v2988_v29 = vsel %vm2705_vm11, %v2987_v22, %v2986_v12  ;;  %v4804_v49 = vld [vmem:[#allocation2 + $0x28] sm:$0xe]  ;;  %v4805_v38 = vld [vmem:[#allocation2 + $0x2c] sm:$0x1] }
 0x240   : > { %v6137_v0 = vrot.slane %v23912_v17, 5  ;;  %v5978_v6 = vsel %vm19422_vm1, %v19853_v58, %v19792_v14  ;;  %v2990_v18 = vsel %vm2708_vm12, %v2989_v51, %v2988_v29  ;;  %v5155_v60 = vshll.u32 %v5135_v4, 16  ;;  %v6356_v48 = vld [vmem:[#allocation2 + $0x30] sm:$0xf] }
 0x241   : > { %5347 = vrot.lane.b32.xlu0 %v19729_v46, %s18424_s25  ;;  %v5152_v46 = vshrl.u32 %v5135_v4, 16  ;;  %v3071_v59 = vsel %vm18778_vm9, %v3007_v31, %v3070_v35  ;;  %v4832_v61 = vsel %vm19514_vm14, %v16260_v26, %v4831_v40  ;;  %v2883_v28 = vsel %vm18806_vm13, %v2815_v54, %v2882_v2  ;;  %v5617_v4 = vld [vmem:[#allocation2 + $0x60] sm:$0xf]  ;;  %6364 = vst.msk [vmem:[#allocation5 + $0x84] sm:$0xf] %vm833_vm2, %v6356_v48 }
 0x242   : > { %v3006_v14 = vpack.c.b16 %v2990_v18, %v2990_v18  ;;  %3072 = vst [vmem:[#allocation2 + $0x94] sm:$0x1] %v3071_v59  ;;  %v6133_v58 = vrot.slane %v6132_v63, 4  ;;  %4869 = vst.msk [vmem:[#allocation5 + $0x4] sm:$0xf] %vm833_vm2, %v4832_v61  ;;  %6065 = vrot.lane.b32.xlu1 %v5978_v6, %s18424_s25  ;;  %v5157_v16 = vrot.slane %v5155_v60, 5  ;;  %v5026_v8 = vor.u32 %v19771_v57, %v19769_v45 }
 0x243   : > { %v5154_v23 = vrot.slane %v5152_v46, 4  ;;  %2884 = vst [vmem:[#allocation2 + $0x40] sm:$0xf] %v2883_v28  ;;  %4918 = vst.msk [vmem:[#allocation5 + $0x4] sm:$0xf] %vm4460_vm15, %v19561_v50  ;;  %v5161_v40 = vshll.u32 %v5136_v44, 16 }
 0x244   : > { %v16261_v20 = vrot.slane %v4796_v53, 9  ;;  %v4835_v7 = vrot.slane %v4797_v9, 5  ;;  %v23914_v41 = vrot.slane %v19717_v42, 5  ;;  %v23915_v13 = vrot.slane %v19702_v33, 9  ;;  %4967 = vst.msk [vmem:[#allocation5 + $0x4] sm:$0xf] %vm4624_vm3, %v19940_v3 }
 0x245   : > { %5751 = vrot.lane.b32.xlu0 %v23913_v24, %s18424_s25  ;;  %v5078_v39 = vrot.slane %v23916_v21, 4  ;;  %v23917_v19 = vshll.u32 %v19764_v32, 16  ;;  %v3068_v50 = vsel %vm18806_vm13, %v3006_v14, %v3067_v43  ;;  %v5158_v42 = vor.u32 %v5157_v16, %v5154_v23  ;;  %v5924_v57 = vld [vmem:[#allocation2 + $0x120] sm:$0xf]  ;;  %v5873_v45 = vld [vmem:[#allocation2 + $0xb8] sm:$0xf] }
 0x246   : > { %v5338_v22 = vsel %vm19514_vm14, %v23915_v13, %v23914_v41  ;;  %3069 = vst [vmem:[#allocation2 + $0x90] sm:$0xf] %v3068_v50  ;;  %v5163_v51 = vrot.slane %v5161_v40, 5  ;;  %v4836_v33 = vsel %vm19514_vm14, %v16261_v20, %v4835_v7  ;;  %v16265_v5 = vrot.slane %v4804_v49, 9  ;;  %5932 = vst.msk [vmem:[#allocation5 + $0x9c] sm:$0xf] %vm833_vm2, %v5924_v57 }
 0x247   : > { %v5081_v15 = vrot.slane %v23917_v19, 5  ;;  %v5029_v30 = vshll.u32 %v4980_v27, 16  ;;  %v6138_v32 = vsel %vm19422_vm1, %v6133_v58, %v6137_v0  ;;  %4870 = vst.msk [vmem:[#allocation5 + $0x20] sm:$0xf] %vm833_vm2, %v4836_v33  ;;  %v4851_v52 = vrot.slane %v4805_v38, 5 }
 0x248   : > { %v5085_v3 = vshll.u32 %v4988_v55, 16  ;;  %6225 = vrot.lane.b32.xlu1 %v6138_v32, %s18425_s26  ;;  %v5159_v35 = vrot.slane %v5158_v42, 4  ;;  %4919 = vst.msk [vmem:[#allocation5 + $0x20] sm:$0xf] %vm4460_vm15, %v19576_v25  ;;  %v5646_v0 = vshrl.u32 %v5617_v4, 16  ;;  %v5649_v11 = vshll.u32 %v5617_v4, 16 }
 0x249   : > { %5355 = vrot.lane.b32.xlu0 %v5338_v22, %s18424_s25  ;;  %v5082_v63 = vor.u32 %v5081_v15, %v5078_v39  ;;  %4968 = vst.msk [vmem:[#allocation5 + $0x20] sm:$0xf] %vm4624_vm3, %v19584_v1  ;;  %v4852_v17 = vsel %vm19514_vm14, %v16265_v5, %v4851_v52  ;;  %v4473_v12 = vld [vmem:[#allocation2 + $0x10] sm:$0xf]  ;;  %v4637_v25 = vld [vmem:[#allocation2 + $0x60] sm:$0xf] }
 0x24a   : > { %v5164_v2 = vsel %vm19422_vm1, %v5159_v35, %v5163_v51  ;;  %4874 = vst.msk [vmem:[#allocation5 + $0x90] sm:$0xf] %vm833_vm2, %v4852_v17  ;;  %v5618_v31 = vld [vmem:[#allocation2 + $0x64] sm:$0x1]  ;;  %v5027_v26 = vrot.slane %v5026_v8, 4  ;;  %v5031_v9 = vrot.slane %v5029_v30, 5 }
 0x24b   : > { %5271 = vst.msk [vmem:[#allocation5 + $0x8] sm:$0xf] %vm833_vm2, %v5164_v2  ;;  %v4423_v1 = vld [vmem:[#allocation2 + $0x68] sm:$0xf]  ;;  %v5648_v54 = vrot.slane %v5646_v0, 4  ;;  %v5651_v29 = vrot.slane %v5649_v11, 5 }
 0x24c   : > { %4923 = vst.msk [vmem:[#allocation5 + $0x90] sm:$0xf] %vm4460_vm15, %v19598_v10  ;;  %4442 = vrot.lane.b32.xlu1 %v4423_v1, %s18424_s25  ;;  %v4474_v6 = vld [vmem:[#allocation2 + $0x14] sm:$0x1]  ;;  %v5083_v44 = vrot.slane %v5082_v63, 4  ;;  %v5087_v46 = vrot.slane %v5085_v3, 5  ;;  %v5032_v27 = vsel %vm19422_vm1, %v5027_v26, %v5031_v9 }
 0x24d   : > { %5891 = vrot.lane.b32.xlu0 %v5873_v45, %s18426_s15  ;;  %4972 = vst.msk [vmem:[#allocation5 + $0x90] sm:$0xf] %vm4624_vm3, %v19620_v36  ;;  %v4517_v53 = vshrl.u32 %v4473_v12, 16  ;;  %v4520_v18 = vshll.u32 %v4473_v12, 16  ;;  %v5625_v43 = vld [vmem:[#allocation2 + $0x80] sm:$0xf]  ;;  %v5652_v14 = vor.u32 %v5651_v29, %v5648_v54 }
 0x24e   : > { %vm4785_vm9 = vcmask 1044224   ;;  %v4638_v59 = vld [vmem:[#allocation2 + $0x64] sm:$0x1]  ;;  %v4678_v61 = vshrl.u32 %v4637_v25, 16  ;;  %v4681_v60 = vshll.u32 %v4637_v25, 16  ;;  %v5655_v10 = vshll.u32 %v5618_v31, 16 }
 0x24f   : > { %v4427_v28 = vld [vmem:[#allocation2 + $0x88] sm:$0xf]  ;;  %v4526_v36 = vshll.u32 %v4474_v6, 16  ;;  %v4481_v23 = vld [vmem:[#allocation2 + $0x30] sm:$0xf]  ;;  %v5702_v49 = vshrl.u32 %v5625_v43, 16  ;;  %v5088_v40 = vsel %vm19422_vm1, %v5083_v44, %v5087_v46 }
 0x250   : > { %4450 = vrot.lane.b32.xlu1 %v4427_v28, %s18424_s25  ;;  %v5137_v24 = vld [vmem:[#allocation2 + $0xf8] sm:$0xf]  ;;  %v5138_v16 = vld [vmem:[#allocation2 + $0xfc] sm:$0x1]  ;;  %v20059_v20 = vrot.slane %v4517_v53, 4  ;;  %v20061_v7 = vrot.slane %v4520_v18, 5 }
 0x251   : > { %5107 = vrot.lane.b32.xlu0 %v5032_v27, %s18426_s15  ;;  %v4762_v58 = vpop.permute.xlu0 %4761  ;;  %v6370_v38 = vld [vmem:[#allocation2 + $0x68] sm:$0xf]  ;;  %v4687_v41 = vshll.u32 %v4638_v59, 16  ;;  %v5285_v13 = vld [vmem:[#allocation2 + $0xb8] sm:$0xe]  ;;  %v20063_v55 = vrot.slane %v4678_v61, 4 }
 0x252   : > { %4786 = vst.msk [vmem:[#allocation5] sm:$0xf] %vm4785_vm9, %v4762_v58  ;;  %v5626_v22 = vld [vmem:[#allocation2 + $0x84] sm:$0x1]  ;;  %v20065_v21 = vrot.slane %v4681_v60, 5  ;;  %v5657_v39 = vrot.slane %v5655_v10, 5  ;;  %v4523_v48 = vor.u32 %v20061_v7, %v20059_v20 }
 0x253   : > { %v5286_v19 = vld [vmem:[#allocation2 + $0xbc] sm:$0x1]  ;;  %v5705_v15 = vshll.u32 %v5625_v43, 16  ;;  %v5653_v50 = vrot.slane %v5652_v14, 4  ;;  %v5704_v42 = vrot.slane %v5702_v49, 4  ;;  %v5166_v51 = vshrl.u32 %v5137_v24, 16 }
 0x254   : > { %v5169_v33 = vshll.u32 %v5137_v24, 16  ;;  %v4406_v5 = vld [vmem:[#allocation2 + $0x18] sm:$0xf]  ;;  %v20068_v4 = vrot.slane %v4526_v36, 5  ;;  %6387 = vrot.lane.b32.xlu1 %v6370_v38, %s18424_s25  ;;  %v4482_v8 = vld [vmem:[#allocation2 + $0x34] sm:$0x1]  ;;  %v4684_v25 = vor.u32 %v20065_v21, %v20063_v55 }
 0x255   : > { %5115 = vrot.lane.b32.xlu0 %v5088_v40, %s18426_s15  ;;  %v4573_v30 = vshrl.u32 %v4481_v23, 16  ;;  %v4576_v32 = vshll.u32 %v4481_v23, 16  ;;  %v5707_v52 = vrot.slane %v5705_v15, 5  ;;  %4414 = vst.msk [vmem:[#allocation5 + $0x54] sm:$0xf] %vm833_vm2, %v4406_v5  ;;  %v5168_v3 = vrot.slane %v5166_v51, 4 }
 0x256   : > { %v5171_v35 = vrot.slane %v5169_v33, 5  ;;  %v5175_v57 = vshll.u32 %v5138_v16, 16  ;;  %v5145_v45 = vld [vmem:[#allocation2 + $0x118] sm:$0xf]  ;;  %v20074_v63 = vrot.slane %v4687_v41, 5  ;;  %v16271_v17 = vrot.slane %v5285_v13, 9 }
 0x257   : > { %v5325_v0 = vrot.slane %v5286_v19, 5  ;;  %v4645_v11 = vld [vmem:[#allocation2 + $0x80] sm:$0xf]  ;;  %v5711_v2 = vshll.u32 %v5626_v22, 16  ;;  %v5377_v12 = vld [vmem:[#allocation2 + $0x18] sm:$0xf]  ;;  %v5658_v31 = vsel %vm19422_vm1, %v5653_v50, %v5657_v39  ;;  %v5708_v26 = vor.u32 %v5707_v52, %v5704_v42 }
 0x258   : > { %v5172_v9 = vor.u32 %v5171_v35, %v5168_v3  ;;  %v4410_v1 = vld [vmem:[#allocation2 + $0x38] sm:$0xf]  ;;  %5745 = vrot.lane.b32.xlu1 %v5658_v31, %s18424_s25  ;;  %v20082_v54 = vrot.slane %v4573_v30, 4  ;;  %v20084_v29 = vrot.slane %v4576_v32, 5  ;;  %v4582_v6 = vshll.u32 %v4482_v8, 16 }
 0x259   : > { %5395 = vrot.lane.b32.xlu0 %v5377_v12, %s18425_s26  ;;  %v20086_v44 = vld [vmem:[#allocation2 + $0x84] sm:$0x1]  ;;  %v5146_v46 = vld [vmem:[#allocation2 + $0x11c] sm:$0x1]  ;;  %v5222_v53 = vshrl.u32 %v5145_v45, 16  ;;  %v4734_v43 = vshrl.u32 %v4645_v11, 16  ;;  %v5326_v14 = vsel %vm19514_vm14, %v16271_v17, %v5325_v0  ;;  %v5346_v23 = vpop.permute.xlu1 %5345 }
 0x25a   : > { %4418 = vst.msk [vmem:[#allocation5 + $0xc4] sm:$0xf] %vm833_vm2, %v4410_v1  ;;  %v5425_v18 = vld [vmem:[#allocation2 + $0x68] sm:$0xf]  ;;  %v5173_v59 = vrot.slane %v5172_v9, 4  ;;  %v5177_v61 = vrot.slane %v5175_v57, 5  ;;  %v4579_v22 = vor.u32 %v20084_v29, %v20082_v54 }
 0x25b   : > { %v20089_v60 = vld [vmem:[#allocation2 + $0xd8] sm:$0xe]  ;;  %v5294_v10 = vld [vmem:[#allocation2 + $0xdc] sm:$0x1]  ;;  %v5225_v27 = vshll.u32 %v5145_v45, 16  ;;  %v5104_v28 = vpop.permute.xlu0 %5103  ;;  %v4737_v58 = vshll.u32 %v4645_v11, 16 }
 0x25c   : > { %v5713_v36 = vrot.slane %v5711_v2, 5  ;;  %v5224_v49 = vrot.slane %v5222_v53, 4  ;;  %v4981_v24 = vld [vmem:[#allocation2 + $0xb8] sm:$0xf]  ;;  %5127 = vst.msk [vmem:[#allocation5 + $0x4] sm:$0xf] %vm4785_vm9, %v5104_v28  ;;  %v5178_v40 = vsel %vm19422_vm1, %v5173_v59, %v5177_v61  ;;  %5349 = vrot.lane.b32.xlu1 %v5326_v14, %s18424_s25 }
 0x25d   : > { %v5709_v16 = vrot.slane %v5708_v26, 4  ;;  %v5227_v20 = vrot.slane %v5225_v27, 5  ;;  %v5231_v7 = vshll.u32 %v5146_v46, 16  ;;  %v6353_v38 = vld [vmem:[#allocation2 + $0x18] sm:$0xf]  ;;  %5443 = vrot.lane.b32.xlu0 %v5425_v18, %s18426_s15  ;;  %v20097_v41 = vrot.slane %v4523_v48, 4  ;;  %v5354_v2 = vpop.permute.xlu1 %5353 }
 0x25e   : > { %v20099_v13 = vrot.slane %v4684_v25, 4  ;;  %v20103_v55 = vrot.slane %v4582_v6, 5  ;;  %5272 = vst.msk [vmem:[#allocation5 + $0x24] sm:$0xf] %vm833_vm2, %v5178_v40  ;;  %v6417_v21 = vld [vmem:[#allocation2 + $0x10] sm:$0xf] }
 0x25f   : > { %6361 = vst.msk [vmem:[#allocation5 + $0x30] sm:$0xf] %vm833_vm2, %v6353_v38  ;;  %v5381_v39 = vld [vmem:[#allocation2 + $0x38] sm:$0xf]  ;;  %v20108_v19 = vrot.slane %v4734_v43, 4  ;;  %v4743_v15 = vshll.u32 %v20086_v44, 16  ;;  %v5228_v50 = vor.u32 %v5227_v20, %v5224_v49  ;;  %v5344_v33 = vpop.permute.xlu0 %5343  ;;  %v5714_v3 = vsel %vm19422_vm1, %v5709_v16, %v5713_v36 }
 0x260   : > { %5368 = vst.msk [vmem:[#allocation5 + $0x24] sm:$0xf] %vm4460_vm15, %v5346_v23  ;;  %v6577_v42 = vld [vmem:[#allocation2 + $0x60] sm:$0xf]  ;;  %v5034_v51 = vshrl.u32 %v4981_v24, 16  ;;  %v20112_v5 = vrot.slane %v4737_v58, 5  ;;  %5753 = vrot.lane.b32.xlu1 %v5714_v3, %s18424_s25 }
 0x261   : > { %v16275_v8 = vrot.slane %v20089_v60, 9  ;;  %v5341_v30 = vrot.slane %v5294_v10, 5  ;;  %v5037_v32 = vshll.u32 %v4981_v24, 16  ;;  %v4989_v52 = vld [vmem:[#allocation2 + $0xd8] sm:$0xf]  ;;  %v5229_v35 = vrot.slane %v5228_v50, 4  ;;  %5403 = vrot.lane.b32.xlu0 %v5381_v39, %s18425_s26  ;;  %v20142_v50 = vpop.permute.xlu1 %5889 }
 0x262   : > { %v4798_v48 = vld [vmem:[#allocation2 + $0x10] sm:$0xe]  ;;  %5367 = vst.msk [vmem:[#allocation5 + $0x8] sm:$0xf] %vm4460_vm15, %v5344_v33  ;;  %v5233_v57 = vrot.slane %v5231_v7, 5  ;;  %v5036_v17 = vrot.slane %v5034_v51, 4  ;;  %v4740_v58 = vor.u32 %v20112_v5, %v20108_v19 }
 0x263   : > { %v4982_v45 = vld [vmem:[#allocation2 + $0xbc] sm:$0x1]  ;;  %v6434_v0 = vshrl.u32 %v6417_v21, 16  ;;  %v6437_v11 = vshll.u32 %v6417_v21, 16  ;;  %v6594_v12 = vshrl.u32 %v6577_v42, 16  ;;  %v5039_v25 = vrot.slane %v5037_v32, 5  ;;  %v20122_v46 = vpop.permute.xlu0 %5887 }
 0x264   : > { %v4799_v31 = vld [vmem:[#allocation2 + $0x14] sm:$0x1]  ;;  %v5429_v26 = vld [vmem:[#allocation2 + $0x88] sm:$0xf]  ;;  %v5234_v9 = vsel %vm19422_vm1, %v5229_v35, %v5233_v57  ;;  %v6597_v1 = vshll.u32 %v6577_v42, 16  ;;  %v5090_v54 = vshrl.u32 %v4989_v52, 16  ;;  %v5342_v18 = vsel %vm19514_vm14, %v16275_v8, %v5341_v30 }
 0x265   : > { %v5093_v29 = vshll.u32 %v4989_v52, 16  ;;  %v4806_v6 = vld [vmem:[#allocation2 + $0x30] sm:$0xe]  ;;  %v20124_v53 = vrot.slane %v4579_v22, 4  ;;  %5276 = vst.msk [vmem:[#allocation5 + $0x94] sm:$0xf] %vm833_vm2, %v5234_v9  ;;  %v5040_v43 = vor.u32 %v5039_v25, %v5036_v17  ;;  %5451 = vrot.lane.b32.xlu0 %v5429_v26, %s18426_s15  ;;  %5357 = vrot.lane.b32.xlu1 %v5342_v18, %s18424_s25  ;;  %v4529_v21 = vsel %vm19422_vm1, %v20097_v41, %v20068_v4 }
 0x266   : > { %v5043_v59 = vshll.u32 %v4982_v45, 16  ;;  %v4807_v61 = vld [vmem:[#allocation2 + $0x34] sm:$0x1]  ;;  %5372 = vst.msk [vmem:[#allocation5 + $0x94] sm:$0xf] %vm4460_vm15, %v5354_v2  ;;  %v5092_v10 = vrot.slane %v5090_v54, 4  ;;  %v4690_v4 = vsel %vm19422_vm1, %v20099_v13, %v20074_v63 }
 0x267   : > { %v6418_v60 = vld [vmem:[#allocation2 + $0x14] sm:$0x1]  ;;  %v5095_v27 = vrot.slane %v5093_v29, 5  ;;  %v16262_v28 = vrot.slane %v4798_v48, 9  ;;  %v4839_v14 = vrot.slane %v4799_v31, 5  ;;  %v6436_v36 = vrot.slane %v6434_v0, 4  ;;  %v20136_v22 = vpop.permute.xlu0 %5895 }
 0x268   : > { %v6439_v23 = vrot.slane %v6437_v11, 5  ;;  %v4990_v49 = vld [vmem:[#allocation2 + $0xdc] sm:$0x1]  ;;  %v16266_v24 = vrot.slane %v4806_v6, 9  ;;  %v6578_v16 = vld [vmem:[#allocation2 + $0x64] sm:$0x1]  ;;  %v4585_v35 = vsel %vm19422_vm1, %v20124_v53, %v20103_v55  ;;  %v20175_v6 = vpop.permute.xlu1 %5897 }
 0x269   : > { %v6596_v40 = vrot.slane %v6594_v12, 4  ;;  %v6599_v20 = vrot.slane %v6597_v1, 5  ;;  %v4840_v7 = vsel %vm19514_vm14, %v16262_v28, %v4839_v14  ;;  %v4855_v38 = vrot.slane %v4807_v61, 5  ;;  %v5874_v19 = vld [vmem:[#allocation2 + $0xc0] sm:$0xf]  ;;  %4604 = vrot.lane.b32.xlu0 %v4529_v21, %s18425_s26 }
 0x26a   : > { %v6443_v39 = vshll.u32 %v6418_v60, 16  ;;  %v5045_v42 = vrot.slane %v5043_v59, 5  ;;  %4871 = vst.msk [vmem:[#allocation5 + $0x3c] sm:$0xf] %vm833_vm2, %v4840_v7  ;;  %v5041_v51 = vrot.slane %v5040_v43, 4  ;;  %v5096_v33 = vor.u32 %v5095_v27, %v5092_v10  ;;  %5893 = vrot.lane.b32.xlu1 %v5874_v19, %s18426_s15 }
 0x26b   : > { %v5099_v5 = vshll.u32 %v4990_v49, 16  ;;  %v4856_v8 = vsel %vm19514_vm14, %v16266_v24, %v4855_v38  ;;  %v5619_v30 = vld [vmem:[#allocation2 + $0x68] sm:$0xf]  ;;  %v4475_v32 = vld [vmem:[#allocation2 + $0x18] sm:$0xf]  ;;  %v6440_v41 = vor.u32 %v6439_v23, %v6436_v36  ;;  %v6603_v52 = vshll.u32 %v6578_v16, 16  ;;  %v4439_v0 = vpop.permute.xlu0 %4438 }
 0x26c   : > { %v5779_v48 = vld [vmem:[#allocation2 + $0x18] sm:$0xe]  ;;  %v5780_v3 = vld [vmem:[#allocation2 + $0x1c] sm:$0x1]  ;;  %4875 = vst.msk [vmem:[#allocation5 + $0xac] sm:$0xf] %vm833_vm2, %v4856_v8  ;;  %v6600_v63 = vor.u32 %v6599_v20, %v6596_v40  ;;  %v5046_v55 = vsel %vm19422_vm1, %v5041_v51, %v5045_v42 }
 0x26d   : > { %v20158_v57 = vrot.slane %v4740_v58, 4  ;;  %v20162_v45 = vrot.slane %v4743_v15, 5  ;;  %v5787_v13 = vld [vmem:[#allocation2 + $0x38] sm:$0xe]  ;;  %v5788_v17 = vld [vmem:[#allocation2 + $0x3c] sm:$0x1]  ;;  %4765 = vrot.lane.b32.xlu0 %v4690_v4, %s18426_s15 }
 0x26e   : > { %v5620_v11 = vld [vmem:[#allocation2 + $0x6c] sm:$0x1]  ;;  %v5660_v2 = vshrl.u32 %v5619_v30, 16  ;;  %v5663_v12 = vshll.u32 %v5619_v30, 16  ;;  %v4531_v25 = vshrl.u32 %v4475_v32, 16  ;;  %v4534_v31 = vshll.u32 %v4475_v32, 16  ;;  %5109 = vrot.lane.b32.xlu1 %v5046_v55, %s18426_s15 }
 0x26f   : > { %4462 = vst.msk [vmem:[#allocation5 + $0x1c] sm:$0xf] %vm4460_vm15, %v4439_v0  ;;  %v20165_v26 = vrot.slane %v6443_v39, 5  ;;  %v5097_v9 = vrot.slane %v5096_v33, 4  ;;  %v5101_v44 = vrot.slane %v5099_v5, 5  ;;  %v20170_v15 = vrot.slane %v6440_v41, 4  ;;  %v5392_v27 = vpop.permute.xlu0 %5391 }
 0x270   : > { %v20172_v1 = vrot.slane %v6603_v52, 5  ;;  %v16278_v54 = vrot.slane %v5779_v48, 9  ;;  %v5817_v29 = vrot.slane %v5780_v3, 5  ;;  %v5287_v53 = vld [vmem:[#allocation2 + $0xc0] sm:$0xe]  ;;  %v20177_v43 = vrot.slane %v6600_v63, 4  ;;  %v5106_v4 = vpop.permute.xlu1 %5105 }
 0x271   : > { %v5627_v18 = vld [vmem:[#allocation2 + $0x88] sm:$0xf]  ;;  %v16282_v59 = vrot.slane %v5787_v13, 9  ;;  %v5833_v61 = vrot.slane %v5788_v17, 5  ;;  %v5669_v60 = vshll.u32 %v5620_v11, 16  ;;  %v5662_v28 = vrot.slane %v5660_v2, 4  ;;  %4612 = vrot.lane.b32.xlu0 %v4585_v35, %s18425_s26 }
 0x272   : > { %v4639_v10 = vld [vmem:[#allocation2 + $0x68] sm:$0xf]  ;;  %v5665_v14 = vrot.slane %v5663_v12, 5  ;;  %v5288_v58 = vld [vmem:[#allocation2 + $0xc4] sm:$0x1]  ;;  %v4533_v36 = vrot.slane %v4531_v25, 4  ;;  %v4746_v49 = vsel %vm19422_vm1, %v20158_v57, %v20162_v45  ;;  %v5102_v24 = vsel %vm19422_vm1, %v5097_v9, %v5101_v44 }
 0x273   : > { %v4536_v23 = vrot.slane %v4534_v31, 5  ;;  %5415 = vst.msk [vmem:[#allocation5 + $0x8] sm:$0xf] %vm4624_vm3, %v5392_v27  ;;  %v4476_v16 = vld [vmem:[#allocation2 + $0x1c] sm:$0x1]  ;;  %v5716_v40 = vshrl.u32 %v5627_v18, 16  ;;  %v6446_v7 = vsel %vm19422_vm1, %v20170_v15, %v20165_v26  ;;  %v20193_v38 = vsel %vm19514_vm14, %v16278_v54, %v5817_v29  ;;  %5117 = vrot.lane.b32.xlu1 %v5102_v24, %s18426_s15  ;;  %v5440_v32 = vpop.permute.xlu0 %5439 }
 0x274   : > { %v5719_v20 = vshll.u32 %v5627_v18, 16  ;;  %v4692_v21 = vshrl.u32 %v4639_v10, 16  ;;  %v4695_v39 = vshll.u32 %v4639_v10, 16  ;;  %v4983_v19 = vld [vmem:[#allocation2 + $0xc0] sm:$0xf]  ;;  %v6606_v42 = vsel %vm19422_vm1, %v20177_v43, %v20172_v1  ;;  %v5114_v29 = vpop.permute.xlu1 %5113 }
 0x275   : > { %v20202_v51 = vsel %vm19514_vm14, %v16282_v59, %v5833_v61  ;;  %v5378_v33 = vld [vmem:[#allocation2 + $0x20] sm:$0xf]  ;;  %v16272_v5 = vrot.slane %v5287_v53, 9  ;;  %v5329_v8 = vrot.slane %v5288_v58, 5  ;;  %v4483_v30 = vld [vmem:[#allocation2 + $0x38] sm:$0xf]  ;;  %v5666_v41 = vor.u32 %v5665_v14, %v5662_v28  ;;  %4773 = vrot.lane.b32.xlu0 %v4746_v49, %s18426_s15 }
 0x276   : > { %v20204_v52 = vrot.slane %v5669_v60, 5  ;;  %v4537_v48 = vor.u32 %v4536_v23, %v4533_v36  ;;  %v4540_v3 = vshll.u32 %v4476_v16, 16  ;;  %v5628_v35 = vld [vmem:[#allocation2 + $0x8c] sm:$0x1]  ;;  %v4477_v57 = vld [vmem:[#allocation2 + $0x20] sm:$0xf] }
 0x277   : > { %5463 = vst.msk [vmem:[#allocation5 + $0x8] sm:$0xf] %vm4785_vm9, %v5440_v32  ;;  %5128 = vst.msk [vmem:[#allocation5 + $0x20] sm:$0xf] %vm4785_vm9, %v5106_v4  ;;  %v5718_v45 = vrot.slane %v5716_v40, 4  ;;  %v5721_v63 = vrot.slane %v5719_v20, 5  ;;  %5397 = vrot.lane.b32.xlu1 %v5378_v33, %s18425_s26  ;;  %v20212_v26 = vsel %vm19514_vm14, %v16272_v5, %v5329_v8  ;;  %v20214_v54 = vpop.permute.xlu0 %5399 }
 0x278   : > { %v4640_v13 = vld [vmem:[#allocation2 + $0x6c] sm:$0x1]  ;;  %v5048_v17 = vshrl.u32 %v4983_v19, 16  ;;  %v5051_v0 = vshll.u32 %v4983_v19, 16  ;;  %v4694_v11 = vrot.slane %v4692_v21, 4  ;;  %v4697_v2 = vrot.slane %v4695_v39, 5  ;;  %v5394_v8 = vpop.permute.xlu1 %5393 }
 0x279   : > { %v4984_v12 = vld [vmem:[#allocation2 + $0xc4] sm:$0x1]  ;;  %v4587_v25 = vshrl.u32 %v4483_v30, 16  ;;  %v4590_v31 = vshll.u32 %v4483_v30, 16  ;;  %v5725_v55 = vshll.u32 %v5628_v35, 16  ;;  %v4545_v9 = vshrl.u32 %v4477_v57, 16  ;;  %6545 = vrot.lane.b32.xlu0 %v6446_v7, %s18425_s26 }
 0x27a   : > { %v4548_v44 = vshll.u32 %v4477_v57, 16  ;;  %v4647_v15 = vld [vmem:[#allocation2 + $0x88] sm:$0xf]  ;;  %v5426_v53 = vld [vmem:[#allocation2 + $0x70] sm:$0xf]  ;;  %v20216_v18 = vrot.slane %v5666_v41, 4  ;;  %v5722_v10 = vor.u32 %v5721_v63, %v5718_v45  ;;  %v4698_v36 = vor.u32 %v4697_v2, %v4694_v11 }
 0x27b   : > { %v20218_v59 = vrot.slane %v4537_v48, 4  ;;  %v20220_v61 = vrot.slane %v4540_v3, 5  ;;  %v4701_v60 = vshll.u32 %v4640_v13, 16  ;;  %5132 = vst.msk [vmem:[#allocation5 + $0x90] sm:$0xf] %vm4785_vm9, %v5114_v29  ;;  %v5050_v27 = vrot.slane %v5048_v17, 4  ;;  %5445 = vrot.lane.b32.xlu1 %v5426_v53, %s18426_s15  ;;  %v20227_v5 = vpop.permute.xlu0 %5447 }
 0x27c   : > { %v5053_v28 = vrot.slane %v5051_v0, 5  ;;  %v5057_v14 = vshll.u32 %v4984_v12, 16  ;;  %v4484_v58 = vld [vmem:[#allocation2 + $0x3c] sm:$0x1]  ;;  %v4589_v23 = vrot.slane %v4587_v25, 4  ;;  %v4592_v49 = vrot.slane %v4590_v31, 5  ;;  %v5442_v29 = vpop.permute.xlu1 %5441 }
 0x27d   : > { %v4478_v24 = vld [vmem:[#allocation2 + $0x24] sm:$0x1]  ;;  %v4748_v16 = vshrl.u32 %v4647_v15, 16  ;;  %v5471_v40 = vld [vmem:[#allocation2 + $0x8] sm:$0xf]  ;;  %v20225_v20 = vrot.slane %v5725_v55, 5  ;;  %v5672_v7 = vsel %vm19422_vm1, %v20216_v18, %v20204_v52  ;;  %v4543_v30 = vsel %vm19422_vm1, %v20218_v59, %v20220_v61  ;;  %6705 = vrot.lane.b32.xlu0 %v6606_v42, %s18426_s15 }
 0x27e   : > { %v4547_v21 = vrot.slane %v4545_v9, 4  ;;  %v4550_v39 = vrot.slane %v4548_v44, 5  ;;  %v4648_v19 = vld [vmem:[#allocation2 + $0x8c] sm:$0x1]  ;;  %v4751_v33 = vshll.u32 %v4647_v15, 16  ;;  %v20237_v32 = vrot.slane %v4701_v60, 5 }
 0x27f   : > { %v4596_v4 = vshll.u32 %v4484_v58, 16  ;;  %v4641_v41 = vld [vmem:[#allocation2 + $0x70] sm:$0xf]  ;;  %v6419_v48 = vld [vmem:[#allocation2 + $0x18] sm:$0xf]  ;;  %v20240_v35 = vrot.slane %v5722_v10, 4  ;;  %v5054_v57 = vor.u32 %v5053_v28, %v5050_v27  ;;  %v4593_v17 = vor.u32 %v4592_v49, %v4589_v23  ;;  %v20255_v15 = vpop.permute.xlu0 %6319 }
 0x280   : > { %5416 = vst.msk [vmem:[#allocation5 + $0x24] sm:$0xf] %vm4624_vm3, %v5394_v8  ;;  %v5382_v3 = vld [vmem:[#allocation2 + $0x40] sm:$0xf]  ;;  %v20242_v45 = vrot.slane %v5057_v14, 5  ;;  %v4554_v63 = vshll.u32 %v4478_v24, 16  ;;  %v4551_v12 = vor.u32 %v4550_v39, %v4547_v21 }
 0x281   : > { %5405 = vrot.lane.b32.xlu1 %v5382_v3, %s18425_s26  ;;  %v20251_v13 = vrot.slane %v4698_v36, 4  ;;  %v4750_v0 = vrot.slane %v4748_v16, 4  ;;  %v4757_v11 = vshll.u32 %v4648_v19, 16  ;;  %v5472_v2 = vld [vmem:[#allocation2 + $0xc] sm:$0x1]  ;;  %v4753_v25 = vrot.slane %v4751_v33, 5  ;;  %5843 = vrot.lane.b32.xlu0 %v20193_v38, %s18425_s26  ;;  %v5402_v38 = vpop.permute.xlu1 %5401 }
 0x282   : > { %v4642_v31 = vld [vmem:[#allocation2 + $0x74] sm:$0x1]  ;;  %v4706_v55 = vshrl.u32 %v4641_v41, 16  ;;  %v20253_v9 = vld [vmem:[#allocation2 + $0x1c] sm:$0x1]  ;;  %v5488_v44 = vshrl.u32 %v5471_v40, 16 }
 0x283   : > { %v20257_v1 = vrot.slane %v4596_v4, 5  ;;  %v4709_v43 = vshll.u32 %v4641_v41, 16  ;;  %v6448_v42 = vshrl.u32 %v6419_v48, 16  ;;  %v20259_v53 = vld [vmem:[#allocation2 + $0x68] sm:$0xf]  ;;  %v5491_v60 = vshll.u32 %v5471_v40, 16  ;;  %v20279_v41 = vpop.permute.xlu0 %5839 }
 0x284   : > { %v5139_v10 = vld [vmem:[#allocation2 + $0x100] sm:$0xf]  ;;  %v5921_v27 = vld [vmem:[#allocation2 + $0x108] sm:$0xf]  ;;  %5464 = vst.msk [vmem:[#allocation5 + $0x24] sm:$0xf] %vm4785_vm9, %v5442_v29  ;;  %v4754_v19 = vor.u32 %v4753_v25, %v4750_v0  ;;  %v4704_v29 = vsel %vm19422_vm1, %v20251_v13, %v20237_v32 }
 0x285   : > { %v5430_v28 = vld [vmem:[#allocation2 + $0x90] sm:$0xf]  ;;  %v20262_v14 = vrot.slane %v5054_v57, 4  ;;  %v20264_v58 = vrot.slane %v4554_v63, 5  ;;  %v6451_v36 = vshll.u32 %v6419_v48, 16  ;;  %v5490_v23 = vrot.slane %v5488_v44, 4  ;;  %5851 = vrot.lane.b32.xlu0 %v20202_v51, %s18425_s26 }
 0x286   : > { %5929 = vst.msk [vmem:[#allocation5 + $0x48] sm:$0xf] %vm833_vm2, %v5921_v27  ;;  %5453 = vrot.lane.b32.xlu1 %v5430_v28, %s18426_s15  ;;  %v20270_v49 = vrot.slane %v4593_v17, 4  ;;  %v20272_v24 = vrot.slane %v4757_v11, 5  ;;  %v5493_v16 = vrot.slane %v5491_v60, 5  ;;  %v5497_v40 = vshll.u32 %v5472_v2, 16 }
 0x287   : > { %v4407_v21 = vld [vmem:[#allocation2 + $0x20] sm:$0xf]  ;;  %v20274_v39 = vrot.slane %v4551_v12, 4  ;;  %v20276_v33 = vrot.slane %v4706_v55, 4  ;;  %v4715_v8 = vshll.u32 %v4642_v31, 16  ;;  %v4711_v48 = vrot.slane %v4709_v43, 5 }
 0x288   : > { %v5140_v4 = vld [vmem:[#allocation2 + $0x104] sm:$0x1]  ;;  %4415 = vst.msk [vmem:[#allocation5 + $0x70] sm:$0xf] %vm833_vm2, %v4407_v21  ;;  %v20281_v3 = vrot.slane %v6448_v42, 4  ;;  %v6457_v57 = vshll.u32 %v20253_v9, 16  ;;  %v5494_v63 = vor.u32 %v5493_v16, %v5490_v23  ;;  %v4599_v51 = vsel %vm19422_vm1, %v20270_v49, %v20257_v1  ;;  %v20307_v42 = vpop.permute.xlu0 %5847 }
 0x289   : > { %5420 = vst.msk [vmem:[#allocation5 + $0x94] sm:$0xf] %vm4624_vm3, %v5402_v38  ;;  %v20285_v17 = vrot.slane %v6451_v36, 5  ;;  %v6608_v0 = vshrl.u32 %v20259_v53, 16  ;;  %v6611_v11 = vshll.u32 %v20259_v53, 16  ;;  %v5180_v2 = vshrl.u32 %v5139_v10, 16  ;;  %v5450_v53 = vpop.permute.xlu1 %5449 }
 0x28a   : > { %4606 = vrot.lane.b32.xlu1 %v4543_v30, %s18425_s26  ;;  %v5495_v12 = vrot.slane %v5494_v63, 4  ;;  %v5499_v25 = vrot.slane %v5497_v40, 5  ;;  %v5183_v31 = vshll.u32 %v5139_v10, 16  ;;  %v5189_v55 = vshll.u32 %v5140_v4, 16  ;;  %v5479_v9 = vld [vmem:[#allocation2 + $0x28] sm:$0xf] }
 0x28b   : > { %v4882_v44 = vld [vmem:[#allocation2 + $0xc0] sm:$0xf]  ;;  %v20305_v43 = vrot.slane %v4754_v19, 4  ;;  %v5182_v59 = vrot.slane %v5180_v2, 4  ;;  %v6357_v61 = vld [vmem:[#allocation2 + $0x38] sm:$0xf]  ;;  %v4712_v60 = vor.u32 %v4711_v48, %v20276_v33  ;;  %v6454_v40 = vor.u32 %v20285_v17, %v20281_v3 }
 0x28c   : > { %v5925_v30 = vld [vmem:[#allocation2 + $0x128] sm:$0xf]  ;;  %v20310_v10 = vrot.slane %v4715_v8, 5  ;;  %v6580_v27 = vld [vmem:[#allocation2 + $0x6c] sm:$0x1]  ;;  %v5500_v32 = vsel %vm19422_vm1, %v5495_v12, %v5499_v25  ;;  %v5185_v13 = vrot.slane %v5183_v31, 5  ;;  %4902 = vrot.lane.b32.xlu0 %v4882_v44, %s18424_s25  ;;  %v4899_v17 = vpop.permute.xlu0 %4898 }
 0x28d   : > { %v5480_v28 = vld [vmem:[#allocation2 + $0x2c] sm:$0x1]  ;;  %6365 = vst.msk [vmem:[#allocation5 + $0xa0] sm:$0xf] %vm833_vm2, %v6357_v61  ;;  %5933 = vst.msk [vmem:[#allocation5 + $0xb8] sm:$0xf] %vm833_vm2, %v5925_v30  ;;  %v4760_v48 = vsel %vm19422_vm1, %v20305_v43, %v20272_v24 }
 0x28e   : > { %5468 = vst.msk [vmem:[#allocation5 + $0x94] sm:$0xf] %vm4785_vm9, %v5450_v53  ;;  %v20317_v1 = vrot.slane %v6457_v57, 5  ;;  %v20319_v36 = vrot.slane %v6608_v0, 4  ;;  %v20322_v23 = vld [vmem:[#allocation2 + $0xb8] sm:$0xf]  ;;  %4767 = vrot.lane.b32.xlu1 %v4704_v29, %s18426_s15  ;;  %v5186_v19 = vor.u32 %v5185_v13, %v5182_v59 }
 0x28f   : > { %5607 = vst.msk [vmem:[#allocation5 + $0xc] sm:$0xf] %vm833_vm2, %v5500_v32  ;;  %v5544_v49 = vshrl.u32 %v5479_v9, 16  ;;  %v5547_v16 = vshll.u32 %v5479_v9, 16  ;;  %v20328_v21 = vrot.slane %v6611_v11, 5  ;;  %v5191_v33 = vrot.slane %v5189_v55, 5  ;;  %v4603_v11 = vpop.permute.xlu1 %4602 }
 0x290   : > { %v5147_v8 = vld [vmem:[#allocation2 + $0x120] sm:$0xf]  ;;  %v5148_v4 = vld [vmem:[#allocation2 + $0x124] sm:$0x1]  ;;  %v4931_v38 = vld [vmem:[#allocation2 + $0x110] sm:$0xf] }
 0x291   : > { %v5546_v57 = vrot.slane %v5544_v49, 4  ;;  %v5549_v63 = vrot.slane %v5547_v16, 5  ;;  %v5553_v0 = vshll.u32 %v5480_v28, 16  ;;  %v4800_v2 = vld [vmem:[#allocation2 + $0x18] sm:$0xe]  ;;  %v20337_v12 = vrot.slane %v4712_v60, 4  ;;  %4951 = vrot.lane.b32.xlu0 %v4931_v38, %s18425_s26 }
 0x292   : > { %v17555_v3 = vld [vmem:[%s23890_s3 + $0x178] sm:$0xff]   ;;  %v6617_v25 = vshll.u32 %v6580_v27, 16  ;;  %v5980_v31 = vshrl.u32 %v20322_v23, 16  ;;  %v5187_v55 = vrot.slane %v5186_v19, 4  ;;  %v20340_v9 = vld [vmem:[#allocation2 + $0x108] sm:$0xf]  ;;  %4614 = vrot.lane.b32.xlu1 %v4599_v51, %s18425_s26  ;;  %v6614_v30 = vor.u32 %v20328_v21, %v20319_v36  ;;  %v4948_v21 = vpop.permute.xlu0 %4947 }
 0x293   : > { %4920 = vst.msk [vmem:[#allocation5 + $0x3c] sm:$0xf] %vm4460_vm15, %v4899_v17  ;;  %v5550_v24 = vor.u32 %v5549_v63, %v5546_v57  ;;  %v5236_v44 = vshrl.u32 %v5147_v8, 16  ;;  %v5239_v29 = vshll.u32 %v5147_v8, 16  ;;  %v5245_v43 = vshll.u32 %v5148_v4, 16  ;;  %17191 = vmatprep.subr.bf16.mxu0 %v17555_v3  ;;  %v17557_v36 = vld [vmem:[%s23890_s3 + $0x170] sm:$0xff]   ;;  %v4764_v19 = vpop.permute.xlu1 %4763 }
 0x294   : > { %4626 = vst.msk [vmem:[#allocation5 + $0x1c] sm:$0xf] %vm4624_vm3, %v4603_v11  ;;  %v4801_v59 = vld [vmem:[#allocation2 + $0x1c] sm:$0x1]  ;;  %v20346_v61 = vrot.slane %v6454_v40, 4  ;;  %v5192_v60 = vsel %vm19422_vm1, %v5187_v55, %v5191_v33  ;;  %v16263_v27 = vrot.slane %v4800_v2, 9 }
 0x295   : > { %v20350_v53 = vld [vmem:[#allocation2 + $0xbc] sm:$0x1]  ;;  %v20354_v32 = vld [vmem:[#allocation2 + $0xc0] sm:$0xf]  ;;  %v4424_v13 = vld [vmem:[#allocation2 + $0x70] sm:$0xf] }
 0x296   : > { %5273 = vst.msk [vmem:[#allocation5 + $0x40] sm:$0xf] %vm833_vm2, %v5192_v60  ;;  %v5551_v28 = vrot.slane %v5550_v24, 4  ;;  %v5555_v49 = vrot.slane %v5553_v0, 5  ;;  %v5238_v16 = vrot.slane %v5236_v44, 4  ;;  %v5241_v51 = vrot.slane %v5239_v29, 5  ;;  %4444 = vrot.lane.b32.xlu0 %v4424_v13, %s18424_s25  ;;  %4775 = vrot.lane.b32.xlu1 %v4760_v48, %s18426_s15 }
 0x297   : > { %v17556_v40 = vld [vmem:[%s23890_s3 + $0x138] sm:$0xff]   ;;  %v20363_v33 = vrot.slane %v6617_v25, 5  ;;  %v5983_v8 = vshll.u32 %v20322_v23, 16  ;;  %v20366_v4 = vld [vmem:[#allocation2 + $0x20] sm:$0xe]  ;;  %v6140_v38 = vshrl.u32 %v20340_v9, 16  ;;  %v6460_v48 = vsel %vm19422_vm1, %v20346_v61, %v20317_v1 }
 0x298   : > { %v4843_v57 = vrot.slane %v4801_v59, 5  ;;  %4969 = vst.msk [vmem:[#allocation5 + $0x3c] sm:$0xf] %vm4624_vm3, %v4948_v21  ;;  %v20371_v63 = vld [vmem:[#allocation2 + $0x24] sm:$0x1]  ;;  %v5556_v0 = vsel %vm19422_vm1, %v5551_v28, %v5555_v49  ;;  %v6143_v2 = vshll.u32 %v20340_v9, 16  ;;  %v5242_v3 = vor.u32 %v5241_v51, %v5238_v16  ;;  %17192 = vmatpush3.bf16.msra.mxu0 %v17556_v40 }
 0x299   : > { %4787 = vst.msk [vmem:[#allocation5 + $0x1c] sm:$0xf] %vm4785_vm9, %v4764_v19  ;;  %v5247_v17 = vrot.slane %v5245_v43, 5  ;;  %v4808_v11 = vld [vmem:[#allocation2 + $0x38] sm:$0xe]  ;;  %v20378_v23 = vrot.slane %v5980_v31, 4  ;;  %17193 = vmatprep.subr.bf16.mxu0 %v17557_v36  ;;  %v5728_v21 = vsel %vm19422_vm1, %v20240_v35, %v20225_v20  ;;  %v5060_v19 = vsel %vm19422_vm1, %v20262_v14, %v20242_v45 }
 0x29a   : > { %5611 = vst.msk [vmem:[#allocation5 + $0x7c] sm:$0xf] %vm833_vm2, %v5556_v0  ;;  %v4844_v25 = vsel %vm19514_vm14, %v16263_v27, %v4843_v57  ;;  %v5994_v55 = vshrl.u32 %v20354_v32, 16  ;;  %v5997_v24 = vshll.u32 %v20354_v32, 16  ;;  %v4809_v9 = vld [vmem:[#allocation2 + $0x3c] sm:$0x1]  ;;  %v4907_v27 = vpop.permute.xlu0 %4906  ;;  %v4611_v32 = vpop.permute.xlu1 %4610  ;;  %5747 = vrot.lane.b32.xlu0 %v5672_v7, %s18424_s25  ;;  %6547 = vrot.lane.b32.xlu1 %v6460_v48, %s18425_s26 }
 0x29b   : > { %v17558_v44 = vld [vmem:[%s23890_s3 + $0x130] sm:$0xff]   ;;  %v20392_v31 = vrot.slane %v6614_v30, 4  ;;  %v5989_v29 = vshll.u32 %v20350_v53, 16  ;;  %v5243_v43 = vrot.slane %v5242_v3, 4  ;;  %4872 = vst.msk [vmem:[#allocation5 + $0x58] sm:$0xf] %vm833_vm2, %v4844_v25  ;;  %v4718_v25 = vsel %vm19422_vm1, %v20337_v12, %v20310_v10 }
 0x29c   : > { %v20396_v59 = vld [vmem:[#allocation2 + $0xc8] sm:$0xf]  ;;  %v20401_v13 = vrot.slane %v5983_v8, 5  ;;  %v16279_v1 = vrot.slane %v20366_v4, 9  ;;  %v5821_v61 = vrot.slane %v20371_v63, 5  ;;  %v16267_v53 = vrot.slane %v4808_v11, 9  ;;  %17194 = vmatpush3.bf16.msra.mxu0 %v17558_v44 }
 0x29d   : > { %v17559_v60 = vld [vmem:[%s23890_s3 + $0x168] sm:$0xff]   ;;  %4924 = vst.msk [vmem:[#allocation5 + $0xac] sm:$0xf] %vm4460_vm15, %v4907_v27  ;;  %v20409_v28 = vrot.slane %v6140_v38, 4  ;;  %v20411_v49 = vrot.slane %v6143_v2, 5  ;;  %v5248_v16 = vsel %vm19422_vm1, %v5243_v43, %v5247_v17  ;;  %v4859_v51 = vrot.slane %v4809_v9, 5 }
 0x29e   : > { %v20405_v30 = vld [vmem:[#allocation2 + $0x10c] sm:$0x1]  ;;  %4630 = vst.msk [vmem:[#allocation5 + $0x8c] sm:$0xf] %vm4624_vm3, %v4611_v32  ;;  %v17561_v36 = vld [vmem:[%s23890_s3 + $0xf8] sm:$0xff]   ;;  %v20441_v52 = vrot.slane %v5994_v55, 4  ;;  %v4557_v38 = vsel %vm19422_vm1, %v20274_v39, %v20264_v58  ;;  %17195 = vmatprep.subr.bf16.mxu0 %v17559_v60  ;;  %v4956_v11 = vpop.permute.xlu0 %4955  ;;  %v4772_v55 = vpop.permute.xlu1 %4771  ;;  %v5986_v48 = vor.u32 %v20401_v13, %v20378_v23  ;;  %v5822_v60 = vsel %vm19514_vm14, %v16279_v1, %v5821_v61 }
 0x29f   : > { %v17560_v40 = vld [vmem:[%s23890_s3 + $0x128] sm:$0xff]   ;;  %v20436_v8 = vld [vmem:[#allocation2 + $0x40] sm:$0xe]  ;;  %5277 = vst.msk [vmem:[#allocation5 + $0xb0] sm:$0xf] %vm833_vm2, %v5248_v16  ;;  %v20443_v18 = vrot.slane %v5997_v24, 5  ;;  %v4860_v0 = vsel %vm19514_vm14, %v16267_v53, %v4859_v51  ;;  %17151 = vmatprep.subr.bf16.mxu1 %v17561_v36  ;;  %v6620_v24 = vsel %vm19422_vm1, %v20392_v31, %v20363_v33  ;;  %v6146_v23 = vor.u32 %v20411_v49, %v20409_v28 }
 0x2a0   : > { %v20439_v4 = vld [vmem:[#allocation2 + $0xc4] sm:$0x1]  ;;  %v20445_v7 = vld [vmem:[#allocation2 + $0x118] sm:$0xf]  ;;  %v6008_v57 = vshrl.u32 %v20396_v59, 16  ;;  %v6011_v63 = vshll.u32 %v20396_v59, 16  ;;  %17196 = vmatpush3.bf16.msra.mxu0 %v17560_v40  ;;  %5351 = vrot.lane.b32.xlu0 %v20212_v26, %s18424_s25 }
 0x2a1   : > { %v20455_v2 = vld [vmem:[#allocation2 + $0x110] sm:$0xf]  ;;  %v20457_v3 = vld [vmem:[#allocation2 + $0x28] sm:$0xf]  ;;  %v17562_v17 = vld [vmem:[%s23890_s3 + $0x160] sm:$0xff]   ;;  %v20472_v43 = vrot.slane %v5989_v29, 5  ;;  %6707 = vrot.lane.b32.xlu1 %v6620_v24, %s18426_s15  ;;  %v6000_v61 = vor.u32 %v20443_v18, %v20441_v52 }
 0x2a2   : > { %v17552_v9 = vld [vmem:[#allocation5] ss:$28 sps:$4 sm:$0xff]   ;;  %v20474_v59 = vld [vmem:[#allocation2 + $0xb8] sm:$0xe]  ;;  %4876 = vst.msk [vmem:[#allocation5 + $0xc8] sm:$0xf] %vm833_vm2, %v4860_v0  ;;  %17197 = vmatprep.subr.bf16.mxu0 %v17562_v17  ;;  %v20516_v52 = vpop.permute.xlu1 %6321 }
 0x2a3   : > { %v17554_v44 = vld [vmem:[#allocation5 + $0x4] ss:$28 sps:$4 sm:$0xff]   ;;  %4973 = vst.msk [vmem:[#allocation5 + $0xac] sm:$0xf] %vm4624_vm3, %v4956_v11  ;;  %v16283_v33 = vrot.slane %v20436_v8, 9  ;;  %v6149_v31 = vshll.u32 %v20405_v30, 16 }
 0x2a4   : > { %4791 = vst.msk [vmem:[#allocation5 + $0x8c] sm:$0xf] %vm4785_vm9, %v4772_v55  ;;  %v20481_v27 = vld [vmem:[#allocation2 + $0x44] sm:$0x1]  ;;  %v20487_v29 = vld [vmem:[#allocation2 + $0xcc] sm:$0x1]  ;;  %7441 = vmatprep.mubr.bf16.mxu1 %v17554_v44  ;;  %5755 = vrot.lane.b32.xlu0 %v5728_v21, %s18424_s25 }
 0x2a5   : > { %v17563_v32 = vld [vmem:[%s23890_s3 + $0xb8] sm:$0xff]   ;;  %v17564_v13 = vld [vmem:[%s23890_s3 + $0x120] sm:$0xff]   ;;  %v6003_v30 = vshll.u32 %v20439_v4, 16  ;;  %v6154_v53 = vshrl.u32 %v20455_v2, 16  ;;  %v6157_v28 = vshll.u32 %v20455_v2, 16  ;;  %v20505_v49 = vrot.slane %v6008_v57, 4  ;;  %v6064_v4 = vpop.permute.xlu0 %6063  ;;  %7442 = vmatmul.mubr.bf16.vlgmr.msra.gmra.mxu1 %v17552_v9  ;;  %5845 = vrot.lane.b32.xlu1 %v5822_v60, %s18425_s26 }
 0x2a6   : > { %v20498_v1 = vld [vmem:[#allocation2 + $0xbc] sm:$0x1]  ;;  %v20507_v16 = vrot.slane %v6011_v63, 5  ;;  %v6168_v26 = vshrl.u32 %v20445_v7, 16  ;;  %v6171_v51 = vshll.u32 %v20445_v7, 16  ;;  %v20518_v18 = vrot.slane %v5986_v48, 4  ;;  %17152 = vmatpush3.bf16.msra.mxu1 %v17563_v32  ;;  %17198 = vmatpush3.bf16.msra.mxu0 %v17564_v13  ;;  %v20568_v32 = vpop.permute.xlu1 %5841 }
 0x2a7   : > { %v20511_v40 = vld [vmem:[#allocation2 + $0x30] sm:$0xf]  ;;  %v17567_v36 = vld [vmem:[%s23890_s3 + $0x158] sm:$0xff]   ;;  %v5837_v57 = vrot.slane %v20481_v27, 5  ;;  %v6476_v63 = vshrl.u32 %v20457_v3, 16  ;;  %v6479_v0 = vshll.u32 %v20457_v3, 16 }
 0x2a8   : > { %v20523_v7 = vld [vmem:[#allocation2 + $0x20] sm:$0xf]  ;;  %6087 = vst.msk [vmem:[#allocation5 + $0x10] sm:$0xf] %vm4460_vm15, %v6064_v4  ;;  %v20526_v2 = vrot.slane %v6146_v23, 4  ;;  %v20528_v17 = vrot.slane %v6149_v31, 5  ;;  %v6014_v20 = vor.u32 %v20507_v16, %v20505_v49  ;;  %17199 = vmatprep.subr.bf16.mxu0 %v17567_v36  ;;  %5111 = vrot.lane.b32.xlu0 %v5060_v19, %s18426_s15 }
 0x2a9   : > { %v16286_v11 = vrot.slane %v20474_v59, 9  ;;  %v6297_v55 = vrot.slane %v20498_v1, 5  ;;  %v17568_v24 = vld [vmem:[%s23890_s3 + $0xf0] sm:$0xff]   ;;  %v20545_v9 = vrot.slane %v6003_v30, 5  ;;  %v6017_v44 = vshll.u32 %v20487_v29, 16  ;;  %v17570_v27 = vld [vmem:[%s23890_s3 + $0x118] sm:$0xff]   ;;  %v6224_v29 = vpop.permute.xlu0 %6223 }
 0x2aa   : > { %v17569_v3 = vld [vmem:[%s23890_s3 + $0xb0] sm:$0xff]   ;;  %v20548_v48 = vrot.slane %v6154_v53, 4  ;;  %v20550_v59 = vrot.slane %v6157_v28, 5  ;;  %v20555_v23 = vrot.slane %v6000_v61, 4  ;;  %v20561_v21 = vrot.slane %v6168_v26, 4  ;;  %17153 = vmatprep.subr.bf16.mxu1 %v17568_v24  ;;  %17200 = vmatpush3.bf16.msra.mxu0 %v17570_v27  ;;  %v17572_v36 = vld [vmem:[%s23890_s3 + $0xe8] sm:$0xff]   ;;  %v20641_v27 = vpop.permute.xlu1 %5849 }
 0x2ab   : > { %v20559_v35 = vld [vmem:[#allocation2 + $0x114] sm:$0x1]  ;;  %v20563_v60 = vrot.slane %v6171_v51, 5  ;;  %v20570_v13 = vld [vmem:[#allocation2 + $0x11c] sm:$0x1]  ;;  %v20572_v1 = vrot.slane %v6476_v63, 4  ;;  %v5992_v28 = vsel %vm19422_vm1, %v20518_v18, %v20472_v43  ;;  %v5838_v49 = vsel %vm19514_vm14, %v16283_v33, %v5837_v57  ;;  %17154 = vmatpush3.bf16.msra.mxu1 %v17569_v3 }
 0x2ac   : > { %v17571_v31 = vld [vmem:[%s23890_s3 + $0x150] sm:$0xff]   ;;  %v20574_v61 = vrot.slane %v6479_v0, 5  ;;  %v6490_v30 = vshrl.u32 %v20511_v40, 16  ;;  %v6493_v53 = vshll.u32 %v20511_v40, 16  ;;  %6247 = vst.msk [vmem:[#allocation5 + $0x10] sm:$0xf] %vm4624_vm3, %v6224_v29  ;;  %5853 = vrot.lane.b32.xlu1 %v5838_v49, %s18425_s26  ;;  %v20617_v57 = vsel %vm19514_vm14, %v16286_v11, %v6297_v55  ;;  %17155 = vmatprep.subr.bf16.mxu1 %v17572_v36 }
 0x2ad   : > { %v20587_v16 = vld [vmem:[#allocation2 + $0x2c] sm:$0x1]  ;;  %v20589_v26 = vld [vmem:[#allocation2 + $0x34] sm:$0x1]  ;;  %v6462_v51 = vshrl.u32 %v20523_v7, 16  ;;  %v6465_v40 = vshll.u32 %v20523_v7, 16  ;;  %v6006_v7 = vsel %vm19422_vm1, %v20555_v23, %v20545_v9  ;;  %v6174_v55 = vor.u32 %v20563_v60, %v20561_v21  ;;  %17201 = vmatprep.subr.bf16.mxu0 %v17571_v31  ;;  %4608 = vrot.lane.b32.xlu0 %v4557_v38, %s18425_s26 }
 0x2ae   : > { %v17573_v8 = vld [vmem:[%s23890_s3 + $0xa8] sm:$0xff]   ;;  %v17574_v33 = vld [vmem:[%s23890_s3 + $0x110] sm:$0xff]   ;;  %6343 = vst.msk [vmem:[#allocation5 + $0x10] sm:$0xf] %vm4785_vm9, %v20255_v15  ;;  %v6160_v15 = vor.u32 %v20550_v59, %v20548_v48  ;;  %v6163_v63 = vshll.u32 %v20559_v35, 16  ;;  %v20630_v24 = vrot.slane %v6014_v20, 4  ;;  %v4441_v59 = vpop.permute.xlu0 %4440 }
 0x2af   : > { %v20622_v0 = vld [vmem:[#allocation2 + $0xc0] sm:$0xe]  ;;  %v20624_v45 = vld [vmem:[#allocation2 + $0xc4] sm:$0x1]  ;;  %v5621_v14 = vld [vmem:[#allocation2 + $0x70] sm:$0xf]  ;;  %17156 = vmatpush3.bf16.msra.mxu1 %v17573_v8  ;;  %17202 = vmatpush3.bf16.msra.mxu0 %v17574_v33  ;;  %v4901_v33 = vpop.permute.xlu1 %4900 }
 0x2b0   : > { %v5878_v19 = vld [vmem:[#allocation2 + $0xe0] sm:$0xf]  ;;  %v20632_v11 = vrot.slane %v6017_v44, 5  ;;  %v20636_v3 = vld [vmem:[#allocation2 + $0x24] sm:$0x1]  ;;  %v17575_v48 = vld [vmem:[%s23890_s3 + $0x148] sm:$0xff]   ;;  %v6482_v44 = vor.u32 %v20574_v61, %v20572_v1 }
 0x2b1   : > { %v6177_v9 = vshll.u32 %v20570_v13, 16  ;;  %v20646_v23 = vrot.slane %v6490_v30, 4  ;;  %v20648_v20 = vrot.slane %v6493_v53, 5  ;;  %v20650_v35 = vld [vmem:[#allocation2 + $0x70] sm:$0xf]  ;;  %v20653_v21 = vrot.slane %v6462_v51, 4  ;;  %5901 = vrot.lane.b32.xlu1 %v5878_v19, %s18426_s15  ;;  %17203 = vmatprep.subr.bf16.mxu0 %v17575_v48 }
 0x2b2   : > { %4463 = vst.msk [vmem:[#allocation5 + $0x38] sm:$0xf] %vm4460_vm15, %v4441_v59  ;;  %v20655_v60 = vrot.slane %v6465_v40, 5  ;;  %v5674_v31 = vshrl.u32 %v5621_v14, 16  ;;  %v5677_v29 = vshll.u32 %v5621_v14, 16  ;;  %v17576_v13 = vld [vmem:[%s23890_s3 + $0xe0] sm:$0xff]   ;;  %v4449_v8 = vpop.permute.xlu0 %4448  ;;  %4769 = vrot.lane.b32.xlu0 %v4718_v25, %s18426_s15 }
 0x2b3   : > { %v20657_v49 = vld [vmem:[#allocation2 + $0x78] sm:$0xf]  ;;  %v17577_v1 = vld [vmem:[%s23890_s3 + $0xa0] sm:$0xff]   ;;  %v20672_v61 = vrot.slane %v6160_v15, 4  ;;  %v20674_v30 = vrot.slane %v6163_v63, 5  ;;  %v6485_v53 = vshll.u32 %v20587_v16, 16  ;;  %17157 = vmatprep.subr.bf16.mxu1 %v17576_v13  ;;  %v6496_v14 = vor.u32 %v20648_v20, %v20646_v23 }
 0x2b4   : > { %v6499_v51 = vshll.u32 %v20589_v26, 16  ;;  %v17578_v40 = vld [vmem:[%s23890_s3 + $0x108] sm:$0xff]   ;;  %v20685_v39 = vrot.slane %v6174_v55, 4  ;;  %v16287_v38 = vrot.slane %v20622_v0, 9  ;;  %v6301_v36 = vrot.slane %v20624_v45, 5  ;;  %v17581_v16 = vld [vmem:[%s23890_s3 + $0x140] sm:$0xff]   ;;  %17158 = vmatpush3.bf16.msra.mxu1 %v17577_v1 }
 0x2b5   : > { %v6354_v26 = vld [vmem:[#allocation2 + $0x20] sm:$0xf]  ;;  %v20692_v15 = vrot.slane %v6177_v9, 5  ;;  %v20694_v63 = vrot.slane %v6482_v44, 4  ;;  %v6471_v0 = vshll.u32 %v20636_v3, 16  ;;  %v6468_v45 = vor.u32 %v20655_v60, %v20653_v21  ;;  %17204 = vmatpush3.bf16.msra.mxu0 %v17578_v40  ;;  %v17582_v3 = vld [vmem:[%s23890_s3 + $0xd8] sm:$0xff]   ;;  %6069 = vrot.lane.b32.xlu1 %v6006_v7, %s18424_s25 }
 0x2b6   : > { %v20699_v19 = vld [vmem:[#allocation2 + $0x74] sm:$0x1]  ;;  %6362 = vst.msk [vmem:[#allocation5 + $0x4c] sm:$0xf] %vm833_vm2, %v6354_v26  ;;  %v20706_v55 = vrot.slane %v5674_v31, 4  ;;  %v20708_v48 = vrot.slane %v5677_v29, 5  ;;  %v6166_v23 = vsel %vm19422_vm1, %v20672_v61, %v20674_v30  ;;  %v20743_v25 = vsel %vm19514_vm14, %v16287_v38, %v6301_v36  ;;  %17205 = vmatprep.subr.bf16.mxu0 %v17581_v16  ;;  %17159 = vmatprep.subr.bf16.mxu1 %v17582_v3  ;;  %v6386_v40 = vpop.permute.xlu0 %6385  ;;  %v4950_v26 = vpop.permute.xlu1 %4949 }
 0x2b7   : > { %4467 = vst.msk [vmem:[#allocation5 + $0xa8] sm:$0xf] %vm4460_vm15, %v4449_v8  ;;  %4921 = vst.msk [vmem:[#allocation5 + $0x58] sm:$0xf] %vm4460_vm15, %v4901_v33  ;;  %v6622_v59 = vshrl.u32 %v20650_v35, 16  ;;  %v17585_v9 = vld [vmem:[%s23890_s3 + $0x98] sm:$0xff]  }
 0x2b8   : > { %v17586_v44 = vld [vmem:[%s23890_s3 + $0x100] sm:$0xff]   ;;  %v20731_v20 = vrot.slane %v6485_v53, 5  ;;  %v6582_v21 = vld [vmem:[#allocation2 + $0x74] sm:$0x1]  ;;  %v6636_v60 = vshrl.u32 %v20657_v49, 16  ;;  %v6639_v31 = vshll.u32 %v20657_v49, 16  ;;  %v5680_v33 = vor.u32 %v20708_v48, %v20706_v55  ;;  %17160 = vmatpush3.bf16.msra.mxu1 %v17585_v9 }
 0x2b9   : > { %v5877_v29 = vld [vmem:[#allocation2 + $0xd8] sm:$0xf]  ;;  %v20739_v12 = vrot.slane %v6499_v51, 5  ;;  %v6625_v7 = vshll.u32 %v20650_v35, 16  ;;  %v20746_v1 = vld [vmem:[#allocation2 + $0x7c] sm:$0x1]  ;;  %17206 = vmatpush3.bf16.msra.mxu0 %v17586_v44 }
 0x2ba   : > { %v6372_v13 = vld [vmem:[#allocation2 + $0x78] sm:$0xf]  ;;  %v20748_v53 = vld [vmem:[#allocation2 + $0xd0] sm:$0xf]  ;;  %v20754_v8 = vrot.slane %v6496_v14, 4  ;;  %v20756_v38 = vrot.slane %v6471_v0, 5  ;;  %5899 = vrot.lane.b32.xlu0 %v5877_v29, %s18426_s15  ;;  %v5744_v29 = vpop.permute.xlu0 %5743 }
 0x2bb   : > { %v5473_v49 = vld [vmem:[#allocation2 + $0x10] sm:$0xf]  ;;  %v5683_v35 = vshll.u32 %v20699_v19, 16  ;;  %v5474_v36 = vld [vmem:[#allocation2 + $0x14] sm:$0x1]  ;;  %v20761_v16 = vrot.slane %v6468_v45, 4  ;;  %6391 = vrot.lane.b32.xlu1 %v6372_v13, %s18424_s25  ;;  %v4909_v13 = vpop.permute.xlu1 %4908 }
 0x2bc   : > { %6409 = vst.msk [vmem:[#allocation5 + $0x14] sm:$0xf] %vm4460_vm15, %v6386_v40  ;;  %v20765_v3 = vrot.slane %v6622_v59, 4  ;;  %v6631_v10 = vshll.u32 %v6582_v21, 16  ;;  %v20767_v58 = vld [vmem:[#allocation2 + $0xc8] sm:$0xe] }
 0x2bd   : > { %4970 = vst.msk [vmem:[#allocation5 + $0x58] sm:$0xf] %vm4624_vm3, %v4950_v26  ;;  %v17590_v14 = vld [vmem:[%s23890_s3 + $0xd0] sm:$0xff]   ;;  %v20777_v19 = vrot.slane %v6636_v60, 4  ;;  %v20779_v45 = vrot.slane %v6639_v31, 5  ;;  %v5502_v48 = vshrl.u32 %v5473_v49, 16 }
 0x2be   : > { %v17591_v0 = vld [vmem:[%s23890_s3 + $0x90] sm:$0xff]   ;;  %v20781_v55 = vld [vmem:[#allocation2 + $0xcc] sm:$0x1]  ;;  %v5505_v59 = vshll.u32 %v5473_v49, 16  ;;  %v20783_v9 = vrot.slane %v6625_v7, 5  ;;  %v6022_v21 = vshrl.u32 %v20748_v53, 16  ;;  %17161 = vmatprep.subr.bf16.mxu1 %v17590_v14  ;;  %6067 = vrot.lane.b32.xlu0 %v5992_v28, %s18424_s25 }
 0x2bf   : > { %v20785_v44 = vld [vmem:[#allocation2 + $0xd4] sm:$0x1]  ;;  %v6025_v40 = vshll.u32 %v20748_v53, 16  ;;  %v5511_v26 = vshll.u32 %v5474_v36, 16  ;;  %v20789_v60 = vrot.slane %v5683_v35, 5  ;;  %v6645_v31 = vshll.u32 %v20746_v1, 16  ;;  %17162 = vmatpush3.bf16.msra.mxu1 %v17591_v0  ;;  %6229 = vrot.lane.b32.xlu1 %v6166_v23, %s18425_s26 }
 0x2c0   : > { %v20792_v4 = vld [vmem:[#allocation2 + $0x80] sm:$0xf]  ;;  %v5504_v51 = vrot.slane %v5502_v48, 4  ;;  %v5507_v49 = vrot.slane %v5505_v59, 5  ;;  %v5141_v7 = vld [vmem:[#allocation2 + $0x108] sm:$0xf]  ;;  %v6628_v28 = vor.u32 %v20783_v9, %v20765_v3 }
 0x2c1   : > { %5767 = vst.msk [vmem:[#allocation5 + $0xc] sm:$0xf] %vm4460_vm15, %v5744_v29  ;;  %4925 = vst.msk [vmem:[#allocation5 + $0xc8] sm:$0xf] %vm4460_vm15, %v4909_v13  ;;  %v20804_v1 = vrot.slane %v5680_v33, 4  ;;  %v20806_v36 = vrot.slane %v6631_v10, 5  ;;  %v6642_v10 = vor.u32 %v20779_v45, %v20777_v19  ;;  %v5348_v45 = vpop.permute.xlu0 %5347 }
 0x2c2   : > { %v5922_v14 = vld [vmem:[#allocation2 + $0x110] sm:$0xf]  ;;  %v17592_v48 = vld [vmem:[%s23890_s3 + $0xc8] sm:$0xff]   ;;  %5863 = vst.msk [vmem:[#allocation5 + $0xc] sm:$0xf] %vm4624_vm3, %v20279_v41  ;;  %v5508_v0 = vor.u32 %v5507_v49, %v5504_v51  ;;  %v5513_v59 = vrot.slane %v5511_v26, 5  ;;  %v4958_v26 = vpop.permute.xlu1 %4957 }
 0x2c3   : > { %v20828_v41 = vld [vmem:[#allocation2 + $0x84] sm:$0x1]  ;;  %v20830_v29 = vld [vmem:[#allocation2 + $0xd8] sm:$0xf]  ;;  %5930 = vst.msk [vmem:[#allocation5 + $0x64] sm:$0xf] %vm833_vm2, %v5922_v14  ;;  %17163 = vmatprep.subr.bf16.mxu1 %v17592_v48  ;;  %v5686_v3 = vsel %vm19422_vm1, %v20804_v1, %v20789_v60  ;;  %v23918_v48 = vsel %vm19422_vm1, %v20694_v63, %v20731_v20 }
 0x2c4   : > { %v17593_v43 = vld [vmem:[%s23890_s3 + $0x88] sm:$0xff]   ;;  %5911 = vst.msk [vmem:[#allocation5 + $0xc] sm:$0xf] %vm4785_vm9, %v20122_v46  ;;  %v6371_v18 = vld [vmem:[#allocation2 + $0x70] sm:$0xf]  ;;  %v6024_v30 = vrot.slane %v6022_v21, 4  ;;  %6551 = vrot.lane.b32.xlu1 %v23918_v48, %s18425_s26 }
 0x2c5   : > { %v6027_v23 = vrot.slane %v6025_v40, 5  ;;  %v5142_v51 = vld [vmem:[#allocation2 + $0x10c] sm:$0x1]  ;;  %v20841_v19 = vld [vmem:[#allocation2 + $0x30] sm:$0xf]  ;;  %v20843_v13 = vrot.slane %v6645_v31, 5  ;;  %17164 = vmatpush3.bf16.msra.mxu1 %v17593_v43  ;;  %6389 = vrot.lane.b32.xlu0 %v6371_v18, %s18424_s25  ;;  %v5752_v33 = vpop.permute.xlu0 %5751 }
 0x2c6   : > { %v6031_v49 = vshll.u32 %v20785_v44, 16  ;;  %v5509_v14 = vrot.slane %v5508_v0, 4  ;;  %v5629_v46 = vld [vmem:[#allocation2 + $0x90] sm:$0xf]  ;;  %v5194_v35 = vshrl.u32 %v5141_v7, 16  ;;  %v6650_v9 = vshrl.u32 %v20792_v4, 16  ;;  %v6066_v61 = vpop.permute.xlu1 %6065 }
 0x2c7   : > { %5369 = vst.msk [vmem:[#allocation5 + $0x40] sm:$0xf] %vm4460_vm15, %v5348_v45  ;;  %v6653_v21 = vshll.u32 %v20792_v4, 16  ;;  %v5197_v40 = vshll.u32 %v5141_v7, 16  ;;  %v17597_v44 = vld [vmem:[%s23890_s3 + $0xc0] sm:$0xff]   ;;  %v20867_v4 = vrot.slane %v6642_v10, 4  ;;  %v6028_v45 = vor.u32 %v6027_v23, %v6024_v30 }
 0x2c8   : > { %4974 = vst.msk [vmem:[#allocation5 + $0xc8] sm:$0xf] %vm4624_vm3, %v4958_v26  ;;  %v17598_v31 = vld [vmem:[%s23890_s3 + $0x80] sm:$0xff]   ;;  %v5514_v7 = vsel %vm19422_vm1, %v5509_v14, %v5513_v59  ;;  %v5196_v0 = vrot.slane %v5194_v35, 4  ;;  %v5203_v43 = vshll.u32 %v5142_v51, 16  ;;  %v6659_v26 = vshll.u32 %v20828_v41, 16  ;;  %17165 = vmatprep.subr.bf16.mxu1 %v17597_v44  ;;  %6325 = vrot.lane.b32.xlu1 %v20743_v25, %s18426_s15 }
 0x2c9   : > { %5608 = vst.msk [vmem:[#allocation5 + $0x28] sm:$0xf] %vm833_vm2, %v5514_v7  ;;  %v6036_v18 = vshrl.u32 %v20830_v29, 16  ;;  %v5199_v53 = vrot.slane %v5197_v40, 5  ;;  %v6039_v63 = vshll.u32 %v20830_v29, 16  ;;  %v5730_v20 = vshrl.u32 %v5629_v46, 16  ;;  %17166 = vmatpush3.bf16.msra.mxu1 %v17598_v31  ;;  %v5356_v40 = vpop.permute.xlu0 %5355 }
 0x2ca   : > { %v5733_v10 = vshll.u32 %v5629_v46, 16  ;;  %v5482_v48 = vld [vmem:[#allocation2 + $0x34] sm:$0x1]  ;;  %v5558_v59 = vshrl.u32 %v20841_v19, 16  ;;  %5771 = vst.msk [vmem:[#allocation5 + $0x7c] sm:$0xf] %vm4460_vm15, %v5752_v33  ;;  %v23919_v29 = vsel %vm19422_vm1, %v20526_v2, %v20528_v17  ;;  %v6226_v44 = vpop.permute.xlu1 %6225 }
 0x2cb   : > { %6088 = vst.msk [vmem:[#allocation5 + $0x2c] sm:$0xf] %vm4460_vm15, %v6066_v61  ;;  %v20878_v35 = vrot.slane %v6650_v9, 4  ;;  %v20880_v41 = vrot.slane %v6653_v21, 5  ;;  %v5200_v30 = vor.u32 %v5199_v53, %v5196_v0  ;;  %v5205_v23 = vrot.slane %v5203_v43, 5  ;;  %6227 = vrot.lane.b32.xlu0 %v23919_v29, %s18425_s26 }
 0x2cc   : > { %v6105_v51 = vld [vmem:[#allocation2 + $0x120] sm:$0xf]  ;;  %5867 = vst.msk [vmem:[#allocation5 + $0x7c] sm:$0xf] %vm4624_vm3, %v20307_v42  ;;  %v20892_v33 = vrot.slane %v6628_v28, 4  ;;  %v20894_v61 = vrot.slane %v6031_v49, 5  ;;  %5749 = vrot.lane.b32.xlu1 %v5686_v3, %s18424_s25 }
 0x2cd   : > { %v5948_v53 = vld [vmem:[#allocation2 + $0xdc] sm:$0x1]  ;;  %v5560_v14 = vrot.slane %v5558_v59, 4  ;;  %v5561_v46 = vshll.u32 %v20841_v19, 16  ;;  %5915 = vst.msk [vmem:[#allocation5 + $0x7c] sm:$0xf] %vm4785_vm9, %v20136_v22  ;;  %v6648_v22 = vsel %vm19422_vm1, %v20867_v4, %v20843_v13  ;;  %v6656_v19 = vor.u32 %v20880_v41, %v20878_v35 }
 0x2ce   : > { %v20899_v42 = vrot.slane %v6028_v45, 4  ;;  %v6038_v9 = vrot.slane %v6036_v18, 4  ;;  %v5630_v21 = vld [vmem:[#allocation2 + $0x94] sm:$0x1]  ;;  %v5201_v2 = vrot.slane %v5200_v30, 4  ;;  %v5567_v17 = vshll.u32 %v5482_v48, 16  ;;  %v20928_v48 = vpop.permute.xlu0 %5891  ;;  %v4443_v59 = vpop.permute.xlu1 %4442 }
 0x2cf   : > { %v6041_v25 = vrot.slane %v6039_v63, 5  ;;  %v5732_v28 = vrot.slane %v5730_v20, 4  ;;  %v5735_v31 = vrot.slane %v5733_v10, 5  ;;  %v5563_v49 = vrot.slane %v5561_v46, 5  ;;  %v5149_v7 = vld [vmem:[#allocation2 + $0x128] sm:$0xf]  ;;  %6323 = vrot.lane.b32.xlu0 %v20617_v57, %s18426_s15 }
 0x2d0   : > { %5373 = vst.msk [vmem:[#allocation5 + $0xb0] sm:$0xf] %vm4460_vm15, %v5356_v40  ;;  %v20909_v0 = vrot.slane %v6659_v26, 5  ;;  %v5206_v43 = vsel %vm19422_vm1, %v5201_v2, %v5205_v23  ;;  %v6427_v45 = vld [vmem:[#allocation2 + $0x38] sm:$0xf]  ;;  %v6182_v13 = vshrl.u32 %v6105_v51, 16  ;;  %v6034_v57 = vsel %vm19422_vm1, %v20899_v42, %v20894_v61  ;;  %6711 = vrot.lane.b32.xlu1 %v6648_v22, %s18426_s15 }
 0x2d1   : > { %6248 = vst.msk [vmem:[#allocation5 + $0x2c] sm:$0xf] %vm4624_vm3, %v6226_v44  ;;  %v6185_v4 = vshll.u32 %v6105_v51, 16  ;;  %v5564_v26 = vor.u32 %v5563_v49, %v5560_v14  ;;  %v5569_v18 = vrot.slane %v5567_v17, 5  ;;  %v5150_v63 = vld [vmem:[#allocation2 + $0x12c] sm:$0x1]  ;;  %v6042_v60 = vor.u32 %v6041_v25, %v6038_v9 }
 0x2d2   : > { %6344 = vst.msk [vmem:[#allocation5 + $0x2c] sm:$0xf] %vm4785_vm9, %v20516_v52  ;;  %v6045_v52 = vshll.u32 %v5948_v53, 16  ;;  %v5739_v20 = vshll.u32 %v5630_v21, 16  ;;  %v5250_v10 = vshrl.u32 %v5149_v7, 16  ;;  %v5736_v1 = vor.u32 %v5735_v31, %v5732_v28  ;;  %v5108_v25 = vpop.permute.xlu0 %5107  ;;  %v4451_v28 = vpop.permute.xlu1 %4450 }
 0x2d3   : > { %5274 = vst.msk [vmem:[#allocation5 + $0x5c] sm:$0xf] %vm833_vm2, %v5206_v43  ;;  %v20930_v3 = vld [vmem:[#allocation2 + $0x124] sm:$0x1]  ;;  %v5565_v35 = vrot.slane %v5564_v26, 4  ;;  %v5253_v30 = vshll.u32 %v5149_v7, 16  ;;  %v23920_v14 = vsel %vm19422_vm1, %v20630_v24, %v20632_v11 }
 0x2d4   : > { %v6107_v41 = vld [vmem:[#allocation2 + $0x128] sm:$0xf]  ;;  %4464 = vst.msk [vmem:[#allocation5 + $0x54] sm:$0xf] %vm4460_vm15, %v4443_v59  ;;  %v20933_v23 = vld [vmem:[#allocation2 + $0x12c] sm:$0x1]  ;;  %6071 = vrot.lane.b32.xlu0 %v23920_v14, %s18424_s25  ;;  %6073 = vrot.lane.b32.xlu1 %v6034_v57, %s18424_s25  ;;  %v6634_v57 = vsel %vm19422_vm1, %v20892_v33, %v20806_v36 }
 0x2d5   : > { %v6504_v51 = vshrl.u32 %v6427_v45, 16  ;;  %v6507_v29 = vshll.u32 %v6427_v45, 16  ;;  %v5252_v61 = vrot.slane %v5250_v10, 4  ;;  %v5259_v53 = vshll.u32 %v5150_v63, 16  ;;  %v20948_v21 = vld [vmem:[#allocation2 + $0x3c] sm:$0x1] }
 0x2d6   : > { %v20942_v46 = vrot.slane %v6182_v13, 4  ;;  %v20944_v42 = vrot.slane %v6185_v4, 5  ;;  %v5570_v9 = vsel %vm19422_vm1, %v5565_v35, %v5569_v18  ;;  %v5255_v2 = vrot.slane %v5253_v30, 5  ;;  %v6587_v44 = vld [vmem:[#allocation2 + $0x88] sm:$0xf] }
 0x2d7   : > { %v20950_v17 = vrot.slane %v6656_v19, 4  ;;  %v20952_v40 = vrot.slane %v6045_v52, 5  ;;  %5612 = vst.msk [vmem:[#allocation5 + $0x98] sm:$0xf] %vm833_vm2, %v5570_v9  ;;  %v6196_v24 = vshrl.u32 %v6107_v41, 16  ;;  %v6199_v11 = vshll.u32 %v6107_v41, 16  ;;  %v5116_v41 = vpop.permute.xlu0 %5115 }
 0x2d8   : > { %v20955_v31 = vrot.slane %v6042_v60, 4  ;;  %v20957_v49 = vrot.slane %v5739_v20, 5  ;;  %v5256_v7 = vor.u32 %v5255_v2, %v5252_v61  ;;  %v5261_v22 = vrot.slane %v5259_v53, 5  ;;  %v6358_v43 = vld [vmem:[#allocation2 + $0x40] sm:$0xf] }
 0x2d9   : > { %5129 = vst.msk [vmem:[#allocation5 + $0x3c] sm:$0xf] %vm4785_vm9, %v5108_v25  ;;  %v6373_v19 = vld [vmem:[#allocation2 + $0x80] sm:$0xf]  ;;  %v20961_v45 = vrot.slane %v5736_v1, 4  ;;  %v6191_v13 = vshll.u32 %v20930_v3, 16  ;;  %v6188_v18 = vor.u32 %v20944_v42, %v20942_v46  ;;  %v6662_v61 = vsel %vm19422_vm1, %v20950_v17, %v20909_v0 }
 0x2da   : > { %4468 = vst.msk [vmem:[#allocation5 + $0xc4] sm:$0xf] %vm4460_vm15, %v4451_v28  ;;  %v6506_v4 = vrot.slane %v6504_v51, 4  ;;  %v6509_v26 = vrot.slane %v6507_v29, 5  ;;  %6393 = vrot.lane.b32.xlu0 %v6373_v19, %s18424_s25  ;;  %v6205_v63 = vshll.u32 %v20933_v23, 16  ;;  %v5257_v52 = vrot.slane %v5256_v7, 4  ;;  %v6388_v29 = vpop.permute.xlu1 %6387 }
 0x2db   : > { %6366 = vst.msk [vmem:[#allocation5 + $0xbc] sm:$0xf] %vm833_vm2, %v6358_v43  ;;  %v6664_v20 = vshrl.u32 %v6587_v44, 16  ;;  %v20970_v10 = vrot.slane %v6196_v24, 4  ;;  %v20972_v59 = vrot.slane %v6199_v11, 5  ;;  %v6513_v60 = vshll.u32 %v20948_v21, 16 }
 0x2dc   : > { %v20975_v1 = vld [vmem:[#allocation2 + $0xd0] sm:$0xe]  ;;  %v6667_v3 = vshll.u32 %v6587_v44, 16  ;;  %v5949_v35 = vld [vmem:[#allocation2 + $0xe0] sm:$0xf]  ;;  %v23921_v30 = vrot.slane %v20781_v55, 5  ;;  %v5262_v14 = vsel %vm19422_vm1, %v5257_v52, %v5261_v22  ;;  %v5742_v55 = vsel %vm19422_vm1, %v20961_v45, %v20957_v49 }
 0x2dd   : > { %v23922_v23 = vrot.slane %v20767_v58, 9  ;;  %v6374_v53 = vld [vmem:[#allocation2 + $0x88] sm:$0xf]  ;;  %v20995_v46 = vld [vmem:[#allocation2 + $0xd4] sm:$0x1]  ;;  %v6048_v58 = vsel %vm19422_vm1, %v20955_v31, %v20952_v40  ;;  %v21009_v9 = vrot.slane %v6191_v13, 5  ;;  %v6510_v21 = vor.u32 %v6509_v26, %v6506_v4 }
 0x2de   : > { %v20997_v42 = vld [vmem:[#allocation2 + $0x40] sm:$0xf]  ;;  %5133 = vst.msk [vmem:[#allocation5 + $0xac] sm:$0xf] %vm4785_vm9, %v5116_v41  ;;  %v21012_v2 = vld [vmem:[#allocation2 + $0x8c] sm:$0x1]  ;;  %v23923_v44 = vsel %vm19422_vm1, %v20685_v39, %v20692_v15  ;;  %6395 = vrot.lane.b32.xlu1 %v6374_v53, %s18424_s25  ;;  %v6202_v19 = vor.u32 %v20972_v59, %v20970_v10  ;;  %v5396_v39 = vpop.permute.xlu0 %5395  ;;  %v5746_v15 = vpop.permute.xlu1 %5745 }
 0x2df   : > { %v20987_v51 = vsel %vm19514_vm14, %v23922_v23, %v23921_v30  ;;  %6410 = vst.msk [vmem:[#allocation5 + $0x30] sm:$0xf] %vm4460_vm15, %v6388_v29  ;;  %v4802_v24 = vld [vmem:[#allocation2 + $0x20] sm:$0xe]  ;;  %v21017_v11 = vld [vmem:[%s23890_s3 + $0x188] sm:$0xff]   ;;  %6231 = vrot.lane.b32.xlu0 %v23923_v44, %s18425_s26  ;;  %v6666_v25 = vrot.slane %v6664_v20, 4 }
 0x2e0   : > { %5278 = vst.msk [vmem:[#allocation5 + $0xcc] sm:$0xf] %vm833_vm2, %v5262_v14  ;;  %v6669_v28 = vrot.slane %v6667_v3, 5  ;;  %v6050_v49 = vshrl.u32 %v5949_v35, 16  ;;  %v6053_v7 = vshll.u32 %v5949_v35, 16  ;;  %v6189_v43 = vrot.slane %v6188_v18, 4  ;;  %17445 = vmatprep.subr.bf16.mxu1 %v21017_v11 }
 0x2e1   : > { %v4803_v22 = vld [vmem:[#allocation2 + $0x24] sm:$0x1]  ;;  %v21028_v45 = vrot.slane %v6205_v63, 5  ;;  %v21030_v13 = vrot.slane %v6513_v60, 5  ;;  %v21032_v4 = vld [vmem:[#allocation2 + $0xd8] sm:$0xe] }
 0x2e2   : > { %v6109_v26 = vld [vmem:[#allocation2 + $0x130] sm:$0xf]  ;;  %v16289_v52 = vrot.slane %v20975_v1, 9  ;;  %v5950_v20 = vld [vmem:[#allocation2 + $0xe4] sm:$0x1]  ;;  %v6052_v3 = vrot.slane %v6050_v49, 4  ;;  %v23924_v1 = vsel %vm19422_vm1, %v20754_v8, %v20739_v12  ;;  %5757 = vrot.lane.b32.xlu1 %v5742_v55, %s18424_s25  ;;  %v6670_v30 = vor.u32 %v6669_v28, %v6666_v25 }
 0x2e3   : > { %v6055_v35 = vrot.slane %v6053_v7, 5  ;;  %v16264_v18 = vrot.slane %v4802_v24, 9  ;;  %5417 = vst.msk [vmem:[#allocation5 + $0x40] sm:$0xf] %vm4624_vm3, %v5396_v39  ;;  %v21038_v63 = vrot.slane %v6510_v21, 4  ;;  %v6309_v59 = vrot.slane %v20995_v46, 5  ;;  %6553 = vrot.lane.b32.xlu0 %v23924_v1, %s18425_s26  ;;  %v5444_v24 = vpop.permute.xlu0 %5443 }
 0x2e4   : > { %5768 = vst.msk [vmem:[#allocation5 + $0x28] sm:$0xf] %vm4460_vm15, %v5746_v15  ;;  %v21040_v10 = vld [vmem:[#allocation2 + $0xdc] sm:$0x1]  ;;  %v6518_v60 = vshrl.u32 %v20997_v42, 16  ;;  %v4847_v41 = vrot.slane %v4803_v22, 5  ;;  %v6194_v14 = vsel %vm19422_vm1, %v6189_v43, %v21009_v9 }
 0x2e5   : > { %5864 = vst.msk [vmem:[#allocation5 + $0x28] sm:$0xf] %vm4624_vm3, %v20568_v32  ;;  %v6673_v23 = vshll.u32 %v21012_v2, 16  ;;  %v6210_v29 = vshrl.u32 %v6109_v26, 16  ;;  %v6213_v53 = vshll.u32 %v6109_v26, 16  ;;  %v6056_v12 = vor.u32 %v6055_v35, %v6052_v3  ;;  %v5350_v2 = vpop.permute.xlu1 %5349 }
 0x2e6   : > { %5912 = vst.msk [vmem:[#allocation5 + $0x28] sm:$0xf] %vm4785_vm9, %v20142_v50  ;;  %v21059_v46 = vld [vmem:[#allocation2 + $0x90] sm:$0xf]  ;;  %v6059_v8 = vshll.u32 %v5950_v20, 16  ;;  %v4848_v32 = vsel %vm19514_vm14, %v16264_v18, %v4847_v41  ;;  %v21063_v44 = vrot.slane %v6202_v19, 4  ;;  %v6310_v49 = vsel %vm19514_vm14, %v16289_v52, %v6309_v59  ;;  %6233 = vrot.lane.b32.xlu1 %v6194_v14, %s18425_s26 }
 0x2e7   : > { %v6110_v55 = vld [vmem:[#allocation2 + $0x134] sm:$0x1]  ;;  %v5475_v21 = vld [vmem:[#allocation2 + $0x18] sm:$0xf]  ;;  %v6521_v28 = vshll.u32 %v20997_v42, 16  ;;  %v21073_v7 = vrot.slane %v6518_v60, 4  ;;  %v23925_v42 = vsel %vm19422_vm1, %v20761_v16, %v20756_v38  ;;  %v6516_v26 = vsel %vm19422_vm1, %v21038_v63, %v21030_v13  ;;  %v5404_v59 = vpop.permute.xlu0 %5403 }
 0x2e8   : > { %4873 = vst.msk [vmem:[#allocation5 + $0x74] sm:$0xf] %vm833_vm2, %v4848_v32  ;;  %v6431_v9 = vld [vmem:[#allocation2 + $0x48] sm:$0xf]  ;;  %v6212_v22 = vrot.slane %v6210_v29, 4  ;;  %v6215_v43 = vrot.slane %v6213_v53, 5  ;;  %6549 = vrot.lane.b32.xlu0 %v23925_v42, %s18425_s26 }
 0x2e9   : > { %5465 = vst.msk [vmem:[#allocation5 + $0x40] sm:$0xf] %vm4785_vm9, %v5444_v24  ;;  %v5476_v19 = vld [vmem:[#allocation2 + $0x1c] sm:$0x1]  ;;  %v21086_v39 = vrot.slane %v6670_v30, 4  ;;  %v21088_v15 = vrot.slane %v6673_v23, 5  ;;  %v5754_v60 = vpop.permute.xlu1 %5753 }
 0x2ea   : > { %5370 = vst.msk [vmem:[#allocation5 + $0x5c] sm:$0xf] %vm4460_vm15, %v5350_v2  ;;  %v6219_v52 = vshll.u32 %v6110_v55, 16  ;;  %v6432_v20 = vld [vmem:[#allocation2 + $0x4c] sm:$0x1]  ;;  %v21090_v3 = vrot.slane %v6056_v12, 4  ;;  %v6216_v23 = vor.u32 %v6215_v43, %v6212_v22  ;;  %6555 = vrot.lane.b32.xlu1 %v6516_v26, %s18425_s26 }
 0x2eb   : > { %v21092_v35 = vrot.slane %v6059_v8, 5  ;;  %v6532_v18 = vshrl.u32 %v6431_v9, 16  ;;  %v5516_v38 = vshrl.u32 %v5475_v21, 16  ;;  %v21094_v16 = vld [vmem:[#allocation2 + $0x38] sm:$0xf]  ;;  %v21096_v41 = vrot.slane %v6521_v28, 5  ;;  %v5452_v28 = vpop.permute.xlu0 %5451 }
 0x2ec   : > { %v6678_v13 = vshrl.u32 %v21059_v46, 16  ;;  %v5519_v63 = vshll.u32 %v5475_v21, 16  ;;  %v5525_v1 = vshll.u32 %v5476_v19, 16  ;;  %v5143_v30 = vld [vmem:[#allocation2 + $0x110] sm:$0xf]  ;;  %v6535_v29 = vshll.u32 %v6431_v9, 16  ;;  %6709 = vrot.lane.b32.xlu0 %v6634_v57, %s18426_s15 }
 0x2ed   : > { %5421 = vst.msk [vmem:[#allocation5 + $0xb0] sm:$0xf] %vm4624_vm3, %v5404_v59  ;;  %v6541_v53 = vshll.u32 %v6432_v20, 16  ;;  %v5518_v14 = vrot.slane %v5516_v38, 4  ;;  %v5144_v12 = vld [vmem:[#allocation2 + $0x114] sm:$0x1]  ;;  %v6676_v8 = vsel %vm19422_vm1, %v21086_v39, %v21088_v15  ;;  %v5358_v9 = vpop.permute.xlu1 %5357 }
 0x2ee   : > { %5772 = vst.msk [vmem:[#allocation5 + $0x98] sm:$0xf] %vm4460_vm15, %v5754_v60  ;;  %v6681_v32 = vshll.u32 %v21059_v46, 16  ;;  %v21115_v55 = vrot.slane %v6219_v52, 5  ;;  %v5521_v21 = vrot.slane %v5519_v63, 5  ;;  %v21123_v36 = vrot.slane %v6532_v18, 4  ;;  %6329 = vrot.lane.b32.xlu1 %v6310_v49, %s18426_s15 }
 0x2ef   : > { %5868 = vst.msk [vmem:[#allocation5 + $0x98] sm:$0xf] %vm4624_vm3, %v20641_v27  ;;  %v5484_v24 = vld [vmem:[#allocation2 + $0x3c] sm:$0x1]  ;;  %v6062_v27 = vsel %vm19422_vm1, %v21090_v3, %v21092_v35  ;;  %v5527_v33 = vrot.slane %v5525_v1, 5  ;;  %v5208_v2 = vshrl.u32 %v5143_v30, 16 }
 0x2f0   : > { %5916 = vst.msk [vmem:[#allocation5 + $0x98] sm:$0xf] %vm4785_vm9, %v20175_v6  ;;  %v21125_v57 = vld [vmem:[#allocation2 + $0x98] sm:$0xf]  ;;  %v5522_v22 = vor.u32 %v5521_v21, %v5518_v14  ;;  %v5211_v43 = vshll.u32 %v5143_v30, 16  ;;  %v5217_v19 = vshll.u32 %v5144_v12, 16  ;;  %6327 = vrot.lane.b32.xlu0 %v20987_v51, %s18426_s15 }
 0x2f1   : > { %v5572_v42 = vshrl.u32 %v21094_v16, 16  ;;  %v5477_v26 = vld [vmem:[#allocation2 + $0x20] sm:$0xf]  ;;  %5469 = vst.msk [vmem:[#allocation5 + $0xb0] sm:$0xf] %vm4785_vm9, %v5452_v28  ;;  %v21130_v6 = vrot.slane %v6216_v23, 4  ;;  %v21141_v14 = vpop.permute.xlu1 %5893 }
 0x2f2   : > { %5374 = vst.msk [vmem:[#allocation5 + $0xcc] sm:$0xf] %vm4460_vm15, %v5358_v9  ;;  %v21132_v39 = vrot.slane %v6535_v29, 5  ;;  %v21134_v15 = vrot.slane %v6541_v53, 5  ;;  %v5210_v52 = vrot.slane %v5208_v2, 4  ;;  %v5523_v18 = vrot.slane %v5522_v22, 4  ;;  %v4605_v53 = vpop.permute.xlu0 %4604  ;;  %6715 = vrot.lane.b32.xlu1 %v6676_v8, %s18426_s15 }
 0x2f3   : > { %v5478_v20 = vld [vmem:[#allocation2 + $0x24] sm:$0x1]  ;;  %v6692_v38 = vshrl.u32 %v21125_v57, 16  ;;  %v5213_v59 = vrot.slane %v5211_v43, 5  ;;  %v5219_v60 = vrot.slane %v5217_v19, 5  ;;  %v5574_v63 = vrot.slane %v5572_v42, 4 }
 0x2f4   : > { %v5575_v1 = vshll.u32 %v21094_v16, 16  ;;  %v5581_v30 = vshll.u32 %v5484_v24, 16  ;;  %v5530_v23 = vshrl.u32 %v5477_v26, 16  ;;  %v5485_v29 = vld [vmem:[#allocation2 + $0x40] sm:$0xf]  ;;  %v5528_v12 = vsel %vm19422_vm1, %v5523_v18, %v5527_v33  ;;  %6713 = vrot.lane.b32.xlu0 %v6662_v61, %s18426_s15 }
 0x2f5   : > { %v5214_v51 = vor.u32 %v5213_v59, %v5210_v52  ;;  %v5533_v21 = vshll.u32 %v5477_v26, 16  ;;  %v5539_v49 = vshll.u32 %v5478_v20, 16  ;;  %v5486_v2 = vld [vmem:[#allocation2 + $0x44] sm:$0x1]  ;;  %v6737_v28 = vld [vmem:[#allocation2 + $0x10] sm:$0xe]  ;;  %v6538_v9 = vor.u32 %v21132_v39, %v21123_v36  ;;  %v5110_v25 = vpop.permute.xlu1 %5109 }
 0x2f6   : > { %4627 = vst.msk [vmem:[#allocation5 + $0x38] sm:$0xf] %vm4624_vm3, %v4605_v53  ;;  %v5577_v16 = vrot.slane %v5575_v1, 5  ;;  %v5583_v24 = vrot.slane %v5581_v30, 5  ;;  %v5532_v22 = vrot.slane %v5530_v23, 4  ;;  %v5586_v52 = vshrl.u32 %v5485_v29, 16  ;;  %6077 = vrot.lane.b32.xlu1 %v6062_v27, %s18424_s25 }
 0x2f7   : > { %5609 = vst.msk [vmem:[#allocation5 + $0x44] sm:$0xf] %vm833_vm2, %v5528_v12  ;;  %v6738_v43 = vld [vmem:[#allocation2 + $0x14] sm:$0x1]  ;;  %v21149_v19 = vld [vmem:[#allocation2 + $0x24] sm:$0x1]  ;;  %v4766_v12 = vpop.permute.xlu0 %4765 }
 0x2f8   : > { %v5215_v33 = vrot.slane %v5214_v51, 4  ;;  %v5535_v42 = vrot.slane %v5533_v21, 5  ;;  %v5541_v26 = vrot.slane %v5539_v49, 5  ;;  %v6739_v20 = vld [vmem:[#allocation2 + $0x18] sm:$0xe]  ;;  %v5578_v59 = vor.u32 %v5577_v16, %v5574_v63  ;;  %6075 = vrot.lane.b32.xlu0 %v6048_v58, %s18424_s25 }
 0x2f9   : > { %v6744_v18 = vld [vmem:[#allocation2 + $0x2c] sm:$0x1]  ;;  %v5589_v1 = vshll.u32 %v5485_v29, 16  ;;  %v5595_v30 = vshll.u32 %v5486_v2, 16  ;;  %v6740_v23 = vld [vmem:[#allocation2 + $0x1c] sm:$0x1]  ;;  %v5118_v27 = vpop.permute.xlu1 %5117 }
 0x2fa   : > { %v16292_v53 = vrot.slane %v6737_v28, 9  ;;  %v5220_v50 = vsel %vm19422_vm1, %v5215_v33, %v5219_v60  ;;  %v5536_v0 = vor.u32 %v5535_v42, %v5532_v22  ;;  %v5588_v17 = vrot.slane %v5586_v52, 4  ;;  %v6741_v8 = vld [vmem:[#allocation2 + $0x20] sm:$0xe]  ;;  %v6743_v51 = vld [vmem:[#allocation2 + $0x28] sm:$0xe] }
 0x2fb   : > { %v6771_v61 = vrot.slane %v6738_v43, 5  ;;  %4788 = vst.msk [vmem:[#allocation5 + $0x38] sm:$0xf] %vm4785_vm9, %v4766_v12  ;;  %5130 = vst.msk [vmem:[#allocation5 + $0x58] sm:$0xf] %vm4785_vm9, %v5110_v25  ;;  %v6695_v63 = vshll.u32 %v21125_v57, 16  ;;  %v4613_v3 = vpop.permute.xlu0 %4612 }
 0x2fc   : > { %v6376_v21 = vld [vmem:[#allocation2 + $0x98] sm:$0xf]  ;;  %5275 = vst.msk [vmem:[#allocation5 + $0x78] sm:$0xf] %vm833_vm2, %v5220_v50  ;;  %v5579_v29 = vrot.slane %v5578_v59, 4  ;;  %v5591_v49 = vrot.slane %v5589_v1, 5 }
 0x2fd   : > { %v16293_v2 = vrot.slane %v6739_v20, 9  ;;  %v6745_v28 = vld [vmem:[#allocation2 + $0x30] sm:$0xe]  ;;  %v5537_v25 = vrot.slane %v5536_v0, 4  ;;  %v5597_v50 = vrot.slane %v5595_v30, 5  ;;  %v6772_v60 = vsel %vm19514_vm14, %v16292_v53, %v6771_v61  ;;  %6399 = vrot.lane.b32.xlu1 %v6376_v21, %s18424_s25 }
 0x2fe   : > { %v6775_v16 = vrot.slane %v6740_v23, 5  ;;  %v6746_v22 = vld [vmem:[#allocation2 + $0x34] sm:$0x1]  ;;  %v5584_v43 = vsel %vm19422_vm1, %v5579_v29, %v5583_v24  ;;  %v5592_v33 = vor.u32 %v5591_v49, %v5588_v17  ;;  %6809 = vst.msk [vmem:[#allocation5 + $0x18] sm:$0xf] %vm833_vm2, %v6772_v60  ;;  %v16294_v40 = vrot.slane %v6741_v8, 9 }
 0x2ff   : > { %v6779_v31 = vrot.slane %v21149_v19, 5  ;;  %v6747_v58 = vld [vmem:[#allocation2 + $0x38] sm:$0xe]  ;;  %v6748_v42 = vld [vmem:[#allocation2 + $0x3c] sm:$0x1]  ;;  %v5542_v52 = vsel %vm19422_vm1, %v5537_v25, %v5541_v26  ;;  %v16295_v59 = vrot.slane %v6743_v51, 9  ;;  %v4774_v39 = vpop.permute.xlu0 %4773 }
 0x300   : > { %v6375_v35 = vld [vmem:[#allocation2 + $0x90] sm:$0xf]  ;;  %5613 = vst.msk [vmem:[#allocation5 + $0xb4] sm:$0xf] %vm833_vm2, %v5584_v43  ;;  %v6776_v20 = vsel %vm19514_vm14, %v16293_v2, %v6775_v16  ;;  %v6783_v1 = vrot.slane %v6744_v18, 5  ;;  %v5593_v19 = vrot.slane %v5592_v33, 4 }
 0x301   : > { %v5926_v24 = vld [vmem:[#allocation2 + $0x130] sm:$0xf]  ;;  %4631 = vst.msk [vmem:[#allocation5 + $0xa8] sm:$0xf] %vm4624_vm3, %v4613_v3  ;;  %v6430_v30 = vld [vmem:[#allocation2 + $0x44] sm:$0x1]  ;;  %v6780_v26 = vsel %vm19514_vm14, %v16294_v40, %v6779_v31  ;;  %6397 = vrot.lane.b32.xlu0 %v6375_v35, %s18424_s25 }
 0x302   : > { %5134 = vst.msk [vmem:[#allocation5 + $0xc8] sm:$0xf] %vm4785_vm9, %v5118_v27  ;;  %v16296_v23 = vrot.slane %v6745_v28, 9  ;;  %v6787_v53 = vrot.slane %v6746_v22, 5  ;;  %v6539_v18 = vrot.slane %v6538_v9, 4  ;;  %v6784_v0 = vsel %vm19514_vm14, %v16295_v59, %v6783_v1  ;;  %v5398_v28 = vpop.permute.xlu1 %5397 }
 0x303   : > { %5610 = vst.msk [vmem:[#allocation5 + $0x60] sm:$0xf] %vm833_vm2, %v5542_v52  ;;  %6810 = vst.msk [vmem:[#allocation5 + $0x34] sm:$0xf] %vm833_vm2, %v6776_v20  ;;  %v6592_v12 = vld [vmem:[#allocation2 + $0x9c] sm:$0x1]  ;;  %v5598_v21 = vsel %vm19422_vm1, %v5593_v19, %v5597_v50  ;;  %v6524_v9 = vor.u32 %v21096_v41, %v21073_v7  ;;  %v6208_v7 = vsel %vm19422_vm1, %v21063_v44, %v21028_v45  ;;  %v6546_v40 = vpop.permute.xlu0 %6545 }
 0x304   : > { %5934 = vst.msk [vmem:[#allocation5 + $0xd4] sm:$0xf] %vm833_vm2, %v5926_v24  ;;  %6811 = vst.msk [vmem:[#allocation5 + $0x50] sm:$0xf] %vm833_vm2, %v6780_v26  ;;  %v16297_v17 = vrot.slane %v6747_v58, 9  ;;  %v6791_v61 = vrot.slane %v6748_v42, 5  ;;  %v6788_v36 = vsel %vm19514_vm14, %v16296_v23, %v6787_v53  ;;  %v6544_v44 = vsel %vm19422_vm1, %v6539_v18, %v21134_v15 }
 0x305   : > { %v6590_v8 = vld [vmem:[#allocation2 + $0x94] sm:$0x1]  ;;  %v6694_v51 = vrot.slane %v6692_v38, 4  ;;  %v6697_v29 = vrot.slane %v6695_v63, 5  ;;  %6812 = vst.msk [vmem:[#allocation5 + $0x6c] sm:$0xf] %vm833_vm2, %v6784_v0  ;;  %6235 = vrot.lane.b32.xlu0 %v6208_v7, %s18425_s26 }
 0x306   : > { %v6527_v49 = vshll.u32 %v6430_v30, 16  ;;  %v6680_v2 = vrot.slane %v6678_v13, 4  ;;  %v6269_v57 = vld [vmem:[#allocation2 + $0xe0] sm:$0xe]  ;;  %v6270_v38 = vld [vmem:[#allocation2 + $0xe4] sm:$0x1]  ;;  %v6792_v63 = vsel %vm19514_vm14, %v16297_v17, %v6791_v61  ;;  %v6222_v13 = vsel %vm19422_vm1, %v21130_v6, %v21115_v55  ;;  %v5446_v42 = vpop.permute.xlu1 %5445 }
 0x307   : > { %5614 = vst.msk [vmem:[#allocation5 + $0xd0] sm:$0xf] %vm833_vm2, %v5598_v21  ;;  %6813 = vst.msk [vmem:[#allocation5 + $0x88] sm:$0xf] %vm833_vm2, %v6788_v36  ;;  %v6683_v41 = vrot.slane %v6681_v32, 5  ;;  %v6701_v25 = vshll.u32 %v6592_v12, 16  ;;  %6237 = vrot.lane.b32.xlu1 %v6222_v13, %s18425_s26  ;;  %v6698_v6 = vor.u32 %v6697_v29, %v6694_v51  ;;  %v6706_v1 = vpop.permute.xlu0 %6705 }
 0x308   : > { %4792 = vst.msk [vmem:[#allocation5 + $0xa8] sm:$0xf] %vm4785_vm9, %v4774_v39  ;;  %v6359_v50 = vld [vmem:[#allocation2 + $0x48] sm:$0xf]  ;;  %v6749_v60 = vld [vmem:[#allocation2 + $0x40] sm:$0xe] }
 0x309   : > { %5418 = vst.msk [vmem:[#allocation5 + $0x5c] sm:$0xf] %vm4624_vm3, %v5398_v28  ;;  %v23926_v16 = vrot.slane %v21040_v10, 5  ;;  %v23927_v45 = vrot.slane %v21032_v4, 9  ;;  %v6750_v32 = vld [vmem:[#allocation2 + $0x44] sm:$0x1]  ;;  %v6684_v35 = vor.u32 %v6683_v41, %v6680_v2 }
 0x30a   : > { %6814 = vst.msk [vmem:[#allocation5 + $0xa4] sm:$0xf] %vm833_vm2, %v6792_v63  ;;  %6367 = vst.msk [vmem:[#allocation5 + $0xd8] sm:$0xf] %vm833_vm2, %v6359_v50  ;;  %v6751_v55 = vld [vmem:[#allocation2 + $0x48] sm:$0xe]  ;;  %v5406_v30 = vpop.permute.xlu1 %5405 }
 0x30b   : > { %v6314_v46 = vsel %vm19514_vm14, %v23927_v45, %v23926_v16  ;;  %v6752_v22 = vld [vmem:[#allocation2 + $0x4c] sm:$0x1]  ;;  %v16298_v43 = vrot.slane %v6749_v60, 9  ;;  %v6795_v33 = vrot.slane %v6750_v32, 5  ;;  %v16299_v10 = vrot.slane %v6751_v55, 9  ;;  %6559 = vrot.lane.b32.xlu1 %v6544_v44, %s18425_s26  ;;  %v5844_v12 = vpop.permute.xlu0 %5843  ;;  %v6825_v39 = vld [vmem:[#allocation5 + $0x38] sm:$0xff] }
 0x30c   : > { %v6525_v4 = vrot.slane %v6524_v9, 4  ;;  %v6529_v31 = vrot.slane %v6527_v49, 5  ;;  %v6687_v58 = vshll.u32 %v6590_v8, 16  ;;  %v6799_v3 = vrot.slane %v6752_v22, 5  ;;  %6569 = vst.msk [vmem:[#allocation5 + $0x14] sm:$0xf] %vm4624_vm3, %v6546_v40  ;;  %6331 = vrot.lane.b32.xlu0 %v6314_v46, %s18426_s15 }
 0x30d   : > { %5466 = vst.msk [vmem:[#allocation5 + $0x5c] sm:$0xf] %vm4785_vm9, %v5446_v42  ;;  %v16291_v15 = vrot.slane %v6269_v57, 9  ;;  %v6317_v27 = vrot.slane %v6270_v38, 5  ;;  %v6796_v52 = vsel %vm19514_vm14, %v16298_v43, %v6795_v33  ;;  %v6699_v24 = vrot.slane %v6698_v6, 4  ;;  %v6837_v55 = vld [vmem:[#allocation5 + $0x8c] sm:$0xff] }
 0x30e   : > { %v6800_v20 = vsel %vm19514_vm14, %v16299_v10, %v6799_v3  ;;  %6815 = vst.msk [vmem:[#allocation5 + $0xc0] sm:$0xf] %vm833_vm2, %v6796_v52  ;;  %v6703_v59 = vrot.slane %v6701_v25, 5  ;;  %v6530_v19 = vsel %vm19422_vm1, %v6525_v4, %v6529_v31  ;;  %v6685_v26 = vrot.slane %v6684_v35, 4  ;;  %v5454_v0 = vpop.permute.xlu1 %5453  ;;  %v17565_v49 = vld [vmem:[#allocation5 + $0x3c] ss:$28 sps:$4 sm:$0xff]  }
 0x30f   : > { %6816 = vst.msk [vmem:[#allocation5 + $0xdc] sm:$0xf] %vm833_vm2, %v6800_v20  ;;  %v6689_v23 = vrot.slane %v6687_v58, 5  ;;  %v6318_v53 = vsel %vm19514_vm14, %v16291_v15, %v6317_v27  ;;  %v5852_v34 = vpop.permute.xlu0 %5851  ;;  %7449 = vmatprep.mubr.bf16.mxu1 %v17565_v49  ;;  %v17587_v25 = vld [vmem:[#allocation5 + $0x10] ss:$28 sps:$4 sm:$0xff]   ;;  %vm7396_vm2 = vcmask 261120  }
 0x310   : > { %6729 = vst.msk [vmem:[#allocation5 + $0x14] sm:$0xf] %vm4785_vm9, %v6706_v1  ;;  %6557 = vrot.lane.b32.xlu0 %v6530_v19, %s18425_s26  ;;  %6333 = vrot.lane.b32.xlu1 %v6318_v53, %s18426_s15  ;;  %v6704_v18 = vsel %vm19422_vm1, %v6699_v24, %v6703_v59  ;;  %v17583_v33 = vld [vmem:[#allocation5 + $0xac] ss:$28 sps:$4 sm:$0xff]   ;;  %v17607_v59 = vld [vmem:[%s23890_s3 + $0x180] sm:$0xff]   ;;  %vm7677_vm10 = vcmask 518144  }
 0x311   : > { %5422 = vst.msk [vmem:[#allocation5 + $0xcc] sm:$0xf] %vm4624_vm3, %v5406_v30  ;;  %v6690_v17 = vsel %vm19422_vm1, %v6685_v26, %v6689_v23  ;;  %v6841_v31 = vld [vmem:[#allocation5 + $0xa8] sm:$0xff]  ;;  %v17603_v53 = vld [vmem:[#allocation5 + $0x7c] ss:$28 sps:$4 sm:$0xff]  }
 0x312   : > { %5470 = vst.msk [vmem:[#allocation5 + $0xcc] sm:$0xf] %vm4785_vm9, %v5454_v0  ;;  %v4607_v61 = vpop.permute.xlu1 %4606  ;;  %v17596_v35 = vld [vmem:[#allocation5 + $0xc] ss:$28 sps:$4 sm:$0xff]   ;;  %vm8680_vm12 = vsmask.f32 1280 }
 0x313   : > { %4628 = vst.msk [vmem:[#allocation5 + $0x54] sm:$0xf] %vm4624_vm3, %v4607_v61  ;;  %v4903_v8 = vpop.permute.xlu0 %4902  ;;  %v17594_v24 = vld [vmem:[#allocation5 + $0x8] ss:$28 sps:$4 sm:$0xff]   ;;  %vm8681_vm13 = vsmask.f32 3336 }
 0x314   : > { %6717 = vrot.lane.b32.xlu0 %v6690_v17, %s18426_s15  ;;  %6719 = vrot.lane.b32.xlu1 %v6704_v18, %s18426_s15  ;;  %4922 = vst.msk [vmem:[#allocation5 + $0x74] sm:$0xf] %vm4460_vm15, %v4903_v8  ;;  %v17602_v19 = vld [vmem:[#allocation5 + $0x40] ss:$28 sps:$4 sm:$0xff]   ;;  %v6838_v17 = vld [vmem:[#allocation5 + $0x94] sm:$0xff]  ;;  %vm21429_vm1 = vmor %vm8680_vm12, %vm8681_vm13  ;;  %vm11352_vm13 = vcmask 523264  }
 0x315   : > { %vm8685_vm14 = vsmask.f32 7448 }
 0x316   : > { %v4768_v51 = vpop.permute.xlu1 %4767 }
 0x317   : > { %4789 = vst.msk [vmem:[#allocation5 + $0x54] sm:$0xf] %vm4785_vm9, %v4768_v51  ;;  %v4952_v29 = vpop.permute.xlu0 %4951 }
 0x318   : > { %4971 = vst.msk [vmem:[#allocation5 + $0x74] sm:$0xf] %vm4624_vm3, %v4952_v29 }
 0x31a   : > { %v4615_v21 = vpop.permute.xlu1 %4614 }
 0x31b   : > { %4632 = vst.msk [vmem:[#allocation5 + $0xc4] sm:$0xf] %vm4624_vm3, %v4615_v21  ;;  %v4445_v62 = vpop.permute.xlu0 %4444  ;;  %v17610_v21 = vld [vmem:[#allocation5 + $0xb0] ss:$28 sps:$4 sm:$0xff]  }
 0x31c   : > { %4465 = vst.msk [vmem:[#allocation5 + $0x70] sm:$0xf] %vm4460_vm15, %v4445_v62 }
 0x31e   : > { %v4776_v36 = vpop.permute.xlu1 %4775  ;;  %v6829_v9 = vld [vmem:[#allocation5 + $0x54] sm:$0xff] }
 0x31f   : > { %4793 = vst.msk [vmem:[#allocation5 + $0xc4] sm:$0xf] %vm4785_vm9, %v4776_v36  ;;  %v16308_v2 = vcombine.low %v6825_v39, %v6829_v9  ;;  %v5748_v28 = vpop.permute.xlu0 %5747  ;;  %v17611_v9 = vld [vmem:[#allocation5 + $0x18] ss:$28 sps:$4 sm:$0xff]  }
 0x320   : > { %5769 = vst.msk [vmem:[#allocation5 + $0x44] sm:$0xf] %vm4460_vm15, %v5748_v28 }
 0x321   : > { %7450 = vmatmul.mubr.bf16.gmra.mxu1 %v16308_v2  ;;  %5865 = vst.msk [vmem:[#allocation5 + $0x44] sm:$0xf] %vm4624_vm3, %v5844_v12 }
 0x322   : > { %v6548_v57 = vpop.permute.xlu1 %6547  ;;  %5913 = vst.msk [vmem:[#allocation5 + $0x44] sm:$0xf] %vm4785_vm9, %v20928_v48 }
 0x323   : > { %6570 = vst.msk [vmem:[#allocation5 + $0x30] sm:$0xf] %vm4624_vm3, %v6548_v57  ;;  %v5352_v38 = vpop.permute.xlu0 %5351 }
 0x324   : > { %5371 = vst.msk [vmem:[#allocation5 + $0x78] sm:$0xf] %vm4460_vm15, %v5352_v38 }
 0x325   : > { %5419 = vst.msk [vmem:[#allocation5 + $0x78] sm:$0xf] %vm4624_vm3, %v20214_v54 }
 0x326   : > { %v6708_v63 = vpop.permute.xlu1 %6707  ;;  %5467 = vst.msk [vmem:[#allocation5 + $0x78] sm:$0xf] %vm4785_vm9, %v20227_v5  ;;  %v6845_v4 = vld [vmem:[#allocation5 + $0xc4] sm:$0xff] }
 0x327   : > { %6730 = vst.msk [vmem:[#allocation5 + $0x30] sm:$0xf] %vm4785_vm9, %v6708_v63  ;;  %v5756_v7 = vpop.permute.xlu0 %5755  ;;  %v16322_v3 = vcombine.low %v6841_v31, %v6845_v4  ;;  %v23928_v4 = vmov 0  }
 0x328   : > { %5773 = vst.msk [vmem:[#allocation5 + $0xb4] sm:$0xf] %vm4460_vm15, %v5756_v7 }
 0x329   : > { %5869 = vst.msk [vmem:[#allocation5 + $0xb4] sm:$0xf] %vm4624_vm3, %v5852_v34 }
 0x32a   : > { %v5846_v41 = vpop.permute.xlu1 %5845  ;;  %7680 = vst.msk [vmem:[#allocation3 + $0x8] sm:$0x7] %vm7677_vm10, %v23928_v4  ;;  %7686 = vst.msk [vmem:[#allocation3 + $0x20] sm:$0x7] %vm7677_vm10, %v23928_v4 }
 0x32b   : > { %v5112_v13 = vpop.permute.xlu0 %5111  ;;  %7692 = vst.msk [vmem:[#allocation3 + $0x38] sm:$0x7] %vm7677_vm10, %v23928_v4  ;;  %7698 = vst.msk [vmem:[#allocation3 + $0x50] sm:$0x7] %vm7677_vm10, %v23928_v4 }
 0x32c   : > { %5131 = vst.msk [vmem:[#allocation5 + $0x74] sm:$0xf] %vm4785_vm9, %v5112_v13  ;;  %v17613_v13 = vld [vmem:[#allocation5 + $0x88] ss:$28 sps:$4 sm:$0xff]  }
 0x32d   : > { %v6834_v12 = vld [vmem:[#allocation5 + $0x78] sm:$0xff]  ;;  %7678 = vst.msk [vmem:[#allocation3] sm:$0x7] %vm7677_vm10, %v23928_v4  ;;  %7679 = vst.msk [vmem:[#allocation3 + $0x4] sm:$0x7] %vm7677_vm10, %v23928_v4 }
 0x32e   : > { %v21287_v48 = vpop.permute.xlu1 %5853  ;;  %v17589_v50 = vld [vmem:[#allocation5 + $0x14] ss:$28 sps:$4 sm:$0xff]   ;;  %v16317_v61 = vcombine.low %v6834_v12, %v6838_v17  ;;  %7681 = vst.msk [vmem:[#allocation3 + $0xc] sm:$0x7] %vm7677_vm10, %v23928_v4  ;;  %7682 = vst.msk [vmem:[#allocation3 + $0x10] sm:$0x7] %vm7677_vm10, %v23928_v4 }
 0x32f   : > { %7571 = vmatprep.mubr.bf16.mxu0 %v17589_v50  ;;  %v4609_v60 = vpop.permute.xlu0 %4608  ;;  %7683 = vst.msk [vmem:[#allocation3 + $0x14] sm:$0x7] %vm7677_vm10, %v23928_v4  ;;  %7684 = vst.msk [vmem:[#allocation3 + $0x18] sm:$0x7] %vm7677_vm10, %v23928_v4 }
 0x330   : > { %7572 = vmatmul.mubr.bf16.vlgmr.msra.gmra.mxu0 %v17587_v25  ;;  %4629 = vst.msk [vmem:[#allocation5 + $0x70] sm:$0xf] %vm4624_vm3, %v4609_v60 }
 0x331   : > { %7685 = vst.msk [vmem:[#allocation3 + $0x1c] sm:$0x7] %vm7677_vm10, %v23928_v4  ;;  %7687 = vst.msk [vmem:[#allocation3 + $0x24] sm:$0x7] %vm7677_vm10, %v23928_v4 }
 0x332   : > { %v21290_v54 = vpop.permute.xlu1 %5901  ;;  %7688 = vst.msk [vmem:[#allocation3 + $0x28] sm:$0x7] %vm7677_vm10, %v23928_v4  ;;  %7689 = vst.msk [vmem:[#allocation3 + $0x2c] sm:$0x7] %vm7677_vm10, %v23928_v4 }
 0x333   : > { %v4770_v5 = vpop.permute.xlu0 %4769  ;;  %v17579_v6 = vld [vmem:[#allocation5 + $0x74] ss:$28 sps:$4 sm:$0xff]   ;;  %7690 = vst.msk [vmem:[#allocation3 + $0x30] sm:$0x7] %vm7677_vm10, %v23928_v4  ;;  %7691 = vst.msk [vmem:[#allocation3 + $0x34] sm:$0x7] %vm7677_vm10, %v23928_v4 }
 0x334   : > { %4790 = vst.msk [vmem:[#allocation5 + $0x70] sm:$0xf] %vm4785_vm9, %v4770_v5  ;;  %7457 = vmatprep.mubr.bf16.mxu1 %v17579_v6 }
 0x335   : > { %7693 = vst.msk [vmem:[#allocation3 + $0x3c] sm:$0x7] %vm7677_vm10, %v23928_v4  ;;  %7694 = vst.msk [vmem:[#allocation3 + $0x40] sm:$0x7] %vm7677_vm10, %v23928_v4 }
 0x336   : > { %v6070_v16 = vpop.permute.xlu1 %6069  ;;  %7696 = vst.msk [vmem:[#allocation3 + $0x48] sm:$0x7] %vm7677_vm10, %v23928_v4  ;;  %7697 = vst.msk [vmem:[#allocation3 + $0x4c] sm:$0x7] %vm7677_vm10, %v23928_v4 }
 0x337   : > { %6090 = vst.msk [vmem:[#allocation5 + $0x64] sm:$0xf] %vm4460_vm15, %v6070_v16  ;;  %v5900_v45 = vpop.permute.xlu0 %5899 }
 0x338   : > { %5917 = vst.msk [vmem:[#allocation5 + $0xb4] sm:$0xf] %vm4785_vm9, %v5900_v45  ;;  %v17617_v45 = vld [vmem:[#allocation5 + $0xc0] ss:$28 sps:$4 sm:$0xff]  }
 0x339   : > { %7699 = vst.msk [vmem:[#allocation3 + $0x54] sm:$0x7] %vm7677_vm10, %v23928_v4  ;;  %7700 = vst.msk [vmem:[#allocation3 + $0x58] sm:$0x7] %vm7677_vm10, %v23928_v4 }
 0x33a   : > { %v6392_v46 = vpop.permute.xlu1 %6391 }
 0x33b   : > { %6412 = vst.msk [vmem:[#allocation5 + $0x68] sm:$0xf] %vm4460_vm15, %v6392_v46  ;;  %v6068_v44 = vpop.permute.xlu0 %6067  ;;  %v6833_v32 = vld [vmem:[#allocation5 + $0x70] sm:$0xff] }
 0x33c   : > { %6089 = vst.msk [vmem:[#allocation5 + $0x48] sm:$0xf] %vm4460_vm15, %v6068_v44  ;;  %v16315_v43 = vcombine.low %v6833_v32, %v6837_v55 }
 0x33e   : > { %v6230_v22 = vpop.permute.xlu1 %6229  ;;  %7458 = vmatmul.mubr.bf16.gmra.mxu1 %v16315_v43 }
 0x33f   : > { %6250 = vst.msk [vmem:[#allocation5 + $0x64] sm:$0xf] %vm4624_vm3, %v6230_v22  ;;  %v6390_v10 = vpop.permute.xlu0 %6389  ;;  %7465 = vmatprep.mubr.bf16.mxu1 %v17583_v33 }
 0x340   : > { %6411 = vst.msk [vmem:[#allocation5 + $0x4c] sm:$0xf] %vm4460_vm15, %v6390_v10 }
 0x342   : > { %v6552_v40 = vpop.permute.xlu1 %6551 }
 0x343   : > { %6572 = vst.msk [vmem:[#allocation5 + $0x68] sm:$0xf] %vm4624_vm3, %v6552_v40  ;;  %v6228_v58 = vpop.permute.xlu0 %6227 }
 0x344   : > { %6249 = vst.msk [vmem:[#allocation5 + $0x48] sm:$0xf] %vm4624_vm3, %v6228_v58 }
 0x346   : > { %v6326_v42 = vpop.permute.xlu1 %6325  ;;  %7466 = vmatmul.mubr.bf16.gmra.mxu1 %v16322_v3 }
 0x347   : > { %6346 = vst.msk [vmem:[#allocation5 + $0x64] sm:$0xf] %vm4785_vm9, %v6326_v42  ;;  %v6324_v15 = vpop.permute.xlu0 %6323  ;;  %7506 = vmatprep.mubr.bf16.mxu1 %v17596_v35 }
 0x348   : > { %6345 = vst.msk [vmem:[#allocation5 + $0x48] sm:$0xf] %vm4785_vm9, %v6324_v15 }
 0x34a   : > { %v5750_v27 = vpop.permute.xlu1 %5749 }
 0x34b   : > { %5770 = vst.msk [vmem:[#allocation5 + $0x60] sm:$0xf] %vm4460_vm15, %v5750_v27  ;;  %v6072_v52 = vpop.permute.xlu0 %6071 }
 0x34c   : > { %5866 = vst.msk [vmem:[#allocation5 + $0x60] sm:$0xf] %vm4624_vm3, %v5846_v41  ;;  %v17612_v41 = vld [vmem:[#allocation5 + $0x50] ss:$28 sps:$4 sm:$0xff]  }
 0x34d   : > { %5914 = vst.msk [vmem:[#allocation5 + $0x60] sm:$0xf] %vm4785_vm9, %v21141_v14 }
 0x34e   : > { %v6712_v20 = vpop.permute.xlu1 %6711  ;;  %6091 = vst.msk [vmem:[#allocation5 + $0x80] sm:$0xf] %vm4460_vm15, %v6072_v52  ;;  %7507 = vmatmul.mubr.bf16.vlgmr.msra.gmra.mxu1 %v17594_v24 }
 0x34f   : > { %6732 = vst.msk [vmem:[#allocation5 + $0x68] sm:$0xf] %vm4785_vm9, %v6712_v20  ;;  %v6394_v1 = vpop.permute.xlu0 %6393  ;;  %17446 = vmatpush3.bf16.msra.mxu1 %v21017_v11 }
 0x350   : > { %6413 = vst.msk [vmem:[#allocation5 + $0x84] sm:$0xf] %vm4460_vm15, %v6394_v1  ;;  %17447 = vmatprep.subr.bf16.mxu1 %v17607_v59 }
 0x352   : > { %v6074_v30 = vpop.permute.xlu1 %6073 }
 0x353   : > { %6092 = vst.msk [vmem:[#allocation5 + $0x9c] sm:$0xf] %vm4460_vm15, %v6074_v30  ;;  %v6232_v26 = vpop.permute.xlu0 %6231  ;;  %17448 = vmatpush3.bf16.msra.mxu1 %v17607_v59 }
 0x354   : > { %v17600_v14 = vld [vmem:[#allocation5 + $0x44] ss:$28 sps:$4 sm:$0xff]   ;;  %6251 = vst.msk [vmem:[#allocation5 + $0x80] sm:$0xf] %vm4624_vm3, %v6232_v26 }
 0x355   : > { %7514 = vmatprep.mubr.bf16.mxu1 %v17600_v14 }
 0x356   : > { %v6396_v23 = vpop.permute.xlu1 %6395  ;;  %7515 = vmatmul.mubr.bf16.gmra.mxu1 %v17602_v19  ;;  %v6831_v39 = vld [vmem:[#allocation5 + $0x64] sm:$0xff] }
 0x357   : > { %6414 = vst.msk [vmem:[#allocation5 + $0xa0] sm:$0xf] %vm4460_vm15, %v6396_v23  ;;  %v6554_v18 = vpop.permute.xlu0 %6553  ;;  %7522 = vmatprep.mubr.bf16.mxu1 %v17603_v53 }
 0x358   : > { %6573 = vst.msk [vmem:[#allocation5 + $0x84] sm:$0xf] %vm4624_vm3, %v6554_v18 }
 0x35a   : > { %v5758_v11 = vpop.permute.xlu1 %5757 }
 0x35b   : > { %5774 = vst.msk [vmem:[#allocation5 + $0xd0] sm:$0xf] %vm4460_vm15, %v5758_v11  ;;  %v6550_v0 = vpop.permute.xlu0 %6549 }
 0x35c   : > { %5870 = vst.msk [vmem:[#allocation5 + $0xd0] sm:$0xf] %vm4624_vm3, %v21287_v48  ;;  %6571 = vst.msk [vmem:[#allocation5 + $0x4c] sm:$0xf] %vm4624_vm3, %v6550_v0 }
 0x35d   : > { %5918 = vst.msk [vmem:[#allocation5 + $0xd0] sm:$0xf] %vm4785_vm9, %v21290_v54 }
 0x35e   : > { %v6234_v34 = vpop.permute.xlu1 %6233  ;;  %7523 = vmatmul.mubr.bf16.gmra.mxu1 %v16317_v61 }
 0x35f   : > { %6252 = vst.msk [vmem:[#allocation5 + $0x9c] sm:$0xf] %vm4624_vm3, %v6234_v34  ;;  %v6710_v8 = vpop.permute.xlu0 %6709 }
 0x360   : > { %6731 = vst.msk [vmem:[#allocation5 + $0x4c] sm:$0xf] %vm4785_vm9, %v6710_v8 }
 0x362   : > { %v6556_v51 = vpop.permute.xlu1 %6555 }
 0x363   : > { %6574 = vst.msk [vmem:[#allocation5 + $0xa0] sm:$0xf] %vm4624_vm3, %v6556_v51  ;;  %v6328_v62 = vpop.permute.xlu0 %6327 }
 0x364   : > { %v17608_v29 = vld [vmem:[#allocation5 + $0xb4] ss:$28 sps:$4 sm:$0xff]   ;;  %6347 = vst.msk [vmem:[#allocation5 + $0x80] sm:$0xf] %vm4785_vm9, %v6328_v62 }
 0x365   : > { %7530 = vmatprep.mubr.bf16.mxu1 %v17608_v29  ;;  %v17127_v16 = vpop.f32.mrf.mxu1 }
 0x366   : > { %v6330_v36 = vpop.permute.xlu1 %6329  ;;  %7531 = vmatmul.mubr.bf16.gmra.mxu1 %v17610_v21 }
 0x367   : > { %6348 = vst.msk [vmem:[#allocation5 + $0x9c] sm:$0xf] %vm4785_vm9, %v6330_v36  ;;  %v6714_v49 = vpop.permute.xlu0 %6713  ;;  %v6827_v2 = vld [vmem:[#allocation5 + $0x48] sm:$0xff]  ;;  %17449 = vmatprep.mubr.msk.bf16.mxu1 %vm7396_vm2, %v17611_v9  ;;  %v17128_v46 = vpop.f32.mrf.mxu1 }
 0x368   : > { %v17605_v28 = vld [vmem:[#allocation5 + $0x4c] ss:$28 sps:$4 sm:$0xff]   ;;  %6733 = vst.msk [vmem:[#allocation5 + $0x84] sm:$0xf] %vm4785_vm9, %v6714_v49  ;;  %v16312_v38 = vcombine.low %v6827_v2, %v6831_v39  ;;  %v21342_v32 = vadd.f32 %v17128_v46, %v17127_v16 }
 0x369   : > { %7579 = vmatprep.mubr.bf16.mxu0 %v17605_v28  ;;  %v17130_v31 = vpop.f32.mrf.mxu1  ;;  %v16391_v36 = vld.sshfl [vmem:[#allocation3 + $0x18] sm:$0x13 pattern:$0x76325410] }
 0x36a   : > { %v6716_v57 = vpop.permute.xlu1 %6715  ;;  %7580 = vmatmul.mubr.bf16.gmra.mxu0 %v16312_v38  ;;  %v8804_v9 = vshrl.u32 %v16391_v36, 16  ;;  %v8807_v49 = vshll.u32 %v16391_v36, 16 }
 0x36b   : > { %6734 = vst.msk [vmem:[#allocation5 + $0xa0] sm:$0xf] %vm4785_vm9, %v6716_v57  ;;  %v6076_v63 = vpop.permute.xlu0 %6075  ;;  %v17131_v58 = vpop.f32.mrf.mxu1  ;;  %v21413_v57 = vld [vmem:[%s23891_s4] ss:$0 sm:$0xff] }
 0x36c   : > { %6093 = vst.msk [vmem:[#allocation5 + $0xb8] sm:$0xf] %vm4460_vm15, %v6076_v63 }
 0x36e   : > { %v6078_v7 = vpop.permute.xlu1 %6077  ;;  %17450 = vmatmul.mubr.msk.bf16.vlgmr.msra.gmra.mxu1 %vm7396_vm2, %v17612_v41  ;;  %v17616_v60 = vld [vmem:[#allocation5 + $0x80] ss:$28 sps:$4 sm:$0xff]   ;;  %v8806_v41 = vrot.slane %v8804_v9, 6 }
 0x36f   : > { %6094 = vst.msk [vmem:[#allocation5 + $0xd4] sm:$0xf] %vm4460_vm15, %v6078_v7  ;;  %17453 = vmatprep.mubr.msk.bf16.mxu1 %vm7396_vm2, %v17613_v13  ;;  %v8778_v7 = vcombine.high %v16391_v36, %v16391_v36  ;;  %v8809_v13 = vrot.slane %v8807_v49, 7 }
 0x372   : > { %v6400_v25 = vpop.permute.xlu1 %6399  ;;  %v17614_v50 = vld [vmem:[#allocation5 + $0x84] ss:$28 sps:$4 sm:$0xff]  }
 0x373   : > { %v6398_v48 = vpop.permute.xlu0 %6397  ;;  %6416 = vst.msk [vmem:[#allocation5 + $0xd8] sm:$0xf] %vm4460_vm15, %v6400_v25  ;;  %7587 = vmatprep.mubr.bf16.mxu0 %v17614_v50 }
 0x374   : > { %6415 = vst.msk [vmem:[#allocation5 + $0xbc] sm:$0xf] %vm4460_vm15, %v6398_v48  ;;  %7588 = vmatmul.mubr.bf16.gmra.mxu0 %v17616_v60  ;;  %v17132_v48 = vadd.f32 %v17131_v58, %v17130_v31  ;;  %vm21436_vm15 = vmor %vm21429_vm1, %vm8683_vm5  ;;  %vm12004_vm1 = vsmask.f32 1284  ;;  %vm11797_vm5 = vcmask 1041408  }
 0x376   : > { %17454 = vmatmul.mubr.msk.bf16.gmra.mxu1 %vm7396_vm2, %v17617_v45  ;;  %v16403_v45 = vld.sshfl [vmem:[#allocation3 + $0x30] sm:$0x13 pattern:$0x76325410]  ;;  %v7447_v31 = vadd.f32 %v17132_v48, %v21413_v57 }
 0x377   : > { %v6236_v54 = vpop.permute.xlu0 %6235 }
 0x378   : > { %6253 = vst.msk [vmem:[#allocation5 + $0xb8] sm:$0xf] %vm4624_vm3, %v6236_v54  ;;  %v7444_v54 = vadd.f32 %v21342_v32, %v21413_v57 }
 0x379   : > { %v6238_v5 = vpop.permute.xlu1 %6237 }
 0x37a   : > { %6254 = vst.msk [vmem:[#allocation5 + $0xd4] sm:$0xf] %vm4624_vm3, %v6238_v5 }
 0x37d   : > { %v6560_v55 = vpop.permute.xlu1 %6559 }
 0x37e   : > { %v6332_v44 = vpop.permute.xlu0 %6331  ;;  %6576 = vst.msk [vmem:[#allocation5 + $0xd8] sm:$0xf] %vm4624_vm3, %v6560_v55 }
 0x37f   : > { %6349 = vst.msk [vmem:[#allocation5 + $0xb8] sm:$0xf] %vm4785_vm9, %v6332_v44 }
 0x382   : > { %v6558_v6 = vpop.permute.xlu0 %6557  ;;  %v6334_v22 = vpop.permute.xlu1 %6333 }
 0x383   : > { %6575 = vst.msk [vmem:[#allocation5 + $0xbc] sm:$0xf] %vm4624_vm3, %v6558_v6  ;;  %v18427_v6 = vmov 1983009808   ;;  %vm21446_vm3 = vmor %vm636_vm0, %vm2693_vm6 }
 0x384   : > { %6350 = vst.msk [vmem:[#allocation5 + $0xd4] sm:$0xf] %vm4785_vm9, %v6334_v22  ;;  %v8587_v22 = vunpack.c.l.s4 %v18427_v6  ;;  %vm21459_vm0 = vmor %vm21436_vm15, %vm8685_vm14  ;;  %vm11798_vm14 = vsmask.f32 1282  ;;  %vm12006_vm15 = vsmask.f32 2312 }
 0x386   : > { %v6718_v43 = vpop.permute.xlu0 %6717  ;;  %v6720_v33 = vpop.permute.xlu1 %6719 }
 0x387   : > { %6735 = vst.msk [vmem:[#allocation5 + $0xbc] sm:$0xf] %vm4785_vm9, %v6718_v43  ;;  %6736 = vst.msk [vmem:[#allocation5 + $0xd8] sm:$0xf] %vm4785_vm9, %v6720_v33 }
 0x388   : > { %vm21475_vm9 = vmor %vm21446_vm3, %vm2699_vm8  ;;  %vm12008_vm3 = vsmask.f32 3340 }
 0x389   : > { %vm21493_vm2 = vmor %vm21475_vm9, %vm2705_vm11  ;;  %vm8184_vm11 = vsmask.f32 2306 }
 0x38a   : > { %vm21560_vm12 = vmand %vm7677_vm10, %vm8184_vm11  ;;  %vm18429_vm10 = vmmov 0  }
 0x38b   : > { %v17620_v40 = vld [vmem:[#allocation5 + $0xb8] ss:$28 sps:$4 sm:$0xff]   ;;  %vm12005_vm9 = vmor %vm2841_vm4, %vm12004_vm1  ;;  %vm12016_vm1 = vsmask.f32 7452 }
 0x38c   : > { %vm22570_vm11 = vmor %vm12005_vm9, %vm12006_vm15 }
 0x38d   : > { %vm22580_vm4 = vmand %vm11797_vm5, %vm11798_vm14  ;;  %vm16135_vm14 = vcmask 0  }
 0x38e   : > { %v17618_v10 = vld [vmem:[#allocation5 + $0xbc] ss:$28 sps:$4 sm:$0xff]  }
 0x38f   : > { %7595 = vmatprep.mubr.bf16.mxu0 %v17618_v10  ;;  %v8810_v10 = vor.u32 %v8809_v13, %v8806_v41 }
 0x390   : > { %7596 = vmatmul.mubr.bf16.gmra.mxu0 %v17620_v40  ;;  %v8813_v40 = vshll.u32 %v8778_v7, 16 }
 0x3e1   : > { %v17133_v42 = vpop.f32.mrf.mxu1 }
 0x3e3   : > { %v17134_v3 = vpop.f32.mrf.mxu1 }
 0x3e4   : > { %v17135_v38 = vadd.f32 %v17134_v3, %v17133_v42  ;;  %v9069_v3 = vshrl.u32 %v16403_v45, 16 }
 0x3e5   : > { %v17136_v35 = vpop.f32.mrf.mxu1 }
 0x3e6   : > { %v7452_v46 = vadd.f32 %v17135_v38, %v21413_v57 }
 0x3e7   : > { %v17137_v15 = vpop.f32.mrf.mxu1 }
 0x3e8   : > { %v17138_v5 = vadd.f32 %v17137_v15, %v17136_v35  ;;  %v9072_v35 = vshll.u32 %v16403_v45, 16 }
 0x3ea   : > { %v7455_v15 = vadd.f32 %v17138_v5, %v21413_v57  ;;  %v9074_v9 = vrot.slane %v9072_v35, 7 }
 0x3f0   : > { %v17207_v8 = vpop.f32.mrf.mxu0 }
 0x3f2   : > { %v17208_v21 = vpop.f32.mrf.mxu0 }
 0x3f4   : > { %v17210_v2 = vpop.f32.mrf.mxu0 }
 0x3f6   : > { %v17211_v25 = vpop.f32.mrf.mxu0 }
 0x3fe   : > { %v17139_v27 = vpop.f32.mrf.mxu1 }
 0x400   : > { %v17140_v52 = vpop.f32.mrf.mxu1 }
 0x401   : > { %v21394_v20 = vadd.f32 %v17140_v52, %v17139_v27 }
 0x402   : > { %v17142_v24 = vpop.f32.mrf.mxu1 }
 0x403   : > { %v7460_v49 = vadd.f32 %v21394_v20, %v21413_v57 }
 0x404   : > { %v17143_v59 = vpop.f32.mrf.mxu1 }
 0x405   : > { %v21396_v1 = vadd.f32 %v17143_v59, %v17142_v24  ;;  %v17209_v59 = vadd.f32 %v17208_v21, %v17207_v8  ;;  %v9043_v8 = vcombine.high %v16403_v45, %v16403_v45  ;;  %v9071_v21 = vrot.slane %v9069_v3, 6 }
 0x406   : > { %v17145_v30 = vpop.f32.mrf.mxu1 }
 0x407   : > { %v7463_v13 = vadd.f32 %v21396_v1, %v21413_v57 }
 0x408   : > { %v17146_v14 = vpop.f32.mrf.mxu1 }
 0x409   : > { %v21398_v19 = vadd.f32 %v17146_v14, %v17145_v30  ;;  %v17212_v30 = vadd.f32 %v17211_v25, %v17210_v2 }
 0x40a   : > { %v17148_v26 = vpop.f32.mrf.mxu1 }
 0x40b   : > { %v7468_v48 = vadd.f32 %v21398_v19, %v21413_v57 }
 0x40c   : > { %v17149_v23 = vpop.f32.mrf.mxu1 }
 0x40d   : > { %v21400_v53 = vadd.f32 %v17149_v23, %v17148_v26  ;;  %v8588_v23 = vunpack.c.0.s8 %v8587_v22 }
 0x40e   : > { %v17167_v18 = vpop.f32.mrf.mxu1 }
 0x40f   : > { %v21464_v19 = vsub.s32 %v8588_v23, %v18736_v37 }
 0x410   : > { %v17168_v11 = vpop.f32.mrf.mxu1 }
 0x411   : > { %v17169_v16 = vadd.f32 %v17168_v11, %v17167_v18 }
 0x412   : > { %v17170_v12 = vpop.f32.mrf.mxu1 }
 0x413   : > { %v7509_v27 = vadd.f32 %v17169_v16, %v7444_v54 }
 0x414   : > { %v17171_v0 = vpop.f32.mrf.mxu1 }
 0x415   : > { %v17172_v43 = vadd.f32 %v17171_v0, %v17170_v12  ;;  %v8811_v12 = vrot.slane %v8810_v10, 2  ;;  %v8815_v0 = vrot.slane %v8813_v40, 7  ;;  %v7574_v7 = vadd.f32 %v17209_v59, %v7509_v27 }
 0x416   : > { %v17173_v17 = vpop.f32.mrf.mxu1 }
 0x417   : > { %v7512_v18 = vadd.f32 %v17172_v43, %v7447_v31 }
 0x418   : > { %v17174_v34 = vpop.f32.mrf.mxu1 }
 0x419   : > { %v17175_v50 = vadd.f32 %v17174_v34, %v17173_v17  ;;  %v16411_v17 = vld.sshfl [vmem:[#allocation3 + $0x30] sm:$0x12 pattern:$0x76325410]  ;;  %v7577_v16 = vadd.f32 %v17212_v30, %v7512_v18 }
 0x41a   : > { %v17176_v61 = vpop.f32.mrf.mxu1  ;;  %v9279_v54 = vcombine.high %v16411_v17, %v16411_v17  ;;  %v16415_v3 = vrot.slane %v16411_v17, 9 }
 0x41b   : > { %v7517_v58 = vadd.f32 %v17175_v50, %v7452_v46 }
 0x41c   : > { %v17177_v51 = vpop.f32.mrf.mxu1  ;;  %v9306_v35 = vrot.slane %v9279_v54, 7 }
 0x41d   : > { %v17178_v33 = vadd.f32 %v17177_v51, %v17176_v61 }
 0x41e   : > { %v21402_v29 = vpop.f32.mrf.mxu1 }
 0x41f   : > { %v7520_v11 = vadd.f32 %v17178_v33, %v7455_v15 }
 0x420   : > { %v21404_v62 = vpop.f32.mrf.mxu1 }
 0x421   : > { %v17181_v38 = vadd.f32 %v21404_v62, %v21402_v29  ;;  %v7471_v29 = vadd.f32 %v21400_v53, %v21413_v57  ;;  %v9075_v53 = vor.u32 %v9074_v9, %v9071_v21  ;;  %v21470_v57 = vshll.u32 %v9043_v8, 16 }
 0x422   : > { %v21406_v39 = vpop.f32.mrf.mxu1 }
 0x423   : > { %v7525_v6 = vadd.f32 %v17181_v38, %v7460_v49 }
 0x424   : > { %v21408_v28 = vpop.f32.mrf.mxu1 }
 0x425   : > { %v17184_v40 = vadd.f32 %v21408_v28, %v21406_v39  ;;  %v9080_v39 = vrot.slane %v21470_v57, 7 }
 0x426   : > { %v21415_v63 = vpop.f32.mrf.mxu1 }
 0x428   : > { %v21417_v60 = vpop.f32.mrf.mxu1 }
 0x429   : > { %v17187_v59 = vadd.f32 %v21417_v60, %v21415_v63  ;;  %v7528_v60 = vadd.f32 %v17184_v40, %v7463_v13 }
 0x42a   : > { %v17213_v44 = vpop.f32.mrf.mxu0  ;;  %v21422_v55 = vpop.f32.mrf.mxu1 }
 0x42b   : > { %v21507_v36 = vadd.f32 %v17187_v59, %v7468_v48 }
 0x42c   : > { %v17214_v32 = vpop.f32.mrf.mxu0  ;;  %v21425_v42 = vpop.f32.mrf.mxu1 }
 0x42d   : > { %v17215_v52 = vadd.f32 %v17214_v32, %v17213_v44  ;;  %v21468_v44 = vsel %vm21459_vm0, %v8811_v12, %v8815_v0  ;;  %v17190_v30 = vadd.f32 %v21425_v42, %v21422_v55  ;;  %v21501_v42 = vsel %vm21493_vm2, %v16415_v3, %v9306_v35 }
 0x42e   : > { %v17216_v14 = vpop.f32.mrf.mxu0  ;;  %v17451_v26 = vpop.f32.mrf.mxu1 }
 0x42f   : > { %v7582_v61 = vadd.f32 %v17215_v52, %v7517_v58  ;;  %v21509_v8 = vadd.f32 %v17190_v30, %v7471_v29 }
 0x430   : > { %v17217_v34 = vpop.f32.mrf.mxu0  ;;  %v7638_v51 = vpop.f32.mrf.mxu1 }
 0x431   : > { %v17218_v2 = vadd.f32 %v17217_v34, %v17216_v14  ;;  %v7647_v25 = vadd.f32 %v17451_v26, %v7582_v61  ;;  %v7639_v62 = vadd.f32 %v7638_v51, %v7574_v7  ;;  %v21487_v26 = vrot.slane %v9075_v53, 2 }
 0x432   : > { %v17452_v50 = vpop.f32.mrf.mxu1 }
 0x433   : > { %v7585_v5 = vadd.f32 %v17218_v2, %v7520_v11  ;;  %v7671_v31 = vmax.f32 %v7647_v25, 0.0  ;;  %v7669_v15 = vmax.f32 %v7639_v62, 0.0 }
 0x434   : > { %v17219_v20 = vpop.f32.mrf.mxu0  ;;  %v7641_v1 = vpop.f32.mrf.mxu1 }
 0x435   : > { %v7650_v22 = vadd.f32 %v17452_v50, %v7585_v5  ;;  %v7642_v43 = vadd.f32 %v7641_v1, %v7577_v16 }
 0x436   : > { %v17220_v46 = vpop.f32.mrf.mxu0  ;;  %v21481_v58 = vpop.f32.mrf.mxu1 }
 0x437   : > { %v17221_v33 = vadd.f32 %v17220_v46, %v17219_v20  ;;  %v7672_v27 = vmax.f32 %v7650_v22, 0.0  ;;  %v7670_v52 = vmax.f32 %v7642_v43, 0.0 }
 0x438   : > { %v17222_v32 = vpop.f32.mrf.mxu0  ;;  %v7654_v63 = vpop.f32.mrf.mxu1 }
 0x439   : > { %v7590_v24 = vadd.f32 %v17221_v33, %v7525_v6  ;;  %v7703_v23 = vpack.c.bf16 %v7672_v27, %v7671_v31  ;;  %v16384_v18 = vpack.c.bf16 %v7672_v27, %v7672_v27  ;;  %v7702_v11 = vpack.c.bf16 %v7670_v52, %v7669_v15  ;;  %v17631_v31 = vld [vmem:[%s23892_s5 + $0x78] sm:$0xff]  }
 0x43a   : > { %v17223_v14 = vpop.f32.mrf.mxu0  ;;  %v16383_v12 = vpack.c.bf16 %v7670_v52, %v7670_v52  ;;  %17237 = vmatprep.subr.bf16.mxu0 %v17631_v31 }
 0x43b   : > { %v21497_v0 = vadd.f32 %v7654_v63, %v7590_v24  ;;  %v17224_v55 = vadd.f32 %v17223_v14, %v17222_v32  ;;  %v7766_v17 = vrot.slane %v7703_v23, %v18739_v47  ;;  %v7773_v34 = vrot.slane %v16384_v18, %v18739_v47  ;;  %v17632_v32 = vld [vmem:[%s23892_s5 + $0x38] sm:$0xff]  }
 0x43c   : > { %v7717_v61 = vrot.slane %v7702_v11, %v18739_v47  ;;  %v7724_v51 = vrot.slane %v16383_v12, %v18739_v47  ;;  %17238 = vmatpush3.bf16.msra.mxu0 %v17632_v32 }
 0x43d   : > { %v7673_v21 = vmax.f32 %v21497_v0, 0.0  ;;  %v21512_v9 = vadd.f32 %v17224_v55, %v7528_v60  ;;  %v7774_v49 = vcombine.high %v7766_v17, %v7766_v17  ;;  %v7775_v2 = vcombine.high %v7773_v34, %v7773_v34 }
 0x43e   : > { %v7782_v38 = vrot.slane %v7766_v17, %v18739_v47  ;;  %v7789_v7 = vrot.slane %v7773_v34, %v18739_v47  ;;  %v7725_v41 = vcombine.high %v7717_v61, %v7717_v61  ;;  %v7726_v13 = vcombine.high %v7724_v51, %v7724_v51 }
 0x43f   : > { %v21517_v25 = vrot.slane %v7717_v61, %v18739_v47  ;;  %v21520_v48 = vrot.slane %v7724_v51, %v18739_v47  ;;  %v7796_v50 = vrot.slane %v7774_v49, %v18739_v47  ;;  %v7803_v20 = vrot.slane %v7775_v2, %v18739_v47 }
 0x440   : > { %v7804_v54 = vcombine.high %v7782_v38, %v7782_v38  ;;  %v7805_v29 = vcombine.high %v7789_v7, %v7789_v7  ;;  %v7968_v62 = vrot.slane %v7782_v38, %v18742_v56  ;;  %v8305_v5 = vrot.slane %v7789_v7, %v18742_v56 }
 0x441   : > { %v21527_v16 = vrot.slane %v7725_v41, %v18739_v47  ;;  %v21530_v1 = vrot.slane %v7726_v13, %v18739_v47  ;;  %v7806_v46 = vcombine.high %v7796_v50, %v7796_v50  ;;  %v7807_v53 = vcombine.high %v7803_v20, %v7803_v20 }
 0x442   : > { %v7982_v6 = vrot.slane %v7796_v50, %v18742_v56  ;;  %v7996_v22 = vrot.slane %v7804_v54, %v18742_v56  ;;  %v7975_v43 = vrot.slane %v7968_v62, %v18742_v56  ;;  %v8312_v33 = vrot.slane %v8305_v5, %v18742_v56 }
 0x443   : > { %v8319_v10 = vrot.slane %v7803_v20, %v18742_v56  ;;  %v8333_v40 = vrot.slane %v7805_v29, %v18742_v56  ;;  %v8010_v15 = vrot.slane %v7806_v46, %v18742_v56  ;;  %v8347_v27 = vrot.slane %v7807_v53, %v18742_v56 }
 0x444   : > { %v7989_v3 = vrot.slane %v7982_v6, %v18742_v56  ;;  %v8003_v35 = vrot.slane %v7996_v22, %v18742_v56  ;;  %v8134_v52 = vunpack.c.l.b16 %v7975_v43  ;;  %v8471_v30 = vunpack.c.l.b16 %v8312_v33  ;;  %v8189_v6 = vld [vmem:[#allocation3 + $0x8] sm:$0x7]  ;;  %v8234_v43 = vld [vmem:[#allocation3 + $0x20] sm:$0x7] }
 0x445   : > { %v8326_v24 = vrot.slane %v8319_v10, %v18742_v56  ;;  %v8340_v59 = vrot.slane %v8333_v40, %v18742_v56  ;;  %v8017_v14 = vrot.slane %v8010_v15, %v18742_v56  ;;  %v8354_v11 = vrot.slane %v8347_v27, %v18742_v56 }
 0x446   : > { %v8135_v23 = vunpack.c.l.b16 %v7989_v3  ;;  %v8136_v18 = vunpack.c.l.b16 %v8003_v35  ;;  %v8153_v12 = vrot.slane %v8134_v52, 7  ;;  %v8490_v55 = vrot.slane %v8471_v30, 7  ;;  %v8523_v3 = vld [vmem:[#allocation3 + $0x38] sm:$0x7] }
 0x447   : > { %v8472_v63 = vunpack.c.l.b16 %v8326_v24  ;;  %v8473_v60 = vunpack.c.l.b16 %v8340_v59  ;;  %v8137_v17 = vunpack.c.l.b16 %v8017_v14  ;;  %v8474_v2 = vunpack.c.l.b16 %v8354_v11 }
 0x448   : > { %v8154_v34 = vrot.slane %v8135_v23, 6  ;;  %v8156_v61 = vrot.slane %v8136_v18, 5  ;;  %v8204_v51 = vrot.slane %v8135_v23, 7  ;;  %v8206_v49 = vrot.slane %v8136_v18, 6 }
 0x449   : > { %v8491_v38 = vrot.slane %v8472_v63, 6  ;;  %v8493_v7 = vrot.slane %v8473_v60, 5  ;;  %v8158_v13 = vrot.slane %v8137_v17, 4  ;;  %v8208_v20 = vrot.slane %v8137_v17, 5 }
 0x44a   : > { %v8155_v41 = vsel %vm2693_vm6, %v8154_v34, %v8153_v12  ;;  %v8205_v50 = vsel %vm2693_vm6, %v8204_v51, %v8134_v52  ;;  %v8495_v5 = vrot.slane %v8474_v2, 4  ;;  %v8538_v10 = vrot.slane %v8472_v63, 7  ;;  %v8568_v12 = vld [vmem:[#allocation3 + $0x50] sm:$0x7] }
 0x44b   : > { %v8157_v54 = vsel %vm2696_vm7, %v8156_v61, %v8155_v41  ;;  %v8207_v29 = vsel %vm2696_vm7, %v8206_v49, %v8205_v50  ;;  %v8492_v62 = vsel %vm2693_vm6, %v8491_v38, %v8490_v55  ;;  %v8540_v35 = vrot.slane %v8473_v60, 6 }
 0x44c   : > { %v8159_v46 = vsel %vm2699_vm8, %v8158_v13, %v8157_v54  ;;  %v8209_v22 = vsel %vm2699_vm8, %v8208_v20, %v8207_v29  ;;  %v8494_v33 = vsel %vm2696_vm7, %v8493_v7, %v8492_v62  ;;  %v8539_v27 = vsel %vm2693_vm6, %v8538_v10, %v8471_v30 }
 0x44d   : > { %v8175_v40 = vpack.c.b16 %v8159_v46, %v8159_v46  ;;  %v8223_v31 = vpack.c.b16 %v8209_v22, %v8209_v22  ;;  %v8496_v32 = vsel %vm2699_vm8, %v8495_v5, %v8494_v33  ;;  %v8542_v52 = vrot.slane %v8474_v2, 5 }
 0x44e   : > { %v8512_v15 = vpack.c.b16 %v8496_v32, %v8496_v32  ;;  %v7755_v24 = vcombine.high %v21517_v25, %v21517_v25  ;;  %v8541_v23 = vsel %vm2696_vm7, %v8540_v35, %v8539_v27  ;;  %v7756_v18 = vcombine.high %v21520_v48, %v21520_v48 }
 0x44f   : > { %v8190_v59 = vsel %vm21560_vm12, %v8175_v40, %v8189_v6  ;;  %v8235_v14 = vsel %vm21560_vm12, %v8223_v31, %v8234_v43  ;;  %v8543_v11 = vsel %vm2699_vm8, %v8542_v52, %v8541_v23  ;;  %v7757_v63 = vcombine.high %v21527_v16, %v21527_v16  ;;  %v17456_v52 = vpop.f32.mrf.mxu1 }
 0x450   : > { %8191 = vst [vmem:[#allocation3 + $0x8] sm:$0x7] %v8190_v59  ;;  %8236 = vst [vmem:[#allocation3 + $0x20] sm:$0x7] %v8235_v14  ;;  %v8524_v30 = vsel %vm21560_vm12, %v8512_v15, %v8523_v3  ;;  %v7758_v60 = vcombine.high %v21530_v1, %v21530_v1  ;;  %v21584_v55 = vpop.f32.mrf.mxu0  ;;  %v8557_v17 = vpack.c.b16 %v8543_v11, %v8543_v11 }
 0x451   : > { %8525 = vst [vmem:[#allocation3 + $0x38] sm:$0x7] %v8524_v30  ;;  %v7912_v34 = vrot.slane %v21517_v25, %v18742_v56  ;;  %v7926_v61 = vrot.slane %v21527_v16, %v18742_v56  ;;  %v7940_v51 = vrot.slane %v7755_v24, %v18742_v56  ;;  %v7954_v49 = vrot.slane %v7757_v63, %v18742_v56 }
 0x452   : > { %v8249_v2 = vrot.slane %v21520_v48, %v18742_v56  ;;  %v8263_v38 = vrot.slane %v21530_v1, %v18742_v56  ;;  %v8277_v7 = vrot.slane %v7756_v18, %v18742_v56  ;;  %v8569_v41 = vsel %vm21560_vm12, %v8557_v17, %v8568_v12  ;;  %v17226_v54 = vpop.f32.mrf.mxu0  ;;  %v8186_v17 = vld [vmem:[#allocation3 + $0x4] sm:$0x7] }
 0x453   : > { %v7919_v25 = vrot.slane %v7912_v34, %v18742_v56  ;;  %v7933_v13 = vrot.slane %v7926_v61, %v18742_v56  ;;  %v7947_v16 = vrot.slane %v7940_v51, %v18742_v56  ;;  %8570 = vst [vmem:[#allocation3 + $0x50] sm:$0x7] %v8569_v41  ;;  %v7961_v50 = vrot.slane %v7954_v49, %v18742_v56  ;;  %v8231_v61 = vld [vmem:[#allocation3 + $0x1c] sm:$0x7] }
 0x454   : > { %v8256_v20 = vrot.slane %v8249_v2, %v18742_v56  ;;  %v8270_v48 = vrot.slane %v8263_v38, %v18742_v56  ;;  %v8284_v1 = vrot.slane %v8277_v7, %v18742_v56  ;;  %v8291_v46 = vrot.slane %v7758_v60, %v18742_v56  ;;  %v17228_v24 = vpop.f32.mrf.mxu0 }
 0x455   : > { %v8130_v29 = vunpack.c.l.b16 %v7919_v25  ;;  %v8131_v62 = vunpack.c.l.b16 %v7933_v13  ;;  %v8132_v5 = vunpack.c.l.b16 %v7947_v16  ;;  %v8133_v6 = vunpack.c.l.b16 %v7961_v50  ;;  %v8520_v25 = vld [vmem:[#allocation3 + $0x34] sm:$0x7]  ;;  %v7657_v13 = vpop.f32.mrf.mxu1 }
 0x456   : > { %v8467_v22 = vunpack.c.l.b16 %v8256_v20  ;;  %v8468_v43 = vunpack.c.l.b16 %v8270_v48  ;;  %v8469_v33 = vunpack.c.l.b16 %v8284_v1  ;;  %v8298_v27 = vrot.slane %v8291_v46, %v18742_v56  ;;  %v17229_v16 = vpop.f32.mrf.mxu0 }
 0x457   : > { %v8146_v10 = vrot.slane %v8130_v29, 7  ;;  %v8147_v40 = vrot.slane %v8131_v62, 6  ;;  %v8149_v31 = vrot.slane %v8132_v5, 5  ;;  %v8198_v32 = vrot.slane %v8131_v62, 7 }
 0x458   : > { %v8151_v3 = vrot.slane %v8133_v6, 4  ;;  %v8200_v35 = vrot.slane %v8132_v5, 6  ;;  %v8202_v15 = vrot.slane %v8133_v6, 5  ;;  %v8483_v23 = vrot.slane %v8467_v22, 7 }
 0x459   : > { %v8148_v59 = vsel %vm2693_vm6, %v8147_v40, %v8146_v10  ;;  %v8199_v14 = vsel %vm2693_vm6, %v8198_v32, %v8130_v29  ;;  %v8484_v18 = vrot.slane %v8468_v43, 6  ;;  %v8470_v12 = vunpack.c.l.b16 %v8298_v27  ;;  %v16393_v50 = vld.sshfl [vmem:[#allocation3 + $0x20] sm:$0x13 pattern:$0x76325410] }
 0x45a   : > { %v8150_v30 = vsel %vm2696_vm7, %v8149_v31, %v8148_v59  ;;  %v8201_v11 = vsel %vm2696_vm7, %v8200_v35, %v8199_v14  ;;  %v8486_v63 = vrot.slane %v8469_v33, 5  ;;  %v8532_v49 = vrot.slane %v8468_v43, 7  ;;  %v21641_v0 = vld.sshfl [vmem:[#allocation3 + $0x38] sm:$0x13 pattern:$0x76325410] }
 0x45b   : > { %v8152_v60 = vsel %vm2699_vm8, %v8151_v3, %v8150_v30  ;;  %v8203_v34 = vsel %vm2699_vm8, %v8202_v15, %v8201_v11  ;;  %v8485_v51 = vsel %vm2693_vm6, %v8484_v18, %v8483_v23  ;;  %v8488_v41 = vrot.slane %v8470_v12, 4 }
 0x45c   : > { %v8174_v2 = vpack.c.b16 %v8152_v60, %v8152_v60  ;;  %v8222_v38 = vpack.c.b16 %v8203_v34, %v8203_v34  ;;  %v8487_v7 = vsel %vm2696_vm7, %v8486_v63, %v8485_v51  ;;  %v8533_v20 = vsel %vm2693_vm6, %v8532_v49, %v8467_v22 }
 0x45d   : > { %v8534_v48 = vrot.slane %v8469_v33, 6  ;;  %v8536_v1 = vrot.slane %v8470_v12, 5  ;;  %v7658_v29 = vadd.f32 %v7657_v13, %v21512_v9  ;;  %v8489_v46 = vsel %vm2699_vm8, %v8488_v41, %v8487_v7  ;;  %v8565_v9 = vld [vmem:[#allocation3 + $0x4c] sm:$0x7] }
 0x45e   : > { %v8187_v62 = vsel %vm21560_vm12, %v8174_v2, %v8186_v17  ;;  %v8232_v5 = vsel %vm21560_vm12, %v8222_v38, %v8231_v61  ;;  %v17227_v6 = vadd.f32 %v17226_v54, %v21584_v55  ;;  %v8511_v43 = vpack.c.b16 %v8489_v46, %v8489_v46 }
 0x45f   : > { %8188 = vst [vmem:[#allocation3 + $0x4] sm:$0x7] %v8187_v62  ;;  %8233 = vst [vmem:[#allocation3 + $0x1c] sm:$0x7] %v8232_v5  ;;  %v8535_v10 = vsel %vm2696_vm7, %v8534_v48, %v8533_v20  ;;  %v7674_v22 = vmax.f32 %v7658_v29, 0.0  ;;  %v17230_v33 = vadd.f32 %v17229_v16, %v17228_v24  ;;  %v8794_v32 = vcombine.high %v16393_v50, %v16393_v50 }
 0x460   : > { %v8537_v40 = vsel %vm2699_vm8, %v8536_v1, %v8535_v10  ;;  %v7598_v31 = vadd.f32 %v17227_v6, %v21507_v36  ;;  %v8832_v3 = vshrl.u32 %v16393_v50, 16  ;;  %v8521_v35 = vsel %vm21560_vm12, %v8511_v43, %v8520_v25 }
 0x461   : > { %v8556_v15 = vpack.c.b16 %v8537_v40, %v8537_v40  ;;  %v7704_v55 = vpack.c.bf16 %v7674_v22, %v7673_v21  ;;  %v16385_v54 = vpack.c.bf16 %v7674_v22, %v7674_v22  ;;  %8522 = vst [vmem:[#allocation3 + $0x34] sm:$0x7] %v8521_v35  ;;  %v7601_v24 = vadd.f32 %v17230_v33, %v21509_v8  ;;  %v17635_v35 = vld [vmem:[%s23892_s5 + $0x30] sm:$0xff]  }
 0x462   : > { %v7663_v27 = vadd.f32 %v21481_v58, %v7598_v31  ;;  %v21633_v59 = vrot.slane %v8832_v3, 6  ;;  %v8835_v14 = vshll.u32 %v16393_v50, 16  ;;  %v21639_v30 = vshll.u32 %v8794_v32, 16  ;;  %v17634_v3 = vld [vmem:[%s23892_s5 + $0x70] sm:$0xff]  }
 0x463   : > { %v8566_v36 = vsel %vm21560_vm12, %v8556_v15, %v8565_v9  ;;  %v7815_v23 = vrot.slane %v7704_v55, %v18739_v47  ;;  %v7822_v18 = vrot.slane %v16385_v54, %v18739_v47  ;;  %v7666_v11 = vadd.f32 %v17456_v52, %v7601_v24  ;;  %v17636_v15 = vld [vmem:[%s23892_s5 + $0x68] sm:$0xff]   ;;  %17239 = vmatprep.subr.bf16.mxu0 %v17634_v3 }
 0x464   : > { %8567 = vst [vmem:[#allocation3 + $0x4c] sm:$0x7] %v8566_v36  ;;  %v7675_v21 = vmax.f32 %v7663_v27, 0.0  ;;  %v21648_v58 = vsel %vm21459_vm0, %v21487_v26, %v9080_v39  ;;  %v21650_v8 = vrot.slane %v8835_v14, 7  ;;  %v8843_v57 = vrot.slane %v21639_v30, 7  ;;  %v17637_v14 = vld [vmem:[%s23892_s5 + $0xf8] sm:$0xff]   ;;  %17240 = vmatpush3.bf16.msra.mxu0 %v17635_v35 }
 0x465   : > { %v7823_v12 = vcombine.high %v7815_v23, %v7815_v23  ;;  %v7824_v63 = vcombine.high %v7822_v18, %v7822_v18  ;;  %v7831_v60 = vrot.slane %v7815_v23, %v18739_v47  ;;  %v7838_v17 = vrot.slane %v7822_v18, %v18739_v47  ;;  %v17639_v36 = vld [vmem:[%s23892_s5 + $0xb8] sm:$0xff]   ;;  %17259 = vmatprep.subr.bf16.mxu1 %v17637_v14  ;;  %v17650_v30 = vld [vmem:[%s23892_s5 + $0x50] sm:$0xff]  }
 0x466   : > { %v21654_v34 = vmax.f32 %v7666_v11, 0.0  ;;  %v8838_v52 = vor.u32 %v21650_v8, %v21633_v59  ;;  %v9059_v61 = vcombine.high %v21641_v0, %v21641_v0  ;;  %17241 = vmatprep.subr.bf16.mxu0 %v17636_v15  ;;  %17260 = vmatpush3.bf16.msra.mxu1 %v17639_v36  ;;  %v17647_v59 = vld [vmem:[%s23892_s5 + $0x18] sm:$0xff]  }
 0x467   : > { %v7845_v26 = vrot.slane %v7823_v12, %v18739_v47  ;;  %v7852_v39 = vrot.slane %v7824_v63, %v18739_v47  ;;  %v7853_v51 = vcombine.high %v7831_v60, %v7831_v60  ;;  %v7854_v49 = vcombine.high %v7838_v17, %v7838_v17 }
 0x468   : > { %v8024_v2 = vrot.slane %v7831_v60, %v18742_v56  ;;  %v8361_v38 = vrot.slane %v7838_v17, %v18742_v56  ;;  %v21666_v7 = vpack.c.bf16 %v21654_v34, %v7675_v21  ;;  %v16386_v41 = vpack.c.bf16 %v21654_v34, %v21654_v34 }
 0x469   : > { %v7855_v25 = vcombine.high %v7845_v26, %v7845_v26  ;;  %v7856_v13 = vcombine.high %v7852_v39, %v7852_v39  ;;  %v8038_v16 = vrot.slane %v7845_v26, %v18742_v56  ;;  %v8052_v50 = vrot.slane %v7853_v51, %v18742_v56  ;;  %v17638_v26 = vld [vmem:[%s23892_s5 + $0x28] sm:$0xff]  }
 0x46a   : > { %v8031_v20 = vrot.slane %v8024_v2, %v18742_v56  ;;  %v8368_v48 = vrot.slane %v8361_v38, %v18742_v56  ;;  %v8375_v1 = vrot.slane %v7852_v39, %v18742_v56  ;;  %v8389_v29 = vrot.slane %v7854_v49, %v18742_v56  ;;  %17242 = vmatpush3.bf16.msra.mxu0 %v17638_v26 }
 0x46b   : > { %v8045_v62 = vrot.slane %v8038_v16, %v18742_v56  ;;  %v8059_v5 = vrot.slane %v8052_v50, %v18742_v56  ;;  %v8066_v46 = vrot.slane %v7855_v25, %v18742_v56  ;;  %v8403_v6 = vrot.slane %v7856_v13, %v18742_v56 }
 0x46c   : > { %v8138_v43 = vunpack.c.l.b16 %v8031_v20  ;;  %v8382_v10 = vrot.slane %v8375_v1, %v18742_v56  ;;  %v8396_v22 = vrot.slane %v8389_v29, %v18742_v56  ;;  %v8475_v33 = vunpack.c.l.b16 %v8368_v48  ;;  %v8192_v20 = vld [vmem:[#allocation3 + $0xc] sm:$0x7]  ;;  %v8237_v1 = vld [vmem:[#allocation3 + $0x24] sm:$0x7] }
 0x46d   : > { %v8073_v40 = vrot.slane %v8066_v46, %v18742_v56  ;;  %v8139_v9 = vunpack.c.l.b16 %v8045_v62  ;;  %v8140_v31 = vunpack.c.l.b16 %v8059_v5  ;;  %v8410_v32 = vrot.slane %v8403_v6, %v18742_v56 }
 0x46e   : > { %v8160_v55 = vrot.slane %v8138_v43, 7  ;;  %v8476_v54 = vunpack.c.l.b16 %v8382_v10  ;;  %v8477_v27 = vunpack.c.l.b16 %v8396_v22  ;;  %v8497_v24 = vrot.slane %v8475_v33, 7  ;;  %v18393_v22 = vld.sshfl [vmem:[#allocation3 + $0x18] sm:$0xf pattern:$0x76325410] }
 0x46f   : > { %v8141_v23 = vunpack.c.l.b16 %v8073_v40  ;;  %v8161_v18 = vrot.slane %v8139_v9, 6  ;;  %v8163_v21 = vrot.slane %v8140_v31, 5  ;;  %v8210_v11 = vrot.slane %v8139_v9, 7  ;;  %8631 = vrot.lane.b32.xlu0 %v18393_v22, %s18425_s26 }
 0x470   : > { %v8212_v12 = vrot.slane %v8140_v31, 6  ;;  %v8478_v63 = vunpack.c.l.b16 %v8410_v32  ;;  %v8498_v60 = vrot.slane %v8476_v54, 6  ;;  %v8500_v17 = vrot.slane %v8477_v27, 5 }
 0x471   : > { %v8162_v39 = vsel %vm2693_vm6, %v8161_v18, %v8160_v55  ;;  %v8165_v51 = vrot.slane %v8141_v23, 4  ;;  %v8211_v49 = vsel %vm2693_vm6, %v8210_v11, %v8138_v43  ;;  %v8214_v2 = vrot.slane %v8141_v23, 5  ;;  %v8526_v43 = vld [vmem:[#allocation3 + $0x3c] sm:$0x7] }
 0x472   : > { %v8164_v38 = vsel %vm2696_vm7, %v8163_v21, %v8162_v39  ;;  %v8213_v25 = vsel %vm2696_vm7, %v8212_v12, %v8211_v49  ;;  %v8499_v13 = vsel %vm2693_vm6, %v8498_v60, %v8497_v24  ;;  %v8502_v16 = vrot.slane %v8478_v63, 4 }
 0x473   : > { %v8166_v50 = vsel %vm2699_vm8, %v8165_v51, %v8164_v38  ;;  %v8215_v48 = vsel %vm2699_vm8, %v8214_v2, %v8213_v25  ;;  %v8501_v29 = vsel %vm2696_vm7, %v8500_v17, %v8499_v13  ;;  %v8544_v62 = vrot.slane %v8476_v54, 7  ;;  %v21723_v54 = vld.sshfl [vmem:[#allocation3 + $0x1c] sm:$0x13 pattern:$0x76325410] }
 0x474   : > { %v8176_v5 = vpack.c.b16 %v8166_v50, %v8166_v50  ;;  %v8224_v46 = vpack.c.b16 %v8215_v48, %v8215_v48  ;;  %v8503_v6 = vsel %vm2699_vm8, %v8502_v16, %v8501_v29  ;;  %v8546_v10 = vrot.slane %v8477_v27, 6  ;;  %v8571_v27 = vld [vmem:[#allocation3 + $0x54] sm:$0x7] }
 0x475   : > { %v8513_v40 = vpack.c.b16 %v8503_v6, %v8503_v6  ;;  %v8545_v9 = vsel %vm2693_vm6, %v8544_v62, %v8475_v33  ;;  %v8548_v31 = vrot.slane %v8478_v63, 5  ;;  %v7864_v32 = vrot.slane %v21666_v7, %v18739_v47 }
 0x476   : > { %v8193_v3 = vsel %vm21560_vm12, %v8176_v5, %v8192_v20  ;;  %v8238_v35 = vsel %vm21560_vm12, %v8224_v46, %v8237_v1  ;;  %v8547_v15 = vsel %vm2696_vm7, %v8546_v10, %v8545_v9  ;;  %v7871_v55 = vrot.slane %v16386_v41, %v18739_v47 }
 0x477   : > { %8194 = vst [vmem:[#allocation3 + $0xc] sm:$0x7] %v8193_v3  ;;  %8239 = vst [vmem:[#allocation3 + $0x24] sm:$0x7] %v8238_v35  ;;  %v8527_v7 = vsel %vm21560_vm12, %v8513_v40, %v8526_v43  ;;  %v8549_v33 = vsel %vm2699_vm8, %v8548_v31, %v8547_v15  ;;  %v7872_v24 = vcombine.high %v7864_v32, %v7864_v32 }
 0x478   : > { %v7880_v14 = vrot.slane %v7864_v32, %v18739_v47  ;;  %8528 = vst [vmem:[#allocation3 + $0x3c] sm:$0x7] %v8527_v7  ;;  %v8558_v36 = vpack.c.b16 %v8549_v33, %v8549_v33  ;;  %v7873_v23 = vcombine.high %v7871_v55, %v7871_v55  ;;  %v7887_v18 = vrot.slane %v7871_v55, %v18739_v47 }
 0x479   : > { %v7894_v34 = vrot.slane %v7872_v24, %v18739_v47  ;;  %v8786_v11 = vcombine.high %v21723_v54, %v21723_v54 }
 0x47a   : > { %v7902_v41 = vcombine.high %v7880_v14, %v7880_v14  ;;  %v8080_v21 = vrot.slane %v7880_v14, %v18742_v56  ;;  %v8572_v12 = vsel %vm21560_vm12, %v8558_v36, %v8571_v27  ;;  %v7901_v63 = vrot.slane %v7873_v23, %v18739_v47  ;;  %v8195_v36 = vld [vmem:[#allocation3 + $0x10] sm:$0x7] }
 0x47b   : > { %v7903_v60 = vcombine.high %v7887_v18, %v7887_v18  ;;  %v8417_v17 = vrot.slane %v7887_v18, %v18742_v56  ;;  %8573 = vst [vmem:[#allocation3 + $0x54] sm:$0x7] %v8572_v12  ;;  %v7904_v26 = vcombine.high %v7894_v34, %v7894_v34  ;;  %v8094_v51 = vrot.slane %v7894_v34, %v18742_v56  ;;  %v8240_v34 = vld [vmem:[#allocation3 + $0x28] sm:$0x7] }
 0x47c   : > { %v8087_v39 = vrot.slane %v8080_v21, %v18742_v56  ;;  %v8108_v49 = vrot.slane %v7902_v41, %v18742_v56  ;;  %v7905_v2 = vcombine.high %v7901_v63, %v7901_v63  ;;  %v8431_v25 = vrot.slane %v7901_v63, %v18742_v56 }
 0x47d   : > { %v8424_v38 = vrot.slane %v8417_v17, %v18742_v56  ;;  %v8445_v13 = vrot.slane %v7903_v60, %v18742_v56  ;;  %v8101_v16 = vrot.slane %v8094_v51, %v18742_v56  ;;  %v8122_v20 = vrot.slane %v7904_v26, %v18742_v56  ;;  %v8529_v60 = vld [vmem:[#allocation3 + $0x40] sm:$0x7]  ;;  %v21758_v26 = vld.sshfl [vmem:[#allocation3 + $0x38] sm:$0x12 pattern:$0x76325410] }
 0x47e   : > { %v8115_v50 = vrot.slane %v8108_v49, %v18742_v56  ;;  %v8142_v48 = vunpack.c.l.b16 %v8087_v39  ;;  %v8438_v1 = vrot.slane %v8431_v25, %v18742_v56  ;;  %v8459_v62 = vrot.slane %v7905_v2, %v18742_v56  ;;  %v18394_v17 = vld.sshfl [vmem:[#allocation3 + $0x20] sm:$0xf pattern:$0x76325410] }
 0x47f   : > { %v8452_v29 = vrot.slane %v8445_v13, %v18742_v56  ;;  %v8479_v5 = vunpack.c.l.b16 %v8424_v38  ;;  %v8129_v46 = vrot.slane %v8122_v20, %v18742_v56  ;;  %v8143_v6 = vunpack.c.l.b16 %v8101_v16  ;;  %v21763_v38 = vld.sshfl [vmem:[#allocation3 + $0x30] sm:$0xf pattern:$0x76325410]  ;;  %8633 = vrot.lane.b32.xlu1 %v18394_v17, %s18425_s26  ;;  %v17646_v17 = vld [vmem:[%s23892_s5 + $0xe8] sm:$0xff]  }
 0x480   : > { %v8144_v43 = vunpack.c.l.b16 %v8115_v50  ;;  %v8167_v10 = vrot.slane %v8142_v48, 7  ;;  %v8466_v22 = vrot.slane %v8459_v62, %v18742_v56  ;;  %v8480_v40 = vunpack.c.l.b16 %v8438_v1  ;;  %v16404_v20 = vld.sshfl [vmem:[#allocation3 + $0x34] sm:$0x13 pattern:$0x76325410] }
 0x481   : > { %v8481_v9 = vunpack.c.l.b16 %v8452_v29  ;;  %v8504_v31 = vrot.slane %v8479_v5, 7  ;;  %v8145_v32 = vunpack.c.l.b16 %v8129_v46  ;;  %v8168_v3 = vrot.slane %v8143_v6, 6  ;;  %v16394_v46 = vld.sshfl [vmem:[#allocation3 + $0x24] sm:$0x13 pattern:$0x76325410] }
 0x482   : > { %v8170_v35 = vrot.slane %v8144_v43, 5  ;;  %v8216_v15 = vrot.slane %v8143_v6, 7  ;;  %v8218_v55 = vrot.slane %v8144_v43, 6  ;;  %v8482_v7 = vunpack.c.l.b16 %v8466_v22  ;;  %v8574_v22 = vld [vmem:[#allocation3 + $0x58] sm:$0x7] }
 0x483   : > { %v8505_v33 = vrot.slane %v8480_v40, 6  ;;  %v8507_v27 = vrot.slane %v8481_v9, 5  ;;  %v8169_v24 = vsel %vm2693_vm6, %v8168_v3, %v8167_v10  ;;  %v8172_v14 = vrot.slane %v8145_v32, 4 }
 0x484   : > { %v8217_v23 = vsel %vm2693_vm6, %v8216_v15, %v8142_v48  ;;  %v8220_v18 = vrot.slane %v8145_v32, 5  ;;  %v8171_v41 = vsel %vm2696_vm7, %v8170_v35, %v8169_v24  ;;  %v8509_v63 = vrot.slane %v8482_v7, 4  ;;  %v17643_v15 = vld [vmem:[%s23892_s5 + $0x20] sm:$0xff]  }
 0x485   : > { %v8219_v21 = vsel %vm2696_vm7, %v8218_v55, %v8217_v23  ;;  %v8506_v12 = vsel %vm2693_vm6, %v8505_v33, %v8504_v31  ;;  %v8173_v39 = vsel %vm2699_vm8, %v8172_v14, %v8171_v41  ;;  %v8550_v2 = vrot.slane %v8480_v40, 7  ;;  %v17644_v55 = vld [vmem:[%s23892_s5 + $0xb0] sm:$0xff]  }
 0x486   : > { %v8221_v51 = vsel %vm2699_vm8, %v8220_v18, %v8219_v21  ;;  %v8508_v49 = vsel %vm2696_vm7, %v8507_v27, %v8506_v12  ;;  %v8177_v25 = vpack.c.b16 %v8173_v39, %v8173_v39  ;;  %v8552_v50 = vrot.slane %v8481_v9, 6  ;;  %v17640_v9 = vld [vmem:[%s23892_s5 + $0x60] sm:$0xff]   ;;  %v16412_v24 = vld.sshfl [vmem:[#allocation3 + $0x34] sm:$0x12 pattern:$0x76325410] }
 0x487   : > { %v8225_v13 = vpack.c.b16 %v8221_v51, %v8221_v51  ;;  %v8510_v16 = vsel %vm2699_vm8, %v8509_v63, %v8508_v49  ;;  %v8551_v1 = vsel %vm2693_vm6, %v8550_v2, %v8479_v5  ;;  %v8554_v29 = vrot.slane %v8482_v7, 5  ;;  %v17641_v5 = vld [vmem:[%s23892_s5 + $0xf0] sm:$0xff]   ;;  %17243 = vmatprep.subr.bf16.mxu0 %v17640_v9  ;;  %v17645_v21 = vld [vmem:[%s23892_s5 + $0x58] sm:$0xff]   ;;  %v17648_v49 = vld [vmem:[%s23892_s5 + $0xa8] sm:$0xff]  }
 0x488   : > { %v8514_v48 = vpack.c.b16 %v8510_v16, %v8510_v16  ;;  %v8818_v62 = vshrl.u32 %v21723_v54, 16  ;;  %v8196_v6 = vsel %vm21560_vm12, %v8177_v25, %v8195_v36  ;;  %v8553_v10 = vsel %vm2696_vm7, %v8552_v50, %v8551_v1  ;;  %17261 = vmatprep.subr.bf16.mxu1 %v17641_v5  ;;  %17244 = vmatpush3.bf16.msra.mxu0 %v17643_v15  ;;  %v16406_v50 = vld.sshfl [vmem:[#allocation3 + $0x3c] sm:$0x13 pattern:$0x76325410]  ;;  %v17651_v9 = vld [vmem:[%s23892_s5 + $0xe0] sm:$0xff]  }
 0x489   : > { %v8241_v43 = vsel %vm21560_vm12, %v8225_v13, %v8240_v34  ;;  %v8821_v40 = vshll.u32 %v21723_v54, 16  ;;  %8197 = vst [vmem:[#allocation3 + $0x10] sm:$0x7] %v8196_v6  ;;  %v8555_v32 = vsel %vm2699_vm8, %v8554_v29, %v8553_v10  ;;  %v9295_v35 = vcombine.high %v21758_v26, %v21758_v26  ;;  %17262 = vmatpush3.bf16.msra.mxu1 %v17644_v55 }
 0x48a   : > { %8242 = vst [vmem:[#allocation3 + $0x28] sm:$0x7] %v8241_v43  ;;  %v8530_v31 = vsel %vm21560_vm12, %v8514_v48, %v8529_v60  ;;  %v8820_v3 = vrot.slane %v8818_v62, 6  ;;  %v8559_v7 = vpack.c.b16 %v8555_v32, %v8555_v32  ;;  %v8827_v27 = vshll.u32 %v8786_v11, 16  ;;  %17245 = vmatprep.subr.bf16.mxu0 %v17645_v21  ;;  %17263 = vmatprep.subr.bf16.mxu1 %v17646_v17 }
 0x48b   : > { %8531 = vst [vmem:[#allocation3 + $0x40] sm:$0x7] %v8530_v31  ;;  %v8823_v33 = vrot.slane %v8821_v40, 7  ;;  %v9051_v14 = vcombine.high %v16404_v20, %v16404_v20  ;;  %v9083_v36 = vshrl.u32 %v16404_v20, 16  ;;  %v9086_v23 = vshll.u32 %v16404_v20, 16 }
 0x48c   : > { %v8575_v18 = vsel %vm21560_vm12, %v8559_v7, %v8574_v22  ;;  %v8802_v41 = vcombine.high %v16394_v46, %v16394_v46  ;;  %v8839_v54 = vrot.slane %v8838_v52, 2  ;;  %v21800_v11 = vld.sshfl [vmem:[#allocation3 + $0x38] sm:$0xf pattern:$0x76325410]  ;;  %v8846_v53 = vshrl.u32 %v16394_v46, 16  ;;  %17246 = vmatpush3.bf16.msra.mxu0 %v17647_v59  ;;  %vm22587_vm12 = vmor %vm22570_vm11, %vm12008_vm3 }
 0x48d   : > { %v8824_v34 = vor.u32 %v8823_v33, %v8820_v3  ;;  %8576 = vst [vmem:[#allocation3 + $0x58] sm:$0x7] %v8575_v18  ;;  %v9085_v12 = vrot.slane %v9083_v36, 6  ;;  %v9088_v63 = vrot.slane %v9086_v23, 7  ;;  %v9092_v60 = vshll.u32 %v9051_v14, 16  ;;  %17264 = vmatpush3.bf16.msra.mxu1 %v17648_v49  ;;  %17247 = vmatprep.subr.bf16.mxu0 %v17650_v30  ;;  %v17652_v3 = vld [vmem:[%s23892_s5 + $0x10] sm:$0xff]  }
 0x48e   : > { %v8829_v52 = vrot.slane %v8827_v27, 7  ;;  %v8849_v39 = vshll.u32 %v16394_v46, 16  ;;  %v8855_v51 = vshll.u32 %v8802_v41, 16  ;;  %v21818_v25 = vsel %vm21459_vm0, %v8839_v54, %v8843_v57  ;;  %17265 = vmatprep.subr.bf16.mxu1 %v17651_v9  ;;  %v17655_v49 = vld [vmem:[%s23892_s5 + $0xd8] sm:$0xff]  }
 0x48f   : > { %v8825_v8 = vrot.slane %v8824_v34, 2  ;;  %v9089_v2 = vor.u32 %v9088_v63, %v9085_v12  ;;  %v8848_v13 = vrot.slane %v8846_v53, 6  ;;  %v9287_v16 = vcombine.high %v16412_v24, %v16412_v24  ;;  %v21829_v10 = vld.sshfl [vmem:[#allocation3 + $0x1c] sm:$0xf pattern:$0x76325410] }
 0x490   : > { %v9094_v48 = vrot.slane %v9092_v60, 7  ;;  %v8851_v1 = vrot.slane %v8849_v39, 7  ;;  %v8857_v29 = vrot.slane %v8855_v51, 7  ;;  %v16416_v46 = vrot.slane %v16412_v24, 9  ;;  %17248 = vmatpush3.bf16.msra.mxu0 %v17652_v3  ;;  %v17653_v34 = vld [vmem:[%s23892_s5 + $0xa0] sm:$0xff]   ;;  %v17654_v51 = vld [vmem:[%s23892_s5 + $0x48] sm:$0xff]  }
 0x491   : > { %v21822_v20 = vsel %vm21459_vm0, %v8825_v8, %v8829_v52  ;;  %v9090_v62 = vrot.slane %v9089_v2, 2  ;;  %v9310_v6 = vrot.slane %v9287_v16, 7  ;;  %v9067_v22 = vcombine.high %v16406_v50, %v16406_v50  ;;  %v16414_v27 = vld.sshfl [vmem:[#allocation3 + $0x3c] sm:$0x12 pattern:$0x76325410]  ;;  %17266 = vmatpush3.bf16.msra.mxu1 %v17653_v34  ;;  %17249 = vmatprep.subr.bf16.mxu0 %v17654_v51 }
 0x492   : > { %v8859_v57 = vcombine.low %v21468_v44, %v21822_v20  ;;  %v8852_v43 = vor.u32 %v8851_v1, %v8848_v13  ;;  %v9097_v40 = vshrl.u32 %v21641_v0, 16  ;;  %v9100_v32 = vshll.u32 %v21641_v0, 16  ;;  %v21869_v21 = vld.sshfl [vmem:[#allocation3 + $0x34] sm:$0xf pattern:$0x76325410]  ;;  %17267 = vmatprep.subr.bf16.mxu1 %v17655_v49 }
 0x493   : > { %v21838_v31 = vsel %vm21459_vm0, %v9090_v62, %v9094_v48  ;;  %v21842_v44 = vsel %vm21493_vm2, %v16416_v46, %v9310_v6  ;;  %v9106_v14 = vshll.u32 %v9059_v61, 16  ;;  %v9111_v36 = vshrl.u32 %v16406_v50, 16  ;;  %v16426_v17 = vld.sshfl [vmem:[#allocation3 + $0x28] sm:$0x13 pattern:$0x76325410] }
 0x494   : > { %v8866_v5 = vrot.slane %v8859_v57, %v21464_v19  ;;  %v9124_v15 = vcombine.low %v21648_v58, %v21838_v31  ;;  %v8853_v55 = vrot.slane %v8852_v43, 2  ;;  %v9320_v7 = vcombine.low %v21501_v42, %v21842_v44  ;;  %v21902_v48 = vld.sshfl [vmem:[#allocation3 + $0x20] sm:$0xf pattern:$0x76325410]  ;;  %v17657_v1 = vld [vmem:[%s23892_s5 + $0x98] sm:$0xff]  }
 0x495   : > { %v9099_v33 = vrot.slane %v9097_v40, 6  ;;  %v9102_v24 = vrot.slane %v9100_v32, 7  ;;  %v9114_v23 = vshll.u32 %v16406_v50, 16  ;;  %v9120_v42 = vshll.u32 %v9067_v22, 16  ;;  %v17660_v43 = vld [vmem:[%s23892_s5 + $0xd0] sm:$0xff]   ;;  %17268 = vmatpush3.bf16.msra.mxu1 %v17657_v1 }
 0x496   : > { %8875 = vrot.lane.b32.xlu0 %v8866_v5, %s18425_s26  ;;  %v9131_v18 = vrot.slane %v9124_v15, %v21464_v19  ;;  %v21859_v58 = vsel %vm21459_vm0, %v8853_v55, %v8857_v29  ;;  %v21867_v0 = vrot.slane %v9320_v7, %v21464_v19  ;;  %v9113_v54 = vrot.slane %v9111_v36, 6  ;;  %v21891_v50 = vld.sshfl [vmem:[#allocation3 + $0x24] sm:$0xf pattern:$0x76325410]  ;;  %v17662_v7 = vld [vmem:[%s23892_s5 + $0x90] sm:$0xff]   ;;  %17269 = vmatprep.subr.bf16.mxu1 %v17660_v43 }
 0x497   : > { %v8867_v41 = vcombine.low %v21818_v25, %v21859_v58  ;;  %v9103_v61 = vor.u32 %v9102_v24, %v9099_v33  ;;  %v9108_v12 = vrot.slane %v9106_v14, 7  ;;  %v9116_v63 = vrot.slane %v9114_v23, 7  ;;  %v17659_v29 = vld [vmem:[%s23892_s5 + $0x40] sm:$0xff]   ;;  %v17667_v36 = vld [vmem:[%s23892_s5 + $0xc8] sm:$0xff]   ;;  %v17668_v23 = vld [vmem:[%s23892_s5 + $0x178] sm:$0xff]  }
 0x498   : > { %v9616_v60 = vcombine.low %v21822_v20, %v21818_v25  ;;  %v9303_v53 = vcombine.high %v16414_v27, %v16414_v27  ;;  %v16417_v52 = vrot.slane %v21758_v26, 9  ;;  %v9314_v39 = vrot.slane %v9295_v35, 7  ;;  %v21916_v6 = vld.sshfl [vmem:[#allocation3 + $0x3c] sm:$0xf pattern:$0x76325410] }
 0x499   : > { %v21876_v59 = vrot.slane %v8867_v41, %v21464_v19  ;;  %v9104_v8 = vrot.slane %v9103_v61, 2  ;;  %v9117_v2 = vor.u32 %v9116_v63, %v9113_v54  ;;  %v9122_v25 = vrot.slane %v9120_v42, 7  ;;  %v16438_v32 = vld.sshfl [vmem:[#allocation3 + $0x40] sm:$0x13 pattern:$0x76325410]  ;;  %17270 = vmatpush3.bf16.msra.mxu1 %v17662_v7 }
 0x49a   : > { %8991 = vrot.lane.b32.xlu0 %v21763_v38, %s18425_s26  ;;  %v17656_v38 = vld [vmem:[%s23892_s5 + $0x8] sm:$0xff]   ;;  %v16418_v13 = vrot.slane %v16414_v27, 9  ;;  %v9318_v16 = vrot.slane %v9303_v53, 7  ;;  %v21898_v35 = vrot.slane %v9616_v60, %v21464_v19  ;;  %v9315_v20 = vsel %vm21493_vm2, %v16417_v52, %v9314_v39  ;;  %v17661_v55 = vld [vmem:[%s23892_s5] sm:$0xff]   ;;  %17271 = vmatprep.subr.bf16.mxu1 %v17667_v36 }
 0x49b   : > { %8877 = vrot.lane.b32.xlu1 %v21876_v59, %s18425_s26  ;;  %v9109_v26 = vsel %vm21459_vm0, %v9104_v8, %v9108_v12  ;;  %v9118_v30 = vrot.slane %v9117_v2, 2  ;;  %v10068_v46 = vcombine.low %v21842_v44, %v9315_v20  ;;  %v9559_v40 = vcombine.high %v16426_v17, %v16426_v17  ;;  %17250 = vmatpush3.bf16.msra.mxu0 %v17656_v38  ;;  %v16446_v15 = vld.sshfl [vmem:[#allocation3 + $0x40] sm:$0x12 pattern:$0x76325410]  ;;  %v17669_v52 = vld [vmem:[%s23892_s5 + $0x88] sm:$0xff]  }
 0x49c   : > { %v21912_v57 = vsel %vm21493_vm2, %v16418_v13, %v9318_v16  ;;  %v9872_v62 = vcombine.low %v21838_v31, %v9109_v26  ;;  %v9603_v9 = vshrl.u32 %v16426_v17, 16  ;;  %v9606_v5 = vshll.u32 %v16426_v17, 16  ;;  %v16458_v14 = vld.sshfl [vmem:[#allocation3 + $0x2c] sm:$0x13 pattern:$0x76325410]  ;;  %17251 = vmatprep.subr.bf16.mxu0 %v17659_v29 }
 0x49d   : > { %v9328_v22 = vcombine.low %v9315_v20, %v21912_v57  ;;  %v21925_v31 = vsel %vm21459_vm0, %v9118_v30, %v9122_v25  ;;  %v21931_v3 = vrot.slane %v10068_v46, %v21464_v19  ;;  %v9612_v42 = vshll.u32 %v9559_v40, 16  ;;  %v18403_v60 = vld.sshfl [vmem:[#allocation3] sm:$0xf pattern:$0x76325410]  ;;  %17272 = vmatpush3.bf16.msra.mxu1 %v17669_v52 }
 0x49e   : > { %9140 = vrot.lane.b32.xlu0 %v9131_v18, %s18425_s26  ;;  %v21928_v44 = vrot.slane %v9872_v62, %v21464_v19  ;;  %v9132_v33 = vcombine.low %v9109_v26, %v21925_v31  ;;  %v9605_v27 = vrot.slane %v9603_v9, 6  ;;  %v9608_v24 = vrot.slane %v9606_v5, 7  ;;  %v16387_v16 = vld.sshfl [vmem:[#allocation3] sm:$0x13 pattern:$0x76325410] }
 0x49f   : > { %8993 = vrot.lane.b32.xlu1 %v21800_v11, %s18425_s26  ;;  %v9335_v18 = vrot.slane %v9328_v22, %v21464_v19  ;;  %v9815_v34 = vcombine.high %v16438_v32, %v16438_v32  ;;  %v9859_v41 = vshrl.u32 %v16438_v32, 16  ;;  %v21949_v11 = vld.sshfl [vmem:[#allocation3 + $0x28] sm:$0xf pattern:$0x76325410]  ;;  %v9862_v12 = vshll.u32 %v16438_v32, 16  ;;  %17252 = vmatpush3.bf16.msra.mxu0 %v17661_v55 }
 0x4a0   : > { %v9139_v61 = vrot.slane %v9132_v33, %v21464_v19  ;;  %v9609_v54 = vor.u32 %v9608_v24, %v9605_v27  ;;  %v10051_v63 = vcombine.high %v16446_v15, %v16446_v15  ;;  %v9614_v53 = vrot.slane %v9612_v42, 7  ;;  %17281 = vmatprep.subr.bf16.mxu0 %v17668_v23  ;;  %v16388_v29 = vld.sshfl [vmem:[#allocation3 + $0x4] sm:$0x13 pattern:$0x76325410]  ;;  %v17681_v5 = vld [vmem:[%s23892_s5 + $0x1f8] sm:$0xff]  }
 0x4a1   : > { %v9861_v17 = vrot.slane %v9859_v41, 6  ;;  %v9868_v8 = vshll.u32 %v9815_v34, 16  ;;  %v9864_v51 = vrot.slane %v9862_v12, 7  ;;  %v16450_v49 = vrot.slane %v16446_v15, 9 }
 0x4a2   : > { %9336 = vrot.lane.b32.xlu0 %v21867_v0, %s18425_s26  ;;  %v17671_v0 = vld [vmem:[%s23892_s5 + $0xc0] sm:$0xff]   ;;  %v9610_v39 = vrot.slane %v9609_v54, 2  ;;  %v10066_v38 = vrot.slane %v10051_v63, 7  ;;  %v10309_v2 = vcombine.high %v16458_v14, %v16458_v14  ;;  %v10353_v25 = vshrl.u32 %v16458_v14, 16 }
 0x4a3   : > { %9142 = vrot.lane.b32.xlu1 %v9139_v61, %s18425_s26  ;;  %v10356_v13 = vshll.u32 %v16458_v14, 16  ;;  %v9865_v20 = vor.u32 %v9864_v51, %v9861_v17  ;;  %vm8603_vm7 = vcmask 519168   ;;  %v9870_v40 = vrot.slane %v9868_v8, 7  ;;  %17273 = vmatprep.subr.bf16.mxu1 %v17671_v0 }
 0x4a4   : > { %v9615_v26 = vsel %vm21459_vm0, %v9610_v39, %v9614_v53  ;;  %v10067_v1 = vsel %vm21493_vm2, %v16450_v49, %v10066_v38  ;;  %v10355_v46 = vrot.slane %v10353_v25, 6  ;;  %v10362_v9 = vshll.u32 %v10309_v2, 16  ;;  %8604 = vst.msk [vmem:[#allocation6] sm:$0xf] %vm8603_vm7, %v18403_v60 }
 0x4a5   : > { %v9624_v30 = vcombine.low %v21859_v58, %v9615_v26  ;;  %v10076_v62 = vcombine.low %v21912_v57, %v10067_v1  ;;  %v10358_v43 = vrot.slane %v10356_v13, 7  ;;  %v9866_v22 = vrot.slane %v9865_v20, 2  ;;  %v16395_v24 = vld.sshfl [vmem:[#allocation3] sm:$0x12 pattern:$0x76325410] }
 0x4a6   : > { %9396 = vrot.lane.b32.xlu0 %v21829_v10, %s18425_s26  ;;  %v17673_v10 = vld [vmem:[%s23892_s5 + $0x80] sm:$0xff]   ;;  %v8655_v15 = vcombine.high %v16387_v16, %v16387_v16  ;;  %v10364_v7 = vrot.slane %v10362_v9, 7  ;;  %v8688_v33 = vshrl.u32 %v16387_v16, 16  ;;  %v8691_v27 = vshll.u32 %v16387_v16, 16 }
 0x4a7   : > { %9338 = vrot.lane.b32.xlu1 %v9335_v18, %s18425_s26  ;;  %v9631_v58 = vrot.slane %v9624_v30, %v21464_v19  ;;  %v21978_v57 = vrot.slane %v10076_v62, %v21464_v19  ;;  %v10359_v32 = vor.u32 %v10358_v43, %v10355_v46  ;;  %v9871_v55 = vsel %vm21459_vm0, %v9866_v22, %v9870_v40  ;;  %v18404_v42 = vld.sshfl [vmem:[#allocation3 + $0x8] sm:$0xf pattern:$0x76325410] }
 0x4a8   : > { %v9880_v14 = vcombine.low %v21925_v31, %v9871_v55  ;;  %v8697_v23 = vshll.u32 %v8655_v15, 16  ;;  %v8663_v18 = vcombine.high %v16388_v29, %v16388_v29  ;;  %v16396_v34 = vld.sshfl [vmem:[#allocation3 + $0x4] sm:$0x12 pattern:$0x76325410]  ;;  %17274 = vmatpush3.bf16.msra.mxu1 %v17673_v10  ;;  %v8693_v41 = vrot.slane %v8691_v27, 7 }
 0x4a9   : > { %v10360_v36 = vrot.slane %v10359_v32, 2  ;;  %v8702_v61 = vshrl.u32 %v16388_v29, 16  ;;  %v8705_v54 = vshll.u32 %v16388_v29, 16  ;;  %17303 = vmatprep.subr.bf16.mxu1 %v17681_v5  ;;  %v8898_v51 = vcombine.high %v16395_v24, %v16395_v24  ;;  %8605 = vst.msk [vmem:[#allocation6 + $0x34] sm:$0xf] %vm8603_vm7, %v18404_v42 }
 0x4aa   : > { %9632 = vrot.lane.b32.xlu0 %v21898_v35, %s18425_s26  ;;  %v8690_v35 = vrot.slane %v8688_v33, 6  ;;  %v9887_v12 = vrot.slane %v9880_v14, %v21464_v19  ;;  %v8699_v31 = vrot.slane %v8697_v23, 7  ;;  %v8711_v60 = vshll.u32 %v8663_v18, 16 }
 0x4ab   : > { %9398 = vrot.lane.b32.xlu1 %v21891_v50, %s18425_s26  ;;  %v10365_v63 = vsel %vm21459_vm0, %v10360_v36, %v10364_v7  ;;  %v18405_v53 = vld.sshfl [vmem:[#allocation3 + $0x48] sm:$0xf pattern:$0x76325410]  ;;  %v8704_v52 = vrot.slane %v8702_v61, 6  ;;  %v8707_v50 = vrot.slane %v8705_v54, 7  ;;  %v8906_v13 = vcombine.high %v16396_v34, %v16396_v34 }
 0x4ac   : > { %v10374_v17 = vcombine.low %v9615_v26, %v10365_v63  ;;  %v8694_v8 = vor.u32 %v8693_v41, %v8690_v35  ;;  %v16390_v0 = vld.sshfl [vmem:[#allocation3 + $0xc] sm:$0x13 pattern:$0x76325410]  ;;  %v8713_v39 = vrot.slane %v8711_v60, 7  ;;  %v16399_v49 = vrot.slane %v16395_v24, 9 }
 0x4ad   : > { %v8708_v25 = vor.u32 %v8707_v50, %v8704_v52  ;;  %v16389_v16 = vld.sshfl [vmem:[#allocation3 + $0x8] sm:$0x13 pattern:$0x76325410]  ;;  %v16400_v26 = vrot.slane %v16396_v34, 9  ;;  %v8679_v20 = vcombine.high %v16390_v0, %v16390_v0  ;;  %v8936_v30 = vrot.slane %v8906_v13, 7 }
 0x4ae   : > { %9740 = vrot.lane.b32.xlu0 %v21869_v21, %s18425_s26  ;;  %v21995_v38 = vrot.slane %v10374_v17, %v21464_v19  ;;  %v8695_v2 = vrot.slane %v8694_v8, 2  ;;  %v8932_v21 = vrot.slane %v8898_v51, 7  ;;  %v8730_v62 = vshrl.u32 %v16390_v0, 16  ;;  %9026 = vst.msk [vmem:[#allocation6 + $0xc] sm:$0xf] %vm8603_vm7, %v18405_v53 }
 0x4af   : > { %9634 = vrot.lane.b32.xlu1 %v9631_v58, %s18425_s26  ;;  %v8709_v29 = vrot.slane %v8708_v25, 2  ;;  %v8733_v43 = vshll.u32 %v16390_v0, 16  ;;  %v8739_v10 = vshll.u32 %v8679_v20, 16  ;;  %v8671_v22 = vcombine.high %v16389_v16, %v16389_v16 }
 0x4b0   : > { %v8700_v1 = vsel %vm21459_vm0, %v8695_v2, %v8699_v31  ;;  %v8933_v46 = vsel %vm21493_vm2, %v16399_v49, %v8932_v21  ;;  %v22013_v40 = vsel %vm21493_vm2, %v16400_v26, %v8936_v30  ;;  %v8732_v9 = vrot.slane %v8730_v62, 6  ;;  %v16408_v58 = vld.sshfl [vmem:[#allocation3 + $0x4c] sm:$0x13 pattern:$0x76325410] }
 0x4b1   : > { %v8716_v5 = vshrl.u32 %v16389_v16, 16  ;;  %v8946_v15 = vcombine.low %v8933_v46, %v22013_v40  ;;  %v8735_v55 = vrot.slane %v8733_v43, 7  ;;  %v8741_v7 = vrot.slane %v8739_v10, 7 }
 0x4b2   : > { %9888 = vrot.lane.b32.xlu0 %v21928_v44, %s18425_s26  ;;  %v22009_v44 = vsel %vm21459_vm0, %v8709_v29, %v8713_v39  ;;  %v16407_v33 = vld.sshfl [vmem:[#allocation3 + $0x48] sm:$0x13 pattern:$0x76325410]  ;;  %v8719_v27 = vshll.u32 %v16389_v16, 16  ;;  %v8725_v24 = vshll.u32 %v8671_v22, 16  ;;  %v9171_v42 = vcombine.high %v16408_v58, %v16408_v58 }
 0x4b3   : > { %9742 = vrot.lane.b32.xlu1 %v21916_v6, %s18425_s26  ;;  %v8743_v32 = vcombine.low %v8700_v1, %v22009_v44  ;;  %v8718_v6 = vrot.slane %v8716_v5, 6  ;;  %v9163_v14 = vcombine.high %v16407_v33, %v16407_v33  ;;  %v8953_v23 = vrot.slane %v8946_v15, %v21464_v19  ;;  %v16398_v34 = vld.sshfl [vmem:[#allocation3 + $0xc] sm:$0x12 pattern:$0x76325410] }
 0x4b4   : > { %v8736_v18 = vor.u32 %v8735_v55, %v8732_v9  ;;  %v8721_v35 = vrot.slane %v8719_v27, 7  ;;  %v8727_v41 = vrot.slane %v8725_v24, 7  ;;  %v9189_v61 = vshrl.u32 %v16407_v33, 16 }
 0x4b5   : > { %v8750_v36 = vrot.slane %v8743_v32, %v21464_v19  ;;  %v9192_v54 = vshll.u32 %v16407_v33, 16  ;;  %v16397_v63 = vld.sshfl [vmem:[#allocation3 + $0x8] sm:$0x12 pattern:$0x76325410]  ;;  %v9198_v31 = vshll.u32 %v9163_v14, 16 }
 0x4b6   : > { %10084 = vrot.lane.b32.xlu0 %v21931_v3, %s18425_s26  ;;  %8964 = vst.msk [vmem:[#allocation6 + $0x8] sm:$0xf] %vm8603_vm7, %v8953_v23  ;;  %v8737_v3 = vrot.slane %v8736_v18, 2  ;;  %v9203_v60 = vshrl.u32 %v16408_v58, 16  ;;  %v9206_v53 = vshll.u32 %v16408_v58, 16  ;;  %v8722_v17 = vor.u32 %v8721_v35, %v8718_v6 }
 0x4b7   : > { %9890 = vrot.lane.b32.xlu1 %v9887_v12, %s18425_s26  ;;  %8761 = vst.msk [vmem:[#allocation6 + $0x4] sm:$0xf] %vm8603_vm7, %v8750_v36  ;;  %v9191_v8 = vrot.slane %v9189_v61, 6  ;;  %v9194_v52 = vrot.slane %v9192_v54, 7  ;;  %v9212_v12 = vshll.u32 %v9171_v42, 16  ;;  %v9200_v39 = vrot.slane %v9198_v31, 7 }
 0x4b8   : > { %v18406_v50 = vld.sshfl [vmem:[#allocation3 + $0x4] sm:$0xf pattern:$0x76325410]  ;;  %v22028_v0 = vsel %vm21459_vm0, %v8737_v3, %v8741_v7  ;;  %v9205_v51 = vrot.slane %v9203_v60, 6  ;;  %v9208_v49 = vrot.slane %v9206_v53, 7  ;;  %v8914_v20 = vcombine.high %v16397_v63, %v16397_v63 }
 0x4b9   : > { %v18407_v2 = vld.sshfl [vmem:[#allocation3 + $0x50] sm:$0xf pattern:$0x76325410]  ;;  %v8723_v25 = vrot.slane %v8722_v17, 2  ;;  %v9195_v13 = vor.u32 %v9194_v52, %v9191_v8  ;;  %v9214_v16 = vrot.slane %v9212_v12, 7 }
 0x4ba   : > { %10146 = vrot.lane.b32.xlu0 %v21902_v48, %s18425_s26  ;;  %v8922_v48 = vcombine.high %v16398_v34, %v16398_v34  ;;  %v9209_v21 = vor.u32 %v9208_v49, %v9205_v51  ;;  %v16402_v26 = vrot.slane %v16398_v34, 9  ;;  %v16401_v1 = vrot.slane %v16397_v63, 9  ;;  %v16409_v29 = vld.sshfl [vmem:[#allocation3 + $0x50] sm:$0x13 pattern:$0x76325410] }
 0x4bb   : > { %10086 = vrot.lane.b32.xlu1 %v21978_v57, %s18425_s26  ;;  %v8728_v30 = vsel %vm21459_vm0, %v8723_v25, %v8727_v41  ;;  %v9196_v62 = vrot.slane %v9195_v13, 2  ;;  %v16410_v43 = vld.sshfl [vmem:[#allocation3 + $0x54] sm:$0x13 pattern:$0x76325410]  ;;  %v8940_v22 = vrot.slane %v8914_v20, 7  ;;  %v9179_v58 = vcombine.high %v16409_v29, %v16409_v29 }
 0x4bc   : > { %v8944_v46 = vrot.slane %v8922_v48, 7  ;;  %v8751_v57 = vcombine.low %v8728_v30, %v22028_v0  ;;  %v9210_v10 = vrot.slane %v9209_v21, 2  ;;  %9370 = vst.msk [vmem:[#allocation6 + $0x14] sm:$0xf] %vm8603_vm7, %v18406_v50  ;;  %9027 = vst.msk [vmem:[#allocation6 + $0x40] sm:$0xf] %vm8603_vm7, %v18407_v2  ;;  %v9187_v55 = vcombine.high %v16410_v43, %v16410_v43 }
 0x4bd   : > { %v9201_v9 = vsel %vm21459_vm0, %v9196_v62, %v9200_v39  ;;  %v18408_v7 = vld.sshfl [vmem:[#allocation3 + $0xc] sm:$0xf pattern:$0x76325410]  ;;  %v9217_v24 = vshrl.u32 %v16409_v29, 16  ;;  %v9220_v36 = vshll.u32 %v16409_v29, 16 }
 0x4be   : > { %10382 = vrot.lane.b32.xlu0 %v21876_v59, %s18425_s26  ;;  %v22043_v5 = vsel %vm21493_vm2, %v16402_v26, %v8944_v46  ;;  %v9500_v59 = vcombine.low %v22009_v44, %v8728_v30  ;;  %v8758_v32 = vrot.slane %v8751_v57, %v21464_v19  ;;  %v22050_v15 = vsel %vm21459_vm0, %v9210_v10, %v9214_v16  ;;  %v18409_v33 = vld.sshfl [vmem:[#allocation3 + $0x4c] sm:$0xf pattern:$0x76325410] }
 0x4bf   : > { %10148 = vrot.lane.b32.xlu1 %v21949_v11, %s18425_s26  ;;  %v8941_v11 = vsel %vm21493_vm2, %v16401_v1, %v8940_v22  ;;  %v9244_v6 = vcombine.low %v9201_v9, %v22050_v15  ;;  %v16422_v14 = vld.sshfl [vmem:[#allocation3 + $0x10] sm:$0x13 pattern:$0x76325410]  ;;  %v9226_v23 = vshll.u32 %v9179_v58, 16  ;;  %v9231_v18 = vshrl.u32 %v16410_v43, 16 }
 0x4c0   : > { %v8954_v27 = vcombine.low %v8941_v11, %v22043_v5  ;;  %v9507_v44 = vrot.slane %v9500_v59, %v21464_v19  ;;  %8762 = vst.msk [vmem:[#allocation6 + $0x38] sm:$0xf] %vm8603_vm7, %v8758_v32  ;;  %v9234_v42 = vshll.u32 %v16410_v43, 16  ;;  %10268 = vst.msk [vmem:[#allocation6 + $0x2c] sm:$0xf] %vm8603_vm7, %v8758_v32  ;;  %v9219_v61 = vrot.slane %v9217_v24, 6 }
 0x4c1   : > { %v18410_v34 = vld.sshfl [vmem:[#allocation3 + $0x8] sm:$0xf pattern:$0x76325410]  ;;  %v9251_v35 = vrot.slane %v9244_v6, %v21464_v19  ;;  %v9240_v54 = vshll.u32 %v9187_v55, 16  ;;  %v9222_v3 = vrot.slane %v9220_v36, 7  ;;  %v9443_v50 = vcombine.high %v16422_v14, %v16422_v14 }
 0x4c2   : > { %v8961_v41 = vrot.slane %v8954_v27, %v21464_v19  ;;  %9518 = vst.msk [vmem:[#allocation6 + $0x18] sm:$0xf] %vm8603_vm7, %v9507_v44  ;;  %v16430_v63 = vld.sshfl [vmem:[#allocation3 + $0x10] sm:$0x12 pattern:$0x76325410] }
 0x4c3   : > { %10384 = vrot.lane.b32.xlu1 %v21995_v38, %s18425_s26  ;;  %v9228_v31 = vrot.slane %v9226_v23, 7  ;;  %v9233_v60 = vrot.slane %v9231_v18, 6  ;;  %v9236_v53 = vrot.slane %v9234_v42, 7  ;;  %9262 = vst.msk [vmem:[#allocation6 + $0x10] sm:$0xf] %vm8603_vm7, %v9251_v35  ;;  %v9242_v17 = vrot.slane %v9240_v54, 7 }
 0x4c4   : > { %8965 = vst.msk [vmem:[#allocation6 + $0x3c] sm:$0xf] %vm8603_vm7, %v8961_v41  ;;  %v9696_v38 = vcombine.low %v22013_v40, %v8941_v11  ;;  %v18411_v8 = vld.sshfl [vmem:[#allocation3 + $0x54] sm:$0xf pattern:$0x76325410]  ;;  %v9223_v52 = vor.u32 %v9222_v3, %v9219_v61  ;;  %v9679_v2 = vcombine.high %v16430_v63, %v16430_v63 }
 0x4c5   : > { %v9237_v12 = vor.u32 %v9236_v53, %v9233_v60  ;;  %v9487_v39 = vshrl.u32 %v16422_v14, 16  ;;  %9371 = vst.msk [vmem:[#allocation6 + $0x48] sm:$0xf] %vm8603_vm7, %v18408_v7  ;;  %9774 = vst.msk [vmem:[#allocation6 + $0x20] sm:$0xf] %vm8603_vm7, %v18409_v33  ;;  %v9490_v49 = vshll.u32 %v16422_v14, 16 }
 0x4c6   : > { %v9703_v51 = vrot.slane %v9696_v38, %v21464_v19  ;;  %v16442_v25 = vld.sshfl [vmem:[#allocation3 + $0x58] sm:$0x13 pattern:$0x76325410]  ;;  %v9224_v13 = vrot.slane %v9223_v52, 2  ;;  %v9496_v21 = vshll.u32 %v9443_v50, 16 }
 0x4c7   : > { %v9238_v16 = vrot.slane %v9237_v12, 2  ;;  %v9489_v48 = vrot.slane %v9487_v39, 6  ;;  %v9492_v40 = vrot.slane %v9490_v49, 7  ;;  %10119 = vst.msk [vmem:[#allocation6 + $0x28] sm:$0xf] %vm8603_vm7, %v18410_v34  ;;  %v16434_v26 = vrot.slane %v16430_v63, 9 }
 0x4c8   : > { %9714 = vst.msk [vmem:[#allocation6 + $0x1c] sm:$0xf] %vm8603_vm7, %v9703_v51  ;;  %v9694_v20 = vrot.slane %v9679_v2, 7  ;;  %v9229_v29 = vsel %vm21459_vm0, %v9224_v13, %v9228_v31  ;;  %v9935_v62 = vcombine.high %v16442_v25, %v16442_v25  ;;  %9775 = vst.msk [vmem:[#allocation6 + $0x54] sm:$0xf] %vm8603_vm7, %v18411_v8  ;;  %v9498_v9 = vrot.slane %v9496_v21, 7 }
 0x4c9   : > { %v18412_v1 = vld.sshfl [vmem:[#allocation3 + $0x10] sm:$0xf pattern:$0x76325410]  ;;  %v9243_v30 = vsel %vm21459_vm0, %v9238_v16, %v9242_v17  ;;  %v9992_v43 = vcombine.low %v22050_v15, %v9229_v29  ;;  %v9493_v57 = vor.u32 %v9492_v40, %v9489_v48  ;;  %v9979_v58 = vshrl.u32 %v16442_v25, 16 }
 0x4ca   : > { %v9252_v46 = vcombine.low %v9229_v29, %v9243_v30  ;;  %v22080_v10 = vsel %vm21493_vm2, %v16434_v26, %v9694_v20  ;;  %v16454_v22 = vld.sshfl [vmem:[#allocation3 + $0x14] sm:$0x13 pattern:$0x76325410]  ;;  %v9982_v32 = vshll.u32 %v16442_v25, 16  ;;  %v9988_v27 = vshll.u32 %v9935_v62, 16 }
 0x4cb   : > { %v9704_v59 = vcombine.low %v22043_v5, %v22080_v10  ;;  %v9999_v55 = vrot.slane %v9992_v43, %v21464_v19  ;;  %v9494_v7 = vrot.slane %v9493_v57, 2  ;;  %v9981_v33 = vrot.slane %v9979_v58, 6  ;;  %10120 = vst.msk [vmem:[#allocation6 + $0x5c] sm:$0xf] %vm8603_vm7, %v18412_v1 }
 0x4cc   : > { %v9259_v11 = vrot.slane %v9252_v46, %v21464_v19  ;;  %v9984_v6 = vrot.slane %v9982_v32, 7  ;;  %v10193_v5 = vcombine.high %v16454_v22, %v16454_v22  ;;  %v10237_v24 = vshrl.u32 %v16454_v22, 16  ;;  %v16459_v8 = vld.sshfl [vmem:[#allocation3 + $0x8] sm:$0x12 pattern:$0x76325410] }
 0x4cd   : > { %v9711_v15 = vrot.slane %v9704_v59, %v21464_v19  ;;  %10010 = vst.msk [vmem:[#allocation6 + $0x24] sm:$0xf] %vm8603_vm7, %v9999_v55  ;;  %v9499_v44 = vsel %vm21459_vm0, %v9494_v7, %v9498_v9  ;;  %v10240_v14 = vshll.u32 %v16454_v22, 16  ;;  %v9990_v61 = vrot.slane %v9988_v27, 7  ;;  %v17670_v9 = vld [vmem:[%s23892_s5 + $0x138] sm:$0xff]   ;;  %v17682_v27 = vld [vmem:[%s23892_s5 + $0x128] sm:$0xff]  }
 0x4ce   : > { %9263 = vst.msk [vmem:[#allocation6 + $0x44] sm:$0xf] %vm8603_vm7, %v9259_v11  ;;  %v9508_v36 = vcombine.low %v22028_v0, %v9499_v44  ;;  %v9985_v23 = vor.u32 %v9984_v6, %v9981_v33  ;;  %v10239_v18 = vrot.slane %v10237_v24, 6  ;;  %v10246_v34 = vshll.u32 %v10193_v5, 16  ;;  %v17672_v11 = vld [vmem:[%s23892_s5 + $0x170] sm:$0xff]   ;;  %v17680_v33 = vld [vmem:[%s23892_s5 + $0x168] sm:$0xff]  }
 0x4cf   : > { %9715 = vst.msk [vmem:[#allocation6 + $0x50] sm:$0xf] %vm8603_vm7, %v9711_v15  ;;  %v10242_v42 = vrot.slane %v10240_v14, 7  ;;  %v10405_v52 = vcombine.high %v16459_v8, %v16459_v8  ;;  %v16463_v25 = vrot.slane %v16459_v8, 9  ;;  %vm8637_vm8 = vcmask 1043968   ;;  %v17675_v15 = vld [vmem:[%s23892_s5 + $0x130] sm:$0xff]  }
 0x4d0   : > { %v9515_v35 = vrot.slane %v9508_v36, %v21464_v19  ;;  %v9986_v41 = vrot.slane %v9985_v23, 2  ;;  %v10248_v63 = vrot.slane %v10246_v34, 7  ;;  %v16460_v12 = vld.sshfl [vmem:[#allocation3 + $0xc] sm:$0x12 pattern:$0x76325410] }
 0x4d1   : > { %v10243_v54 = vor.u32 %v10242_v42, %v10239_v18  ;;  %v16462_v50 = vld.sshfl [vmem:[#allocation3 + $0x14] sm:$0x12 pattern:$0x76325410]  ;;  %v10413_v39 = vcombine.high %v16460_v12, %v16460_v12  ;;  %v10432_v51 = vrot.slane %v10405_v52, 7  ;;  %v16464_v13 = vrot.slane %v16460_v12, 9 }
 0x4d2   : > { %9519 = vst.msk [vmem:[#allocation6 + $0x4c] sm:$0xf] %vm8603_vm7, %v9515_v35  ;;  %v9991_v3 = vsel %vm21459_vm0, %v9986_v41, %v9990_v61  ;;  %v10429_v49 = vcombine.high %v16462_v50, %v16462_v50  ;;  %v16466_v2 = vrot.slane %v16462_v50, 9  ;;  %v17684_v36 = vld [vmem:[%s23892_s5 + $0x160] sm:$0xff]   ;;  %v17685_v23 = vld [vmem:[%s23892_s5 + $0x1f0] sm:$0xff]   ;;  %v17689_v41 = vld [vmem:[%s23892_s5 + $0x158] sm:$0xff]  }
 0x4d3   : > { %v10000_v31 = vcombine.low %v9243_v30, %v9991_v3  ;;  %v10244_v60 = vrot.slane %v10243_v54, 2  ;;  %v10436_v16 = vrot.slane %v10413_v39, 7  ;;  %v10433_v48 = vsel %vm21493_vm2, %v16463_v25, %v10432_v51  ;;  %v17686_v34 = vld [vmem:[%s23892_s5 + $0x120] sm:$0xff]   ;;  %v17687_v35 = vld [vmem:[%s23892_s5 + $0x1b0] sm:$0xff]   ;;  %v17693_v61 = vld [vmem:[%s23892_s5 + $0x1e8] sm:$0xff]  }
 0x4d4   : > { %v10444_v45 = vrot.slane %v10429_v49, 7  ;;  %v17699_v8 = vld [vmem:[%s23892_s5 + $0x110] sm:$0xff]   ;;  %v17700_v52 = vld [vmem:[%s23892_s5 + $0x1a0] sm:$0xff]   ;;  %v17701_v12 = vld [vmem:[%s23892_s5 + $0x148] sm:$0xff]  }
 0x4d5   : > { %v10007_v0 = vrot.slane %v10000_v31, %v21464_v19  ;;  %v10249_v53 = vsel %vm21459_vm0, %v10244_v60, %v10248_v63  ;;  %v10437_v21 = vsel %vm21493_vm2, %v16464_v13, %v10436_v16  ;;  %v17694_v63 = vld [vmem:[%s23892_s5 + $0x118] sm:$0xff]   ;;  %v17695_v60 = vld [vmem:[%s23892_s5 + $0x1a8] sm:$0xff]   ;;  %v17705_v13 = vld [vmem:[%s23892_s5 + $0x140] sm:$0xff]   ;;  %vm12010_vm0 = vsmask.f32 4368 }
 0x4d6   : > { %v10258_v17 = vcombine.low %v9499_v44, %v10249_v53  ;;  %v10445_v40 = vsel %vm21493_vm2, %v16466_v2, %v10444_v45  ;;  %v10446_v26 = vcombine.low %v10433_v48, %v10437_v21  ;;  %v17683_v44 = vld [vmem:[%s23892_s5 + $0x1b8] sm:$0xff]   ;;  %v17697_v53 = vld [vmem:[%s23892_s5 + $0x1e0] sm:$0xff]   ;;  %v17703_v51 = vld [vmem:[%s23892_s5 + $0x108] sm:$0xff]   ;;  %vm12012_vm2 = vsmask.f32 5396 }
 0x4d7   : > { %10011 = vst.msk [vmem:[#allocation6 + $0x58] sm:$0xf] %vm8603_vm7, %v10007_v0  ;;  %v10454_v1 = vcombine.low %v22080_v10, %v10445_v40  ;;  %v17696_v0 = vld [vmem:[%s23892_s5 + $0x150] sm:$0xff]   ;;  %v17702_v50 = vld [vmem:[%s23892_s5 + $0x1d8] sm:$0xff]   ;;  %v17711_v21 = vld [vmem:[%s23892_s5 + $0x100] sm:$0xff]  }
 0x4d8   : > { %v10265_v38 = vrot.slane %v10258_v17, %v21464_v19  ;;  %v10453_v29 = vrot.slane %v10446_v26, %v21464_v19  ;;  %v17704_v2 = vld [vmem:[%s23892_s5 + $0x198] sm:$0xff]   ;;  %v17706_v16 = vld [vmem:[%s23892_s5 + $0x1d0] sm:$0xff]   ;;  %v17713_v26 = vld [vmem:[%s23892_s5 + $0x1c8] sm:$0xff]  }
 0x4d9   : > { %v10461_v30 = vrot.slane %v10454_v1, %v21464_v19  ;;  %v17712_v40 = vld [vmem:[%s23892_s5 + $0x190] sm:$0xff]  }
 0x4da   : > { %10269 = vst.msk [vmem:[#allocation6 + $0x60] sm:$0xf] %vm8603_vm7, %v10265_v38  ;;  %10464 = vst.msk [vmem:[#allocation6 + $0x30] sm:$0xf] %vm8603_vm7, %v10453_v29  ;;  %v17715_v29 = vld [vmem:[%s23892_s5 + $0x188] sm:$0xff]  }
 0x4db   : > { %10465 = vst.msk [vmem:[#allocation6 + $0x64] sm:$0xf] %vm8603_vm7, %v10461_v30  ;;  %v17716_v30 = vld [vmem:[%s23892_s5 + $0x238] sm:$0xff]   ;;  %vm22614_vm7 = vmor %vm22587_vm12, %vm12010_vm0 }
 0x4e1   : > { %v8632_v20 = vpop.permute.xlu0 %8631 }
 0x4e2   : > { %8638 = vst.msk [vmem:[#allocation6] sm:$0xf] %vm8637_vm8, %v8632_v20  ;;  %v17714_v20 = vld [vmem:[%s23892_s5 + $0x278] sm:$0xff]  }
 0x4f1   : > { %v8634_v62 = vpop.permute.xlu1 %8633 }
 0x4f2   : > { %8639 = vst.msk [vmem:[#allocation6 + $0x34] sm:$0xf] %vm8637_vm8, %v8634_v62 }
 0x4f9   : > { %v17664_v58 = vld [vmem:[#allocation6] ss:$52 sps:$4 sm:$0xff]  }
 0x508   : > { %v8876_v46 = vpop.permute.xlu0 %8875 }
 0x509   : > { %8881 = vst.msk [vmem:[#allocation6 + $0x4] sm:$0xf] %vm8637_vm8, %v8876_v46  ;;  %v17717_v46 = vld [vmem:[%s23892_s5 + $0x1c0] sm:$0xff]  }
 0x50c   : > { %v8992_v28 = vpop.permute.xlu0 %8991 }
 0x50d   : > { %8997 = vst.msk [vmem:[#allocation6 + $0x8] sm:$0xf] %vm8637_vm8, %v8992_v28  ;;  %v8878_v43 = vpop.permute.xlu1 %8877  ;;  %v17718_v28 = vld [vmem:[%s23892_s5 + $0x270] sm:$0xff]  }
 0x50e   : > { %8882 = vst.msk [vmem:[#allocation6 + $0x38] sm:$0xf] %vm8637_vm8, %v8878_v43 }
 0x510   : > { %v9141_v57 = vpop.permute.xlu0 %9140 }
 0x511   : > { %9146 = vst.msk [vmem:[#allocation6 + $0xc] sm:$0xf] %vm8637_vm8, %v9141_v57  ;;  %v8994_v10 = vpop.permute.xlu1 %8993  ;;  %v17722_v57 = vld [vmem:[%s23892_s5 + $0x180] sm:$0xff]  }
 0x512   : > { %8998 = vst.msk [vmem:[#allocation6 + $0x3c] sm:$0xf] %vm8637_vm8, %v8994_v10  ;;  %v17723_v10 = vld [vmem:[%s23892_s5 + $0x230] sm:$0xff]  }
 0x514   : > { %v9337_v22 = vpop.permute.xlu0 %9336 }
 0x515   : > { %9342 = vst.msk [vmem:[#allocation6 + $0x10] sm:$0xf] %vm8637_vm8, %v9337_v22  ;;  %v9143_v59 = vpop.permute.xlu1 %9142  ;;  %v17666_v32 = vld [vmem:[#allocation6 + $0x4] ss:$52 sps:$4 sm:$0xff]   ;;  %v17724_v22 = vld [vmem:[%s23892_s5 + $0x268] sm:$0xff]  }
 0x516   : > { %9147 = vst.msk [vmem:[#allocation6 + $0x40] sm:$0xf] %vm8637_vm8, %v9143_v59  ;;  %11388 = vmatprep.mubr.bf16.mxu0 %v17666_v32  ;;  %v17726_v59 = vld [vmem:[%s23892_s5 + $0x228] sm:$0xff]  }
 0x517   : > { %11389 = vmatmul.mubr.bf16.vlgmr.msra.gmra.mxu0 %v17664_v58  ;;  %v17727_v58 = vld [vmem:[%s23892_s5 + $0x2b8] sm:$0xff]  }
 0x518   : > { %v9397_v55 = vpop.permute.xlu0 %9396  ;;  %17282 = vmatpush3.bf16.msra.mxu0 %v17670_v9  ;;  %v17725_v9 = vld [vmem:[%s23892_s5 + $0x2f8] sm:$0xff]  }
 0x519   : > { %9402 = vst.msk [vmem:[#allocation6 + $0x14] sm:$0xf] %vm8637_vm8, %v9397_v55  ;;  %v9339_v7 = vpop.permute.xlu1 %9338  ;;  %17283 = vmatprep.subr.bf16.mxu0 %v17672_v11  ;;  %v17677_v24 = vld [vmem:[#allocation6 + $0x8] ss:$52 sps:$4 sm:$0xff]   ;;  %v17728_v11 = vld [vmem:[%s23892_s5 + $0x260] sm:$0xff]   ;;  %v17729_v55 = vld [vmem:[%s23892_s5 + $0x2f0] sm:$0xff]  }
 0x51a   : > { %9343 = vst.msk [vmem:[#allocation6 + $0x44] sm:$0xf] %vm8637_vm8, %v9339_v7 }
 0x51c   : > { %v9633_v6 = vpop.permute.xlu0 %9632  ;;  %17284 = vmatpush3.bf16.msra.mxu0 %v17675_v15  ;;  %v17733_v15 = vld [vmem:[%s23892_s5 + $0x220] sm:$0xff]  }
 0x51d   : > { %9638 = vst.msk [vmem:[#allocation6 + $0x18] sm:$0xf] %vm8637_vm8, %v9633_v6  ;;  %v9399_v5 = vpop.permute.xlu1 %9398  ;;  %v17679_v14 = vld [vmem:[#allocation6 + $0xc] ss:$52 sps:$4 sm:$0xff]   ;;  %17285 = vmatprep.subr.bf16.mxu0 %v17680_v33  ;;  %v17734_v33 = vld [vmem:[%s23892_s5 + $0x2b0] sm:$0xff]   ;;  %v17735_v6 = vld [vmem:[%s23892_s5 + $0x258] sm:$0xff]  }
 0x51e   : > { %9403 = vst.msk [vmem:[#allocation6 + $0x48] sm:$0xf] %vm8637_vm8, %v9399_v5  ;;  %11429 = vmatprep.mubr.bf16.mxu1 %v17679_v14  ;;  %v17738_v5 = vld [vmem:[%s23892_s5 + $0x2a8] sm:$0xff]   ;;  %v17740_v14 = vld [vmem:[%s23892_s5 + $0x2e0] sm:$0xff]  }
 0x51f   : > { %11430 = vmatmul.mubr.bf16.vlgmr.msra.gmra.mxu1 %v17677_v24  ;;  %v17739_v24 = vld [vmem:[%s23892_s5 + $0x250] sm:$0xff]  }
 0x520   : > { %v9741_v18 = vpop.permute.xlu0 %9740  ;;  %17286 = vmatpush3.bf16.msra.mxu0 %v17682_v27  ;;  %17304 = vmatpush3.bf16.msra.mxu1 %v17683_v44  ;;  %v17736_v27 = vld [vmem:[%s23892_s5 + $0x2e8] sm:$0xff]   ;;  %v17737_v44 = vld [vmem:[%s23892_s5 + $0x218] sm:$0xff]  }
 0x521   : > { %9746 = vst.msk [vmem:[#allocation6 + $0x1c] sm:$0xf] %vm8637_vm8, %v9741_v18  ;;  %v9635_v42 = vpop.permute.xlu1 %9634  ;;  %17287 = vmatprep.subr.bf16.mxu0 %v17684_v36  ;;  %17305 = vmatprep.subr.bf16.mxu1 %v17685_v23  ;;  %v17690_v62 = vld [vmem:[#allocation6 + $0x10] ss:$52 sps:$4 sm:$0xff]   ;;  %v17743_v18 = vld [vmem:[%s23892_s5 + $0x248] sm:$0xff]  }
 0x522   : > { %9639 = vst.msk [vmem:[#allocation6 + $0x4c] sm:$0xf] %vm8637_vm8, %v9635_v42  ;;  %v17741_v36 = vld [vmem:[%s23892_s5 + $0x210] sm:$0xff]   ;;  %v17742_v23 = vld [vmem:[%s23892_s5 + $0x2a0] sm:$0xff]   ;;  %v17744_v42 = vld [vmem:[%s23892_s5 + $0x2d8] sm:$0xff]  }
 0x524   : > { %v9889_v54 = vpop.permute.xlu0 %9888  ;;  %17288 = vmatpush3.bf16.msra.mxu0 %v17686_v34  ;;  %17306 = vmatpush3.bf16.msra.mxu1 %v17687_v35  ;;  %v17745_v34 = vld [vmem:[%s23892_s5 + $0x208] sm:$0xff]   ;;  %v17746_v35 = vld [vmem:[%s23892_s5 + $0x298] sm:$0xff]  }
 0x525   : > { %9894 = vst.msk [vmem:[#allocation6 + $0x20] sm:$0xf] %vm8637_vm8, %v9889_v54  ;;  %v17692_v3 = vld [vmem:[#allocation6 + $0x14] ss:$52 sps:$4 sm:$0xff]   ;;  %v9743_v31 = vpop.permute.xlu1 %9742  ;;  %17289 = vmatprep.subr.bf16.mxu0 %v17689_v41  ;;  %17307 = vmatprep.subr.bf16.mxu1 %v17693_v61  ;;  %v17747_v41 = vld [vmem:[%s23892_s5 + $0x240] sm:$0xff]  }
 0x526   : > { %9747 = vst.msk [vmem:[#allocation6 + $0x50] sm:$0xf] %vm8637_vm8, %v9743_v31  ;;  %11470 = vmatprep.mubr.bf16.mxu0 %v17692_v3  ;;  %v17748_v61 = vld [vmem:[%s23892_s5 + $0x2d0] sm:$0xff]   ;;  %v17749_v54 = vld [vmem:[%s23892_s5 + $0x200] sm:$0xff]   ;;  %v17751_v3 = vld [vmem:[%s23892_s5 + $0x2c8] sm:$0xff]  }
 0x527   : > { %v17752_v31 = vld [vmem:[%s23892_s5 + $0x288] sm:$0xff]  }
 0x528   : > { %v10085_v17 = vpop.permute.xlu0 %10084  ;;  %17290 = vmatpush3.bf16.msra.mxu0 %v17694_v63  ;;  %17308 = vmatpush3.bf16.msra.mxu1 %v17695_v60  ;;  %v17750_v63 = vld [vmem:[%s23892_s5 + $0x290] sm:$0xff]   ;;  %v17753_v60 = vld [vmem:[%s23892_s5 + $0x318] sm:$0xff]  }
 0x529   : > { %10090 = vst.msk [vmem:[#allocation6 + $0x24] sm:$0xf] %vm8637_vm8, %v10085_v17  ;;  %v9891_v38 = vpop.permute.xlu1 %9890  ;;  %17291 = vmatprep.subr.bf16.mxu0 %v17696_v0  ;;  %17309 = vmatprep.subr.bf16.mxu1 %v17697_v53  ;;  %v17707_v32 = vld [vmem:[#allocation6 + $0x18] ss:$52 sps:$4 sm:$0xff]   ;;  %v18428_v53 = vmov 0.0   ;;  %v17754_v17 = vld [vmem:[%s23892_s5 + $0x2c0] sm:$0xff]  }
 0x52a   : > { %9895 = vst.msk [vmem:[#allocation6 + $0x54] sm:$0xf] %vm8637_vm8, %v9891_v38  ;;  %v17755_v38 = vld [vmem:[%s23892_s5 + $0x280] sm:$0xff]  }
 0x52c   : > { %v10147_v39 = vpop.permute.xlu0 %10146  ;;  %17292 = vmatpush3.bf16.msra.mxu0 %v17699_v8  ;;  %17310 = vmatpush3.bf16.msra.mxu1 %v17700_v52  ;;  %v17756_v8 = vld [vmem:[%s23892_s5 + $0x310] sm:$0xff]   ;;  %v17757_v52 = vld [vmem:[%s23892_s5 + $0x308] sm:$0xff]  }
 0x52d   : > { %10152 = vst.msk [vmem:[#allocation6 + $0x28] sm:$0xf] %vm8637_vm8, %v10147_v39  ;;  %v10087_v49 = vpop.permute.xlu1 %10086  ;;  %v17709_v25 = vld [vmem:[#allocation6 + $0x1c] ss:$52 sps:$4 sm:$0xff]   ;;  %17293 = vmatprep.subr.bf16.mxu0 %v17701_v12  ;;  %17311 = vmatprep.subr.bf16.mxu1 %v17702_v50  ;;  %v17758_v50 = vld [vmem:[%s23892_s5 + $0x300] sm:$0xff]  }
 0x52e   : > { %10091 = vst.msk [vmem:[#allocation6 + $0x58] sm:$0xf] %vm8637_vm8, %v10087_v49  ;;  %11511 = vmatprep.mubr.bf16.mxu1 %v17709_v25  ;;  %v17759_v39 = vld [vmem:[#allocation6 + $0x30] ss:$52 sps:$4 sm:$0xff]   ;;  %v17762_v49 = vld [vmem:[%s23894_s7 + $0x74] ss:$8 sps:$4 sm:$0xff]  }
 0x52f   : > { %v17765_v25 = vld [vmem:[%s23894_s7 + $0x174] ss:$8 sps:$4 sm:$0xff]  }
 0x530   : > { %v10383_v45 = vpop.permute.xlu0 %10382  ;;  %17294 = vmatpush3.bf16.msra.mxu0 %v17703_v51  ;;  %17312 = vmatpush3.bf16.msra.mxu1 %v17704_v2  ;;  %v17760_v51 = vld [vmem:[%s23894_s7 + $0x70] ss:$8 sps:$4 sm:$0xff]  }
 0x531   : > { %10388 = vst.msk [vmem:[#allocation6 + $0x2c] sm:$0xf] %vm8637_vm8, %v10383_v45  ;;  %v10149_v48 = vpop.permute.xlu1 %10148  ;;  %17295 = vmatprep.subr.bf16.mxu0 %v17705_v13  ;;  %17313 = vmatprep.subr.bf16.mxu1 %v17706_v16  ;;  %v17719_v0 = vld [vmem:[#allocation6 + $0x20] ss:$52 sps:$4 sm:$0xff]   ;;  %v17763_v2 = vld [vmem:[%s23894_s7 + $0x170] ss:$8 sps:$4 sm:$0xff]  }
 0x532   : > { %10153 = vst.msk [vmem:[#allocation6 + $0x5c] sm:$0xf] %vm8637_vm8, %v10149_v48  ;;  %v17766_v13 = vld [vmem:[%s23894_s7 + $0x60] ss:$8 sps:$4 sm:$0xff]   ;;  %v17768_v16 = vld [vmem:[%s23894_s7 + $0x64] ss:$8 sps:$4 sm:$0xff]  }
 0x533   : > { %v17769_v45 = vld [vmem:[%s23894_s7 + $0x160] ss:$8 sps:$4 sm:$0xff]   ;;  %v17771_v48 = vld [vmem:[%s23894_s7 + $0x164] ss:$8 sps:$4 sm:$0xff]  }
 0x534   : > { %17296 = vmatpush3.bf16.msra.mxu0 %v17711_v21  ;;  %17314 = vmatpush3.bf16.msra.mxu1 %v17712_v40  ;;  %v17772_v21 = vld [vmem:[%s23894_s7 + $0x50] ss:$8 sps:$4 sm:$0xff]   ;;  %v17774_v40 = vld [vmem:[%s23894_s7 + $0x54] ss:$8 sps:$4 sm:$0xff]  }
 0x535   : > { %v10385_v1 = vpop.permute.xlu1 %10384  ;;  %17315 = vmatprep.subr.bf16.mxu1 %v17713_v26  ;;  %17325 = vmatprep.subr.bf16.mxu0 %v17714_v20  ;;  %v17721_v43 = vld [vmem:[#allocation6 + $0x24] ss:$52 sps:$4 sm:$0xff]   ;;  %v17777_v20 = vld [vmem:[%s23894_s7 + $0x154] ss:$8 sps:$4 sm:$0xff]  }
 0x536   : > { %10389 = vst.msk [vmem:[#allocation6 + $0x60] sm:$0xf] %vm8637_vm8, %v10385_v1  ;;  %v17775_v26 = vld [vmem:[%s23894_s7 + $0x150] ss:$8 sps:$4 sm:$0xff]   ;;  %v17778_v1 = vld [vmem:[%s23894_s7 + $0x40] ss:$8 sps:$4 sm:$0xff]   ;;  %vm12013_vm8 = vmor %vm22614_vm7, %vm12012_vm2 }
 0x537   : > { %11471 = vmatmul.mubr.bf16.vlgmr.msra.gmra.mxu0 %v17690_v62  ;;  %v17786_v62 = vld [vmem:[%s23894_s7 + $0x34] ss:$8 sps:$4 sm:$0xff]  }
 0x538   : > { %17316 = vmatpush3.bf16.msra.mxu1 %v17715_v29  ;;  %17326 = vmatpush3.bf16.msra.mxu0 %v17716_v30  ;;  %v17780_v29 = vld [vmem:[%s23894_s7 + $0x44] ss:$8 sps:$4 sm:$0xff]  }
 0x539   : > { %17317 = vmatprep.subr.bf16.mxu1 %v17717_v46  ;;  %17327 = vmatprep.subr.bf16.mxu0 %v17718_v28  ;;  %v17730_v12 = vld [vmem:[#allocation6 + $0x28] ss:$52 sps:$4 sm:$0xff]   ;;  %v17783_v30 = vld [vmem:[%s23894_s7 + $0x144] ss:$8 sps:$4 sm:$0xff]   ;;  %v17784_v28 = vld [vmem:[%s23894_s7 + $0x30] ss:$8 sps:$4 sm:$0xff]  }
 0x53a   : > { %11552 = vmatprep.mubr.bf16.mxu0 %v17721_v43  ;;  %v17781_v46 = vld [vmem:[%s23894_s7 + $0x140] ss:$8 sps:$4 sm:$0xff]   ;;  %v17789_v43 = vld [vmem:[%s23894_s7 + $0x134] ss:$8 sps:$4 sm:$0xff]  }
 0x53c   : > { %17318 = vmatpush3.bf16.msra.mxu1 %v17722_v57  ;;  %17328 = vmatpush3.bf16.msra.mxu0 %v17723_v10  ;;  %v17792_v57 = vld [vmem:[%s23894_s7 + $0x24] ss:$8 sps:$4 sm:$0xff]   ;;  %v17787_v10 = vld [vmem:[%s23894_s7 + $0x130] ss:$8 sps:$4 sm:$0xff]  }
 0x53d   : > { %17329 = vmatprep.subr.bf16.mxu0 %v17724_v22  ;;  %17347 = vmatprep.subr.bf16.mxu1 %v17725_v9  ;;  %v17732_v7 = vld [vmem:[#allocation6 + $0x2c] ss:$52 sps:$4 sm:$0xff]  }
 0x53e   : > { %v17790_v22 = vld [vmem:[%s23894_s7 + $0x20] ss:$8 sps:$4 sm:$0xff]   ;;  %v17795_v9 = vld [vmem:[%s23894_s7 + $0x124] ss:$8 sps:$4 sm:$0xff]  }
 0x53f   : > { %11512 = vmatmul.mubr.bf16.vlgmr.msra.gmra.mxu1 %v17707_v32  ;;  %v17796_v32 = vld [vmem:[%s23894_s7 + $0x10] ss:$8 sps:$4 sm:$0xff]  }
 0x540   : > { %17330 = vmatpush3.bf16.msra.mxu0 %v17726_v59  ;;  %17348 = vmatpush3.bf16.msra.mxu1 %v17727_v58  ;;  %v17798_v59 = vld [vmem:[%s23894_s7 + $0x14] ss:$8 sps:$4 sm:$0xff]   ;;  %v17793_v58 = vld [vmem:[%s23894_s7 + $0x120] ss:$8 sps:$4 sm:$0xff]  }
 0x541   : > { %17331 = vmatprep.subr.bf16.mxu0 %v17728_v11  ;;  %17349 = vmatprep.subr.bf16.mxu1 %v17729_v55  ;;  %v17801_v11 = vld [vmem:[%s23894_s7 + $0x114] ss:$8 sps:$4 sm:$0xff]   ;;  %v17804_v55 = vld [vmem:[%s23894_s7 + $0x4] ss:$8 sps:$4 sm:$0xff]  }
 0x542   : > { %11593 = vmatprep.mubr.bf16.mxu1 %v17732_v7  ;;  %v17799_v7 = vld [vmem:[%s23894_s7 + $0x110] ss:$8 sps:$4 sm:$0xff]  }
 0x544   : > { %17332 = vmatpush3.bf16.msra.mxu0 %v17733_v15  ;;  %17350 = vmatpush3.bf16.msra.mxu1 %v17734_v33  ;;  %v17802_v15 = vld [vmem:[%s23894_s7] ss:$8 sps:$4 sm:$0xff]   ;;  %v17807_v33 = vld [vmem:[%s23894_s7 + $0x104] ss:$8 sps:$4 sm:$0xff]  }
 0x545   : > { %17333 = vmatprep.subr.bf16.mxu0 %v17735_v6  ;;  %17351 = vmatprep.subr.bf16.mxu1 %v17736_v27  ;;  %v17810_v6 = vld [vmem:[%s23894_s7 + $0xf4] ss:$8 sps:$4 sm:$0xff]   ;;  %v17805_v27 = vld [vmem:[%s23894_s7 + $0x100] ss:$8 sps:$4 sm:$0xff]  }
 0x548   : > { %17334 = vmatpush3.bf16.msra.mxu0 %v17737_v44  ;;  %17352 = vmatpush3.bf16.msra.mxu1 %v17738_v5  ;;  %v17808_v44 = vld [vmem:[%s23894_s7 + $0xf0] ss:$8 sps:$4 sm:$0xff]   ;;  %v17813_v5 = vld [vmem:[%s23894_s7 + $0x1f4] ss:$8 sps:$4 sm:$0xff]  }
 0x549   : > { %17335 = vmatprep.subr.bf16.mxu0 %v17739_v24  ;;  %17353 = vmatprep.subr.bf16.mxu1 %v17740_v14  ;;  %v17816_v24 = vld [vmem:[%s23894_s7 + $0xe4] ss:$8 sps:$4 sm:$0xff]   ;;  %v17811_v14 = vld [vmem:[%s23894_s7 + $0x1f0] ss:$8 sps:$4 sm:$0xff]  }
 0x54c   : > { %17336 = vmatpush3.bf16.msra.mxu0 %v17741_v36  ;;  %17354 = vmatpush3.bf16.msra.mxu1 %v17742_v23  ;;  %v17814_v36 = vld [vmem:[%s23894_s7 + $0xe0] ss:$8 sps:$4 sm:$0xff]   ;;  %v17819_v23 = vld [vmem:[%s23894_s7 + $0x1e4] ss:$8 sps:$4 sm:$0xff]  }
 0x54d   : > { %17337 = vmatprep.subr.bf16.mxu0 %v17743_v18  ;;  %17355 = vmatprep.subr.bf16.mxu1 %v17744_v42  ;;  %v17822_v18 = vld [vmem:[%s23894_s7 + $0xd4] ss:$8 sps:$4 sm:$0xff]   ;;  %v17817_v42 = vld [vmem:[%s23894_s7 + $0x1e0] ss:$8 sps:$4 sm:$0xff]  }
 0x550   : > { %17338 = vmatpush3.bf16.msra.mxu0 %v17745_v34  ;;  %17356 = vmatpush3.bf16.msra.mxu1 %v17746_v35  ;;  %v17820_v34 = vld [vmem:[%s23894_s7 + $0xd0] ss:$8 sps:$4 sm:$0xff]   ;;  %v17825_v35 = vld [vmem:[%s23894_s7 + $0x1d4] ss:$8 sps:$4 sm:$0xff]  }
 0x551   : > { %17339 = vmatprep.subr.bf16.mxu0 %v17747_v41  ;;  %17357 = vmatprep.subr.bf16.mxu1 %v17748_v61  ;;  %v17828_v41 = vld [vmem:[%s23894_s7 + $0xc4] ss:$8 sps:$4 sm:$0xff]   ;;  %v17823_v61 = vld [vmem:[%s23894_s7 + $0x1d0] ss:$8 sps:$4 sm:$0xff]  }
 0x554   : > { %17340 = vmatpush3.bf16.msra.mxu0 %v17749_v54  ;;  %17358 = vmatpush3.bf16.msra.mxu1 %v17750_v63  ;;  %v17826_v54 = vld [vmem:[%s23894_s7 + $0xc0] ss:$8 sps:$4 sm:$0xff]   ;;  %v17831_v63 = vld [vmem:[%s23894_s7 + $0x1c4] ss:$8 sps:$4 sm:$0xff]  }
 0x555   : > { %17359 = vmatprep.subr.bf16.mxu1 %v17751_v3  ;;  %17457 = vmatprep.subr.bf16.mxu0 %v18428_v53  ;;  %v17834_v3 = vld [vmem:[%s23894_s7 + $0xb4] ss:$8 sps:$4 sm:$0xff]  }
 0x557   : > { %11553 = vmatmul.mubr.bf16.vlgmr.msra.gmra.mxu0 %v17719_v0  ;;  %v17837_v0 = vld [vmem:[%s23894_s7 + $0x1b4] ss:$8 sps:$4 sm:$0xff]  }
 0x558   : > { %17360 = vmatpush3.bf16.msra.mxu1 %v17752_v31  ;;  %17458 = vmatpush3.bf16.msra.mxu0 %v17753_v60  ;;  %v17829_v31 = vld [vmem:[%s23894_s7 + $0x1c0] ss:$8 sps:$4 sm:$0xff]   ;;  %v17832_v60 = vld [vmem:[%s23894_s7 + $0xb0] ss:$8 sps:$4 sm:$0xff]  }
 0x559   : > { %17361 = vmatprep.subr.bf16.mxu1 %v17754_v17  ;;  %17459 = vmatprep.subr.bf16.mxu0 %v18428_v53  ;;  %v17840_v17 = vld [vmem:[%s23894_s7 + $0xa4] ss:$8 sps:$4 sm:$0xff]  }
 0x55a   : > { %17465 = vmatprep.mubr.msk.bf16.mxu0 %vm18429_vm10, %v18428_v53 }
 0x55c   : > { %17362 = vmatpush3.bf16.msra.mxu1 %v17755_v38  ;;  %17460 = vmatpush3.bf16.msra.mxu0 %v17756_v8  ;;  %v17835_v38 = vld [vmem:[%s23894_s7 + $0x1b0] ss:$8 sps:$4 sm:$0xff]   ;;  %v17838_v8 = vld [vmem:[%s23894_s7 + $0xa0] ss:$8 sps:$4 sm:$0xff]  }
 0x55d   : > { %17461 = vmatprep.subr.bf16.mxu0 %v18428_v53  ;;  %15345 = vmatprep.subr.bf16.mxu1 %v17765_v25  ;;  %v17847_v25 = vld [vmem:[%s23894_s7 + $0x190] ss:$8 sps:$4 sm:$0xff]  }
 0x55f   : > { %11594 = vmatmul.mubr.bf16.vlgmr.msra.gmra.mxu1 %v17730_v12  ;;  %v17846_v12 = vld [vmem:[%s23894_s7 + $0x94] ss:$8 sps:$4 sm:$0xff]  }
 0x560   : > { %17462 = vmatpush3.bf16.msra.mxu0 %v17757_v52  ;;  %15346 = vmatpush1.bf16.msra.mxu1 %v17763_v2  ;;  %v17843_v52 = vld [vmem:[%s23894_s7 + $0x1a4] ss:$8 sps:$4 sm:$0xff]  }
 0x561   : > { %17463 = vmatprep.subr.bf16.mxu0 %v18428_v53  ;;  %15347 = vmatprep.subr.bf16.mxu1 %v17771_v48 }
 0x564   : > { %17464 = vmatpush3.bf16.msra.mxu0 %v17758_v50  ;;  %15348 = vmatpush1.bf16.msra.mxu1 %v17769_v45  ;;  %v17841_v50 = vld [vmem:[%s23894_s7 + $0x1a0] ss:$8 sps:$4 sm:$0xff]   ;;  %v17858_v45 = vld [vmem:[%s23894_s7 + $0x274] ss:$8 sps:$4 sm:$0xff]  }
 0x565   : > { %15304 = vmatprep.subr.bf16.mxu0 %v17762_v49  ;;  %15349 = vmatprep.subr.bf16.mxu1 %v17777_v20  ;;  %v17852_v49 = vld [vmem:[%s23894_s7 + $0x84] ss:$8 sps:$4 sm:$0xff]  }
 0x567   : > { %17466 = vmatmul.mubr.msk.bf16.vlgmr.msra.gmra.mxu0 %vm11352_vm13, %v17759_v39  ;;  %v17844_v39 = vld [vmem:[%s23894_s7 + $0x90] ss:$8 sps:$4 sm:$0xff]  }
 0x568   : > { %15305 = vmatpush1.bf16.msra.mxu0 %v17760_v51  ;;  %15350 = vmatpush1.bf16.msra.mxu1 %v17775_v26  ;;  %v17849_v51 = vld [vmem:[%s23894_s7 + $0x194] ss:$8 sps:$4 sm:$0xff]  }
 0x569   : > { %15306 = vmatprep.subr.bf16.mxu0 %v17768_v16  ;;  %15351 = vmatprep.subr.bf16.mxu1 %v17783_v30  ;;  %v17855_v16 = vld [vmem:[%s23894_s7 + $0x184] ss:$8 sps:$4 sm:$0xff]  }
 0x56c   : > { %15307 = vmatpush1.bf16.msra.mxu0 %v17766_v13  ;;  %15352 = vmatpush1.bf16.msra.mxu1 %v17781_v46  ;;  %v17850_v13 = vld [vmem:[%s23894_s7 + $0x80] ss:$8 sps:$4 sm:$0xff]  }
 0x56d   : > { %15308 = vmatprep.subr.bf16.mxu0 %v17774_v40  ;;  %15353 = vmatprep.subr.bf16.mxu1 %v17789_v43  ;;  %v17862_v40 = vld [vmem:[%s23894_s7 + $0x374] ss:$8 sps:$4 sm:$0xff]  }
 0x570   : > { %15309 = vmatpush1.bf16.msra.mxu0 %v17772_v21  ;;  %15354 = vmatpush1.bf16.msra.mxu1 %v17787_v10  ;;  %v17853_v21 = vld [vmem:[%s23894_s7 + $0x180] ss:$8 sps:$4 sm:$0xff]  }
 0x571   : > { %15310 = vmatprep.subr.bf16.mxu0 %v17780_v29  ;;  %15355 = vmatprep.subr.bf16.mxu1 %v17795_v9 }
 0x574   : > { %15311 = vmatpush1.bf16.msra.mxu0 %v17778_v1  ;;  %15356 = vmatpush1.bf16.msra.mxu1 %v17793_v58 }
 0x575   : > { %15312 = vmatprep.subr.bf16.mxu0 %v17786_v62  ;;  %15357 = vmatprep.subr.bf16.mxu1 %v17801_v11  ;;  %v16467_v11 = vld [vmem:[%s23893_s6] ss:$0 sm:$0xff] }
 0x578   : > { %15313 = vmatpush1.bf16.msra.mxu0 %v17784_v28  ;;  %15358 = vmatpush1.bf16.msra.mxu1 %v17799_v7 }
 0x579   : > { %15314 = vmatprep.subr.bf16.mxu0 %v17792_v57  ;;  %15359 = vmatprep.subr.bf16.mxu1 %v17807_v33 }
 0x57c   : > { %15315 = vmatpush1.bf16.msra.mxu0 %v17790_v22  ;;  %15360 = vmatpush1.bf16.msra.mxu1 %v17805_v27 }
 0x57d   : > { %15316 = vmatprep.subr.bf16.mxu0 %v17798_v59  ;;  %15361 = vmatprep.subr.bf16.mxu1 %v17813_v5 }
 0x580   : > { %15317 = vmatpush1.bf16.msra.mxu0 %v17796_v32  ;;  %15362 = vmatpush2.bf16.msra.mxu1 %v17811_v14 }
 0x581   : > { %15318 = vmatprep.subr.bf16.mxu0 %v17804_v55  ;;  %15363 = vmatprep.subr.bf16.mxu1 %v17819_v23 }
 0x584   : > { %15319 = vmatpush1.bf16.msra.mxu0 %v17802_v15  ;;  %15364 = vmatpush2.bf16.msra.mxu1 %v17817_v42 }
 0x585   : > { %15320 = vmatprep.subr.bf16.mxu0 %v17810_v6  ;;  %15365 = vmatprep.subr.bf16.mxu1 %v17825_v35 }
 0x588   : > { %15321 = vmatpush2.bf16.msra.mxu0 %v17808_v44  ;;  %15366 = vmatpush2.bf16.msra.mxu1 %v17823_v61 }
 0x589   : > { %15322 = vmatprep.subr.bf16.mxu0 %v17816_v24  ;;  %15367 = vmatprep.subr.bf16.mxu1 %v17831_v63 }
 0x58c   : > { %15323 = vmatpush2.bf16.msra.mxu0 %v17814_v36  ;;  %15368 = vmatpush2.bf16.msra.mxu1 %v17829_v31 }
 0x58d   : > { %15324 = vmatprep.subr.bf16.mxu0 %v17822_v18  ;;  %15369 = vmatprep.subr.bf16.mxu1 %v17837_v0 }
 0x590   : > { %15325 = vmatpush2.bf16.msra.mxu0 %v17820_v34  ;;  %15370 = vmatpush2.bf16.msra.mxu1 %v17835_v38 }
 0x591   : > { %15326 = vmatprep.subr.bf16.mxu0 %v17828_v41  ;;  %15371 = vmatprep.subr.bf16.mxu1 %v17843_v52 }
 0x594   : > { %15327 = vmatpush2.bf16.msra.mxu0 %v17826_v54  ;;  %15372 = vmatpush2.bf16.msra.mxu1 %v17841_v50 }
 0x595   : > { %15328 = vmatprep.subr.bf16.mxu0 %v17834_v3  ;;  %15373 = vmatprep.subr.bf16.mxu1 %v17849_v51 }
 0x598   : > { %15329 = vmatpush2.bf16.msra.mxu0 %v17832_v60  ;;  %15374 = vmatpush2.bf16.msra.mxu1 %v17847_v25 }
 0x599   : > { %15330 = vmatprep.subr.bf16.mxu0 %v17840_v17  ;;  %15375 = vmatprep.subr.bf16.mxu1 %v17855_v16 }
 0x59c   : > { %15331 = vmatpush2.bf16.msra.mxu0 %v17838_v8  ;;  %15376 = vmatpush2.bf16.msra.mxu1 %v17853_v21 }
 0x59d   : > { %15332 = vmatprep.subr.bf16.mxu0 %v17846_v12  ;;  %15427 = vmatprep.subr.bf16.mxu1 %v17862_v40 }
 0x5a0   : > { %15333 = vmatpush2.bf16.msra.mxu0 %v17844_v39 }
 0x5a1   : > { %15334 = vmatprep.subr.bf16.mxu0 %v17852_v49 }
 0x5a4   : > { %15335 = vmatpush2.bf16.msra.mxu0 %v17850_v13 }
 0x5a5   : > { %15386 = vmatprep.subr.bf16.mxu0 %v17858_v45 }
 0x5d7   : > { %v17253_v2 = vpop.f32.mrf.mxu0 }
 0x5d9   : > { %v17254_v48 = vpop.f32.mrf.mxu0 }
 0x5da   : > { %v17255_v32 = vadd.f32 %v17254_v48, %v17253_v2 }
 0x5db   : > { %v17256_v26 = vpop.f32.mrf.mxu0 }
 0x5dc   : > { %v11391_v6 = vadd.f32 %v17255_v32, %v16467_v11 }
 0x5dd   : > { %v17257_v1 = vpop.f32.mrf.mxu0 }
 0x5de   : > { %v17258_v55 = vadd.f32 %v17257_v1, %v17256_v26 }
 0x5df   : > { %v17275_v20 = vpop.f32.mrf.mxu1 }
 0x5e0   : > { %v11394_v24 = vadd.f32 %v17258_v55, %v16467_v11 }
 0x5e1   : > { %v17276_v29 = vpop.f32.mrf.mxu1 }
 0x5e2   : > { %v17277_v7 = vadd.f32 %v17276_v29, %v17275_v20 }
 0x5e3   : > { %v17278_v62 = vpop.f32.mrf.mxu1 }
 0x5e4   : > { %v11432_v14 = vadd.f32 %v17277_v7, %v11391_v6 }
 0x5e5   : > { %v17279_v28 = vpop.f32.mrf.mxu1 }
 0x5e6   : > { %v17280_v27 = vadd.f32 %v17279_v28, %v17278_v62 }
 0x5e8   : > { %v11435_v34 = vadd.f32 %v17280_v27, %v11394_v24 }
 0x5f7   : > { %v17297_v30 = vpop.f32.mrf.mxu0 }
 0x5f9   : > { %v17298_v46 = vpop.f32.mrf.mxu0 }
 0x5fa   : > { %v17299_v44 = vadd.f32 %v17298_v46, %v17297_v30 }
 0x5fb   : > { %v17300_v43 = vpop.f32.mrf.mxu0 }
 0x5fc   : > { %v11473_v35 = vadd.f32 %v17299_v44, %v11432_v14 }
 0x5fd   : > { %v17301_v10 = vpop.f32.mrf.mxu0 }
 0x5fe   : > { %v17302_v36 = vadd.f32 %v17301_v10, %v17300_v43 }
 0x5ff   : > { %v17319_v57 = vpop.f32.mrf.mxu1 }
 0x600   : > { %v11476_v63 = vadd.f32 %v17302_v36, %v11435_v34 }
 0x601   : > { %v17320_v22 = vpop.f32.mrf.mxu1 }
 0x602   : > { %v17321_v23 = vadd.f32 %v17320_v22, %v17319_v57 }
 0x603   : > { %v17322_v59 = vpop.f32.mrf.mxu1 }
 0x604   : > { %v11514_v3 = vadd.f32 %v17321_v23, %v11473_v35 }
 0x605   : > { %v17323_v15 = vpop.f32.mrf.mxu1 }
 0x606   : > { %v17324_v41 = vadd.f32 %v17323_v15, %v17322_v59 }
 0x608   : > { %v11517_v17 = vadd.f32 %v17324_v41, %v11476_v63 }
 0x617   : > { %v17341_v9 = vpop.f32.mrf.mxu0 }
 0x619   : > { %v17342_v58 = vpop.f32.mrf.mxu0 }
 0x61a   : > { %v17343_v61 = vadd.f32 %v17342_v58, %v17341_v9 }
 0x61b   : > { %v17344_v33 = vpop.f32.mrf.mxu0 }
 0x61c   : > { %v11555_v38 = vadd.f32 %v17343_v61, %v11514_v3 }
 0x61d   : > { %v17345_v18 = vpop.f32.mrf.mxu0 }
 0x61e   : > { %v17346_v31 = vadd.f32 %v17345_v18, %v17344_v33 }
 0x61f   : > { %v17363_v5 = vpop.f32.mrf.mxu1 }
 0x620   : > { %v11558_v12 = vadd.f32 %v17346_v31, %v11517_v17  ;;  %v16595_v17 = vld.sshfl [vmem:[#allocation4] sm:$0x10 pattern:$0x75316420] }
 0x621   : > { %v17364_v42 = vpop.f32.mrf.mxu1 }
 0x622   : > { %v17365_v60 = vadd.f32 %v17364_v42, %v17363_v5 }
 0x623   : > { %v17366_v54 = vpop.f32.mrf.mxu1 }
 0x624   : > { %v11596_v50 = vadd.f32 %v17365_v60, %v11555_v38 }
 0x625   : > { %v17367_v0 = vpop.f32.mrf.mxu1 }
 0x626   : > { %v17368_v8 = vadd.f32 %v17367_v0, %v17366_v54 }
 0x627   : > { %v11636_v52 = vpop.f32.mrf.mxu0 }
 0x628   : > { %v11637_v51 = vadd.f32 %v11636_v52, %v11596_v50  ;;  %v11599_v49 = vadd.f32 %v17368_v8, %v11558_v12  ;;  %v11800_v52 = vld [vmem:[#allocation4 + $0x2] sm:$0x3] }
 0x629   : > { %v17467_v39 = vpop.f32.mrf.mxu0 }
 0x62a   : > { %v11643_v16 = vmax.f32 %v11637_v51, 0.0 }
 0x62b   : > { %v11639_v2 = vpop.f32.mrf.mxu0 }
 0x62c   : > { %v11640_v25 = vadd.f32 %v11639_v2, %v11599_v49  ;;  %v11803_v2 = vld [vmem:[#allocation4 + $0x4] sm:$0x3] }
 0x62d   : > { %v17468_v13 = vpop.f32.mrf.mxu0 }
 0x62e   : > { %v11644_v45 = vmax.f32 %v11640_v25, 0.0 }
 0x630   : > { %v11661_v48 = vpack.c.bf16 %v11644_v45, %v11643_v16  ;;  %v16582_v21 = vpack.c.bf16 %v11644_v45, %v11644_v45  ;;  %v11829_v16 = vld [vmem:[#allocation4 + $0xa] sm:$0x3]  ;;  %v11832_v45 = vld [vmem:[#allocation4 + $0xc] sm:$0x3] }
 0x632   : > { %v11670_v40 = vrot.slane %v11661_v48, %v18739_v47  ;;  %v11677_v26 = vrot.slane %v16582_v21, %v18739_v47 }
 0x634   : > { %v11678_v20 = vcombine.high %v11670_v40, %v11670_v40  ;;  %v11679_v1 = vcombine.high %v11677_v26, %v11677_v26  ;;  %v11686_v29 = vrot.slane %v11670_v40, %v18739_v47  ;;  %v11693_v30 = vrot.slane %v11677_v26, %v18739_v47 }
 0x636   : > { %v11700_v62 = vrot.slane %v11678_v20, %v18739_v47  ;;  %v11707_v46 = vrot.slane %v11679_v1, %v18739_v47  ;;  %v11708_v28 = vcombine.high %v11686_v29, %v11686_v29  ;;  %v11709_v43 = vcombine.high %v11693_v30, %v11693_v30 }
 0x637   : > { %v11718_v57 = vrot.slane %v11686_v29, %v18742_v56  ;;  %v11732_v10 = vrot.slane %v11693_v30, %v18742_v56 }
 0x638   : > { %v11710_v22 = vcombine.high %v11700_v62, %v11700_v62  ;;  %v11711_v9 = vcombine.high %v11707_v46, %v11707_v46  ;;  %v11725_v59 = vrot.slane %v11700_v62, %v18742_v56  ;;  %v11739_v58 = vrot.slane %v11707_v46, %v18742_v56  ;;  %v22595_v46 = vld.sshfl [vmem:[#allocation4] sm:$0x11 pattern:$0x75316420] }
 0x639   : > { %v11746_v32 = vrot.slane %v11718_v57, %v21464_v19  ;;  %v11760_v47 = vrot.slane %v11732_v10, %v21464_v19  ;;  %v11841_v11 = vrot.slane %v11708_v28, %v18742_v56  ;;  %v11855_v55 = vrot.slane %v11709_v43, %v18742_v56 }
 0x63a   : > { %v11753_v7 = vrot.slane %v11725_v59, %v21464_v19  ;;  %v11767_v15 = vrot.slane %v11739_v58, %v21464_v19  ;;  %v11848_v33 = vrot.slane %v11710_v22, %v18742_v56  ;;  %v11862_v6 = vrot.slane %v11711_v9, %v18742_v56  ;;  %v22601_v22 = vld.sshfl [vmem:[#allocation4 + $0x8] sm:$0x11 pattern:$0x75316420] }
 0x63b   : > { %v11768_v27 = vunpack.c.l.b16 %v11746_v32  ;;  %v11770_v44 = vunpack.c.l.b16 %v11760_v47  ;;  %v11869_v5 = vrot.slane %v11841_v11, %v21464_v19  ;;  %v11883_v24 = vrot.slane %v11855_v55, %v21464_v19 }
 0x63c   : > { %v11769_v14 = vunpack.c.l.b16 %v11753_v7  ;;  %v11771_v36 = vunpack.c.l.b16 %v11767_v15  ;;  %v11876_v23 = vrot.slane %v11848_v33, %v21464_v19  ;;  %v11890_v18 = vrot.slane %v11862_v6, %v21464_v19  ;;  %v11920_v7 = vld [vmem:[#allocation4 + $0x12] sm:$0x3]  ;;  %v11923_v15 = vld [vmem:[#allocation4 + $0x14] sm:$0x3] }
 0x63d   : > { %v11772_v42 = vrot.slane %v11768_v27, 7  ;;  %v11775_v34 = vrot.slane %v11770_v44, 7  ;;  %v11891_v35 = vunpack.c.l.b16 %v11869_v5  ;;  %v11893_v56 = vunpack.c.l.b16 %v11883_v24 }
 0x63e   : > { %v11773_v41 = vrot.slane %v11769_v14, 6  ;;  %v11776_v61 = vrot.slane %v11771_v36, 6  ;;  %v11806_v54 = vrot.slane %v11769_v14, 7  ;;  %v11808_v63 = vrot.slane %v11771_v36, 7 }
 0x63f   : > { %v11892_v3 = vunpack.c.l.b16 %v11876_v23  ;;  %v11894_v31 = vunpack.c.l.b16 %v11890_v18  ;;  %v11895_v60 = vrot.slane %v11891_v35, 7  ;;  %v11898_v0 = vrot.slane %v11893_v56, 7 }
 0x640   : > { %v11774_v38 = vsel %vm2693_vm6, %v11773_v41, %v11772_v42  ;;  %v11777_v8 = vsel %vm2693_vm6, %v11776_v61, %v11775_v34  ;;  %v11807_v12 = vsel %vm2693_vm6, %v11806_v54, %v11768_v27  ;;  %v11809_v50 = vsel %vm2693_vm6, %v11808_v63, %v11770_v44  ;;  %v11949_v27 = vld [vmem:[#allocation4 + $0x1a] sm:$0x3]  ;;  %v11952_v44 = vld [vmem:[#allocation4 + $0x1c] sm:$0x3]  ;;  %v11955_v61 = vld [vmem:[#allocation4] sm:$0x1] }
 0x641   : > { %v11778_v39 = vpack.c.b16 %v11774_v38, %v11774_v38  ;;  %v11779_v51 = vpack.c.b16 %v11777_v8, %v11777_v8  ;;  %v11810_v25 = vpack.c.b16 %v11807_v12, %v11807_v12  ;;  %v11811_v13 = vpack.c.b16 %v11809_v50, %v11809_v50  ;;  %v22629_v42 = vld.sshfl [vmem:[#allocation4 + $0x10] sm:$0x11 pattern:$0x75316420]  ;;  %v11970_v54 = vld [vmem:[#allocation4 + $0x8] sm:$0x1] }
 0x642   : > { %v11896_v48 = vrot.slane %v11892_v3, 6  ;;  %v11899_v21 = vrot.slane %v11894_v31, 6  ;;  %v11926_v40 = vrot.slane %v11892_v3, 7  ;;  %v11928_v26 = vrot.slane %v11894_v31, 7 }
 0x643   : > { %v11786_v1 = vrot.slane %v11778_v39, %v21464_v19  ;;  %v11793_v29 = vrot.slane %v11779_v51, %v21464_v19  ;;  %v11818_v30 = vrot.slane %v11810_v25, %v21464_v19  ;;  %v11825_v62 = vrot.slane %v11811_v13, %v21464_v19  ;;  %v16606_v8 = vld.sshfl [vmem:[#allocation4 + $0x18] sm:$0x11 pattern:$0x75316420]  ;;  %v12125_v25 = vld [vmem:[#allocation4 + $0x10] sm:$0x1] }
 0x644   : > { %v11897_v28 = vsel %vm2693_vm6, %v11896_v48, %v11895_v60  ;;  %v11900_v43 = vsel %vm2693_vm6, %v11899_v21, %v11898_v0  ;;  %v11927_v57 = vsel %vm2693_vm6, %v11926_v40, %v11891_v35  ;;  %v11929_v10 = vsel %vm2693_vm6, %v11928_v26, %v11893_v56  ;;  %v12140_v13 = vld [vmem:[#allocation4 + $0x18] sm:$0x1] }
 0x645   : > { %v11801_v9 = vsel %vm22580_vm4, %v11786_v1, %v11800_v52  ;;  %v11804_v59 = vsel %vm22580_vm4, %v11793_v29, %v11803_v2  ;;  %v11830_v58 = vsel %vm22580_vm4, %v11818_v30, %v11829_v16  ;;  %v11833_v32 = vsel %vm22580_vm4, %v11825_v62, %v11832_v45  ;;  %v17999_v2 = vld [vmem:[%s23894_s7 + $0x404] ss:$8 sps:$4 sm:$0xff]  }
 0x646   : > { %11802 = vst [vmem:[#allocation4 + $0x2] sm:$0x3] %v11801_v9  ;;  %11805 = vst [vmem:[#allocation4 + $0x4] sm:$0x3] %v11804_v59  ;;  %v11901_v11 = vpack.c.b16 %v11897_v28, %v11897_v28  ;;  %v11902_v55 = vpack.c.b16 %v11900_v43, %v11900_v43  ;;  %v11930_v33 = vpack.c.b16 %v11927_v57, %v11927_v57  ;;  %vm12014_vm6 = vsmask.f32 6424 }
 0x647   : > { %11831 = vst [vmem:[#allocation4 + $0xa] sm:$0x3] %v11830_v58  ;;  %11834 = vst [vmem:[#allocation4 + $0xc] sm:$0x3] %v11833_v32  ;;  %v11931_v6 = vpack.c.b16 %v11929_v10, %v11929_v10  ;;  %v11995_v5 = vcombine.high %v22595_v46, %v22595_v46  ;;  %v12057_v24 = vcombine.high %v22601_v22, %v22601_v22  ;;  %v12019_v3 = vshrl.u32 %v22595_v46, 16 }
 0x648   : > { %v11909_v14 = vrot.slane %v11901_v11, %v21464_v19  ;;  %v11916_v36 = vrot.slane %v11902_v55, %v21464_v19  ;;  %v11938_v23 = vrot.slane %v11930_v33, %v21464_v19  ;;  %vm22640_vm13 = vmor %vm12013_vm8, %vm12014_vm6  ;;  %v12067_v60 = vshrl.u32 %v22601_v22, 16  ;;  %v16611_v57 = vld.sshfl [vmem:[#allocation4 + $0x10] sm:$0x10 pattern:$0x75316420] }
 0x649   : > { %v11945_v18 = vrot.slane %v11931_v6, %v21464_v19  ;;  %v12024_v31 = vshll.u32 %v11995_v5, 16  ;;  %v12072_v0 = vshll.u32 %v12057_v24, 16  ;;  %v12165_v38 = vcombine.high %v22629_v42, %v22629_v42  ;;  %vm22650_vm5 = vmor %vm22640_vm13, %vm12016_vm1 }
 0x64a   : > { %v11921_v34 = vsel %vm22580_vm4, %v11909_v14, %v11920_v7  ;;  %v11924_v35 = vsel %vm22580_vm4, %v11916_v36, %v11923_v15  ;;  %v11950_v56 = vsel %vm22580_vm4, %v11938_v23, %v11949_v27  ;;  %v12175_v21 = vshrl.u32 %v22629_v42, 16 }
 0x64b   : > { %v11953_v41 = vsel %vm22580_vm4, %v11945_v18, %v11952_v44  ;;  %11922 = vst [vmem:[#allocation4 + $0x12] sm:$0x3] %v11921_v34  ;;  %11925 = vst [vmem:[#allocation4 + $0x14] sm:$0x3] %v11924_v35  ;;  %v12213_v40 = vcombine.high %v16606_v8, %v16606_v8  ;;  %v12180_v29 = vshll.u32 %v12165_v38, 16  ;;  %v12223_v30 = vshrl.u32 %v16606_v8, 16 }
 0x64c   : > { %11951 = vst [vmem:[#allocation4 + $0x1a] sm:$0x3] %v11950_v56  ;;  %11954 = vst [vmem:[#allocation4 + $0x1c] sm:$0x3] %v11953_v41  ;;  %v12026_v62 = vsel %vm22650_vm5, %v12019_v3, %v12024_v31  ;;  %v12074_v9 = vsel %vm22650_vm5, %v12067_v60, %v12072_v0  ;;  %v17856_v8 = vld [vmem:[%s23894_s7 + $0x270] ss:$8 sps:$4 sm:$0xff]  }
 0x64d   : > { %v11956_v52 = vld [vmem:[#allocation4 + $0x2] sm:$0x1]  ;;  %v12281_v16 = vld [vmem:[#allocation4 + $0x4] sm:$0x1]  ;;  %v12228_v6 = vshll.u32 %v12213_v40, 16  ;;  %v12182_v18 = vsel %vm22650_vm5, %v12175_v21, %v12180_v29 }
 0x64e   : > { %v11971_v12 = vld [vmem:[#allocation4 + $0xa] sm:$0x1]  ;;  %v12280_v50 = vld [vmem:[#allocation4 + $0x2] sm:$0x1]  ;;  %v11959_v39 = vcombine.low %v11955_v61, %v11956_v52  ;;  %v12295_v22 = vld [vmem:[#allocation4 + $0xc] sm:$0x1] }
 0x64f   : > { %v11974_v51 = vcombine.low %v11970_v54, %v11971_v12  ;;  %v16586_v49 = vld.sshfl [vmem:[#allocation4 + $0x2] sm:$0x11 pattern:$0x75316420]  ;;  %v12284_v26 = vcombine.low %v12280_v50, %v12281_v16  ;;  %v12294_v10 = vld [vmem:[#allocation4 + $0xa] sm:$0x1]  ;;  %v12230_v56 = vsel %vm22650_vm5, %v12223_v30, %v12228_v6 }
 0x650   : > { %v12003_v45 = vcombine.high %v16586_v49, %v16586_v49  ;;  %v16591_v48 = vld.sshfl [vmem:[#allocation4 + $0xa] sm:$0x11 pattern:$0x75316420]  ;;  %v12028_v46 = vshrl.u32 %v16586_v49, 16  ;;  %v12298_v11 = vcombine.low %v12294_v10, %v12295_v22 }
 0x651   : > { %16583 = vst.sshfl [vmem:[#allocation7] sm:$0x11 pattern:$0x75316420] %v11959_v39  ;;  %v12065_v20 = vcombine.high %v16591_v48, %v16591_v48  ;;  %v12076_v59 = vshrl.u32 %v16591_v48, 16 }
 0x652   : > { %16584 = vst.sshfl [vmem:[#allocation7 + $0x2] sm:$0x11 pattern:$0x75316420] %v11974_v51  ;;  %v12033_v28 = vshll.u32 %v12003_v45, 16 }
 0x653   : > { %v22655_v1 = vld.sshfl [vmem:[#allocation4 + $0x2] sm:$0x10 pattern:$0x75316420]  ;;  %v12081_v58 = vshll.u32 %v12065_v20, 16 }
 0x654   : > { %v16597_v43 = vcombine.high %v16595_v17, %v22655_v1  ;;  %16615 = vst.sshfl [vmem:[#allocation7 + $0x14] sm:$0x11 pattern:$0x75316420] %v12284_v26  ;;  %v12126_v32 = vld [vmem:[#allocation4 + $0x12] sm:$0x1]  ;;  %v22664_v55 = vsel %vm22650_vm5, %v12028_v46, %v12033_v28 }
 0x655   : > { %v12141_v47 = vld [vmem:[#allocation4 + $0x1a] sm:$0x1]  ;;  %v12129_v7 = vcombine.low %v12125_v25, %v12126_v32  ;;  %v16602_v33 = vld.sshfl [vmem:[#allocation4 + $0x12] sm:$0x11 pattern:$0x75316420]  ;;  %v12036_v27 = vcombine.low %v12026_v62, %v22664_v55  ;;  %v22669_v44 = vsel %vm22650_vm5, %v12076_v59, %v12081_v58 }
 0x656   : > { %16598 = vst.sshfl [vmem:[#allocation7 + $0x8] sm:$0x11 pattern:$0x75316420] %v16597_v43  ;;  %v12144_v15 = vcombine.low %v12140_v13, %v12141_v47  ;;  %v12173_v5 = vcombine.high %v16602_v33, %v16602_v33  ;;  %v12084_v14 = vcombine.low %v12074_v9, %v22669_v44  ;;  %v12184_v42 = vshrl.u32 %v16602_v33, 16 }
 0x657   : > { %v16607_v24 = vld.sshfl [vmem:[#allocation4 + $0x1a] sm:$0x11 pattern:$0x75316420]  ;;  %v17865_v50 = vld [vmem:[%s23894_s7 + $0x264] ss:$8 sps:$4 sm:$0xff]  }
 0x658   : > { %16616 = vst.sshfl [vmem:[#allocation7 + $0x16] sm:$0x11 pattern:$0x75316420] %v12298_v11  ;;  %v12221_v36 = vcombine.high %v16607_v24, %v16607_v24  ;;  %v12189_v34 = vshll.u32 %v12173_v5, 16  ;;  %v12232_v41 = vshrl.u32 %v16607_v24, 16 }
 0x659   : > { %16599 = vst.sshfl [vmem:[#allocation7 + $0xa] sm:$0x11 pattern:$0x75316420] %v12129_v7  ;;  %v17860_v49 = vld [vmem:[%s23894_s7 + $0x370] ss:$8 sps:$4 sm:$0xff]  }
 0x65a   : > { %16600 = vst.sshfl [vmem:[#allocation7 + $0xc] sm:$0x11 pattern:$0x75316420] %v12144_v15  ;;  %v12237_v61 = vshll.u32 %v12221_v36, 16  ;;  %v12191_v54 = vsel %vm22650_vm5, %v12184_v42, %v12189_v34 }
 0x65b   : > { %v22672_v23 = vld.sshfl [vmem:[#allocation4 + $0x12] sm:$0x10 pattern:$0x75316420]  ;;  %v12192_v63 = vcombine.low %v12182_v18, %v12191_v54  ;;  %v17863_v13 = vld [vmem:[%s23894_s7 + $0x260] ss:$8 sps:$4 sm:$0xff]  }
 0x65c   : > { %16589 = vst.sshfl [vmem:[#allocation7 + $0x4] sm:$0x11 pattern:$0x75316420] %v12036_v27  ;;  %v16613_v35 = vcombine.high %v16611_v57, %v22672_v23  ;;  %v22683_v3 = vsel %vm22650_vm5, %v12232_v41, %v12237_v61  ;;  %v17869_v16 = vld [vmem:[%s23894_s7 + $0x364] ss:$8 sps:$4 sm:$0xff]  }
 0x65d   : > { %16594 = vst.sshfl [vmem:[#allocation7 + $0x6] sm:$0x11 pattern:$0x75316420] %v12084_v14  ;;  %v12240_v31 = vcombine.low %v12230_v56, %v22683_v3  ;;  %v17872_v21 = vld [vmem:[%s23894_s7 + $0x254] ss:$8 sps:$4 sm:$0xff]  }
 0x65e   : > { %16614 = vst.sshfl [vmem:[#allocation7 + $0x12] sm:$0x11 pattern:$0x75316420] %v16613_v35  ;;  %v12434_v29 = vld [vmem:[#allocation4 + $0x12] sm:$0x1] }
 0x65f   : > { %16605 = vst.sshfl [vmem:[#allocation7 + $0xe] sm:$0x11 pattern:$0x75316420] %v12192_v63  ;;  %v17867_v62 = vld [vmem:[%s23894_s7 + $0x360] ss:$8 sps:$4 sm:$0xff]  }
 0x660   : > { %16610 = vst.sshfl [vmem:[#allocation7 + $0x10] sm:$0x11 pattern:$0x75316420] %v12240_v31  ;;  %v17875_v43 = vld [vmem:[%s23894_s7 + $0x354] ss:$8 sps:$4 sm:$0xff]  }
 0x661   : > { %v16618_v40 = vld.sshfl [vmem:[#allocation4 + $0x4] sm:$0x11 pattern:$0x75316420]  ;;  %v12435_v9 = vld [vmem:[#allocation4 + $0x14] sm:$0x1] }
 0x662   : > { %v12327_v26 = vcombine.high %v16618_v40, %v16618_v40  ;;  %v16623_v20 = vld.sshfl [vmem:[#allocation4 + $0xc] sm:$0x11 pattern:$0x75316420]  ;;  %v12338_v57 = vshrl.u32 %v16618_v40, 16  ;;  %v12438_v47 = vcombine.low %v12434_v29, %v12435_v9 }
 0x663   : > { %v12375_v46 = vcombine.high %v16623_v20, %v16623_v20  ;;  %v16628_v28 = vld.sshfl [vmem:[#allocation4 + $0x4] sm:$0x10 pattern:$0x75316420]  ;;  %v17870_v59 = vld [vmem:[%s23894_s7 + $0x250] ss:$8 sps:$4 sm:$0xff]  }
 0x664   : > { %v12744_v60 = vld [vmem:[#allocation7] sm:$0xff]  ;;  %v12343_v10 = vshll.u32 %v12327_v26, 16  ;;  %v16629_v22 = vcombine.high %v22655_v1, %v16628_v28  ;;  %v12386_v58 = vshrl.u32 %v16623_v20, 16  ;;  %v17873_v1 = vld [vmem:[%s23894_s7 + $0x350] ss:$8 sps:$4 sm:$0xff]  }
 0x665   : > { %v13177_v0 = vrot.slane %v12744_v60, %v21464_v19  ;;  %v13170_v17 = vcombine.high %v12744_v60, %v12744_v60  ;;  %v12391_v32 = vshll.u32 %v12375_v46, 16  ;;  %v17878_v11 = vld [vmem:[%s23894_s7 + $0x244] ss:$8 sps:$4 sm:$0xff]   ;;  %v17876_v5 = vld [vmem:[%s23894_s7 + $0x240] ss:$8 sps:$4 sm:$0xff]  }
 0x666   : > { %v12745_v12 = vld [vmem:[#allocation7 + $0x8] sm:$0xff]  ;;  %v22731_v7 = vsel %vm22650_vm5, %v12338_v57, %v12343_v10  ;;  %16630 = vst.sshfl [vmem:[#allocation7 + $0x1c] sm:$0x11 pattern:$0x75316420] %v16629_v22 }
 0x667   : > { %v13185_v38 = vcombine.high %v13177_v0, %v13177_v0  ;;  %v13184_v52 = vrot.slane %v13170_v17, %v21464_v19  ;;  %v22695_v51 = vrot.slane %v12745_v12, %v21464_v19  ;;  %v13187_v25 = vcombine.high %v12745_v12, %v12745_v12  ;;  %16631 = vst.sshfl [vmem:[#allocation7 + $0x1e] sm:$0x11 pattern:$0x75316420] %v12438_v47  ;;  %v17881_v6 = vld [vmem:[%s23894_s7 + $0x344] ss:$8 sps:$4 sm:$0xff]  }
 0x668   : > { %v12346_v15 = vcombine.low %v22664_v55, %v22731_v7  ;;  %v22740_v33 = vsel %vm22650_vm5, %v12386_v58, %v12391_v32  ;;  %v17884_v55 = vld [vmem:[%s23894_s7 + $0x234] ss:$8 sps:$4 sm:$0xff]   ;;  %v17879_v24 = vld [vmem:[%s23894_s7 + $0x340] ss:$8 sps:$4 sm:$0xff]   ;;  %v17882_v14 = vld [vmem:[%s23894_s7 + $0x230] ss:$8 sps:$4 sm:$0xff]  }
 0x669   : > { %15336 = vmatprep.mubr.bf16.mxu0 %v13185_v38  ;;  %v13186_v39 = vcombine.high %v13184_v52, %v13184_v52  ;;  %v13202_v45 = vcombine.high %v22695_v51, %v22695_v51  ;;  %v22709_v48 = vrot.slane %v13187_v25, %v21464_v19  ;;  %v12394_v27 = vcombine.low %v22669_v44, %v22740_v33  ;;  %v17887_v44 = vld [vmem:[%s23894_s7 + $0x334] ss:$8 sps:$4 sm:$0xff]   ;;  %v17890_v36 = vld [vmem:[%s23894_s7 + $0x224] ss:$8 sps:$4 sm:$0xff]   ;;  %v17885_v18 = vld [vmem:[%s23894_s7 + $0x330] ss:$8 sps:$4 sm:$0xff]  }
 0x66a   : > { %15337 = vmatmul.mubr.bf16.vlgmr.msra.gmra.mxu0 %v13177_v0  ;;  %16621 = vst.sshfl [vmem:[#allocation7 + $0x18] sm:$0x11 pattern:$0x75316420] %v12346_v15  ;;  %v17893_v42 = vld [vmem:[%s23894_s7 + $0x324] ss:$8 sps:$4 sm:$0xff]  }
 0x66b   : > { %15387 = vmatpush1.bf16.msra.mxu0 %v17856_v8  ;;  %15377 = vmatprep.mubr.bf16.mxu1 %v13186_v39  ;;  %v13203_v30 = vcombine.high %v22709_v48, %v22709_v48  ;;  %16626 = vst.sshfl [vmem:[#allocation7 + $0x1a] sm:$0x11 pattern:$0x75316420] %v12394_v27  ;;  %v17888_v34 = vld [vmem:[%s23894_s7 + $0x220] ss:$8 sps:$4 sm:$0xff]  }
 0x66c   : > { %15378 = vmatmul.mubr.bf16.vlgmr.msra.gmra.mxu1 %v13184_v52  ;;  %15388 = vmatprep.subr.bf16.mxu0 %v17865_v50  ;;  %v17896_v35 = vld [vmem:[%s23894_s7 + $0x214] ss:$8 sps:$4 sm:$0xff]   ;;  %v17891_v56 = vld [vmem:[%s23894_s7 + $0x320] ss:$8 sps:$4 sm:$0xff]   ;;  %v17894_v61 = vld [vmem:[%s23894_s7 + $0x210] ss:$8 sps:$4 sm:$0xff]  }
 0x66d   : > { %15418 = vmatprep.mubr.bf16.mxu0 %v13202_v45  ;;  %15428 = vmatpush1.bf16.msra.mxu1 %v17860_v49  ;;  %v17899_v41 = vld [vmem:[%s23894_s7 + $0x314] ss:$8 sps:$4 sm:$0xff]   ;;  %v17902_v54 = vld [vmem:[%s23894_s7 + $0x204] ss:$8 sps:$4 sm:$0xff]   ;;  %v17897_v63 = vld [vmem:[%s23894_s7 + $0x310] ss:$8 sps:$4 sm:$0xff]  }
 0x66e   : > { %15429 = vmatprep.subr.bf16.mxu1 %v17869_v16  ;;  %15459 = vmatprep.mubr.bf16.mxu1 %v13203_v30  ;;  %v17905_v31 = vld [vmem:[%s23894_s7 + $0x304] ss:$8 sps:$4 sm:$0xff]   ;;  %v17900_v60 = vld [vmem:[%s23894_s7 + $0x200] ss:$8 sps:$4 sm:$0xff]   ;;  %v17908_v0 = vld [vmem:[%s23894_s7 + $0x2f4] ss:$8 sps:$4 sm:$0xff]  }
 0x66f   : > { %15389 = vmatpush1.bf16.msra.mxu0 %v17863_v13  ;;  %v17903_v17 = vld [vmem:[%s23894_s7 + $0x300] ss:$8 sps:$4 sm:$0xff]   ;;  %v17911_v38 = vld [vmem:[%s23894_s7 + $0x3f4] ss:$8 sps:$4 sm:$0xff]   ;;  %v17906_v8 = vld [vmem:[%s23894_s7 + $0x2f0] ss:$8 sps:$4 sm:$0xff]  }
 0x670   : > { %15390 = vmatprep.subr.bf16.mxu0 %v17872_v21  ;;  %v17914_v52 = vld [vmem:[%s23894_s7 + $0x2e4] ss:$8 sps:$4 sm:$0xff]   ;;  %v17909_v12 = vld [vmem:[%s23894_s7 + $0x3f0] ss:$8 sps:$4 sm:$0xff]   ;;  %v17912_v39 = vld [vmem:[%s23894_s7 + $0x2e0] ss:$8 sps:$4 sm:$0xff]  }
 0x671   : > { %15430 = vmatpush1.bf16.msra.mxu1 %v17867_v62  ;;  %v17917_v50 = vld [vmem:[%s23894_s7 + $0x3e4] ss:$8 sps:$4 sm:$0xff]   ;;  %v17920_v49 = vld [vmem:[%s23894_s7 + $0x2d4] ss:$8 sps:$4 sm:$0xff]   ;;  %v17915_v25 = vld [vmem:[%s23894_s7 + $0x3e0] ss:$8 sps:$4 sm:$0xff]  }
 0x672   : > { %15431 = vmatprep.subr.bf16.mxu1 %v17875_v43  ;;  %v17923_v13 = vld [vmem:[%s23894_s7 + $0x3d4] ss:$8 sps:$4 sm:$0xff]   ;;  %v17918_v16 = vld [vmem:[%s23894_s7 + $0x2d0] ss:$8 sps:$4 sm:$0xff]   ;;  %v17926_v45 = vld [vmem:[%s23894_s7 + $0x2c4] ss:$8 sps:$4 sm:$0xff]  }
 0x673   : > { %15391 = vmatpush1.bf16.msra.mxu0 %v17870_v59  ;;  %v17921_v21 = vld [vmem:[%s23894_s7 + $0x3d0] ss:$8 sps:$4 sm:$0xff]   ;;  %v17929_v40 = vld [vmem:[%s23894_s7 + $0x3c4] ss:$8 sps:$4 sm:$0xff]   ;;  %v17924_v26 = vld [vmem:[%s23894_s7 + $0x2c0] ss:$8 sps:$4 sm:$0xff]  }
 0x674   : > { %15392 = vmatprep.subr.bf16.mxu0 %v17878_v11  ;;  %v17932_v20 = vld [vmem:[%s23894_s7 + $0x2b4] ss:$8 sps:$4 sm:$0xff]   ;;  %v17927_v29 = vld [vmem:[%s23894_s7 + $0x3c0] ss:$8 sps:$4 sm:$0xff]   ;;  %v17930_v62 = vld [vmem:[%s23894_s7 + $0x2b0] ss:$8 sps:$4 sm:$0xff]  }
 0x675   : > { %15432 = vmatpush1.bf16.msra.mxu1 %v17873_v1  ;;  %v17935_v30 = vld [vmem:[%s23894_s7 + $0x3b4] ss:$8 sps:$4 sm:$0xff]   ;;  %v17938_v46 = vld [vmem:[%s23894_s7 + $0x2a4] ss:$8 sps:$4 sm:$0xff]   ;;  %v17933_v28 = vld [vmem:[%s23894_s7 + $0x3b0] ss:$8 sps:$4 sm:$0xff]  }
 0x676   : > { %15433 = vmatprep.subr.bf16.mxu1 %v17881_v6  ;;  %v17941_v43 = vld [vmem:[%s23894_s7 + $0x3a4] ss:$8 sps:$4 sm:$0xff]   ;;  %v17936_v57 = vld [vmem:[%s23894_s7 + $0x2a0] ss:$8 sps:$4 sm:$0xff]   ;;  %v17944_v10 = vld [vmem:[%s23894_s7 + $0x294] ss:$8 sps:$4 sm:$0xff]  }
 0x677   : > { %15393 = vmatpush1.bf16.msra.mxu0 %v17876_v5  ;;  %v17939_v22 = vld [vmem:[%s23894_s7 + $0x3a0] ss:$8 sps:$4 sm:$0xff]   ;;  %v17947_v9 = vld [vmem:[%s23894_s7 + $0x394] ss:$8 sps:$4 sm:$0xff]   ;;  %v17942_v59 = vld [vmem:[%s23894_s7 + $0x290] ss:$8 sps:$4 sm:$0xff]  }
 0x678   : > { %15394 = vmatprep.subr.bf16.mxu0 %v17884_v55  ;;  %v17950_v58 = vld [vmem:[%s23894_s7 + $0x284] ss:$8 sps:$4 sm:$0xff]   ;;  %v12746_v32 = vld [vmem:[#allocation7 + $0x10] sm:$0xff]  ;;  %v17948_v1 = vld [vmem:[%s23894_s7 + $0x280] ss:$8 sps:$4 sm:$0xff]  }
 0x679   : > { %15434 = vmatpush1.bf16.msra.mxu1 %v17879_v24  ;;  %v17945_v47 = vld [vmem:[%s23894_s7 + $0x390] ss:$8 sps:$4 sm:$0xff]   ;;  %v17953_v11 = vld [vmem:[%s23894_s7 + $0x384] ss:$8 sps:$4 sm:$0xff]   ;;  %v13204_v15 = vcombine.high %v12746_v32, %v12746_v32  ;;  %v17956_v6 = vld [vmem:[%s23894_s7 + $0x474] ss:$8 sps:$4 sm:$0xff]   ;;  %v22901_v5 = vrot.slane %v12746_v32, %v21464_v19 }
 0x67a   : > { %15435 = vmatprep.subr.bf16.mxu1 %v17887_v44  ;;  %v17951_v27 = vld [vmem:[%s23894_s7 + $0x380] ss:$8 sps:$4 sm:$0xff]   ;;  %v17959_v55 = vld [vmem:[%s23894_s7 + $0x574] ss:$8 sps:$4 sm:$0xff]   ;;  %v17954_v24 = vld [vmem:[%s23894_s7 + $0x470] ss:$8 sps:$4 sm:$0xff]  }
 0x67b   : > { %15395 = vmatpush1.bf16.msra.mxu0 %v17882_v14  ;;  %v22910_v44 = vrot.slane %v13204_v15, %v21464_v19  ;;  %v17963_v14 = vld [vmem:[%s23894_s7 + $0x464] ss:$8 sps:$4 sm:$0xff]  }
 0x67c   : > { %15396 = vmatprep.subr.bf16.mxu0 %v17890_v36  ;;  %v13219_v36 = vcombine.high %v22901_v5, %v22901_v5  ;;  %v16650_v32 = vld.sshfl [vmem:[#allocation4 + $0x6] sm:$0x11 pattern:$0x75316420] }
 0x67d   : > { %15436 = vmatpush1.bf16.msra.mxu1 %v17885_v18  ;;  %v17957_v18 = vld [vmem:[%s23894_s7 + $0x570] ss:$8 sps:$4 sm:$0xff]   ;;  %v16655_v15 = vld.sshfl [vmem:[#allocation4 + $0xe] sm:$0x11 pattern:$0x75316420] }
 0x67e   : > { %15437 = vmatprep.subr.bf16.mxu1 %v17893_v42  ;;  %v17961_v42 = vld [vmem:[%s23894_s7 + $0x460] ss:$8 sps:$4 sm:$0xff]  }
 0x67f   : > { %15397 = vmatpush1.bf16.msra.mxu0 %v17888_v34  ;;  %v17966_v34 = vld [vmem:[%s23894_s7 + $0x564] ss:$8 sps:$4 sm:$0xff]  }
 0x680   : > { %15398 = vmatprep.subr.bf16.mxu0 %v17896_v35  ;;  %v13220_v35 = vcombine.high %v22910_v44, %v22910_v44 }
 0x681   : > { %15438 = vmatpush1.bf16.msra.mxu1 %v17891_v56  ;;  %v17964_v56 = vld [vmem:[%s23894_s7 + $0x560] ss:$8 sps:$4 sm:$0xff]  }
 0x682   : > { %15439 = vmatprep.subr.bf16.mxu1 %v17899_v41  ;;  %v12448_v41 = vld [vmem:[#allocation4 + $0x1a] sm:$0x1] }
 0x683   : > { %15399 = vmatpush1.bf16.msra.mxu0 %v17894_v61  ;;  %v17969_v61 = vld [vmem:[%s23894_s7 + $0x454] ss:$8 sps:$4 sm:$0xff]  }
 0x684   : > { %15400 = vmatprep.subr.bf16.mxu0 %v17902_v54 }
 0x685   : > { %15440 = vmatpush1.bf16.msra.mxu1 %v17897_v63  ;;  %v16633_v63 = vld.sshfl [vmem:[#allocation4 + $0x12] sm:$0x11 pattern:$0x75316420] }
 0x686   : > { %15441 = vmatprep.subr.bf16.mxu1 %v17905_v31  ;;  %v17967_v31 = vld [vmem:[%s23894_s7 + $0x450] ss:$8 sps:$4 sm:$0xff]  }
 0x687   : > { %15401 = vmatpush1.bf16.msra.mxu0 %v17900_v60  ;;  %v16634_v60 = vld.sshfl [vmem:[#allocation4 + $0x14] sm:$0x11 pattern:$0x75316420] }
 0x688   : > { %15402 = vmatprep.subr.bf16.mxu0 %v17908_v0  ;;  %v12473_v0 = vcombine.high %v16633_v63, %v16633_v63 }
 0x689   : > { %15442 = vmatpush1.bf16.msra.mxu1 %v17903_v17  ;;  %v12481_v17 = vcombine.high %v16634_v60, %v16634_v60 }
 0x68a   : > { %15443 = vmatprep.subr.bf16.mxu1 %v17911_v38  ;;  %v16639_v38 = vld.sshfl [vmem:[#allocation4 + $0x1c] sm:$0x11 pattern:$0x75316420] }
 0x68b   : > { %15403 = vmatpush2.bf16.msra.mxu0 %v17906_v8  ;;  %v12483_v8 = vshrl.u32 %v16633_v63, 16  ;;  %v17996_v63 = vld [vmem:[%s23894_s7 + $0x514] ss:$8 sps:$4 sm:$0xff]  }
 0x68c   : > { %15404 = vmatprep.subr.bf16.mxu0 %v17914_v52  ;;  %v12488_v52 = vshll.u32 %v12473_v0, 16  ;;  %v17997_v0 = vld [vmem:[%s23894_s7 + $0x400] ss:$8 sps:$4 sm:$0xff]  }
 0x68d   : > { %15444 = vmatpush2.bf16.msra.mxu1 %v17909_v12  ;;  %v12529_v12 = vcombine.high %v16639_v38, %v16639_v38 }
 0x68e   : > { %15445 = vmatprep.subr.bf16.mxu1 %v17917_v50  ;;  %v16644_v50 = vld.sshfl [vmem:[#allocation4 + $0x14] sm:$0x10 pattern:$0x75316420] }
 0x68f   : > { %15405 = vmatpush2.bf16.msra.mxu0 %v17912_v39  ;;  %v17975_v39 = vld [vmem:[%s23894_s7 + $0x444] ss:$8 sps:$4 sm:$0xff]  }
 0x690   : > { %15406 = vmatprep.subr.bf16.mxu0 %v17920_v49  ;;  %v12492_v49 = vshrl.u32 %v16634_v60, 16  ;;  %v17994_v60 = vld [vmem:[%s23894_s7 + $0x510] ss:$8 sps:$4 sm:$0xff]  }
 0x691   : > { %15446 = vmatpush2.bf16.msra.mxu1 %v17915_v25  ;;  %v12497_v25 = vshll.u32 %v12481_v17, 16  ;;  %v18000_v17 = vld [vmem:[%s23894_s7 + $0x500] ss:$8 sps:$4 sm:$0xff]  }
 0x692   : > { %15447 = vmatprep.subr.bf16.mxu1 %v17923_v13  ;;  %v16645_v13 = vcombine.high %v22672_v23, %v16644_v50  ;;  %v17973_v23 = vld [vmem:[%s23894_s7 + $0x440] ss:$8 sps:$4 sm:$0xff]   ;;  %v18014_v50 = vld [vmem:[%s23894_s7 + $0x5e4] ss:$8 sps:$4 sm:$0xff]  }
 0x693   : > { %15407 = vmatpush2.bf16.msra.mxu0 %v17918_v16  ;;  %v17970_v16 = vld [vmem:[%s23894_s7 + $0x550] ss:$8 sps:$4 sm:$0xff]  }
 0x694   : > { %15408 = vmatprep.subr.bf16.mxu0 %v17926_v45  ;;  %v12490_v45 = vsel %vm22650_vm5, %v12483_v8, %v12488_v52  ;;  %16646 = vst.sshfl [vmem:[#allocation7 + $0x26] sm:$0x11 pattern:$0x75316420] %v16645_v13  ;;  %v18003_v8 = vld [vmem:[%s23894_s7 + $0x4f0] ss:$8 sps:$4 sm:$0xff]  }
 0x695   : > { %15448 = vmatpush2.bf16.msra.mxu1 %v17921_v21  ;;  %v12540_v21 = vshrl.u32 %v16639_v38, 16  ;;  %v18008_v38 = vld [vmem:[%s23894_s7 + $0x5f4] ss:$8 sps:$4 sm:$0xff]   ;;  %v18011_v52 = vld [vmem:[%s23894_s7 + $0x4e4] ss:$8 sps:$4 sm:$0xff]  }
 0x696   : > { %15449 = vmatprep.subr.bf16.mxu1 %v17929_v40  ;;  %v12545_v40 = vshll.u32 %v12529_v12, 16  ;;  %v18006_v12 = vld [vmem:[%s23894_s7 + $0x5f0] ss:$8 sps:$4 sm:$0xff]   ;;  %v18020_v13 = vld [vmem:[%s23894_s7 + $0x5d4] ss:$8 sps:$4 sm:$0xff]  }
 0x697   : > { %15409 = vmatpush2.bf16.msra.mxu0 %v17924_v26  ;;  %v17978_v26 = vld [vmem:[%s23894_s7 + $0x544] ss:$8 sps:$4 sm:$0xff]  }
 0x698   : > { %15410 = vmatprep.subr.bf16.mxu0 %v17932_v20  ;;  %v12499_v20 = vsel %vm22650_vm5, %v12492_v49, %v12497_v25  ;;  %v18017_v49 = vld [vmem:[%s23894_s7 + $0x4d4] ss:$8 sps:$4 sm:$0xff]   ;;  %v18012_v25 = vld [vmem:[%s23894_s7 + $0x5e0] ss:$8 sps:$4 sm:$0xff]  }
 0x699   : > { %15450 = vmatpush2.bf16.msra.mxu1 %v17927_v29  ;;  %v17981_v29 = vld [vmem:[%s23894_s7 + $0x434] ss:$8 sps:$4 sm:$0xff]  }
 0x69a   : > { %15451 = vmatprep.subr.bf16.mxu1 %v17935_v30  ;;  %v12500_v30 = vcombine.low %v12490_v45, %v12499_v20  ;;  %v18023_v45 = vld [vmem:[%s23894_s7 + $0x4c4] ss:$8 sps:$4 sm:$0xff]   ;;  %v18029_v20 = vld [vmem:[%s23894_s7 + $0x4b4] ss:$8 sps:$4 sm:$0xff]  }
 0x69b   : > { %15411 = vmatpush2.bf16.msra.mxu0 %v17930_v62  ;;  %v12547_v62 = vsel %vm22650_vm5, %v12540_v21, %v12545_v40  ;;  %v18018_v21 = vld [vmem:[%s23894_s7 + $0x5d0] ss:$8 sps:$4 sm:$0xff]   ;;  %v18026_v40 = vld [vmem:[%s23894_s7 + $0x5c4] ss:$8 sps:$4 sm:$0xff]  }
 0x69c   : > { %15412 = vmatprep.subr.bf16.mxu0 %v17938_v46  ;;  %v12589_v46 = vld [vmem:[#allocation4 + $0x4] sm:$0x1]  ;;  %16637 = vst.sshfl [vmem:[#allocation7 + $0x22] sm:$0x11 pattern:$0x75316420] %v12500_v30 }
 0x69d   : > { %15452 = vmatpush2.bf16.msra.mxu1 %v17933_v28  ;;  %v12548_v28 = vcombine.low %v22683_v3, %v12547_v62  ;;  %v17979_v3 = vld [vmem:[%s23894_s7 + $0x430] ss:$8 sps:$4 sm:$0xff]   ;;  %v18035_v62 = vld [vmem:[%s23894_s7 + $0x4a4] ss:$8 sps:$4 sm:$0xff]  }
 0x69e   : > { %15453 = vmatprep.subr.bf16.mxu1 %v17941_v43  ;;  %v12590_v43 = vld [vmem:[#allocation4 + $0x6] sm:$0x1]  ;;  %v18027_v30 = vld [vmem:[%s23894_s7 + $0x4b0] ss:$8 sps:$4 sm:$0xff]  }
 0x69f   : > { %15413 = vmatpush2.bf16.msra.mxu0 %v17936_v57  ;;  %v12604_v57 = vld [vmem:[#allocation4 + $0xc] sm:$0x1]  ;;  %16642 = vst.sshfl [vmem:[#allocation7 + $0x24] sm:$0x11 pattern:$0x75316420] %v12548_v28 }
 0x6a0   : > { %15414 = vmatprep.subr.bf16.mxu0 %v17944_v10  ;;  %v12605_v10 = vld [vmem:[#allocation4 + $0xe] sm:$0x1] }
 0x6a1   : > { %15454 = vmatpush2.bf16.msra.mxu1 %v17939_v22  ;;  %v17976_v22 = vld [vmem:[%s23894_s7 + $0x540] ss:$8 sps:$4 sm:$0xff]   ;;  %v18038_v28 = vld [vmem:[%s23894_s7 + $0x5a4] ss:$8 sps:$4 sm:$0xff]  }
 0x6a2   : > { %15455 = vmatprep.subr.bf16.mxu1 %v17947_v9  ;;  %v12593_v9 = vcombine.low %v12589_v46, %v12590_v43  ;;  %v18030_v46 = vld [vmem:[%s23894_s7 + $0x5b0] ss:$8 sps:$4 sm:$0xff]   ;;  %v18033_v43 = vld [vmem:[%s23894_s7 + $0x4a0] ss:$8 sps:$4 sm:$0xff]  }
 0x6a3   : > { %15415 = vmatpush2.bf16.msra.mxu0 %v17942_v59  ;;  %v12608_v59 = vcombine.low %v12604_v57, %v12605_v10  ;;  %v18041_v57 = vld [vmem:[%s23894_s7 + $0x494] ss:$8 sps:$4 sm:$0xff]   ;;  %v18036_v10 = vld [vmem:[%s23894_s7 + $0x5a0] ss:$8 sps:$4 sm:$0xff]  }
 0x6a4   : > { %15416 = vmatprep.subr.bf16.mxu0 %v17950_v58  ;;  %v17984_v58 = vld [vmem:[%s23894_s7 + $0x534] ss:$8 sps:$4 sm:$0xff]   ;;  %16647 = vst.sshfl [vmem:[#allocation7 + $0x28] sm:$0x11 pattern:$0x75316420] %v12593_v9 }
 0x6a5   : > { %15456 = vmatpush2.bf16.msra.mxu1 %v17945_v47  ;;  %16648 = vst.sshfl [vmem:[#allocation7 + $0x2a] sm:$0x11 pattern:$0x75316420] %v12608_v59  ;;  %v12637_v47 = vcombine.high %v16650_v32, %v16650_v32  ;;  %v18039_v9 = vld [vmem:[%s23894_s7 + $0x490] ss:$8 sps:$4 sm:$0xff]  }
 0x6a6   : > { %15457 = vmatprep.subr.bf16.mxu1 %v17953_v11  ;;  %v12648_v11 = vshrl.u32 %v16650_v32, 16  ;;  %v18047_v59 = vld [vmem:[%s23894_s7 + $0x484] ss:$8 sps:$4 sm:$0xff]   ;;  %v18042_v32 = vld [vmem:[%s23894_s7 + $0x590] ss:$8 sps:$4 sm:$0xff]  }
 0x6a7   : > { %15417 = vmatpush2.bf16.msra.mxu0 %v17948_v1  ;;  %v17987_v1 = vld [vmem:[%s23894_s7 + $0x424] ss:$8 sps:$4 sm:$0xff]  }
 0x6a8   : > { %15468 = vmatprep.subr.bf16.mxu0 %v17956_v6  ;;  %v17982_v6 = vld [vmem:[%s23894_s7 + $0x530] ss:$8 sps:$4 sm:$0xff]  }
 0x6a9   : > { %15458 = vmatpush2.bf16.msra.mxu1 %v17951_v27  ;;  %v12653_v27 = vshll.u32 %v12637_v47, 16  ;;  %v18045_v47 = vld [vmem:[%s23894_s7 + $0x480] ss:$8 sps:$4 sm:$0xff]  }
 0x6aa   : > { %15419 = vmatmul.mubr.bf16.vlgmr.msra.gmra.mxu0 %v22695_v51  ;;  %15509 = vmatprep.subr.bf16.mxu1 %v17959_v55  ;;  %v12449_v51 = vld [vmem:[#allocation4 + $0x1c] sm:$0x1]  ;;  %v12685_v55 = vcombine.high %v16655_v15, %v16655_v15 }
 0x6ab   : > { %15469 = vmatpush1.bf16.msra.mxu0 %v17954_v24  ;;  %15500 = vmatprep.mubr.bf16.mxu0 %v13219_v36  ;;  %v12452_v54 = vcombine.low %v12448_v41, %v12449_v51  ;;  %v12696_v24 = vshrl.u32 %v16655_v15, 16  ;;  %v16659_v36 = vld.sshfl [vmem:[#allocation4 + $0x4] sm:$0x10 pattern:$0x75316420] }
 0x6ac   : > { %15460 = vmatmul.mubr.bf16.vlgmr.msra.gmra.mxu1 %v22709_v48  ;;  %15470 = vmatprep.subr.bf16.mxu0 %v17963_v14  ;;  %v17972_v48 = vld [vmem:[%s23894_s7 + $0x554] ss:$8 sps:$4 sm:$0xff]   ;;  %v17990_v14 = vld [vmem:[%s23894_s7 + $0x524] ss:$8 sps:$4 sm:$0xff]   ;;  %v17988_v51 = vld [vmem:[%s23894_s7 + $0x520] ss:$8 sps:$4 sm:$0xff]  }
 0x6ad   : > { %15510 = vmatpush1.bf16.msra.mxu1 %v17957_v18  ;;  %15541 = vmatprep.mubr.bf16.mxu1 %v13220_v35  ;;  %16632 = vst.sshfl [vmem:[#allocation7 + $0x20] sm:$0x11 pattern:$0x75316420] %v12452_v54  ;;  %v17985_v18 = vld [vmem:[%s23894_s7 + $0x420] ss:$8 sps:$4 sm:$0xff]  }
 0x6ae   : > { %15511 = vmatprep.subr.bf16.mxu1 %v17966_v34  ;;  %v12701_v34 = vshll.u32 %v12685_v55, 16  ;;  %v17993_v35 = vld [vmem:[%s23894_s7 + $0x414] ss:$8 sps:$4 sm:$0xff]   ;;  %v18048_v15 = vld [vmem:[%s23894_s7 + $0x580] ss:$8 sps:$4 sm:$0xff]  }
 0x6af   : > { %15471 = vmatpush1.bf16.msra.mxu0 %v17961_v42  ;;  %v12655_v42 = vsel %vm22650_vm5, %v12648_v11, %v12653_v27  ;;  %v16660_v41 = vld.sshfl [vmem:[#allocation4 + $0x6] sm:$0x10 pattern:$0x75316420]  ;;  %v18056_v27 = vld [vmem:[%s23894_s7 + $0x774] ss:$8 sps:$4 sm:$0xff]  }
 0x6b0   : > { %15472 = vmatprep.subr.bf16.mxu0 %v17969_v61  ;;  %v12703_v61 = vsel %vm22650_vm5, %v12696_v24, %v12701_v34  ;;  %v16661_v54 = vcombine.high %v16659_v36, %v16660_v41  ;;  %v18051_v55 = vld [vmem:[%s23894_s7 + $0x670] ss:$8 sps:$4 sm:$0xff]   ;;  %v18069_v41 = vld [vmem:[%s23894_s7 + $0x754] ss:$8 sps:$4 sm:$0xff]  }
 0x6b1   : > { %15512 = vmatpush1.bf16.msra.mxu1 %v17964_v56  ;;  %v12656_v56 = vcombine.low %v22731_v7, %v12655_v42  ;;  %v17991_v7 = vld [vmem:[%s23894_s7 + $0x410] ss:$8 sps:$4 sm:$0xff]   ;;  %v18063_v42 = vld [vmem:[%s23894_s7 + $0x764] ss:$8 sps:$4 sm:$0xff]  }
 0x6b2   : > { %15513 = vmatprep.subr.bf16.mxu1 %v17972_v48  ;;  %16662 = vst.sshfl [vmem:[#allocation7 + $0x30] sm:$0x11 pattern:$0x75316420] %v16661_v54  ;;  %v18005_v48 = vld [vmem:[%s23894_s7 + $0x4f4] ss:$8 sps:$4 sm:$0xff]  }
 0x6b3   : > { %15473 = vmatpush1.bf16.msra.mxu0 %v17967_v31  ;;  %16653 = vst.sshfl [vmem:[#allocation7 + $0x2c] sm:$0x11 pattern:$0x75316420] %v12656_v56  ;;  %v12704_v31 = vcombine.low %v22740_v33, %v12703_v61  ;;  %v18002_v33 = vld [vmem:[%s23894_s7 + $0x504] ss:$8 sps:$4 sm:$0xff]  }
 0x6b4   : > { %15474 = vmatprep.subr.bf16.mxu0 %v17975_v39  ;;  %v18009_v39 = vld [vmem:[%s23894_s7 + $0x4e0] ss:$8 sps:$4 sm:$0xff]   ;;  %v18067_v61 = vld [vmem:[%s23894_s7 + $0x750] ss:$8 sps:$4 sm:$0xff]   ;;  %v18075_v54 = vld [vmem:[%s23894_s7 + $0x744] ss:$8 sps:$4 sm:$0xff]  }
 0x6b5   : > { %15514 = vmatpush1.bf16.msra.mxu1 %v17970_v16  ;;  %16658 = vst.sshfl [vmem:[#allocation7 + $0x2e] sm:$0x11 pattern:$0x75316420] %v12704_v31  ;;  %v18015_v16 = vld [vmem:[%s23894_s7 + $0x4d0] ss:$8 sps:$4 sm:$0xff]  }
 0x6b6   : > { %15515 = vmatprep.subr.bf16.mxu1 %v17978_v26  ;;  %v18021_v26 = vld [vmem:[%s23894_s7 + $0x4c0] ss:$8 sps:$4 sm:$0xff]   ;;  %v18078_v31 = vld [vmem:[%s23894_s7 + $0x634] ss:$8 sps:$4 sm:$0xff]  }
 0x6b7   : > { %15475 = vmatpush1.bf16.msra.mxu0 %v17973_v23  ;;  %v18024_v23 = vld [vmem:[%s23894_s7 + $0x5c0] ss:$8 sps:$4 sm:$0xff]  }
 0x6b8   : > { %15476 = vmatprep.subr.bf16.mxu0 %v17981_v29  ;;  %v18032_v29 = vld [vmem:[%s23894_s7 + $0x5b4] ss:$8 sps:$4 sm:$0xff]   ;;  %v18061_v56 = vld [vmem:[%s23894_s7 + $0x760] ss:$8 sps:$4 sm:$0xff]  }
 0x6b9   : > { %15516 = vmatpush1.bf16.msra.mxu1 %v17976_v22  ;;  %v18044_v22 = vld [vmem:[%s23894_s7 + $0x594] ss:$8 sps:$4 sm:$0xff]  }
 0x6ba   : > { %15517 = vmatprep.subr.bf16.mxu1 %v17984_v58  ;;  %v12747_v58 = vld [vmem:[#allocation7 + $0x18] sm:$0xff] }
 0x6bb   : > { %15477 = vmatpush1.bf16.msra.mxu0 %v17979_v3  ;;  %v18050_v3 = vld [vmem:[%s23894_s7 + $0x584] ss:$8 sps:$4 sm:$0xff]   ;;  %v13221_v11 = vcombine.high %v12747_v58, %v12747_v58 }
 0x6bc   : > { %15478 = vmatprep.subr.bf16.mxu0 %v17987_v1  ;;  %v18053_v1 = vld [vmem:[%s23894_s7 + $0x674] ss:$8 sps:$4 sm:$0xff]  }
 0x6bd   : > { %15518 = vmatpush1.bf16.msra.mxu1 %v17982_v6  ;;  %v23119_v6 = vrot.slane %v12747_v58, %v21464_v19  ;;  %v23128_v24 = vrot.slane %v13221_v11, %v21464_v19  ;;  %v18124_v58 = vld [vmem:[%s23894_s7 + $0x6b0] ss:$8 sps:$4 sm:$0xff]   ;;  %v18130_v11 = vld [vmem:[%s23894_s7 + $0x6a0] ss:$8 sps:$4 sm:$0xff]  }
 0x6be   : > { %15519 = vmatprep.subr.bf16.mxu1 %v17990_v14  ;;  %v18060_v14 = vld [vmem:[%s23894_s7 + $0x664] ss:$8 sps:$4 sm:$0xff]  }
 0x6bf   : > { %15479 = vmatpush1.bf16.msra.mxu0 %v17985_v18  ;;  %v13236_v36 = vcombine.high %v23119_v6, %v23119_v6  ;;  %v18054_v18 = vld [vmem:[%s23894_s7 + $0x770] ss:$8 sps:$4 sm:$0xff]   ;;  %v13237_v34 = vcombine.high %v23128_v24, %v23128_v24 }
 0x6c0   : > { %15480 = vmatprep.subr.bf16.mxu0 %v17993_v35  ;;  %v18058_v35 = vld [vmem:[%s23894_s7 + $0x660] ss:$8 sps:$4 sm:$0xff]  }
 0x6c1   : > { %15520 = vmatpush1.bf16.msra.mxu1 %v17988_v51  ;;  %v18072_v51 = vld [vmem:[%s23894_s7 + $0x644] ss:$8 sps:$4 sm:$0xff]  }
 0x6c2   : > { %15521 = vmatprep.subr.bf16.mxu1 %v17996_v63  ;;  %v18070_v63 = vld [vmem:[%s23894_s7 + $0x640] ss:$8 sps:$4 sm:$0xff]  }
 0x6c3   : > { %15481 = vmatpush1.bf16.msra.mxu0 %v17991_v7  ;;  %v18073_v7 = vld [vmem:[%s23894_s7 + $0x740] ss:$8 sps:$4 sm:$0xff]  }
 0x6c4   : > { %15482 = vmatprep.subr.bf16.mxu0 %v17999_v2  ;;  %v18081_v2 = vld [vmem:[%s23894_s7 + $0x734] ss:$8 sps:$4 sm:$0xff]  }
 0x6c5   : > { %15522 = vmatpush1.bf16.msra.mxu1 %v17994_v60  ;;  %v18076_v60 = vld [vmem:[%s23894_s7 + $0x630] ss:$8 sps:$4 sm:$0xff]  }
 0x6c6   : > { %15523 = vmatprep.subr.bf16.mxu1 %v18002_v33  ;;  %v18084_v33 = vld [vmem:[%s23894_s7 + $0x624] ss:$8 sps:$4 sm:$0xff]  }
 0x6c7   : > { %15483 = vmatpush1.bf16.msra.mxu0 %v17997_v0  ;;  %v18079_v0 = vld [vmem:[%s23894_s7 + $0x730] ss:$8 sps:$4 sm:$0xff]  }
 0x6c8   : > { %15484 = vmatprep.subr.bf16.mxu0 %v18005_v48  ;;  %v18087_v48 = vld [vmem:[%s23894_s7 + $0x724] ss:$8 sps:$4 sm:$0xff]  }
 0x6c9   : > { %15524 = vmatpush1.bf16.msra.mxu1 %v18000_v17  ;;  %v18082_v17 = vld [vmem:[%s23894_s7 + $0x620] ss:$8 sps:$4 sm:$0xff]  }
 0x6ca   : > { %15525 = vmatprep.subr.bf16.mxu1 %v18008_v38  ;;  %v18090_v38 = vld [vmem:[%s23894_s7 + $0x614] ss:$8 sps:$4 sm:$0xff]  }
 0x6cb   : > { %15485 = vmatpush2.bf16.msra.mxu0 %v18003_v8  ;;  %v18085_v8 = vld [vmem:[%s23894_s7 + $0x720] ss:$8 sps:$4 sm:$0xff]  }
 0x6cc   : > { %15486 = vmatprep.subr.bf16.mxu0 %v18011_v52  ;;  %v18093_v52 = vld [vmem:[%s23894_s7 + $0x714] ss:$8 sps:$4 sm:$0xff]  }
 0x6cd   : > { %15526 = vmatpush2.bf16.msra.mxu1 %v18006_v12  ;;  %v18088_v12 = vld [vmem:[%s23894_s7 + $0x610] ss:$8 sps:$4 sm:$0xff]  }
 0x6ce   : > { %15527 = vmatprep.subr.bf16.mxu1 %v18014_v50  ;;  %v18096_v50 = vld [vmem:[%s23894_s7 + $0x604] ss:$8 sps:$4 sm:$0xff]  }
 0x6cf   : > { %15487 = vmatpush2.bf16.msra.mxu0 %v18009_v39  ;;  %v18091_v39 = vld [vmem:[%s23894_s7 + $0x710] ss:$8 sps:$4 sm:$0xff]  }
 0x6d0   : > { %15488 = vmatprep.subr.bf16.mxu0 %v18017_v49  ;;  %v18099_v49 = vld [vmem:[%s23894_s7 + $0x704] ss:$8 sps:$4 sm:$0xff]  }
 0x6d1   : > { %15528 = vmatpush2.bf16.msra.mxu1 %v18012_v25  ;;  %v18094_v25 = vld [vmem:[%s23894_s7 + $0x600] ss:$8 sps:$4 sm:$0xff]  }
 0x6d2   : > { %15529 = vmatprep.subr.bf16.mxu1 %v18020_v13  ;;  %v18102_v13 = vld [vmem:[%s23894_s7 + $0x6f4] ss:$8 sps:$4 sm:$0xff]  }
 0x6d3   : > { %15489 = vmatpush2.bf16.msra.mxu0 %v18015_v16  ;;  %v18097_v16 = vld [vmem:[%s23894_s7 + $0x700] ss:$8 sps:$4 sm:$0xff]  }
 0x6d4   : > { %15490 = vmatprep.subr.bf16.mxu0 %v18023_v45  ;;  %v18105_v45 = vld [vmem:[%s23894_s7 + $0x7f4] ss:$8 sps:$4 sm:$0xff]  }
 0x6d5   : > { %15530 = vmatpush2.bf16.msra.mxu1 %v18018_v21  ;;  %v18100_v21 = vld [vmem:[%s23894_s7 + $0x6f0] ss:$8 sps:$4 sm:$0xff]  }
 0x6d6   : > { %15531 = vmatprep.subr.bf16.mxu1 %v18026_v40  ;;  %v18108_v40 = vld [vmem:[%s23894_s7 + $0x6e4] ss:$8 sps:$4 sm:$0xff]  }
 0x6d7   : > { %15491 = vmatpush2.bf16.msra.mxu0 %v18021_v26  ;;  %v18103_v26 = vld [vmem:[%s23894_s7 + $0x7f0] ss:$8 sps:$4 sm:$0xff]  }
 0x6d8   : > { %15492 = vmatprep.subr.bf16.mxu0 %v18029_v20  ;;  %v18111_v20 = vld [vmem:[%s23894_s7 + $0x7e4] ss:$8 sps:$4 sm:$0xff]  }
 0x6d9   : > { %15532 = vmatpush2.bf16.msra.mxu1 %v18024_v23  ;;  %v18106_v23 = vld [vmem:[%s23894_s7 + $0x6e0] ss:$8 sps:$4 sm:$0xff]  }
 0x6da   : > { %15533 = vmatprep.subr.bf16.mxu1 %v18032_v29  ;;  %v18114_v29 = vld [vmem:[%s23894_s7 + $0x6d4] ss:$8 sps:$4 sm:$0xff]  }
 0x6db   : > { %15493 = vmatpush2.bf16.msra.mxu0 %v18027_v30  ;;  %v18109_v30 = vld [vmem:[%s23894_s7 + $0x7e0] ss:$8 sps:$4 sm:$0xff]  }
 0x6dc   : > { %15494 = vmatprep.subr.bf16.mxu0 %v18035_v62  ;;  %v18117_v62 = vld [vmem:[%s23894_s7 + $0x7d4] ss:$8 sps:$4 sm:$0xff]  }
 0x6dd   : > { %15534 = vmatpush2.bf16.msra.mxu1 %v18030_v46  ;;  %v18112_v46 = vld [vmem:[%s23894_s7 + $0x6d0] ss:$8 sps:$4 sm:$0xff]  }
 0x6de   : > { %15535 = vmatprep.subr.bf16.mxu1 %v18038_v28  ;;  %v18120_v28 = vld [vmem:[%s23894_s7 + $0x6c4] ss:$8 sps:$4 sm:$0xff]  }
 0x6df   : > { %15495 = vmatpush2.bf16.msra.mxu0 %v18033_v43  ;;  %v18115_v43 = vld [vmem:[%s23894_s7 + $0x7d0] ss:$8 sps:$4 sm:$0xff]  }
 0x6e0   : > { %15496 = vmatprep.subr.bf16.mxu0 %v18041_v57  ;;  %v18123_v57 = vld [vmem:[%s23894_s7 + $0x7c4] ss:$8 sps:$4 sm:$0xff]  }
 0x6e1   : > { %15536 = vmatpush2.bf16.msra.mxu1 %v18036_v10  ;;  %v18118_v10 = vld [vmem:[%s23894_s7 + $0x6c0] ss:$8 sps:$4 sm:$0xff]  }
 0x6e2   : > { %15537 = vmatprep.subr.bf16.mxu1 %v18044_v22  ;;  %v18126_v22 = vld [vmem:[%s23894_s7 + $0x6b4] ss:$8 sps:$4 sm:$0xff]  }
 0x6e3   : > { %15497 = vmatpush2.bf16.msra.mxu0 %v18039_v9  ;;  %v18121_v9 = vld [vmem:[%s23894_s7 + $0x7c0] ss:$8 sps:$4 sm:$0xff]  }
 0x6e4   : > { %15498 = vmatprep.subr.bf16.mxu0 %v18047_v59  ;;  %v18129_v59 = vld [vmem:[%s23894_s7 + $0x7b4] ss:$8 sps:$4 sm:$0xff]  }
 0x6e5   : > { %15538 = vmatpush2.bf16.msra.mxu1 %v18042_v32  ;;  %v18132_v32 = vld [vmem:[%s23894_s7 + $0x6a4] ss:$8 sps:$4 sm:$0xff]  }
 0x6e6   : > { %15539 = vmatprep.subr.bf16.mxu1 %v18050_v3  ;;  %v18127_v3 = vld [vmem:[%s23894_s7 + $0x7b0] ss:$8 sps:$4 sm:$0xff]  }
 0x6e7   : > { %15499 = vmatpush2.bf16.msra.mxu0 %v18045_v47  ;;  %v18135_v47 = vld [vmem:[%s23894_s7 + $0x7a4] ss:$8 sps:$4 sm:$0xff]  }
 0x6e8   : > { %15550 = vmatprep.subr.bf16.mxu0 %v18053_v1  ;;  %v18138_v1 = vld [vmem:[%s23894_s7 + $0x694] ss:$8 sps:$4 sm:$0xff]  }
 0x6e9   : > { %15540 = vmatpush2.bf16.msra.mxu1 %v18048_v15  ;;  %v18133_v15 = vld [vmem:[%s23894_s7 + $0x7a0] ss:$8 sps:$4 sm:$0xff]  }
 0x6ea   : > { %15501 = vmatmul.mubr.bf16.vlgmr.msra.gmra.mxu0 %v22901_v5  ;;  %15591 = vmatprep.subr.bf16.mxu1 %v18056_v27  ;;  %v18066_v5 = vld [vmem:[%s23894_s7 + $0x654] ss:$8 sps:$4 sm:$0xff]  }
 0x6eb   : > { %15551 = vmatpush1.bf16.msra.mxu0 %v18051_v55  ;;  %15582 = vmatprep.mubr.bf16.mxu0 %v13236_v36  ;;  %v18141_v27 = vld [vmem:[%s23894_s7 + $0x794] ss:$8 sps:$4 sm:$0xff]   ;;  %v18136_v55 = vld [vmem:[%s23894_s7 + $0x690] ss:$8 sps:$4 sm:$0xff]   ;;  %v12748_v36 = vld [vmem:[#allocation7 + $0x20] sm:$0xff] }
 0x6ec   : > { %15542 = vmatmul.mubr.bf16.vlgmr.msra.gmra.mxu1 %v22910_v44  ;;  %15552 = vmatprep.subr.bf16.mxu0 %v18060_v14  ;;  %v18064_v44 = vld [vmem:[%s23894_s7 + $0x650] ss:$8 sps:$4 sm:$0xff]   ;;  %v18144_v14 = vld [vmem:[%s23894_s7 + $0x684] ss:$8 sps:$4 sm:$0xff]  }
 0x6ed   : > { %15592 = vmatpush1.bf16.msra.mxu1 %v18054_v18  ;;  %15623 = vmatprep.mubr.bf16.mxu1 %v13237_v34  ;;  %v18139_v18 = vld [vmem:[%s23894_s7 + $0x790] ss:$8 sps:$4 sm:$0xff]   ;;  %v18142_v34 = vld [vmem:[%s23894_s7 + $0x680] ss:$8 sps:$4 sm:$0xff]  }
 0x6ee   : > { %15593 = vmatprep.subr.bf16.mxu1 %v18063_v42  ;;  %v18147_v42 = vld [vmem:[%s23894_s7 + $0x784] ss:$8 sps:$4 sm:$0xff]  }
 0x6ef   : > { %15553 = vmatpush1.bf16.msra.mxu0 %v18058_v35  ;;  %v13155_v35 = vsub.s32 0, %v18736_v37 }
 0x6f0   : > { %15554 = vmatprep.subr.bf16.mxu0 %v18066_v5  ;;  %v13238_v5 = vcombine.high %v12748_v36, %v12748_v36 }
 0x6f1   : > { %15594 = vmatpush1.bf16.msra.mxu1 %v18061_v56  ;;  %v18150_v56 = vld [vmem:[%s23894_s7 + $0x874] ss:$8 sps:$4 sm:$0xff]  }
 0x6f2   : > { %15595 = vmatprep.subr.bf16.mxu1 %v18069_v41  ;;  %v13151_v41 = vld [vmem:[%s23895_s8] sm:$0x3] }
 0x6f3   : > { %15555 = vmatpush1.bf16.msra.mxu0 %v18064_v44  ;;  %v18145_v44 = vld [vmem:[%s23894_s7 + $0x780] ss:$8 sps:$4 sm:$0xff]  }
 0x6f4   : > { %15556 = vmatprep.subr.bf16.mxu0 %v18072_v51  ;;  %v23327_v51 = vrot.slane %v12748_v36, %v21464_v19  ;;  %v18197_v36 = vld [vmem:[%s23894_s7 + $0x8f0] ss:$8 sps:$4 sm:$0xff]  }
 0x6f5   : > { %15596 = vmatpush1.bf16.msra.mxu1 %v18067_v61  ;;  %v13159_v61 = vsub.s32 1, %v18736_v37 }
 0x6f6   : > { %15597 = vmatprep.subr.bf16.mxu1 %v18075_v54  ;;  %v18153_v54 = vld [vmem:[%s23894_s7 + $0x974] ss:$8 sps:$4 sm:$0xff]   ;;  %v13253_v37 = vcombine.high %v23327_v51, %v23327_v51 }
 0x6f7   : > { %15557 = vmatpush1.bf16.msra.mxu0 %v18070_v63  ;;  %v18148_v63 = vld [vmem:[%s23894_s7 + $0x870] ss:$8 sps:$4 sm:$0xff]  }
 0x6f8   : > { %15558 = vmatprep.subr.bf16.mxu0 %v18078_v31  ;;  %v13156_v31 = vrot.slane %v13151_v41, %v13155_v35  ;;  %v18203_v35 = vld [vmem:[%s23894_s7 + $0x8e0] ss:$8 sps:$4 sm:$0xff]  }
 0x6f9   : > { %15598 = vmatpush1.bf16.msra.mxu1 %v18073_v7  ;;  %v23337_v7 = vrot.slane %v13238_v5, %v21464_v19  ;;  %v18211_v5 = vld [vmem:[%s23894_s7 + $0x8d4] ss:$8 sps:$4 sm:$0xff]  }
 0x6fa   : > { %15599 = vmatprep.subr.bf16.mxu1 %v18081_v2  ;;  %v18157_v2 = vld [vmem:[%s23894_s7 + $0x864] ss:$8 sps:$4 sm:$0xff]  }
 0x6fb   : > { %15559 = vmatpush1.bf16.msra.mxu0 %v18076_v60  ;;  %v18151_v60 = vld [vmem:[%s23894_s7 + $0x970] ss:$8 sps:$4 sm:$0xff]  }
 0x6fc   : > { %15560 = vmatprep.subr.bf16.mxu0 %v18084_v33  ;;  %v13160_v33 = vrot.slane %v13151_v41, %v13159_v61  ;;  %v18214_v41 = vld [vmem:[%s23894_s7 + $0x9d4] ss:$8 sps:$4 sm:$0xff]   ;;  %v18217_v61 = vld [vmem:[%s23894_s7 + $0x8c4] ss:$8 sps:$4 sm:$0xff]  }
 0x6fd   : > { %15600 = vmatpush1.bf16.msra.mxu1 %v18079_v0 }
 0x6fe   : > { %15601 = vmatprep.subr.bf16.mxu1 %v18087_v48  ;;  %v18160_v48 = vld [vmem:[%s23894_s7 + $0x964] ss:$8 sps:$4 sm:$0xff]  }
 0x6ff   : > { %15561 = vmatpush1.bf16.msra.mxu0 %v18082_v17 }
 0x700   : > { %15562 = vmatprep.subr.bf16.mxu0 %v18090_v38  ;;  %v13254_v38 = vcombine.high %v23337_v7, %v23337_v7 }
 0x701   : > { %15602 = vmatpush1.bf16.msra.mxu1 %v18085_v8  ;;  %v18155_v8 = vld [vmem:[%s23894_s7 + $0x860] ss:$8 sps:$4 sm:$0xff]  }
 0x702   : > { %15603 = vmatprep.subr.bf16.mxu1 %v18093_v52 }
 0x703   : > { %15563 = vmatpush1.bf16.msra.mxu0 %v18088_v12  ;;  %v18163_v12 = vld [vmem:[%s23894_s7 + $0x854] ss:$8 sps:$4 sm:$0xff]  }
 0x704   : > { %15564 = vmatprep.subr.bf16.mxu0 %v18096_v50 }
 0x705   : > { %15604 = vmatpush1.bf16.msra.mxu1 %v18091_v39 }
 0x706   : > { %15605 = vmatprep.subr.bf16.mxu1 %v18099_v49  ;;  %v18158_v49 = vld [vmem:[%s23894_s7 + $0x960] ss:$8 sps:$4 sm:$0xff]  }
 0x707   : > { %15565 = vmatpush1.bf16.msra.mxu0 %v18094_v25 }
 0x708   : > { %15566 = vmatprep.subr.bf16.mxu0 %v18102_v13 }
 0x709   : > { %15606 = vmatpush1.bf16.msra.mxu1 %v18097_v16 }
 0x70a   : > { %15607 = vmatprep.subr.bf16.mxu1 %v18105_v45  ;;  %v18161_v45 = vld [vmem:[%s23894_s7 + $0x850] ss:$8 sps:$4 sm:$0xff]  }
 0x70b   : > { %15567 = vmatpush2.bf16.msra.mxu0 %v18100_v21 }
 0x70c   : > { %15568 = vmatprep.subr.bf16.mxu0 %v18108_v40 }
 0x70d   : > { %15608 = vmatpush2.bf16.msra.mxu1 %v18103_v26  ;;  %v18169_v26 = vld [vmem:[%s23894_s7 + $0x844] ss:$8 sps:$4 sm:$0xff]  }
 0x70e   : > { %15609 = vmatprep.subr.bf16.mxu1 %v18111_v20  ;;  %v18164_v20 = vld [vmem:[%s23894_s7 + $0x950] ss:$8 sps:$4 sm:$0xff]  }
 0x70f   : > { %15569 = vmatpush2.bf16.msra.mxu0 %v18106_v23 }
 0x710   : > { %15570 = vmatprep.subr.bf16.mxu0 %v18114_v29  ;;  %v18172_v29 = vld [vmem:[%s23894_s7 + $0x944] ss:$8 sps:$4 sm:$0xff]  }
 0x711   : > { %15610 = vmatpush2.bf16.msra.mxu1 %v18109_v30  ;;  %v18167_v30 = vld [vmem:[%s23894_s7 + $0x840] ss:$8 sps:$4 sm:$0xff]  }
 0x712   : > { %15611 = vmatprep.subr.bf16.mxu1 %v18117_v62  ;;  %v18175_v62 = vld [vmem:[%s23894_s7 + $0x834] ss:$8 sps:$4 sm:$0xff]  }
 0x713   : > { %15571 = vmatpush2.bf16.msra.mxu0 %v18112_v46  ;;  %v18170_v46 = vld [vmem:[%s23894_s7 + $0x940] ss:$8 sps:$4 sm:$0xff]  }
 0x714   : > { %15572 = vmatprep.subr.bf16.mxu0 %v18120_v28  ;;  %v18178_v28 = vld [vmem:[%s23894_s7 + $0x934] ss:$8 sps:$4 sm:$0xff]  }
 0x715   : > { %15612 = vmatpush2.bf16.msra.mxu1 %v18115_v43  ;;  %v18173_v43 = vld [vmem:[%s23894_s7 + $0x830] ss:$8 sps:$4 sm:$0xff]  }
 0x716   : > { %15613 = vmatprep.subr.bf16.mxu1 %v18123_v57  ;;  %v18181_v57 = vld [vmem:[%s23894_s7 + $0x824] ss:$8 sps:$4 sm:$0xff]  }
 0x717   : > { %15573 = vmatpush2.bf16.msra.mxu0 %v18118_v10  ;;  %v18176_v10 = vld [vmem:[%s23894_s7 + $0x930] ss:$8 sps:$4 sm:$0xff]  }
 0x718   : > { %15574 = vmatprep.subr.bf16.mxu0 %v18126_v22  ;;  %v18184_v22 = vld [vmem:[%s23894_s7 + $0x924] ss:$8 sps:$4 sm:$0xff]  }
 0x719   : > { %15614 = vmatpush2.bf16.msra.mxu1 %v18121_v9  ;;  %v18179_v9 = vld [vmem:[%s23894_s7 + $0x820] ss:$8 sps:$4 sm:$0xff]  }
 0x71a   : > { %15615 = vmatprep.subr.bf16.mxu1 %v18129_v59  ;;  %v18187_v59 = vld [vmem:[%s23894_s7 + $0x814] ss:$8 sps:$4 sm:$0xff]  }
 0x71b   : > { %15575 = vmatpush2.bf16.msra.mxu0 %v18124_v58  ;;  %v18182_v58 = vld [vmem:[%s23894_s7 + $0x920] ss:$8 sps:$4 sm:$0xff]  }
 0x71c   : > { %15576 = vmatprep.subr.bf16.mxu0 %v18132_v32  ;;  %v18190_v32 = vld [vmem:[%s23894_s7 + $0x914] ss:$8 sps:$4 sm:$0xff]  }
 0x71d   : > { %15616 = vmatpush2.bf16.msra.mxu1 %v18127_v3  ;;  %v18185_v3 = vld [vmem:[%s23894_s7 + $0x810] ss:$8 sps:$4 sm:$0xff]  }
 0x71e   : > { %15617 = vmatprep.subr.bf16.mxu1 %v18135_v47  ;;  %v18193_v47 = vld [vmem:[%s23894_s7 + $0x804] ss:$8 sps:$4 sm:$0xff]  }
 0x71f   : > { %15577 = vmatpush2.bf16.msra.mxu0 %v18130_v11  ;;  %v18188_v11 = vld [vmem:[%s23894_s7 + $0x910] ss:$8 sps:$4 sm:$0xff]  }
 0x720   : > { %15578 = vmatprep.subr.bf16.mxu0 %v18138_v1  ;;  %v18196_v1 = vld [vmem:[%s23894_s7 + $0x904] ss:$8 sps:$4 sm:$0xff]  }
 0x721   : > { %15618 = vmatpush2.bf16.msra.mxu1 %v18133_v15  ;;  %v18191_v15 = vld [vmem:[%s23894_s7 + $0x800] ss:$8 sps:$4 sm:$0xff]  }
 0x722   : > { %15619 = vmatprep.subr.bf16.mxu1 %v18141_v27  ;;  %v18199_v27 = vld [vmem:[%s23894_s7 + $0x8f4] ss:$8 sps:$4 sm:$0xff]  }
 0x723   : > { %15579 = vmatpush2.bf16.msra.mxu0 %v18136_v55  ;;  %v18194_v55 = vld [vmem:[%s23894_s7 + $0x900] ss:$8 sps:$4 sm:$0xff]  }
 0x724   : > { %15580 = vmatprep.subr.bf16.mxu0 %v18144_v14  ;;  %v18202_v14 = vld [vmem:[%s23894_s7 + $0x9f4] ss:$8 sps:$4 sm:$0xff]  }
 0x725   : > { %15620 = vmatpush2.bf16.msra.mxu1 %v18139_v18  ;;  %v18205_v18 = vld [vmem:[%s23894_s7 + $0x8e4] ss:$8 sps:$4 sm:$0xff]  }
 0x726   : > { %15621 = vmatprep.subr.bf16.mxu1 %v18147_v42  ;;  %v18200_v42 = vld [vmem:[%s23894_s7 + $0x9f0] ss:$8 sps:$4 sm:$0xff]  }
 0x727   : > { %15581 = vmatpush2.bf16.msra.mxu0 %v18142_v34  ;;  %v18208_v34 = vld [vmem:[%s23894_s7 + $0x9e4] ss:$8 sps:$4 sm:$0xff]  }
 0x728   : > { %15632 = vmatprep.subr.bf16.mxu0 %v18150_v56  ;;  %v18206_v56 = vld [vmem:[%s23894_s7 + $0x9e0] ss:$8 sps:$4 sm:$0xff]  }
 0x729   : > { %15622 = vmatpush2.bf16.msra.mxu1 %v18145_v44  ;;  %v18209_v44 = vld [vmem:[%s23894_s7 + $0x8d0] ss:$8 sps:$4 sm:$0xff]  }
 0x72a   : > { %15583 = vmatmul.mubr.bf16.vlgmr.msra.gmra.mxu0 %v23119_v6  ;;  %v15338_v0 = vpop.f32.mrf.mxu0  ;;  %15673 = vmatprep.subr.bf16.mxu1 %v18153_v54  ;;  %v18212_v54 = vld [vmem:[%s23894_s7 + $0x9d0] ss:$8 sps:$4 sm:$0xff]  }
 0x72b   : > { %v15339_v17 = vadd.f32 %v15338_v0, %v13156_v31  ;;  %15633 = vmatpush1.bf16.msra.mxu0 %v18148_v63  ;;  %15664 = vmatprep.mubr.bf16.mxu0 %v13253_v37  ;;  %v18220_v63 = vld [vmem:[%s23894_s7 + $0x9c4] ss:$8 sps:$4 sm:$0xff]   ;;  %v18215_v31 = vld [vmem:[%s23894_s7 + $0x8c0] ss:$8 sps:$4 sm:$0xff]  }
 0x72c   : > { %15624 = vmatmul.mubr.bf16.vlgmr.msra.gmra.mxu1 %v23128_v24  ;;  %v15340_v52 = vpop.f32.mrf.mxu0  ;;  %v15379_v6 = vpop.f32.mrf.mxu1  ;;  %15634 = vmatprep.subr.bf16.mxu0 %v18157_v2  ;;  %v18166_v24 = vld [vmem:[%s23894_s7 + $0x954] ss:$8 sps:$4 sm:$0xff]   ;;  %v18218_v37 = vld [vmem:[%s23894_s7 + $0x9c0] ss:$8 sps:$4 sm:$0xff]   ;;  %v18229_v0 = vld [vmem:[%s23894_s7 + $0x8a4] ss:$8 sps:$4 sm:$0xff]  }
 0x72d   : > { %v15341_v50 = vadd.f32 %v15340_v52, %v13160_v33  ;;  %v23360_v39 = vadd.f32 %v15379_v6, %v15339_v17  ;;  %15674 = vmatpush1.bf16.msra.mxu1 %v18151_v60  ;;  %15705 = vmatprep.mubr.bf16.mxu1 %v13254_v38  ;;  %v18223_v2 = vld [vmem:[%s23894_s7 + $0x8b4] ss:$8 sps:$4 sm:$0xff]   ;;  %v18221_v33 = vld [vmem:[%s23894_s7 + $0x8b0] ss:$8 sps:$4 sm:$0xff]   ;;  %v18232_v17 = vld [vmem:[%s23894_s7 + $0x9a4] ss:$8 sps:$4 sm:$0xff]  }
 0x72e   : > { %v15342_v25 = vpop.f32.mrf.mxu0  ;;  %v15381_v13 = vpop.f32.mrf.mxu1  ;;  %15675 = vmatprep.subr.bf16.mxu1 %v18160_v48  ;;  %v18226_v60 = vld [vmem:[%s23894_s7 + $0x9b4] ss:$8 sps:$4 sm:$0xff]   ;;  %v18224_v48 = vld [vmem:[%s23894_s7 + $0x9b0] ss:$8 sps:$4 sm:$0xff]   ;;  %v18227_v38 = vld [vmem:[%s23894_s7 + $0x8a0] ss:$8 sps:$4 sm:$0xff]  }
 0x72f   : > { %v23368_v16 = vadd.f32 %v15381_v13, %v15341_v50  ;;  %15635 = vmatpush1.bf16.msra.mxu0 %v18155_v8  ;;  %v18235_v8 = vld [vmem:[%s23894_s7 + $0x894] ss:$8 sps:$4 sm:$0xff]   ;;  %v18230_v52 = vld [vmem:[%s23894_s7 + $0x9a0] ss:$8 sps:$4 sm:$0xff]   ;;  %v18241_v50 = vld [vmem:[%s23894_s7 + $0x884] ss:$8 sps:$4 sm:$0xff]  }
 0x730   : > { %v15343_v21 = vpop.f32.mrf.mxu0  ;;  %v15383_v40 = vpop.f32.mrf.mxu1  ;;  %15636 = vmatprep.subr.bf16.mxu0 %v18163_v12  ;;  %v18238_v6 = vld [vmem:[%s23894_s7 + $0x994] ss:$8 sps:$4 sm:$0xff]   ;;  %v18233_v12 = vld [vmem:[%s23894_s7 + $0x890] ss:$8 sps:$4 sm:$0xff]   ;;  %v18244_v13 = vld [vmem:[%s23894_s7 + $0x984] ss:$8 sps:$4 sm:$0xff]  }
 0x731   : > { %15676 = vmatpush1.bf16.msra.mxu1 %v18158_v49  ;;  %v12749_v49 = vld [vmem:[#allocation7 + $0x28] sm:$0xff]  ;;  %v18242_v40 = vld [vmem:[%s23894_s7 + $0x980] ss:$8 sps:$4 sm:$0xff]  }
 0x732   : > { %v15384_v23 = vpop.f32.mrf.mxu1  ;;  %15677 = vmatprep.subr.bf16.mxu1 %v18166_v24  ;;  %v18236_v25 = vld [vmem:[%s23894_s7 + $0x990] ss:$8 sps:$4 sm:$0xff]   ;;  %v18239_v24 = vld [vmem:[%s23894_s7 + $0x880] ss:$8 sps:$4 sm:$0xff]   ;;  %v18247_v21 = vld [vmem:[%s23894_s7 + $0xa74] ss:$8 sps:$4 sm:$0xff]  }
 0x733   : > { %15637 = vmatpush1.bf16.msra.mxu0 %v18161_v45  ;;  %v13255_v45 = vcombine.high %v12749_v49, %v12749_v49  ;;  %v18245_v23 = vld [vmem:[%s23894_s7 + $0xa70] ss:$8 sps:$4 sm:$0xff]  }
 0x734   : > { %15638 = vmatprep.subr.bf16.mxu0 %v18169_v26  ;;  %v23536_v26 = vrot.slane %v12749_v49, %v21464_v19  ;;  %v18303_v49 = vld [vmem:[%s23894_s7 + $0xbe0] ss:$8 sps:$4 sm:$0xff]  }
 0x735   : > { %15678 = vmatpush1.bf16.msra.mxu1 %v18164_v20  ;;  %v18250_v20 = vld [vmem:[%s23894_s7 + $0xb74] ss:$8 sps:$4 sm:$0xff]  }
 0x736   : > { %15679 = vmatprep.subr.bf16.mxu1 %v18172_v29  ;;  %v23545_v29 = vrot.slane %v13255_v45, %v21464_v19  ;;  %v18257_v19 = vld [vmem:[%s23894_s7 + $0xb64] ss:$8 sps:$4 sm:$0xff]   ;;  %v18309_v45 = vld [vmem:[%s23894_s7 + $0xbd0] ss:$8 sps:$4 sm:$0xff]  }
 0x737   : > { %15639 = vmatpush1.bf16.msra.mxu0 %v18167_v30  ;;  %v18254_v30 = vld [vmem:[%s23894_s7 + $0xa64] ss:$8 sps:$4 sm:$0xff]  }
 0x738   : > { %15640 = vmatprep.subr.bf16.mxu0 %v18175_v62  ;;  %v13270_v62 = vcombine.high %v23536_v26, %v23536_v26 }
 0x739   : > { %15680 = vmatpush1.bf16.msra.mxu1 %v18170_v46  ;;  %v18248_v46 = vld [vmem:[%s23894_s7 + $0xb70] ss:$8 sps:$4 sm:$0xff]  }
 0x73a   : > { %15681 = vmatprep.subr.bf16.mxu1 %v18178_v28 }
 0x73b   : > { %15641 = vmatpush1.bf16.msra.mxu0 %v18173_v43 }
 0x73c   : > { %15642 = vmatprep.subr.bf16.mxu0 %v18181_v57  ;;  %v13271_v57 = vcombine.high %v23545_v29, %v23545_v29 }
 0x73d   : > { %15682 = vmatpush1.bf16.msra.mxu1 %v18176_v10  ;;  %v18252_v10 = vld [vmem:[%s23894_s7 + $0xa60] ss:$8 sps:$4 sm:$0xff]  }
 0x73e   : > { %15683 = vmatprep.subr.bf16.mxu1 %v18184_v22 }
 0x73f   : > { %15643 = vmatpush1.bf16.msra.mxu0 %v18179_v9 }
 0x740   : > { %15644 = vmatprep.subr.bf16.mxu0 %v18187_v59 }
 0x741   : > { %15684 = vmatpush1.bf16.msra.mxu1 %v18182_v58  ;;  %v18255_v58 = vld [vmem:[%s23894_s7 + $0xb60] ss:$8 sps:$4 sm:$0xff]  }
 0x742   : > { %15685 = vmatprep.subr.bf16.mxu1 %v18190_v32 }
 0x743   : > { %15645 = vmatpush1.bf16.msra.mxu0 %v18185_v3 }
 0x744   : > { %15646 = vmatprep.subr.bf16.mxu0 %v18193_v47 }
 0x745   : > { %15686 = vmatpush1.bf16.msra.mxu1 %v18188_v11 }
 0x746   : > { %15687 = vmatprep.subr.bf16.mxu1 %v18196_v1 }
 0x747   : > { %15647 = vmatpush1.bf16.msra.mxu0 %v18191_v15  ;;  %v18266_v15 = vld [vmem:[%s23894_s7 + $0xa44] ss:$8 sps:$4 sm:$0xff]  }
 0x748   : > { %15648 = vmatprep.subr.bf16.mxu0 %v18199_v27  ;;  %v18261_v27 = vld [vmem:[%s23894_s7 + $0xb50] ss:$8 sps:$4 sm:$0xff]  }
 0x749   : > { %15688 = vmatpush1.bf16.msra.mxu1 %v18194_v55 }
 0x74a   : > { %15689 = vmatprep.subr.bf16.mxu1 %v18202_v14  ;;  %v18269_v14 = vld [vmem:[%s23894_s7 + $0xb44] ss:$8 sps:$4 sm:$0xff]  }
 0x74b   : > { %15649 = vmatpush2.bf16.msra.mxu0 %v18197_v36  ;;  %v18264_v36 = vld [vmem:[%s23894_s7 + $0xa40] ss:$8 sps:$4 sm:$0xff]  }
 0x74c   : > { %15650 = vmatprep.subr.bf16.mxu0 %v18205_v18  ;;  %v18272_v18 = vld [vmem:[%s23894_s7 + $0xa34] ss:$8 sps:$4 sm:$0xff]  }
 0x74d   : > { %15690 = vmatpush2.bf16.msra.mxu1 %v18200_v42  ;;  %v18267_v42 = vld [vmem:[%s23894_s7 + $0xb40] ss:$8 sps:$4 sm:$0xff]  }
 0x74e   : > { %15691 = vmatprep.subr.bf16.mxu1 %v18208_v34  ;;  %v18275_v34 = vld [vmem:[%s23894_s7 + $0xb34] ss:$8 sps:$4 sm:$0xff]  }
 0x74f   : > { %15651 = vmatpush2.bf16.msra.mxu0 %v18203_v35  ;;  %v18270_v35 = vld [vmem:[%s23894_s7 + $0xa30] ss:$8 sps:$4 sm:$0xff]  }
 0x750   : > { %15652 = vmatprep.subr.bf16.mxu0 %v18211_v5  ;;  %v18278_v5 = vld [vmem:[%s23894_s7 + $0xa24] ss:$8 sps:$4 sm:$0xff]  }
 0x751   : > { %15692 = vmatpush2.bf16.msra.mxu1 %v18206_v56  ;;  %v18273_v56 = vld [vmem:[%s23894_s7 + $0xb30] ss:$8 sps:$4 sm:$0xff]  }
 0x752   : > { %15693 = vmatprep.subr.bf16.mxu1 %v18214_v41  ;;  %v18281_v41 = vld [vmem:[%s23894_s7 + $0xb24] ss:$8 sps:$4 sm:$0xff]  }
 0x753   : > { %15653 = vmatpush2.bf16.msra.mxu0 %v18209_v44  ;;  %v18276_v44 = vld [vmem:[%s23894_s7 + $0xa20] ss:$8 sps:$4 sm:$0xff]  }
 0x754   : > { %15654 = vmatprep.subr.bf16.mxu0 %v18217_v61  ;;  %v18284_v61 = vld [vmem:[%s23894_s7 + $0xa14] ss:$8 sps:$4 sm:$0xff]  }
 0x755   : > { %15694 = vmatpush2.bf16.msra.mxu1 %v18212_v54  ;;  %v18279_v54 = vld [vmem:[%s23894_s7 + $0xb20] ss:$8 sps:$4 sm:$0xff]  }
 0x756   : > { %15695 = vmatprep.subr.bf16.mxu1 %v18220_v63  ;;  %v18287_v63 = vld [vmem:[%s23894_s7 + $0xb14] ss:$8 sps:$4 sm:$0xff]  }
 0x757   : > { %15655 = vmatpush2.bf16.msra.mxu0 %v18215_v31  ;;  %v18282_v31 = vld [vmem:[%s23894_s7 + $0xa10] ss:$8 sps:$4 sm:$0xff]  }
 0x758   : > { %15656 = vmatprep.subr.bf16.mxu0 %v18223_v2  ;;  %v18290_v2 = vld [vmem:[%s23894_s7 + $0xa04] ss:$8 sps:$4 sm:$0xff]  }
 0x759   : > { %15696 = vmatpush2.bf16.msra.mxu1 %v18218_v37  ;;  %v18285_v37 = vld [vmem:[%s23894_s7 + $0xb10] ss:$8 sps:$4 sm:$0xff]  }
 0x75a   : > { %15697 = vmatprep.subr.bf16.mxu1 %v18226_v60  ;;  %v18293_v60 = vld [vmem:[%s23894_s7 + $0xb04] ss:$8 sps:$4 sm:$0xff]  }
 0x75b   : > { %15657 = vmatpush2.bf16.msra.mxu0 %v18221_v33  ;;  %v18288_v33 = vld [vmem:[%s23894_s7 + $0xa00] ss:$8 sps:$4 sm:$0xff]  }
 0x75c   : > { %15658 = vmatprep.subr.bf16.mxu0 %v18229_v0  ;;  %v18296_v0 = vld [vmem:[%s23894_s7 + $0xaf4] ss:$8 sps:$4 sm:$0xff]  }
 0x75d   : > { %15698 = vmatpush2.bf16.msra.mxu1 %v18224_v48  ;;  %v18291_v48 = vld [vmem:[%s23894_s7 + $0xb00] ss:$8 sps:$4 sm:$0xff]  }
 0x75e   : > { %15699 = vmatprep.subr.bf16.mxu1 %v18232_v17  ;;  %v18299_v17 = vld [vmem:[%s23894_s7 + $0xbf4] ss:$8 sps:$4 sm:$0xff]  }
 0x75f   : > { %15659 = vmatpush2.bf16.msra.mxu0 %v18227_v38  ;;  %v18294_v38 = vld [vmem:[%s23894_s7 + $0xaf0] ss:$8 sps:$4 sm:$0xff]  }
 0x760   : > { %15660 = vmatprep.subr.bf16.mxu0 %v18235_v8  ;;  %v18302_v8 = vld [vmem:[%s23894_s7 + $0xae4] ss:$8 sps:$4 sm:$0xff]  }
 0x761   : > { %15700 = vmatpush2.bf16.msra.mxu1 %v18230_v52  ;;  %v18297_v52 = vld [vmem:[%s23894_s7 + $0xbf0] ss:$8 sps:$4 sm:$0xff]  }
 0x762   : > { %15701 = vmatprep.subr.bf16.mxu1 %v18238_v6  ;;  %v18305_v6 = vld [vmem:[%s23894_s7 + $0xbe4] ss:$8 sps:$4 sm:$0xff]  }
 0x763   : > { %15661 = vmatpush2.bf16.msra.mxu0 %v18233_v12  ;;  %v18300_v12 = vld [vmem:[%s23894_s7 + $0xae0] ss:$8 sps:$4 sm:$0xff]  }
 0x764   : > { %15662 = vmatprep.subr.bf16.mxu0 %v18241_v50  ;;  %v18308_v50 = vld [vmem:[%s23894_s7 + $0xad4] ss:$8 sps:$4 sm:$0xff]  }
 0x765   : > { %15702 = vmatpush2.bf16.msra.mxu1 %v18236_v25  ;;  %v18311_v25 = vld [vmem:[%s23894_s7 + $0xbd4] ss:$8 sps:$4 sm:$0xff]  }
 0x766   : > { %15703 = vmatprep.subr.bf16.mxu1 %v18244_v13  ;;  %v18306_v13 = vld [vmem:[%s23894_s7 + $0xad0] ss:$8 sps:$4 sm:$0xff]  }
 0x767   : > { %15663 = vmatpush2.bf16.msra.mxu0 %v18239_v24  ;;  %v18314_v24 = vld [vmem:[%s23894_s7 + $0xac4] ss:$8 sps:$4 sm:$0xff]  }
 0x768   : > { %15714 = vmatprep.subr.bf16.mxu0 %v18247_v21  ;;  %v18317_v21 = vld [vmem:[%s23894_s7 + $0xbc4] ss:$8 sps:$4 sm:$0xff]  }
 0x769   : > { %15704 = vmatpush2.bf16.msra.mxu1 %v18242_v40  ;;  %v18312_v40 = vld [vmem:[%s23894_s7 + $0xac0] ss:$8 sps:$4 sm:$0xff]  }
 0x76a   : > { %v15420_v28 = vpop.f32.mrf.mxu0  ;;  %15665 = vmatmul.mubr.bf16.vlgmr.msra.gmra.mxu0 %v23327_v51  ;;  %15755 = vmatprep.subr.bf16.mxu1 %v18250_v20  ;;  %v18260_v51 = vld [vmem:[%s23894_s7 + $0xa54] ss:$8 sps:$4 sm:$0xff]  }
 0x76b   : > { %v15421_v43 = vadd.f32 %v15420_v28, %v23360_v39  ;;  %15715 = vmatpush1.bf16.msra.mxu0 %v18245_v23  ;;  %15746 = vmatprep.mubr.bf16.mxu0 %v13270_v62  ;;  %v18320_v20 = vld [vmem:[%s23894_s7 + $0xab4] ss:$8 sps:$4 sm:$0xff]   ;;  %v18315_v23 = vld [vmem:[%s23894_s7 + $0xbc0] ss:$8 sps:$4 sm:$0xff]   ;;  %v18318_v62 = vld [vmem:[%s23894_s7 + $0xab0] ss:$8 sps:$4 sm:$0xff]  }
 0x76c   : > { %v15422_v22 = vpop.f32.mrf.mxu0  ;;  %v15461_v9 = vpop.f32.mrf.mxu1  ;;  %15706 = vmatmul.mubr.bf16.vlgmr.msra.gmra.mxu1 %v23337_v7  ;;  %15716 = vmatprep.subr.bf16.mxu0 %v18254_v30  ;;  %v18263_v7 = vld [vmem:[%s23894_s7 + $0xb54] ss:$8 sps:$4 sm:$0xff]   ;;  %v18321_v28 = vld [vmem:[%s23894_s7 + $0xbb0] ss:$8 sps:$4 sm:$0xff]  }
 0x76d   : > { %v15423_v39 = vadd.f32 %v15422_v22, %v23368_v16  ;;  %v23570_v59 = vadd.f32 %v15461_v9, %v15421_v43  ;;  %15756 = vmatpush1.bf16.msra.mxu1 %v18248_v46  ;;  %15787 = vmatprep.mubr.bf16.mxu1 %v13271_v57  ;;  %v18258_v16 = vld [vmem:[%s23894_s7 + $0xa50] ss:$8 sps:$4 sm:$0xff]   ;;  %v18323_v30 = vld [vmem:[%s23894_s7 + $0xbb4] ss:$8 sps:$4 sm:$0xff]   ;;  %v18326_v46 = vld [vmem:[%s23894_s7 + $0xaa4] ss:$8 sps:$4 sm:$0xff]  }
 0x76e   : > { %v15424_v32 = vpop.f32.mrf.mxu0  ;;  %v15463_v3 = vpop.f32.mrf.mxu1  ;;  %15757 = vmatprep.subr.bf16.mxu1 %v18257_v19  ;;  %v18329_v19 = vld [vmem:[%s23894_s7 + $0xba4] ss:$8 sps:$4 sm:$0xff]   ;;  %v18324_v43 = vld [vmem:[%s23894_s7 + $0xaa0] ss:$8 sps:$4 sm:$0xff]   ;;  %v18332_v57 = vld [vmem:[%s23894_s7 + $0xa94] ss:$8 sps:$4 sm:$0xff]  }
 0x76f   : > { %v23578_v47 = vadd.f32 %v15463_v3, %v15423_v39  ;;  %15717 = vmatpush1.bf16.msra.mxu0 %v18252_v10  ;;  %v18327_v10 = vld [vmem:[%s23894_s7 + $0xba0] ss:$8 sps:$4 sm:$0xff]   ;;  %v18335_v22 = vld [vmem:[%s23894_s7 + $0xb94] ss:$8 sps:$4 sm:$0xff]   ;;  %v18330_v9 = vld [vmem:[%s23894_s7 + $0xa90] ss:$8 sps:$4 sm:$0xff]  }
 0x770   : > { %v15425_v11 = vpop.f32.mrf.mxu0  ;;  %v15465_v1 = vpop.f32.mrf.mxu1  ;;  %15718 = vmatprep.subr.bf16.mxu0 %v18260_v51  ;;  %v18338_v51 = vld [vmem:[%s23894_s7 + $0xa84] ss:$8 sps:$4 sm:$0xff]   ;;  %v18333_v39 = vld [vmem:[%s23894_s7 + $0xb90] ss:$8 sps:$4 sm:$0xff]   ;;  %v18336_v32 = vld [vmem:[%s23894_s7 + $0xa80] ss:$8 sps:$4 sm:$0xff]  }
 0x771   : > { %15758 = vmatpush1.bf16.msra.mxu1 %v18255_v58  ;;  %v18341_v58 = vld [vmem:[%s23894_s7 + $0xb84] ss:$8 sps:$4 sm:$0xff]   ;;  %v18344_v3 = vld [vmem:[%s23894_s7 + $0xc74] ss:$8 sps:$4 sm:$0xff]  }
 0x772   : > { %v15466_v55 = vpop.f32.mrf.mxu1  ;;  %15759 = vmatprep.subr.bf16.mxu1 %v18263_v7  ;;  %v18339_v7 = vld [vmem:[%s23894_s7 + $0xb80] ss:$8 sps:$4 sm:$0xff]   ;;  %v18347_v11 = vld [vmem:[%s23894_s7 + $0xc64] ss:$8 sps:$4 sm:$0xff]  }
 0x773   : > { %15719 = vmatpush1.bf16.msra.mxu0 %v18258_v16  ;;  %v18342_v16 = vld [vmem:[%s23894_s7 + $0xc70] ss:$8 sps:$4 sm:$0xff]  }
 0x774   : > { %15720 = vmatprep.subr.bf16.mxu0 %v18266_v15 }
 0x775   : > { %15760 = vmatpush1.bf16.msra.mxu1 %v18261_v27  ;;  %v18345_v27 = vld [vmem:[%s23894_s7 + $0xc60] ss:$8 sps:$4 sm:$0xff]  }
 0x776   : > { %15761 = vmatprep.subr.bf16.mxu1 %v18269_v14 }
 0x777   : > { %15721 = vmatpush1.bf16.msra.mxu0 %v18264_v36  ;;  %v18350_v36 = vld [vmem:[%s23894_s7 + $0xc54] ss:$8 sps:$4 sm:$0xff]  }
 0x778   : > { %15722 = vmatprep.subr.bf16.mxu0 %v18272_v18 }
 0x779   : > { %15762 = vmatpush1.bf16.msra.mxu1 %v18267_v42 }
 0x77a   : > { %15763 = vmatprep.subr.bf16.mxu1 %v18275_v34 }
 0x77b   : > { %15723 = vmatpush1.bf16.msra.mxu0 %v18270_v35 }
 0x77c   : > { %15724 = vmatprep.subr.bf16.mxu0 %v18278_v5 }
 0x77d   : > { %15764 = vmatpush1.bf16.msra.mxu1 %v18273_v56 }
 0x77e   : > { %15765 = vmatprep.subr.bf16.mxu1 %v18281_v41  ;;  %v18356_v41 = vld [vmem:[%s23894_s7 + $0xc34] ss:$8 sps:$4 sm:$0xff]  }
 0x77f   : > { %15725 = vmatpush1.bf16.msra.mxu0 %v18276_v44  ;;  %v18354_v44 = vld [vmem:[%s23894_s7 + $0xc30] ss:$8 sps:$4 sm:$0xff]  }
 0x780   : > { %15726 = vmatprep.subr.bf16.mxu0 %v18284_v61  ;;  %v18359_v61 = vld [vmem:[%s23894_s7 + $0xc24] ss:$8 sps:$4 sm:$0xff]  }
 0x781   : > { %15766 = vmatpush1.bf16.msra.mxu1 %v18279_v54  ;;  %v18357_v54 = vld [vmem:[%s23894_s7 + $0xc20] ss:$8 sps:$4 sm:$0xff]  }
 0x782   : > { %15767 = vmatprep.subr.bf16.mxu1 %v18287_v63  ;;  %v18362_v63 = vld [vmem:[%s23894_s7 + $0xc14] ss:$8 sps:$4 sm:$0xff]  }
 0x783   : > { %15727 = vmatpush1.bf16.msra.mxu0 %v18282_v31  ;;  %v18360_v31 = vld [vmem:[%s23894_s7 + $0xc10] ss:$8 sps:$4 sm:$0xff]  }
 0x784   : > { %15728 = vmatprep.subr.bf16.mxu0 %v18290_v2  ;;  %v18365_v2 = vld [vmem:[%s23894_s7 + $0xc04] ss:$8 sps:$4 sm:$0xff]  }
 0x785   : > { %15768 = vmatpush1.bf16.msra.mxu1 %v18285_v37  ;;  %v18363_v37 = vld [vmem:[%s23894_s7 + $0xc00] ss:$8 sps:$4 sm:$0xff]  }
 0x786   : > { %15769 = vmatprep.subr.bf16.mxu1 %v18293_v60  ;;  %v16663_v60 = vld.sshfl [vmem:[#allocation7 + $0x30] sm:$0x3 pattern:$0x76325410] }
 0x787   : > { %15729 = vmatpush1.bf16.msra.mxu0 %v18288_v33 }
 0x788   : > { %15730 = vmatprep.subr.bf16.mxu0 %v18296_v0 }
 0x789   : > { %15770 = vmatpush1.bf16.msra.mxu1 %v18291_v48 }
 0x78a   : > { %15771 = vmatprep.subr.bf16.mxu1 %v18299_v17 }
 0x78b   : > { %15731 = vmatpush2.bf16.msra.mxu0 %v18294_v38 }
 0x78c   : > { %15732 = vmatprep.subr.bf16.mxu0 %v18302_v8 }
 0x78d   : > { %15772 = vmatpush2.bf16.msra.mxu1 %v18297_v52 }
 0x78e   : > { %15773 = vmatprep.subr.bf16.mxu1 %v18305_v6 }
 0x78f   : > { %15733 = vmatpush2.bf16.msra.mxu0 %v18300_v12 }
 0x790   : > { %15734 = vmatprep.subr.bf16.mxu0 %v18308_v50 }
 0x791   : > { %15774 = vmatpush2.bf16.msra.mxu1 %v18303_v49 }
 0x792   : > { %15775 = vmatprep.subr.bf16.mxu1 %v18311_v25 }
 0x793   : > { %15735 = vmatpush2.bf16.msra.mxu0 %v18306_v13  ;;  %v18366_v13 = vld [vmem:[%s23896_s9 + $0x78] sm:$0xff]  }
 0x794   : > { %15736 = vmatprep.subr.bf16.mxu0 %v18314_v24  ;;  %v18367_v24 = vld [vmem:[%s23896_s9 + $0x38] sm:$0xff]  }
 0x795   : > { %15776 = vmatpush2.bf16.msra.mxu1 %v18309_v45  ;;  %v18368_v45 = vld [vmem:[%s23896_s9 + $0x70] sm:$0xff]  }
 0x796   : > { %15777 = vmatprep.subr.bf16.mxu1 %v18317_v21  ;;  %v18369_v21 = vld [vmem:[%s23896_s9 + $0x30] sm:$0xff]  }
 0x797   : > { %15737 = vmatpush2.bf16.msra.mxu0 %v18312_v40  ;;  %v18370_v40 = vld [vmem:[%s23896_s9 + $0x68] sm:$0xff]  }
 0x798   : > { %15738 = vmatprep.subr.bf16.mxu0 %v18320_v20  ;;  %v18371_v20 = vld [vmem:[%s23896_s9 + $0x28] sm:$0xff]  }
 0x799   : > { %15778 = vmatpush2.bf16.msra.mxu1 %v18315_v23  ;;  %v18372_v23 = vld [vmem:[%s23896_s9 + $0x60] sm:$0xff]  }
 0x79a   : > { %15779 = vmatprep.subr.bf16.mxu1 %v18323_v30  ;;  %v18373_v30 = vld [vmem:[%s23896_s9 + $0x20] sm:$0xff]  }
 0x79b   : > { %15739 = vmatpush2.bf16.msra.mxu0 %v18318_v62  ;;  %v18374_v62 = vld [vmem:[%s23896_s9 + $0x58] sm:$0xff]  }
 0x79c   : > { %15740 = vmatprep.subr.bf16.mxu0 %v18326_v46  ;;  %v18375_v46 = vld [vmem:[%s23896_s9 + $0x18] sm:$0xff]  }
 0x79d   : > { %15780 = vmatpush2.bf16.msra.mxu1 %v18321_v28  ;;  %v18376_v28 = vld [vmem:[%s23896_s9 + $0x50] sm:$0xff]  }
 0x79e   : > { %15781 = vmatprep.subr.bf16.mxu1 %v18329_v19  ;;  %v18382_v19 = vld [vmem:[%s23898_s11 + $0x38] sm:$0xff]  }
 0x79f   : > { %15741 = vmatpush2.bf16.msra.mxu0 %v18324_v43  ;;  %v18377_v43 = vld [vmem:[%s23896_s9 + $0x10] sm:$0xff]  }
 0x7a0   : > { %15742 = vmatprep.subr.bf16.mxu0 %v18332_v57  ;;  %v18383_v57 = vld [vmem:[%s23898_s11 + $0x30] sm:$0xff]  }
 0x7a1   : > { %15782 = vmatpush2.bf16.msra.mxu1 %v18327_v10  ;;  %v18378_v10 = vld [vmem:[%s23896_s9 + $0x48] sm:$0xff]  }
 0x7a2   : > { %15783 = vmatprep.subr.bf16.mxu1 %v18335_v22  ;;  %v18379_v22 = vld [vmem:[%s23896_s9 + $0x8] sm:$0xff]  }
 0x7a3   : > { %15743 = vmatpush2.bf16.msra.mxu0 %v18330_v9  ;;  %v18384_v9 = vld [vmem:[%s23898_s11 + $0x28] sm:$0xff]  }
 0x7a4   : > { %15744 = vmatprep.subr.bf16.mxu0 %v18338_v51 }
 0x7a5   : > { %15784 = vmatpush2.bf16.msra.mxu1 %v18333_v39  ;;  %v18380_v39 = vld [vmem:[%s23896_s9 + $0x40] sm:$0xff]  }
 0x7a6   : > { %15785 = vmatprep.subr.bf16.mxu1 %v18341_v58 }
 0x7a7   : > { %15745 = vmatpush2.bf16.msra.mxu0 %v18336_v32 }
 0x7a8   : > { %15796 = vmatprep.subr.bf16.mxu0 %v18344_v3 }
 0x7a9   : > { %15786 = vmatpush2.bf16.msra.mxu1 %v18339_v7 }
 0x7aa   : > { %v15502_v1 = vpop.f32.mrf.mxu0  ;;  %15747 = vmatmul.mubr.bf16.vlgmr.msra.gmra.mxu0 %v23536_v26  ;;  %17374 = vmatprep.subr.bf16.mxu1 %v18366_v13 }
 0x7ab   : > { %v15503_v15 = vadd.f32 %v15502_v1, %v23570_v59  ;;  %15797 = vmatpush1.bf16.msra.mxu0 %v18342_v16  ;;  %15828 = vmatprep.mubr.bf16.mxu0 %v23928_v4  ;;  %v18348_v4 = vld [vmem:[%s23894_s7 + $0xc50] ss:$8 sps:$4 sm:$0xff]   ;;  %v18385_v1 = vld [vmem:[%s23898_s11 + $0x20] sm:$0xff]  }
 0x7ac   : > { %v15504_v55 = vpop.f32.mrf.mxu0  ;;  %v15543_v14 = vpop.f32.mrf.mxu1  ;;  %15788 = vmatmul.mubr.bf16.vlgmr.msra.gmra.mxu1 %v23545_v29  ;;  %15798 = vmatprep.subr.bf16.mxu0 %v18347_v11  ;;  %v18353_v29 = vld [vmem:[%s23894_s7 + $0xc44] ss:$8 sps:$4 sm:$0xff]  }
 0x7ad   : > { %v15505_v26 = vadd.f32 %v15504_v55, %v23578_v47  ;;  %v15544_v18 = vadd.f32 %v15543_v14, %v15503_v15  ;;  %v18351_v47 = vld [vmem:[%s23894_s7 + $0xc40] ss:$8 sps:$4 sm:$0xff]   ;;  %17375 = vmatpush3.bf16.msra.mxu1 %v18367_v24 }
 0x7ae   : > { %v15506_v59 = vpop.f32.mrf.mxu0  ;;  %v15545_v42 = vpop.f32.mrf.mxu1  ;;  %17376 = vmatprep.subr.bf16.mxu1 %v18368_v45  ;;  %v18381_v11 = vld [vmem:[%s23896_s9] sm:$0xff]  }
 0x7af   : > { %v15546_v34 = vadd.f32 %v15545_v42, %v15505_v26  ;;  %15799 = vmatpush1.bf16.msra.mxu0 %v18345_v27  ;;  %v18386_v26 = vld [vmem:[%s23898_s11 + $0x18] sm:$0xff]  }
 0x7b0   : > { %v15507_v35 = vpop.f32.mrf.mxu0  ;;  %v15547_v5 = vpop.f32.mrf.mxu1  ;;  %15800 = vmatprep.subr.bf16.mxu0 %v18350_v36 }
 0x7b1   : > { %17377 = vmatpush3.bf16.msra.mxu1 %v18369_v21 }
 0x7b2   : > { %v15548_v56 = vpop.f32.mrf.mxu1  ;;  %17378 = vmatprep.subr.bf16.mxu1 %v18370_v40 }
 0x7b3   : > { %15801 = vmatpush1.bf16.msra.mxu0 %v18348_v4 }
 0x7b4   : > { %15802 = vmatprep.subr.bf16.mxu0 %v18353_v29 }
 0x7b5   : > { %17379 = vmatpush3.bf16.msra.mxu1 %v18371_v20 }
 0x7b6   : > { %17380 = vmatprep.subr.bf16.mxu1 %v18372_v23 }
 0x7b7   : > { %15803 = vmatpush1.bf16.msra.mxu0 %v18351_v47 }
 0x7b8   : > { %15804 = vmatprep.subr.bf16.mxu0 %v18356_v41 }
 0x7b9   : > { %17381 = vmatpush3.bf16.msra.mxu1 %v18373_v30 }
 0x7ba   : > { %17382 = vmatprep.subr.bf16.mxu1 %v18374_v62  ;;  %v18387_v62 = vld [vmem:[%s23898_s11 + $0x10] sm:$0xff]  }
 0x7bb   : > { %15805 = vmatpush1.bf16.msra.mxu0 %v18354_v44 }
 0x7bc   : > { %15806 = vmatprep.subr.bf16.mxu0 %v18359_v61 }
 0x7bd   : > { %17383 = vmatpush3.bf16.msra.mxu1 %v18375_v46  ;;  %v18388_v46 = vld [vmem:[%s23898_s11 + $0x8] sm:$0xff]  }
 0x7be   : > { %17384 = vmatprep.subr.bf16.mxu1 %v18376_v28  ;;  %v18389_v28 = vld [vmem:[%s23898_s11] sm:$0xff]  }
 0x7bf   : > { %15807 = vmatpush1.bf16.msra.mxu0 %v18357_v54 }
 0x7c0   : > { %15808 = vmatprep.subr.bf16.mxu0 %v18362_v63 }
 0x7c1   : > { %17385 = vmatpush3.bf16.msra.mxu1 %v18377_v43  ;;  %v15891_v43 = vld [vmem:[%s23897_s10] sm:$0x1] }
 0x7c2   : > { %17386 = vmatprep.subr.bf16.mxu1 %v18378_v10 }
 0x7c3   : > { %15809 = vmatpush1.bf16.msra.mxu0 %v18360_v31 }
 0x7c4   : > { %15810 = vmatprep.subr.bf16.mxu0 %v18365_v2 }
 0x7c5   : > { %17387 = vmatpush3.bf16.msra.mxu1 %v18379_v22 }
 0x7c6   : > { %17388 = vmatprep.subr.bf16.mxu1 %v18380_v39 }
 0x7c7   : > { %15811 = vmatpush1.bf16.msra.mxu0 %v18363_v37 }
 0x7c8   : > { %17469 = vmatprep.subr.bf16.mxu0 %v18428_v53 }
 0x7c9   : > { %17389 = vmatpush3.bf16.msra.mxu1 %v18381_v11 }
 0x7ca   : > { %15829 = vmatmul.mubr.bf16.vlgmr.msra.gmra.mxu0 %v16663_v60 }
 0x7cb   : > { %17485 = vmatprep.mubr.msk.bf16.mxu0 %vm18429_vm10, %v18428_v53  ;;  %17470 = vmatpush3.bf16.msra.mxu0 %v18382_v19  ;;  %vm15839_vm10 = vcmask 1043456  }
 0x7cc   : > { %17471 = vmatprep.subr.bf16.mxu0 %v18428_v53 }
 0x7cf   : > { %17472 = vmatpush3.bf16.msra.mxu0 %v18383_v57 }
 0x7d0   : > { %17473 = vmatprep.subr.bf16.mxu0 %v18428_v53 }
 0x7d3   : > { %17474 = vmatpush3.bf16.msra.mxu0 %v18384_v9 }
 0x7d4   : > { %17475 = vmatprep.subr.bf16.mxu0 %v18428_v53 }
 0x7d7   : > { %17476 = vmatpush3.bf16.msra.mxu0 %v18385_v1 }
 0x7d8   : > { %17477 = vmatprep.subr.bf16.mxu0 %v18428_v53 }
 0x7db   : > { %17478 = vmatpush3.bf16.msra.mxu0 %v18386_v26 }
 0x7dc   : > { %17479 = vmatprep.subr.bf16.mxu0 %v18428_v53 }
 0x7df   : > { %17480 = vmatpush3.bf16.msra.mxu0 %v18387_v62 }
 0x7e0   : > { %17481 = vmatprep.subr.bf16.mxu0 %v18428_v53 }
 0x7e3   : > { %17482 = vmatpush3.bf16.msra.mxu0 %v18388_v46 }
 0x7e4   : > { %17483 = vmatprep.subr.bf16.mxu0 %v18428_v53 }
 0x7e7   : > { %17484 = vmatpush3.bf16.msra.mxu0 %v18389_v28 }
 0x7ea   : > { %v15584_v33 = vpop.f32.mrf.mxu0 }
 0x7eb   : > { %v15585_v0 = vadd.f32 %v15584_v33, %v15544_v18 }
 0x7ec   : > { %v15586_v48 = vpop.f32.mrf.mxu0  ;;  %v15625_v17 = vpop.f32.mrf.mxu1 }
 0x7ed   : > { %v15587_v38 = vadd.f32 %v15586_v48, %v15546_v34  ;;  %v15626_v8 = vadd.f32 %v15625_v17, %v15585_v0 }
 0x7ee   : > { %v15588_v52 = vpop.f32.mrf.mxu0  ;;  %v15627_v6 = vpop.f32.mrf.mxu1 }
 0x7ef   : > { %v15628_v12 = vadd.f32 %v15627_v6, %v15587_v38 }
 0x7f0   : > { %v15589_v50 = vpop.f32.mrf.mxu0  ;;  %v15629_v49 = vpop.f32.mrf.mxu1 }
 0x7f2   : > { %v15630_v25 = vpop.f32.mrf.mxu1 }
 0x82a   : > { %v15666_v51 = vpop.f32.mrf.mxu0 }
 0x82b   : > { %v15667_v58 = vadd.f32 %v15666_v51, %v15626_v8 }
 0x82c   : > { %v15668_v32 = vpop.f32.mrf.mxu0  ;;  %v15707_v3 = vpop.f32.mrf.mxu1 }
 0x82d   : > { %v15669_v7 = vadd.f32 %v15668_v32, %v15628_v12  ;;  %v15708_v16 = vadd.f32 %v15707_v3, %v15667_v58  ;;  %v16046_v32 = vld [vmem:[#allocation8] sm:$0x1] }
 0x82e   : > { %v15670_v15 = vpop.f32.mrf.mxu0  ;;  %v15709_v27 = vpop.f32.mrf.mxu1 }
 0x82f   : > { %v15710_v55 = vadd.f32 %v15709_v27, %v15669_v7 }
 0x830   : > { %v15671_v14 = vpop.f32.mrf.mxu0  ;;  %v15711_v36 = vpop.f32.mrf.mxu1 }
 0x832   : > { %v15712_v18 = vpop.f32.mrf.mxu1 }
 0x86a   : > { %v15748_v59 = vpop.f32.mrf.mxu0 }
 0x86b   : > { %v15749_v47 = vadd.f32 %v15748_v59, %v15708_v16 }
 0x86c   : > { %v15750_v42 = vpop.f32.mrf.mxu0  ;;  %v15789_v34 = vpop.f32.mrf.mxu1 }
 0x86d   : > { %v15751_v41 = vadd.f32 %v15750_v42, %v15710_v55  ;;  %v15790_v44 = vadd.f32 %v15789_v34, %v15749_v47 }
 0x86e   : > { %v15752_v4 = vpop.f32.mrf.mxu0  ;;  %v15791_v35 = vpop.f32.mrf.mxu1 }
 0x86f   : > { %v15792_v54 = vadd.f32 %v15791_v35, %v15751_v41 }
 0x870   : > { %v15753_v5 = vpop.f32.mrf.mxu0  ;;  %v15793_v29 = vpop.f32.mrf.mxu1 }
 0x872   : > { %v15794_v56 = vpop.f32.mrf.mxu1 }
 0x88a   : > { %v15830_v61 = vpop.f32.mrf.mxu0 }
 0x88b   : > { %v15831_v63 = vadd.f32 %v15830_v61, %v15790_v44 }
 0x88c   : > { %v15832_v31 = vpop.f32.mrf.mxu0 }
 0x88d   : > { %v15837_v2 = vmax.f32 %v15831_v63, 0.0  ;;  %v15833_v37 = vadd.f32 %v15832_v31, %v15792_v54 }
 0x88e   : > { %v15834_v60 = vpop.f32.mrf.mxu0 }
 0x88f   : > { %v15840_v33 = vsel %vm15839_vm10, %v15837_v2, 0.0  ;;  %v15838_v0 = vmax.f32 %v15833_v37, 0.0 }
 0x890   : > { %v15841_v48 = vrot.slane %v15840_v33, 4  ;;  %v15835_v17 = vpop.f32.mrf.mxu0 }
 0x891   : > { %v15847_v38 = vsel %vm15839_vm10, %v15838_v0, 0.0 }
 0x892   : > { %v15842_v8 = vadd.f32 %v15841_v48, %v15840_v33  ;;  %v15848_v52 = vrot.slane %v15847_v38, 4 }
 0x894   : > { %v15843_v6 = vrot.slane %v15842_v8, 2  ;;  %v15849_v12 = vadd.f32 %v15848_v52, %v15847_v38 }
 0x896   : > { %v15844_v50 = vadd.f32 %v15843_v6, %v15842_v8  ;;  %v15850_v49 = vrot.slane %v15849_v12, 2 }
 0x898   : > { %v15845_v25 = vrot.slane %v15844_v50, 1  ;;  %v15851_v13 = vadd.f32 %v15850_v49, %v15849_v12 }
 0x89a   : > { %v15846_v24 = vadd.f32 %v15845_v25, %v15844_v50  ;;  %v15852_v45 = vrot.slane %v15851_v13, 1 }
 0x89c   : > { %v15853_v21 = vadd.f32 %v15852_v45, %v15851_v13  ;;  %v15855_v40 = vmul.f32 0.25, %v15846_v24 }
 0x89e   : > { %v15856_v20 = vmul.f32 0.25, %v15853_v21  ;;  %v15857_v30 = vpack.c.bf16 %v15855_v40, %v15855_v40 }
 0x8a0   : > { %v15858_v23 = vpack.c.bf16 %v15856_v20, %v15856_v20 }
 0x8a2   : > { %16020 = vmatprep.mubr.bf16.mxu1 %v15858_v23 }
 0x8a3   : > { %16021 = vmatmul.mubr.bf16.vlgmr.msra.gmra.mxu1 %v15857_v30 }
 0x963   : > { %v17390_v19 = vpop.f32.mrf.mxu1 }
 0x965   : > { %v17391_v57 = vpop.f32.mrf.mxu1 }
 0x966   : > { %v17392_v10 = vadd.f32 %v17391_v57, %v17390_v19 }
 0x967   : > { %v17393_v22 = vpop.f32.mrf.mxu1 }
 0x968   : > { %v16023_v9 = vadd.f32 %v17392_v10, %v15891_v43 }
 0x969   : > { %v17394_v51 = vpop.f32.mrf.mxu1 }
 0x96a   : > { %v16028_v39 = vmax.f32 %v16023_v9, 0.0 }
 0x96c   : > { %v16029_v58 = vpack.c.bf16 %v16028_v39, %v16028_v39 }
 0x96e   : > { %17486 = vmatmul.mubr.bf16.vlgmr.msra.gmra.mxu0 %v16029_v58 }
 0xa2e   : > { %v16129_v53 = vpop.f32.mrf.mxu0 }
 0xa2f   : > { %v16130_v3 = vadd.f32 %v16129_v53, %v16046_v32 }
 0xa30   : > { %v17487_v7 = vpop.f32.mrf.mxu0 }
 0xa31   : > { %16136 = vst.msk [vmem:[%s438_s18] sm:$0x1] %vm16135_vm14, %v16130_v3 }
 0xa32   : > { %v16132_v16 = vpop.f32.mrf.mxu0 }
 0xa34   : > { %v17488_v11 = vpop.f32.mrf.mxu0 }
 0xa35 PF: > { %s25_s27 = sadd.s32 1, %s18419_s27  }
 0xa36   : > { %p22_p4 = scmp.ge.s32.totalorder %s25_s27, 4  }
 0xa38   :  { %24 = sbr.rel (!%p22_p4) target bundleno = 3 (0x3), region = 129 }

</bundles_post_ra>
